<compile_context>
chip_gen: v7x
topology: tpu7x:2x2x1
jax: 0.10.0
libtpu: 0.0.40
codegen_flags: <defaults>
</compile_context>

<pallas_src>
import functools

import jax
import jax.numpy as jnp
from jax.experimental import pallas as pl
from jax.experimental.pallas import tpu as pltpu  # noqa: F401  (TPU backend assumed)


# ---------------------------------------------------------------------------
# Pallas kernels
# ---------------------------------------------------------------------------
def _enc_conv_kernel(a_ref, w_ref, b_ref, o_ref, *, activation):
    """Strided 3x3 conv as 9 accumulated matmuls.

    a_ref: (9, M, Cin) bf16 shifted taps, w_ref: (9, Cin, Cout) bf16,
    b_ref: (1, Cout) f32, o_ref: (M, Cout).
    """
    ntaps = a_ref.shape[0]
    acc = jnp.dot(a_ref[0], w_ref[0], preferred_element_type=jnp.float32)
    for t in range(1, ntaps):
        acc = acc + jnp.dot(a_ref[t], w_ref[t], preferred_element_type=jnp.float32)
    acc = acc + b_ref[...]
    if activation == "relu":
        acc = jnp.maximum(acc, 0.0)
    elif activation == "sigmoid":
        acc = jax.nn.sigmoid(acc)
    o_ref[...] = acc.astype(o_ref.dtype)


def _dec_conv_kernel(a_ref, w_ref, b_ref, o_ref, *, activation, tap_phase,
                     tap_view, cout):
    """4-phase sub-pixel transposed conv (k=3, s=2, p=1, output_padding=1).

    a_ref: (4, M, Cin) bf16 shifted input views (view = 2*a + b, shift (a,b)),
    w_ref: (9, Cin, Cout) bf16 per-tap matrices, b_ref: (1, Cout) f32,
    o_ref: (M, 4*Cout) with the 4 output parity phases grouped on the lane axis.
    """
    bias = b_ref[...]
    for p in range(4):
        acc = None
        for t in range(len(tap_phase)):
            if tap_phase[t] != p:
                continue
            d = jnp.dot(a_ref[tap_view[t]], w_ref[t],
                        preferred_element_type=jnp.float32)
            acc = d if acc is None else acc + d
        acc = acc + bias
        if activation == "relu":
            acc = jnp.maximum(acc, 0.0)
        elif activation == "sigmoid":
            acc = jax.nn.sigmoid(acc)
        o_ref[:, p * cout:(p + 1) * cout] = acc.astype(o_ref.dtype)


# ---------------------------------------------------------------------------
# XLA-side tap/view builders (cheap lane-dense NHWC slicing, no 9x im2col blowup)
# ---------------------------------------------------------------------------
def _enc_taps(x):
    """x: (N, H, W, C) NHWC -> (9, N*Ho*Wo, C) stride-2 3x3 taps (pad=1)."""
    n, h, w, c = x.shape
    ho, wo = h // 2, w // 2
    xp = jnp.pad(x, ((0, 0), (1, 1), (1, 1), (0, 0)))
    taps = []
    for dh in range(3):
        for dw in range(3):
            t = xp[:, dh:dh + 2 * ho - 1:2, dw:dw + 2 * wo - 1:2, :]
            taps.append(t.reshape(n * ho * wo, c))
    return jnp.stack(taps, axis=0)


def _dec_views(x):
    """x: (N, H, W, C) -> (4, N*H*W, C): views shifted by (a, b) in {0,1}^2 with
    zero padding at the bottom/right (view index = 2*a + b)."""
    n, h, w, c = x.shape
    xp = jnp.pad(x, ((0, 0), (0, 1), (0, 1), (0, 0)))
    views = []
    for a in range(2):
        for b in range(2):
            views.append(xp[:, a:a + h, b:b + w, :].reshape(n * h * w, c))
    return jnp.stack(views, axis=0)


# (output phase 2*ph+pw, input view 2*a+b, kh, kw) mapping for
# ConvTranspose2d(kernel=3, stride=2, padding=1, output_padding=1).
_DEC_TAPS = (
    (0, 0, 1, 1),
    (1, 0, 1, 2), (1, 1, 1, 0),
    (2, 0, 2, 1), (2, 2, 0, 1),
    (3, 0, 2, 2), (3, 1, 2, 0), (3, 2, 0, 2), (3, 3, 0, 0),
)
_DEC_TAP_PHASE = tuple(t[0] for t in _DEC_TAPS)
_DEC_TAP_VIEW = tuple(t[1] for t in _DEC_TAPS)


# ---------------------------------------------------------------------------
# Layer wrappers (one pallas_call per layer; all operands VMEM-resident blocks)
# ---------------------------------------------------------------------------
def conv2d_s2p1(x, wt, b, activation, out_dtype):
    """Conv2d(k=3, s=2, p=1) on NHWC x. wt: packed (9, Cin, Cout) bf16."""
    n, h, w, cin = x.shape
    cout = wt.shape[2]
    ho, wo = h // 2, w // 2
    m = n * ho * wo
    taps = _enc_taps(x)
    out = pl.pallas_call(
        functools.partial(_enc_conv_kernel, activation=activation),
        out_shape=jax.ShapeDtypeStruct((m, cout), out_dtype),
        grid=(1,),
        in_specs=[
            pl.BlockSpec((9, m, cin), lambda i: (0, 0, 0)),
            pl.BlockSpec((9, cin, cout), lambda i: (0, 0, 0)),
            pl.BlockSpec((1, cout), lambda i: (0, 0)),
        ],
        out_specs=pl.BlockSpec((m, cout), lambda i: (0, 0)),
    )(taps, wt, b)
    return out.reshape(n, ho, wo, cout)


def conv_transpose2d_s2p1op1(x, wt, b, cout, activation, out_dtype):
    """ConvTranspose2d(k=3, s=2, p=1, output_padding=1) via 4-phase sub-pixel conv.

    x: NHWC (N, H, W, Cin); wt: (9, Cin, Cp) packed per-tap matrices, Cp >= cout.
    """
    n, h, w, cin = x.shape
    cp = wt.shape[2]
    m = n * h * w
    views = _dec_views(x)
    out = pl.pallas_call(
        functools.partial(_dec_conv_kernel, activation=activation,
                          tap_phase=_DEC_TAP_PHASE, tap_view=_DEC_TAP_VIEW,
                          cout=cp),
        out_shape=jax.ShapeDtypeStruct((m, 4 * cp), out_dtype),
        grid=(1,),
        in_specs=[
            pl.BlockSpec((4, m, cin), lambda i: (0, 0, 0)),
            pl.BlockSpec((9, cin, cp), lambda i: (0, 0, 0)),
            pl.BlockSpec((1, cp), lambda i: (0, 0)),
        ],
        out_specs=pl.BlockSpec((m, 4 * cp), lambda i: (0, 0)),
    )(views, wt, b)
    # depth-to-space: (M, 4*Cp) -> (N, 2H, 2W, cout); padded lanes sliced away.
    out = out.reshape(n, h, w, 2, 2, cp)[..., :cout]
    out = out.transpose(0, 1, 3, 2, 4, 5).reshape(n, 2 * h, 2 * w, cout)
    return out


# ---------------------------------------------------------------------------
# Parameters
# ---------------------------------------------------------------------------
_ENC_CH = ((3, 64), (64, 128), (128, 256), (256, 512))
_DEC_CH = ((512, 256), (256, 128), (128, 64), (64, 3))


def init_params(key):
    """PyTorch-layout weights with PyTorch-default-like uniform init."""
    params = {"enc": [], "dec": []}
    for cin, cout in _ENC_CH:
        key, k1, k2 = jax.random.split(key, 3)
        bound = 1.0 / float(jnp.sqrt(cin * 9.0))
        w = jax.random.uniform(k1, (cout, cin, 3, 3), jnp.float32, -bound, bound)
        b = jax.random.uniform(k2, (cout,), jnp.float32, -bound, bound)
        params["enc"].append((w, b))
    for cin, cout in _DEC_CH:
        key, k1, k2 = jax.random.split(key, 3)
        bound = 1.0 / float(jnp.sqrt(cout * 9.0))
        w = jax.random.uniform(k1, (cin, cout, 3, 3), jnp.float32, -bound, bound)
        b = jax.random.uniform(k2, (cout,), jnp.float32, -bound, bound)
        params["dec"].append((w, b))
    return params


def pack_params(params):
    """Pack PyTorch-layout weights into kernel-ready stacked bf16 tap matrices."""
    enc = []
    for (w, b) in params["enc"]:
        cout = w.shape[0]
        wt = jnp.stack([w[:, :, dh, dw].T
                        for dh in range(3) for dw in range(3)], axis=0)
        enc.append((wt.astype(jnp.bfloat16),
                    b.reshape(1, cout).astype(jnp.float32)))
    dec = []
    for (w, b) in params["dec"]:
        cout = w.shape[1]
        cp = cout if cout >= 8 else 128   # pad tiny Cout to a lane-dense slab
        mats = []
        for (_, _, kh, kw) in _DEC_TAPS:
            m = w[:, :, kh, kw]           # (Cin, Cout), ConvTranspose layout
            if cp != cout:
                m = jnp.pad(m, ((0, 0), (0, cp - cout)))
            mats.append(m)
        wt = jnp.stack(mats, axis=0).astype(jnp.bfloat16)
        bp = b if cp == cout else jnp.pad(b, (0, cp - cout))
        dec.append((wt, bp.reshape(1, cp).astype(jnp.float32)))
    return {"enc": enc, "dec": dec}


# ---------------------------------------------------------------------------
# Forward pass (NCHW module I/O, NHWC internally)
# ---------------------------------------------------------------------------
def autoencoder_forward(packed, x_nchw):
    h = jnp.transpose(x_nchw, (0, 2, 3, 1)).astype(jnp.bfloat16)  # NCHW -> NHWC once
    for (wt, b) in packed["enc"]:
        h = conv2d_s2p1(h, wt, b, "relu", jnp.bfloat16)
    n_dec = len(packed["dec"])
    for i, (wt, b) in enumerate(packed["dec"]):
        last = i == n_dec - 1
        cout = _DEC_CH[i][1]
        h = conv_transpose2d_s2p1op1(
            h, wt, b, cout,
            "sigmoid" if last else "relu",
            jnp.float32 if last else jnp.bfloat16)
    return jnp.transpose(h, (0, 3, 1, 2))                          # NHWC -> NCHW once


if __name__ == "__main__":
    key = jax.random.PRNGKey(0)
    pkey, xkey = jax.random.split(key)
    params = init_params(pkey)
    packed = pack_params(params)
    x = jax.random.uniform(xkey, (2, 3, 16, 16), jnp.float32)      # NCHW, like PyTorch

    fwd = jax.jit(autoencoder_forward)
    out = jax.block_until_ready(fwd(packed, x))

    assert out.shape == (2, 3, 16, 16), out.shape
    assert bool(jnp.all(jnp.isfinite(out)))
    assert bool(jnp.all((out >= 0.0) & (out <= 1.0)))              # sigmoid output range
    print("KERNEL_OK")
</pallas_src>

<mosaic_0001>
module attributes {stable_mosaic.version = 11 : i64} {
  func.func @_enc_conv_kernel(%arg0: i32, %arg1: memref<9x128x3xbf16, #tpu.memory_space<vmem>>, %arg2: memref<9x3x64xbf16, #tpu.memory_space<vmem>>, %arg3: memref<1x64xf32, #tpu.memory_space<vmem>>, %arg4: memref<128x64xbf16, #tpu.memory_space<vmem>>) attributes {dimension_semantics = [#tpu.dimension_semantics<arbitrary>], iteration_bounds = array<i64: 1>, scalar_prefetch = 0 : i64, scratch_operands = 0 : i64, tpu.core_type = #tpu.core_type<tc>, window_params = [{pipeline_mode = #tpu.pipeline_mode<synchronous>, transform_indices = @transform_0, window_bounds = array<i64: 9, 128, 3>}, {pipeline_mode = #tpu.pipeline_mode<synchronous>, transform_indices = @transform_1, window_bounds = array<i64: 9, 3, 64>}, {pipeline_mode = #tpu.pipeline_mode<synchronous>, transform_indices = @transform_2, window_bounds = array<i64: 1, 64>}, {pipeline_mode = #tpu.pipeline_mode<synchronous>, transform_indices = @transform_3, window_bounds = array<i64: 128, 64>}]} {
    %c0 = arith.constant 0 : index
    %c0_0 = arith.constant 0 : index
    %c0_1 = arith.constant 0 : index
    %0 = vector.load %arg1[%c0, %c0_0, %c0_1] : memref<9x128x3xbf16, #tpu.memory_space<vmem>>, vector<1x128x3xbf16>
    %1 = vector.shape_cast %0 : vector<1x128x3xbf16> to vector<128x3xbf16>
    %c0_2 = arith.constant 0 : index
    %c0_3 = arith.constant 0 : index
    %c0_4 = arith.constant 0 : index
    %2 = vector.load %arg2[%c0_2, %c0_3, %c0_4] : memref<9x3x64xbf16, #tpu.memory_space<vmem>>, vector<1x3x64xbf16>
    %3 = vector.shape_cast %2 : vector<1x3x64xbf16> to vector<3x64xbf16>
    %cst = arith.constant dense<0.000000e+00> : vector<128x64xf32>
    %4 = tpu.matmul %1, %3, %cst {dimension_numbers = #tpu.dot_dimension_numbers<[1], [0], [0], [1], [0, 0, 1, 1], [], []>} : vector<128x3xbf16>, vector<3x64xbf16>, vector<128x64xf32> -> vector<128x64xf32>
    %c1 = arith.constant 1 : index
    %c0_5 = arith.constant 0 : index
    %c0_6 = arith.constant 0 : index
    %5 = vector.load %arg1[%c1, %c0_5, %c0_6] : memref<9x128x3xbf16, #tpu.memory_space<vmem>>, vector<1x128x3xbf16>
    %6 = vector.shape_cast %5 : vector<1x128x3xbf16> to vector<128x3xbf16>
    %c1_7 = arith.constant 1 : index
    %c0_8 = arith.constant 0 : index
    %c0_9 = arith.constant 0 : index
    %7 = vector.load %arg2[%c1_7, %c0_8, %c0_9] : memref<9x3x64xbf16, #tpu.memory_space<vmem>>, vector<1x3x64xbf16>
    %8 = vector.shape_cast %7 : vector<1x3x64xbf16> to vector<3x64xbf16>
    %cst_10 = arith.constant dense<0.000000e+00> : vector<128x64xf32>
    %9 = tpu.matmul %6, %8, %cst_10 {dimension_numbers = #tpu.dot_dimension_numbers<[1], [0], [0], [1], [0, 0, 1, 1], [], []>} : vector<128x3xbf16>, vector<3x64xbf16>, vector<128x64xf32> -> vector<128x64xf32>
    %10 = arith.addf %4, %9 : vector<128x64xf32>
    %c2 = arith.constant 2 : index
    %c0_11 = arith.constant 0 : index
    %c0_12 = arith.constant 0 : index
    %11 = vector.load %arg1[%c2, %c0_11, %c0_12] : memref<9x128x3xbf16, #tpu.memory_space<vmem>>, vector<1x128x3xbf16>
    %12 = vector.shape_cast %11 : vector<1x128x3xbf16> to vector<128x3xbf16>
    %c2_13 = arith.constant 2 : index
    %c0_14 = arith.constant 0 : index
    %c0_15 = arith.constant 0 : index
    %13 = vector.load %arg2[%c2_13, %c0_14, %c0_15] : memref<9x3x64xbf16, #tpu.memory_space<vmem>>, vector<1x3x64xbf16>
    %14 = vector.shape_cast %13 : vector<1x3x64xbf16> to vector<3x64xbf16>
    %cst_16 = arith.constant dense<0.000000e+00> : vector<128x64xf32>
    %15 = tpu.matmul %12, %14, %cst_16 {dimension_numbers = #tpu.dot_dimension_numbers<[1], [0], [0], [1], [0, 0, 1, 1], [], []>} : vector<128x3xbf16>, vector<3x64xbf16>, vector<128x64xf32> -> vector<128x64xf32>
    %16 = arith.addf %10, %15 : vector<128x64xf32>
    %c3 = arith.constant 3 : index
    %c0_17 = arith.constant 0 : index
    %c0_18 = arith.constant 0 : index
    %17 = vector.load %arg1[%c3, %c0_17, %c0_18] : memref<9x128x3xbf16, #tpu.memory_space<vmem>>, vector<1x128x3xbf16>
    %18 = vector.shape_cast %17 : vector<1x128x3xbf16> to vector<128x3xbf16>
    %c3_19 = arith.constant 3 : index
    %c0_20 = arith.constant 0 : index
    %c0_21 = arith.constant 0 : index
    %19 = vector.load %arg2[%c3_19, %c0_20, %c0_21] : memref<9x3x64xbf16, #tpu.memory_space<vmem>>, vector<1x3x64xbf16>
    %20 = vector.shape_cast %19 : vector<1x3x64xbf16> to vector<3x64xbf16>
    %cst_22 = arith.constant dense<0.000000e+00> : vector<128x64xf32>
    %21 = tpu.matmul %18, %20, %cst_22 {dimension_numbers = #tpu.dot_dimension_numbers<[1], [0], [0], [1], [0, 0, 1, 1], [], []>} : vector<128x3xbf16>, vector<3x64xbf16>, vector<128x64xf32> -> vector<128x64xf32>
    %22 = arith.addf %16, %21 : vector<128x64xf32>
    %c4 = arith.constant 4 : index
    %c0_23 = arith.constant 0 : index
    %c0_24 = arith.constant 0 : index
    %23 = vector.load %arg1[%c4, %c0_23, %c0_24] : memref<9x128x3xbf16, #tpu.memory_space<vmem>>, vector<1x128x3xbf16>
    %24 = vector.shape_cast %23 : vector<1x128x3xbf16> to vector<128x3xbf16>
    %c4_25 = arith.constant 4 : index
    %c0_26 = arith.constant 0 : index
    %c0_27 = arith.constant 0 : index
    %25 = vector.load %arg2[%c4_25, %c0_26, %c0_27] : memref<9x3x64xbf16, #tpu.memory_space<vmem>>, vector<1x3x64xbf16>
    %26 = vector.shape_cast %25 : vector<1x3x64xbf16> to vector<3x64xbf16>
    %cst_28 = arith.constant dense<0.000000e+00> : vector<128x64xf32>
    %27 = tpu.matmul %24, %26, %cst_28 {dimension_numbers = #tpu.dot_dimension_numbers<[1], [0], [0], [1], [0, 0, 1, 1], [], []>} : vector<128x3xbf16>, vector<3x64xbf16>, vector<128x64xf32> -> vector<128x64xf32>
    %28 = arith.addf %22, %27 : vector<128x64xf32>
    %c5 = arith.constant 5 : index
    %c0_29 = arith.constant 0 : index
    %c0_30 = arith.constant 0 : index
    %29 = vector.load %arg1[%c5, %c0_29, %c0_30] : memref<9x128x3xbf16, #tpu.memory_space<vmem>>, vector<1x128x3xbf16>
    %30 = vector.shape_cast %29 : vector<1x128x3xbf16> to vector<128x3xbf16>
    %c5_31 = arith.constant 5 : index
    %c0_32 = arith.constant 0 : index
    %c0_33 = arith.constant 0 : index
    %31 = vector.load %arg2[%c5_31, %c0_32, %c0_33] : memref<9x3x64xbf16, #tpu.memory_space<vmem>>, vector<1x3x64xbf16>
    %32 = vector.shape_cast %31 : vector<1x3x64xbf16> to vector<3x64xbf16>
    %cst_34 = arith.constant dense<0.000000e+00> : vector<128x64xf32>
    %33 = tpu.matmul %30, %32, %cst_34 {dimension_numbers = #tpu.dot_dimension_numbers<[1], [0], [0], [1], [0, 0, 1, 1], [], []>} : vector<128x3xbf16>, vector<3x64xbf16>, vector<128x64xf32> -> vector<128x64xf32>
    %34 = arith.addf %28, %33 : vector<128x64xf32>
    %c6 = arith.constant 6 : index
    %c0_35 = arith.constant 0 : index
    %c0_36 = arith.constant 0 : index
    %35 = vector.load %arg1[%c6, %c0_35, %c0_36] : memref<9x128x3xbf16, #tpu.memory_space<vmem>>, vector<1x128x3xbf16>
    %36 = vector.shape_cast %35 : vector<1x128x3xbf16> to vector<128x3xbf16>
    %c6_37 = arith.constant 6 : index
    %c0_38 = arith.constant 0 : index
    %c0_39 = arith.constant 0 : index
    %37 = vector.load %arg2[%c6_37, %c0_38, %c0_39] : memref<9x3x64xbf16, #tpu.memory_space<vmem>>, vector<1x3x64xbf16>
    %38 = vector.shape_cast %37 : vector<1x3x64xbf16> to vector<3x64xbf16>
    %cst_40 = arith.constant dense<0.000000e+00> : vector<128x64xf32>
    %39 = tpu.matmul %36, %38, %cst_40 {dimension_numbers = #tpu.dot_dimension_numbers<[1], [0], [0], [1], [0, 0, 1, 1], [], []>} : vector<128x3xbf16>, vector<3x64xbf16>, vector<128x64xf32> -> vector<128x64xf32>
    %40 = arith.addf %34, %39 : vector<128x64xf32>
    %c7 = arith.constant 7 : index
    %c0_41 = arith.constant 0 : index
    %c0_42 = arith.constant 0 : index
    %41 = vector.load %arg1[%c7, %c0_41, %c0_42] : memref<9x128x3xbf16, #tpu.memory_space<vmem>>, vector<1x128x3xbf16>
    %42 = vector.shape_cast %41 : vector<1x128x3xbf16> to vector<128x3xbf16>
    %c7_43 = arith.constant 7 : index
    %c0_44 = arith.constant 0 : index
    %c0_45 = arith.constant 0 : index
    %43 = vector.load %arg2[%c7_43, %c0_44, %c0_45] : memref<9x3x64xbf16, #tpu.memory_space<vmem>>, vector<1x3x64xbf16>
    %44 = vector.shape_cast %43 : vector<1x3x64xbf16> to vector<3x64xbf16>
    %cst_46 = arith.constant dense<0.000000e+00> : vector<128x64xf32>
    %45 = tpu.matmul %42, %44, %cst_46 {dimension_numbers = #tpu.dot_dimension_numbers<[1], [0], [0], [1], [0, 0, 1, 1], [], []>} : vector<128x3xbf16>, vector<3x64xbf16>, vector<128x64xf32> -> vector<128x64xf32>
    %46 = arith.addf %40, %45 : vector<128x64xf32>
    %c8 = arith.constant 8 : index
    %c0_47 = arith.constant 0 : index
    %c0_48 = arith.constant 0 : index
    %47 = vector.load %arg1[%c8, %c0_47, %c0_48] : memref<9x128x3xbf16, #tpu.memory_space<vmem>>, vector<1x128x3xbf16>
    %48 = vector.shape_cast %47 : vector<1x128x3xbf16> to vector<128x3xbf16>
    %c8_49 = arith.constant 8 : index
    %c0_50 = arith.constant 0 : index
    %c0_51 = arith.constant 0 : index
    %49 = vector.load %arg2[%c8_49, %c0_50, %c0_51] : memref<9x3x64xbf16, #tpu.memory_space<vmem>>, vector<1x3x64xbf16>
    %50 = vector.shape_cast %49 : vector<1x3x64xbf16> to vector<3x64xbf16>
    %cst_52 = arith.constant dense<0.000000e+00> : vector<128x64xf32>
    %51 = tpu.matmul %48, %50, %cst_52 {dimension_numbers = #tpu.dot_dimension_numbers<[1], [0], [0], [1], [0, 0, 1, 1], [], []>} : vector<128x3xbf16>, vector<3x64xbf16>, vector<128x64xf32> -> vector<128x64xf32>
    %52 = arith.addf %46, %51 : vector<128x64xf32>
    %c0_53 = arith.constant 0 : index
    %c0_54 = arith.constant 0 : index
    %53 = vector.load %arg3[%c0_53, %c0_54] : memref<1x64xf32, #tpu.memory_space<vmem>>, vector<1x64xf32>
    %54 = vector.broadcast %53 : vector<1x64xf32> to vector<128x64xf32>
    %55 = arith.addf %52, %54 : vector<128x64xf32>
    %cst_55 = arith.constant 0.000000e+00 : f32
    %56 = vector.broadcast %cst_55 : f32 to vector<128x64xf32>
    %57 = arith.maximumf %55, %56 : vector<128x64xf32>
    %58 = arith.truncf %57 : vector<128x64xf32> to vector<128x64xbf16>
    %c0_56 = arith.constant 0 : index
    %c0_57 = arith.constant 0 : index
    %59 = vector.load %arg4[%c0_56, %c0_57] : memref<128x64xbf16, #tpu.memory_space<vmem>>, vector<128x64xbf16>
    tpu.vector_store %arg4[%c0_56, %c0_57], %58 {strides = array<i32>} : memref<128x64xbf16, #tpu.memory_space<vmem>>, vector<128x64xbf16>,
    return
  }
  func.func @transform_0(%arg0: i32) -> (i32, i32, i32) {
    %c0_i32 = arith.constant 0 : i32
    %c0_i32_0 = arith.constant 0 : i32
    %c0_i32_1 = arith.constant 0 : i32
    %c0_i32_2 = arith.constant 0 : i32
    return %c0_i32, %c0_i32_0, %c0_i32_1 : i32, i32, i32
  }
  func.func @transform_1(%arg0: i32) -> (i32, i32, i32) {
    %c0_i32 = arith.constant 0 : i32
    %c0_i32_0 = arith.constant 0 : i32
    %c0_i32_1 = arith.constant 0 : i32
    %c0_i32_2 = arith.constant 0 : i32
    return %c0_i32, %c0_i32_0, %c0_i32_1 : i32, i32, i32
  }
  func.func @transform_2(%arg0: i32) -> (i32, i32) {
    %c0_i32 = arith.constant 0 : i32
    %c0_i32_0 = arith.constant 0 : i32
    %c0_i32_1 = arith.constant 0 : i32
    return %c0_i32, %c0_i32_0 : i32, i32
  }
  func.func @transform_3(%arg0: i32) -> (i32, i32) {
    %c0_i32 = arith.constant 0 : i32
    %c0_i32_0 = arith.constant 0 : i32
    %c0_i32_1 = arith.constant 0 : i32
    return %c0_i32, %c0_i32_0 : i32, i32
  }
}

module attributes {stable_mosaic.version = 11 : i64} {
  func.func @_enc_conv_kernel(%arg0: i32, %arg1: memref<9x32x64xbf16, #tpu.memory_space<vmem>>, %arg2: memref<9x64x128xbf16, #tpu.memory_space<vmem>>, %arg3: memref<1x128xf32, #tpu.memory_space<vmem>>, %arg4: memref<32x128xbf16, #tpu.memory_space<vmem>>) attributes {dimension_semantics = [#tpu.dimension_semantics<arbitrary>], iteration_bounds = array<i64: 1>, scalar_prefetch = 0 : i64, scratch_operands = 0 : i64, tpu.core_type = #tpu.core_type<tc>, window_params = [{pipeline_mode = #tpu.pipeline_mode<synchronous>, transform_indices = @transform_0, window_bounds = array<i64: 9, 32, 64>}, {pipeline_mode = #tpu.pipeline_mode<synchronous>, transform_indices = @transform_1, window_bounds = array<i64: 9, 64, 128>}, {pipeline_mode = #tpu.pipeline_mode<synchronous>, transform_indices = @transform_2, window_bounds = array<i64: 1, 128>}, {pipeline_mode = #tpu.pipeline_mode<synchronous>, transform_indices = @transform_3, window_bounds = array<i64: 32, 128>}]} {
    %c0 = arith.constant 0 : index
    %c0_0 = arith.constant 0 : index
    %c0_1 = arith.constant 0 : index
    %0 = vector.load %arg1[%c0, %c0_0, %c0_1] : memref<9x32x64xbf16, #tpu.memory_space<vmem>>, vector<1x32x64xbf16>
    %1 = vector.shape_cast %0 : vector<1x32x64xbf16> to vector<32x64xbf16>
    %c0_2 = arith.constant 0 : index
    %c0_3 = arith.constant 0 : index
    %c0_4 = arith.constant 0 : index
    %2 = vector.load %arg2[%c0_2, %c0_3, %c0_4] : memref<9x64x128xbf16, #tpu.memory_space<vmem>>, vector<1x64x128xbf16>
    %3 = vector.shape_cast %2 : vector<1x64x128xbf16> to vector<64x128xbf16>
    %cst = arith.constant dense<0.000000e+00> : vector<32x128xf32>
    %4 = tpu.matmul %1, %3, %cst {dimension_numbers = #tpu.dot_dimension_numbers<[1], [0], [0], [1], [0, 0, 1, 1], [], []>} : vector<32x64xbf16>, vector<64x128xbf16>, vector<32x128xf32> -> vector<32x128xf32>
    %c1 = arith.constant 1 : index
    %c0_5 = arith.constant 0 : index
    %c0_6 = arith.constant 0 : index
    %5 = vector.load %arg1[%c1, %c0_5, %c0_6] : memref<9x32x64xbf16, #tpu.memory_space<vmem>>, vector<1x32x64xbf16>
    %6 = vector.shape_cast %5 : vector<1x32x64xbf16> to vector<32x64xbf16>
    %c1_7 = arith.constant 1 : index
    %c0_8 = arith.constant 0 : index
    %c0_9 = arith.constant 0 : index
    %7 = vector.load %arg2[%c1_7, %c0_8, %c0_9] : memref<9x64x128xbf16, #tpu.memory_space<vmem>>, vector<1x64x128xbf16>
    %8 = vector.shape_cast %7 : vector<1x64x128xbf16> to vector<64x128xbf16>
    %cst_10 = arith.constant dense<0.000000e+00> : vector<32x128xf32>
    %9 = tpu.matmul %6, %8, %cst_10 {dimension_numbers = #tpu.dot_dimension_numbers<[1], [0], [0], [1], [0, 0, 1, 1], [], []>} : vector<32x64xbf16>, vector<64x128xbf16>, vector<32x128xf32> -> vector<32x128xf32>
    %10 = arith.addf %4, %9 : vector<32x128xf32>
    %c2 = arith.constant 2 : index
    %c0_11 = arith.constant 0 : index
    %c0_12 = arith.constant 0 : index
    %11 = vector.load %arg1[%c2, %c0_11, %c0_12] : memref<9x32x64xbf16, #tpu.memory_space<vmem>>, vector<1x32x64xbf16>
    %12 = vector.shape_cast %11 : vector<1x32x64xbf16> to vector<32x64xbf16>
    %c2_13 = arith.constant 2 : index
    %c0_14 = arith.constant 0 : index
    %c0_15 = arith.constant 0 : index
    %13 = vector.load %arg2[%c2_13, %c0_14, %c0_15] : memref<9x64x128xbf16, #tpu.memory_space<vmem>>, vector<1x64x128xbf16>
    %14 = vector.shape_cast %13 : vector<1x64x128xbf16> to vector<64x128xbf16>
    %cst_16 = arith.constant dense<0.000000e+00> : vector<32x128xf32>
    %15 = tpu.matmul %12, %14, %cst_16 {dimension_numbers = #tpu.dot_dimension_numbers<[1], [0], [0], [1], [0, 0, 1, 1], [], []>} : vector<32x64xbf16>, vector<64x128xbf16>, vector<32x128xf32> -> vector<32x128xf32>
    %16 = arith.addf %10, %15 : vector<32x128xf32>
    %c3 = arith.constant 3 : index
    %c0_17 = arith.constant 0 : index
    %c0_18 = arith.constant 0 : index
    %17 = vector.load %arg1[%c3, %c0_17, %c0_18] : memref<9x32x64xbf16, #tpu.memory_space<vmem>>, vector<1x32x64xbf16>
    %18 = vector.shape_cast %17 : vector<1x32x64xbf16> to vector<32x64xbf16>
    %c3_19 = arith.constant 3 : index
    %c0_20 = arith.constant 0 : index
    %c0_21 = arith.constant 0 : index
    %19 = vector.load %arg2[%c3_19, %c0_20, %c0_21] : memref<9x64x128xbf16, #tpu.memory_space<vmem>>, vector<1x64x128xbf16>
    %20 = vector.shape_cast %19 : vector<1x64x128xbf16> to vector<64x128xbf16>
    %cst_22 = arith.constant dense<0.000000e+00> : vector<32x128xf32>
    %21 = tpu.matmul %18, %20, %cst_22 {dimension_numbers = #tpu.dot_dimension_numbers<[1], [0], [0], [1], [0, 0, 1, 1], [], []>} : vector<32x64xbf16>, vector<64x128xbf16>, vector<32x128xf32> -> vector<32x128xf32>
    %22 = arith.addf %16, %21 : vector<32x128xf32>
    %c4 = arith.constant 4 : index
    %c0_23 = arith.constant 0 : index
    %c0_24 = arith.constant 0 : index
    %23 = vector.load %arg1[%c4, %c0_23, %c0_24] : memref<9x32x64xbf16, #tpu.memory_space<vmem>>, vector<1x32x64xbf16>
    %24 = vector.shape_cast %23 : vector<1x32x64xbf16> to vector<32x64xbf16>
    %c4_25 = arith.constant 4 : index
    %c0_26 = arith.constant 0 : index
    %c0_27 = arith.constant 0 : index
    %25 = vector.load %arg2[%c4_25, %c0_26, %c0_27] : memref<9x64x128xbf16, #tpu.memory_space<vmem>>, vector<1x64x128xbf16>
    %26 = vector.shape_cast %25 : vector<1x64x128xbf16> to vector<64x128xbf16>
    %cst_28 = arith.constant dense<0.000000e+00> : vector<32x128xf32>
    %27 = tpu.matmul %24, %26, %cst_28 {dimension_numbers = #tpu.dot_dimension_numbers<[1], [0], [0], [1], [0, 0, 1, 1], [], []>} : vector<32x64xbf16>, vector<64x128xbf16>, vector<32x128xf32> -> vector<32x128xf32>
    %28 = arith.addf %22, %27 : vector<32x128xf32>
    %c5 = arith.constant 5 : index
    %c0_29 = arith.constant 0 : index
    %c0_30 = arith.constant 0 : index
    %29 = vector.load %arg1[%c5, %c0_29, %c0_30] : memref<9x32x64xbf16, #tpu.memory_space<vmem>>, vector<1x32x64xbf16>
    %30 = vector.shape_cast %29 : vector<1x32x64xbf16> to vector<32x64xbf16>
    %c5_31 = arith.constant 5 : index
    %c0_32 = arith.constant 0 : index
    %c0_33 = arith.constant 0 : index
    %31 = vector.load %arg2[%c5_31, %c0_32, %c0_33] : memref<9x64x128xbf16, #tpu.memory_space<vmem>>, vector<1x64x128xbf16>
    %32 = vector.shape_cast %31 : vector<1x64x128xbf16> to vector<64x128xbf16>
    %cst_34 = arith.constant dense<0.000000e+00> : vector<32x128xf32>
    %33 = tpu.matmul %30, %32, %cst_34 {dimension_numbers = #tpu.dot_dimension_numbers<[1], [0], [0], [1], [0, 0, 1, 1], [], []>} : vector<32x64xbf16>, vector<64x128xbf16>, vector<32x128xf32> -> vector<32x128xf32>
    %34 = arith.addf %28, %33 : vector<32x128xf32>
    %c6 = arith.constant 6 : index
    %c0_35 = arith.constant 0 : index
    %c0_36 = arith.constant 0 : index
    %35 = vector.load %arg1[%c6, %c0_35, %c0_36] : memref<9x32x64xbf16, #tpu.memory_space<vmem>>, vector<1x32x64xbf16>
    %36 = vector.shape_cast %35 : vector<1x32x64xbf16> to vector<32x64xbf16>
    %c6_37 = arith.constant 6 : index
    %c0_38 = arith.constant 0 : index
    %c0_39 = arith.constant 0 : index
    %37 = vector.load %arg2[%c6_37, %c0_38, %c0_39] : memref<9x64x128xbf16, #tpu.memory_space<vmem>>, vector<1x64x128xbf16>
    %38 = vector.shape_cast %37 : vector<1x64x128xbf16> to vector<64x128xbf16>
    %cst_40 = arith.constant dense<0.000000e+00> : vector<32x128xf32>
    %39 = tpu.matmul %36, %38, %cst_40 {dimension_numbers = #tpu.dot_dimension_numbers<[1], [0], [0], [1], [0, 0, 1, 1], [], []>} : vector<32x64xbf16>, vector<64x128xbf16>, vector<32x128xf32> -> vector<32x128xf32>
    %40 = arith.addf %34, %39 : vector<32x128xf32>
    %c7 = arith.constant 7 : index
    %c0_41 = arith.constant 0 : index
    %c0_42 = arith.constant 0 : index
    %41 = vector.load %arg1[%c7, %c0_41, %c0_42] : memref<9x32x64xbf16, #tpu.memory_space<vmem>>, vector<1x32x64xbf16>
    %42 = vector.shape_cast %41 : vector<1x32x64xbf16> to vector<32x64xbf16>
    %c7_43 = arith.constant 7 : index
    %c0_44 = arith.constant 0 : index
    %c0_45 = arith.constant 0 : index
    %43 = vector.load %arg2[%c7_43, %c0_44, %c0_45] : memref<9x64x128xbf16, #tpu.memory_space<vmem>>, vector<1x64x128xbf16>
    %44 = vector.shape_cast %43 : vector<1x64x128xbf16> to vector<64x128xbf16>
    %cst_46 = arith.constant dense<0.000000e+00> : vector<32x128xf32>
    %45 = tpu.matmul %42, %44, %cst_46 {dimension_numbers = #tpu.dot_dimension_numbers<[1], [0], [0], [1], [0, 0, 1, 1], [], []>} : vector<32x64xbf16>, vector<64x128xbf16>, vector<32x128xf32> -> vector<32x128xf32>
    %46 = arith.addf %40, %45 : vector<32x128xf32>
    %c8 = arith.constant 8 : index
    %c0_47 = arith.constant 0 : index
    %c0_48 = arith.constant 0 : index
    %47 = vector.load %arg1[%c8, %c0_47, %c0_48] : memref<9x32x64xbf16, #tpu.memory_space<vmem>>, vector<1x32x64xbf16>
    %48 = vector.shape_cast %47 : vector<1x32x64xbf16> to vector<32x64xbf16>
    %c8_49 = arith.constant 8 : index
    %c0_50 = arith.constant 0 : index
    %c0_51 = arith.constant 0 : index
    %49 = vector.load %arg2[%c8_49, %c0_50, %c0_51] : memref<9x64x128xbf16, #tpu.memory_space<vmem>>, vector<1x64x128xbf16>
    %50 = vector.shape_cast %49 : vector<1x64x128xbf16> to vector<64x128xbf16>
    %cst_52 = arith.constant dense<0.000000e+00> : vector<32x128xf32>
    %51 = tpu.matmul %48, %50, %cst_52 {dimension_numbers = #tpu.dot_dimension_numbers<[1], [0], [0], [1], [0, 0, 1, 1], [], []>} : vector<32x64xbf16>, vector<64x128xbf16>, vector<32x128xf32> -> vector<32x128xf32>
    %52 = arith.addf %46, %51 : vector<32x128xf32>
    %c0_53 = arith.constant 0 : index
    %c0_54 = arith.constant 0 : index
    %53 = vector.load %arg3[%c0_53, %c0_54] : memref<1x128xf32, #tpu.memory_space<vmem>>, vector<1x128xf32>
    %54 = vector.broadcast %53 : vector<1x128xf32> to vector<32x128xf32>
    %55 = arith.addf %52, %54 : vector<32x128xf32>
    %cst_55 = arith.constant 0.000000e+00 : f32
    %56 = vector.broadcast %cst_55 : f32 to vector<32x128xf32>
    %57 = arith.maximumf %55, %56 : vector<32x128xf32>
    %58 = arith.truncf %57 : vector<32x128xf32> to vector<32x128xbf16>
    %c0_56 = arith.constant 0 : index
    %c0_57 = arith.constant 0 : index
    %59 = vector.load %arg4[%c0_56, %c0_57] : memref<32x128xbf16, #tpu.memory_space<vmem>>, vector<32x128xbf16>
    tpu.vector_store %arg4[%c0_56, %c0_57], %58 {strides = array<i32>} : memref<32x128xbf16, #tpu.memory_space<vmem>>, vector<32x128xbf16>,
    return
  }
  func.func @transform_0(%arg0: i32) -> (i32, i32, i32) {
    %c0_i32 = arith.constant 0 : i32
    %c0_i32_0 = arith.constant 0 : i32
    %c0_i32_1 = arith.constant 0 : i32
    %c0_i32_2 = arith.constant 0 : i32
    return %c0_i32, %c0_i32_0, %c0_i32_1 : i32, i32, i32
  }
  func.func @transform_1(%arg0: i32) -> (i32, i32, i32) {
    %c0_i32 = arith.constant 0 : i32
    %c0_i32_0 = arith.constant 0 : i32
    %c0_i32_1 = arith.constant 0 : i32
    %c0_i32_2 = arith.constant 0 : i32
    return %c0_i32, %c0_i32_0, %c0_i32_1 : i32, i32, i32
  }
  func.func @transform_2(%arg0: i32) -> (i32, i32) {
    %c0_i32 = arith.constant 0 : i32
    %c0_i32_0 = arith.constant 0 : i32
    %c0_i32_1 = arith.constant 0 : i32
    return %c0_i32, %c0_i32_0 : i32, i32
  }
  func.func @transform_3(%arg0: i32) -> (i32, i32) {
    %c0_i32 = arith.constant 0 : i32
    %c0_i32_0 = arith.constant 0 : i32
    %c0_i32_1 = arith.constant 0 : i32
    return %c0_i32, %c0_i32_0 : i32, i32
  }
}

module attributes {stable_mosaic.version = 11 : i64} {
  func.func @_enc_conv_kernel(%arg0: i32, %arg1: memref<9x8x128xbf16, #tpu.memory_space<vmem>>, %arg2: memref<9x128x256xbf16, #tpu.memory_space<vmem>>, %arg3: memref<1x256xf32, #tpu.memory_space<vmem>>, %arg4: memref<8x256xbf16, #tpu.memory_space<vmem>>) attributes {dimension_semantics = [#tpu.dimension_semantics<arbitrary>], iteration_bounds = array<i64: 1>, scalar_prefetch = 0 : i64, scratch_operands = 0 : i64, tpu.core_type = #tpu.core_type<tc>, window_params = [{pipeline_mode = #tpu.pipeline_mode<synchronous>, transform_indices = @transform_0, window_bounds = array<i64: 9, 8, 128>}, {pipeline_mode = #tpu.pipeline_mode<synchronous>, transform_indices = @transform_1, window_bounds = array<i64: 9, 128, 256>}, {pipeline_mode = #tpu.pipeline_mode<synchronous>, transform_indices = @transform_2, window_bounds = array<i64: 1, 256>}, {pipeline_mode = #tpu.pipeline_mode<synchronous>, transform_indices = @transform_3, window_bounds = array<i64: 8, 256>}]} {
    %c0 = arith.constant 0 : index
    %c0_0 = arith.constant 0 : index
    %c0_1 = arith.constant 0 : index
    %0 = vector.load %arg1[%c0, %c0_0, %c0_1] : memref<9x8x128xbf16, #tpu.memory_space<vmem>>, vector<1x8x128xbf16>
    %1 = vector.shape_cast %0 : vector<1x8x128xbf16> to vector<8x128xbf16>
    %c0_2 = arith.constant 0 : index
    %c0_3 = arith.constant 0 : index
    %c0_4 = arith.constant 0 : index
    %2 = vector.load %arg2[%c0_2, %c0_3, %c0_4] : memref<9x128x256xbf16, #tpu.memory_space<vmem>>, vector<1x128x256xbf16>
    %3 = vector.shape_cast %2 : vector<1x128x256xbf16> to vector<128x256xbf16>
    %cst = arith.constant dense<0.000000e+00> : vector<8x256xf32>
    %4 = tpu.matmul %1, %3, %cst {dimension_numbers = #tpu.dot_dimension_numbers<[1], [0], [0], [1], [0, 0, 1, 1], [], []>} : vector<8x128xbf16>, vector<128x256xbf16>, vector<8x256xf32> -> vector<8x256xf32>
    %c1 = arith.constant 1 : index
    %c0_5 = arith.constant 0 : index
    %c0_6 = arith.constant 0 : index
    %5 = vector.load %arg1[%c1, %c0_5, %c0_6] : memref<9x8x128xbf16, #tpu.memory_space<vmem>>, vector<1x8x128xbf16>
    %6 = vector.shape_cast %5 : vector<1x8x128xbf16> to vector<8x128xbf16>
    %c1_7 = arith.constant 1 : index
    %c0_8 = arith.constant 0 : index
    %c0_9 = arith.constant 0 : index
    %7 = vector.load %arg2[%c1_7, %c0_8, %c0_9] : memref<9x128x256xbf16, #tpu.memory_space<vmem>>, vector<1x128x256xbf16>
    %8 = vector.shape_cast %7 : vector<1x128x256xbf16> to vector<128x256xbf16>
    %cst_10 = arith.constant dense<0.000000e+00> : vector<8x256xf32>
    %9 = tpu.matmul %6, %8, %cst_10 {dimension_numbers = #tpu.dot_dimension_numbers<[1], [0], [0], [1], [0, 0, 1, 1], [], []>} : vector<8x128xbf16>, vector<128x256xbf16>, vector<8x256xf32> -> vector<8x256xf32>
    %10 = arith.addf %4, %9 : vector<8x256xf32>
    %c2 = arith.constant 2 : index
    %c0_11 = arith.constant 0 : index
    %c0_12 = arith.constant 0 : index
    %11 = vector.load %arg1[%c2, %c0_11, %c0_12] : memref<9x8x128xbf16, #tpu.memory_space<vmem>>, vector<1x8x128xbf16>
    %12 = vector.shape_cast %11 : vector<1x8x128xbf16> to vector<8x128xbf16>
    %c2_13 = arith.constant 2 : index
    %c0_14 = arith.constant 0 : index
    %c0_15 = arith.constant 0 : index
    %13 = vector.load %arg2[%c2_13, %c0_14, %c0_15] : memref<9x128x256xbf16, #tpu.memory_space<vmem>>, vector<1x128x256xbf16>
    %14 = vector.shape_cast %13 : vector<1x128x256xbf16> to vector<128x256xbf16>
    %cst_16 = arith.constant dense<0.000000e+00> : vector<8x256xf32>
    %15 = tpu.matmul %12, %14, %cst_16 {dimension_numbers = #tpu.dot_dimension_numbers<[1], [0], [0], [1], [0, 0, 1, 1], [], []>} : vector<8x128xbf16>, vector<128x256xbf16>, vector<8x256xf32> -> vector<8x256xf32>
    %16 = arith.addf %10, %15 : vector<8x256xf32>
    %c3 = arith.constant 3 : index
    %c0_17 = arith.constant 0 : index
    %c0_18 = arith.constant 0 : index
    %17 = vector.load %arg1[%c3, %c0_17, %c0_18] : memref<9x8x128xbf16, #tpu.memory_space<vmem>>, vector<1x8x128xbf16>
    %18 = vector.shape_cast %17 : vector<1x8x128xbf16> to vector<8x128xbf16>
    %c3_19 = arith.constant 3 : index
    %c0_20 = arith.constant 0 : index
    %c0_21 = arith.constant 0 : index
    %19 = vector.load %arg2[%c3_19, %c0_20, %c0_21] : memref<9x128x256xbf16, #tpu.memory_space<vmem>>, vector<1x128x256xbf16>
    %20 = vector.shape_cast %19 : vector<1x128x256xbf16> to vector<128x256xbf16>
    %cst_22 = arith.constant dense<0.000000e+00> : vector<8x256xf32>
    %21 = tpu.matmul %18, %20, %cst_22 {dimension_numbers = #tpu.dot_dimension_numbers<[1], [0], [0], [1], [0, 0, 1, 1], [], []>} : vector<8x128xbf16>, vector<128x256xbf16>, vector<8x256xf32> -> vector<8x256xf32>
    %22 = arith.addf %16, %21 : vector<8x256xf32>
    %c4 = arith.constant 4 : index
    %c0_23 = arith.constant 0 : index
    %c0_24 = arith.constant 0 : index
    %23 = vector.load %arg1[%c4, %c0_23, %c0_24] : memref<9x8x128xbf16, #tpu.memory_space<vmem>>, vector<1x8x128xbf16>
    %24 = vector.shape_cast %23 : vector<1x8x128xbf16> to vector<8x128xbf16>
    %c4_25 = arith.constant 4 : index
    %c0_26 = arith.constant 0 : index
    %c0_27 = arith.constant 0 : index
    %25 = vector.load %arg2[%c4_25, %c0_26, %c0_27] : memref<9x128x256xbf16, #tpu.memory_space<vmem>>, vector<1x128x256xbf16>
    %26 = vector.shape_cast %25 : vector<1x128x256xbf16> to vector<128x256xbf16>
    %cst_28 = arith.constant dense<0.000000e+00> : vector<8x256xf32>
    %27 = tpu.matmul %24, %26, %cst_28 {dimension_numbers = #tpu.dot_dimension_numbers<[1], [0], [0], [1], [0, 0, 1, 1], [], []>} : vector<8x128xbf16>, vector<128x256xbf16>, vector<8x256xf32> -> vector<8x256xf32>
    %28 = arith.addf %22, %27 : vector<8x256xf32>
    %c5 = arith.constant 5 : index
    %c0_29 = arith.constant 0 : index
    %c0_30 = arith.constant 0 : index
    %29 = vector.load %arg1[%c5, %c0_29, %c0_30] : memref<9x8x128xbf16, #tpu.memory_space<vmem>>, vector<1x8x128xbf16>
    %30 = vector.shape_cast %29 : vector<1x8x128xbf16> to vector<8x128xbf16>
    %c5_31 = arith.constant 5 : index
    %c0_32 = arith.constant 0 : index
    %c0_33 = arith.constant 0 : index
    %31 = vector.load %arg2[%c5_31, %c0_32, %c0_33] : memref<9x128x256xbf16, #tpu.memory_space<vmem>>, vector<1x128x256xbf16>
    %32 = vector.shape_cast %31 : vector<1x128x256xbf16> to vector<128x256xbf16>
    %cst_34 = arith.constant dense<0.000000e+00> : vector<8x256xf32>
    %33 = tpu.matmul %30, %32, %cst_34 {dimension_numbers = #tpu.dot_dimension_numbers<[1], [0], [0], [1], [0, 0, 1, 1], [], []>} : vector<8x128xbf16>, vector<128x256xbf16>, vector<8x256xf32> -> vector<8x256xf32>
    %34 = arith.addf %28, %33 : vector<8x256xf32>
    %c6 = arith.constant 6 : index
    %c0_35 = arith.constant 0 : index
    %c0_36 = arith.constant 0 : index
    %35 = vector.load %arg1[%c6, %c0_35, %c0_36] : memref<9x8x128xbf16, #tpu.memory_space<vmem>>, vector<1x8x128xbf16>
    %36 = vector.shape_cast %35 : vector<1x8x128xbf16> to vector<8x128xbf16>
    %c6_37 = arith.constant 6 : index
    %c0_38 = arith.constant 0 : index
    %c0_39 = arith.constant 0 : index
    %37 = vector.load %arg2[%c6_37, %c0_38, %c0_39] : memref<9x128x256xbf16, #tpu.memory_space<vmem>>, vector<1x128x256xbf16>
    %38 = vector.shape_cast %37 : vector<1x128x256xbf16> to vector<128x256xbf16>
    %cst_40 = arith.constant dense<0.000000e+00> : vector<8x256xf32>
    %39 = tpu.matmul %36, %38, %cst_40 {dimension_numbers = #tpu.dot_dimension_numbers<[1], [0], [0], [1], [0, 0, 1, 1], [], []>} : vector<8x128xbf16>, vector<128x256xbf16>, vector<8x256xf32> -> vector<8x256xf32>
    %40 = arith.addf %34, %39 : vector<8x256xf32>
    %c7 = arith.constant 7 : index
    %c0_41 = arith.constant 0 : index
    %c0_42 = arith.constant 0 : index
    %41 = vector.load %arg1[%c7, %c0_41, %c0_42] : memref<9x8x128xbf16, #tpu.memory_space<vmem>>, vector<1x8x128xbf16>
    %42 = vector.shape_cast %41 : vector<1x8x128xbf16> to vector<8x128xbf16>
    %c7_43 = arith.constant 7 : index
    %c0_44 = arith.constant 0 : index
    %c0_45 = arith.constant 0 : index
    %43 = vector.load %arg2[%c7_43, %c0_44, %c0_45] : memref<9x128x256xbf16, #tpu.memory_space<vmem>>, vector<1x128x256xbf16>
    %44 = vector.shape_cast %43 : vector<1x128x256xbf16> to vector<128x256xbf16>
    %cst_46 = arith.constant dense<0.000000e+00> : vector<8x256xf32>
    %45 = tpu.matmul %42, %44, %cst_46 {dimension_numbers = #tpu.dot_dimension_numbers<[1], [0], [0], [1], [0, 0, 1, 1], [], []>} : vector<8x128xbf16>, vector<128x256xbf16>, vector<8x256xf32> -> vector<8x256xf32>
    %46 = arith.addf %40, %45 : vector<8x256xf32>
    %c8 = arith.constant 8 : index
    %c0_47 = arith.constant 0 : index
    %c0_48 = arith.constant 0 : index
    %47 = vector.load %arg1[%c8, %c0_47, %c0_48] : memref<9x8x128xbf16, #tpu.memory_space<vmem>>, vector<1x8x128xbf16>
    %48 = vector.shape_cast %47 : vector<1x8x128xbf16> to vector<8x128xbf16>
    %c8_49 = arith.constant 8 : index
    %c0_50 = arith.constant 0 : index
    %c0_51 = arith.constant 0 : index
    %49 = vector.load %arg2[%c8_49, %c0_50, %c0_51] : memref<9x128x256xbf16, #tpu.memory_space<vmem>>, vector<1x128x256xbf16>
    %50 = vector.shape_cast %49 : vector<1x128x256xbf16> to vector<128x256xbf16>
    %cst_52 = arith.constant dense<0.000000e+00> : vector<8x256xf32>
    %51 = tpu.matmul %48, %50, %cst_52 {dimension_numbers = #tpu.dot_dimension_numbers<[1], [0], [0], [1], [0, 0, 1, 1], [], []>} : vector<8x128xbf16>, vector<128x256xbf16>, vector<8x256xf32> -> vector<8x256xf32>
    %52 = arith.addf %46, %51 : vector<8x256xf32>
    %c0_53 = arith.constant 0 : index
    %c0_54 = arith.constant 0 : index
    %53 = vector.load %arg3[%c0_53, %c0_54] : memref<1x256xf32, #tpu.memory_space<vmem>>, vector<1x256xf32>
    %54 = vector.broadcast %53 : vector<1x256xf32> to vector<8x256xf32>
    %55 = arith.addf %52, %54 : vector<8x256xf32>
    %cst_55 = arith.constant 0.000000e+00 : f32
    %56 = vector.broadcast %cst_55 : f32 to vector<8x256xf32>
    %57 = arith.maximumf %55, %56 : vector<8x256xf32>
    %58 = arith.truncf %57 : vector<8x256xf32> to vector<8x256xbf16>
    %c0_56 = arith.constant 0 : index
    %c0_57 = arith.constant 0 : index
    %59 = vector.load %arg4[%c0_56, %c0_57] : memref<8x256xbf16, #tpu.memory_space<vmem>>, vector<8x256xbf16>
    tpu.vector_store %arg4[%c0_56, %c0_57], %58 {strides = array<i32>} : memref<8x256xbf16, #tpu.memory_space<vmem>>, vector<8x256xbf16>,
    return
  }
  func.func @transform_0(%arg0: i32) -> (i32, i32, i32) {
    %c0_i32 = arith.constant 0 : i32
    %c0_i32_0 = arith.constant 0 : i32
    %c0_i32_1 = arith.constant 0 : i32
    %c0_i32_2 = arith.constant 0 : i32
    return %c0_i32, %c0_i32_0, %c0_i32_1 : i32, i32, i32
  }
  func.func @transform_1(%arg0: i32) -> (i32, i32, i32) {
    %c0_i32 = arith.constant 0 : i32
    %c0_i32_0 = arith.constant 0 : i32
    %c0_i32_1 = arith.constant 0 : i32
    %c0_i32_2 = arith.constant 0 : i32
    return %c0_i32, %c0_i32_0, %c0_i32_1 : i32, i32, i32
  }
  func.func @transform_2(%arg0: i32) -> (i32, i32) {
    %c0_i32 = arith.constant 0 : i32
    %c0_i32_0 = arith.constant 0 : i32
    %c0_i32_1 = arith.constant 0 : i32
    return %c0_i32, %c0_i32_0 : i32, i32
  }
  func.func @transform_3(%arg0: i32) -> (i32, i32) {
    %c0_i32 = arith.constant 0 : i32
    %c0_i32_0 = arith.constant 0 : i32
    %c0_i32_1 = arith.constant 0 : i32
    return %c0_i32, %c0_i32_0 : i32, i32
  }
}

module attributes {stable_mosaic.version = 11 : i64} {
  func.func @_enc_conv_kernel(%arg0: i32, %arg1: memref<9x2x256xbf16, #tpu.memory_space<vmem>>, %arg2: memref<9x256x512xbf16, #tpu.memory_space<vmem>>, %arg3: memref<1x512xf32, #tpu.memory_space<vmem>>, %arg4: memref<2x512xbf16, #tpu.memory_space<vmem>>) attributes {dimension_semantics = [#tpu.dimension_semantics<arbitrary>], iteration_bounds = array<i64: 1>, scalar_prefetch = 0 : i64, scratch_operands = 0 : i64, tpu.core_type = #tpu.core_type<tc>, window_params = [{pipeline_mode = #tpu.pipeline_mode<synchronous>, transform_indices = @transform_0, window_bounds = array<i64: 9, 2, 256>}, {pipeline_mode = #tpu.pipeline_mode<synchronous>, transform_indices = @transform_1, window_bounds = array<i64: 9, 256, 512>}, {pipeline_mode = #tpu.pipeline_mode<synchronous>, transform_indices = @transform_2, window_bounds = array<i64: 1, 512>}, {pipeline_mode = #tpu.pipeline_mode<synchronous>, transform_indices = @transform_3, window_bounds = array<i64: 2, 512>}]} {
    %c0 = arith.constant 0 : index
    %c0_0 = arith.constant 0 : index
    %c0_1 = arith.constant 0 : index
    %0 = vector.load %arg1[%c0, %c0_0, %c0_1] : memref<9x2x256xbf16, #tpu.memory_space<vmem>>, vector<1x2x256xbf16>
    %1 = vector.shape_cast %0 : vector<1x2x256xbf16> to vector<2x256xbf16>
    %c0_2 = arith.constant 0 : index
    %c0_3 = arith.constant 0 : index
    %c0_4 = arith.constant 0 : index
    %2 = vector.load %arg2[%c0_2, %c0_3, %c0_4] : memref<9x256x512xbf16, #tpu.memory_space<vmem>>, vector<1x256x512xbf16>
    %3 = vector.shape_cast %2 : vector<1x256x512xbf16> to vector<256x512xbf16>
    %cst = arith.constant dense<0.000000e+00> : vector<2x512xf32>
    %4 = tpu.matmul %1, %3, %cst {dimension_numbers = #tpu.dot_dimension_numbers<[1], [0], [0], [1], [0, 0, 1, 1], [], []>} : vector<2x256xbf16>, vector<256x512xbf16>, vector<2x512xf32> -> vector<2x512xf32>
    %c1 = arith.constant 1 : index
    %c0_5 = arith.constant 0 : index
    %c0_6 = arith.constant 0 : index
    %5 = vector.load %arg1[%c1, %c0_5, %c0_6] : memref<9x2x256xbf16, #tpu.memory_space<vmem>>, vector<1x2x256xbf16>
    %6 = vector.shape_cast %5 : vector<1x2x256xbf16> to vector<2x256xbf16>
    %c1_7 = arith.constant 1 : index
    %c0_8 = arith.constant 0 : index
    %c0_9 = arith.constant 0 : index
    %7 = vector.load %arg2[%c1_7, %c0_8, %c0_9] : memref<9x256x512xbf16, #tpu.memory_space<vmem>>, vector<1x256x512xbf16>
    %8 = vector.shape_cast %7 : vector<1x256x512xbf16> to vector<256x512xbf16>
    %cst_10 = arith.constant dense<0.000000e+00> : vector<2x512xf32>
    %9 = tpu.matmul %6, %8, %cst_10 {dimension_numbers = #tpu.dot_dimension_numbers<[1], [0], [0], [1], [0, 0, 1, 1], [], []>} : vector<2x256xbf16>, vector<256x512xbf16>, vector<2x512xf32> -> vector<2x512xf32>
    %10 = arith.addf %4, %9 : vector<2x512xf32>
    %c2 = arith.constant 2 : index
    %c0_11 = arith.constant 0 : index
    %c0_12 = arith.constant 0 : index
    %11 = vector.load %arg1[%c2, %c0_11, %c0_12] : memref<9x2x256xbf16, #tpu.memory_space<vmem>>, vector<1x2x256xbf16>
    %12 = vector.shape_cast %11 : vector<1x2x256xbf16> to vector<2x256xbf16>
    %c2_13 = arith.constant 2 : index
    %c0_14 = arith.constant 0 : index
    %c0_15 = arith.constant 0 : index
    %13 = vector.load %arg2[%c2_13, %c0_14, %c0_15] : memref<9x256x512xbf16, #tpu.memory_space<vmem>>, vector<1x256x512xbf16>
    %14 = vector.shape_cast %13 : vector<1x256x512xbf16> to vector<256x512xbf16>
    %cst_16 = arith.constant dense<0.000000e+00> : vector<2x512xf32>
    %15 = tpu.matmul %12, %14, %cst_16 {dimension_numbers = #tpu.dot_dimension_numbers<[1], [0], [0], [1], [0, 0, 1, 1], [], []>} : vector<2x256xbf16>, vector<256x512xbf16>, vector<2x512xf32> -> vector<2x512xf32>
    %16 = arith.addf %10, %15 : vector<2x512xf32>
    %c3 = arith.constant 3 : index
    %c0_17 = arith.constant 0 : index
    %c0_18 = arith.constant 0 : index
    %17 = vector.load %arg1[%c3, %c0_17, %c0_18] : memref<9x2x256xbf16, #tpu.memory_space<vmem>>, vector<1x2x256xbf16>
    %18 = vector.shape_cast %17 : vector<1x2x256xbf16> to vector<2x256xbf16>
    %c3_19 = arith.constant 3 : index
    %c0_20 = arith.constant 0 : index
    %c0_21 = arith.constant 0 : index
    %19 = vector.load %arg2[%c3_19, %c0_20, %c0_21] : memref<9x256x512xbf16, #tpu.memory_space<vmem>>, vector<1x256x512xbf16>
    %20 = vector.shape_cast %19 : vector<1x256x512xbf16> to vector<256x512xbf16>
    %cst_22 = arith.constant dense<0.000000e+00> : vector<2x512xf32>
    %21 = tpu.matmul %18, %20, %cst_22 {dimension_numbers = #tpu.dot_dimension_numbers<[1], [0], [0], [1], [0, 0, 1, 1], [], []>} : vector<2x256xbf16>, vector<256x512xbf16>, vector<2x512xf32> -> vector<2x512xf32>
    %22 = arith.addf %16, %21 : vector<2x512xf32>
    %c4 = arith.constant 4 : index
    %c0_23 = arith.constant 0 : index
    %c0_24 = arith.constant 0 : index
    %23 = vector.load %arg1[%c4, %c0_23, %c0_24] : memref<9x2x256xbf16, #tpu.memory_space<vmem>>, vector<1x2x256xbf16>
    %24 = vector.shape_cast %23 : vector<1x2x256xbf16> to vector<2x256xbf16>
    %c4_25 = arith.constant 4 : index
    %c0_26 = arith.constant 0 : index
    %c0_27 = arith.constant 0 : index
    %25 = vector.load %arg2[%c4_25, %c0_26, %c0_27] : memref<9x256x512xbf16, #tpu.memory_space<vmem>>, vector<1x256x512xbf16>
    %26 = vector.shape_cast %25 : vector<1x256x512xbf16> to vector<256x512xbf16>
    %cst_28 = arith.constant dense<0.000000e+00> : vector<2x512xf32>
    %27 = tpu.matmul %24, %26, %cst_28 {dimension_numbers = #tpu.dot_dimension_numbers<[1], [0], [0], [1], [0, 0, 1, 1], [], []>} : vector<2x256xbf16>, vector<256x512xbf16>, vector<2x512xf32> -> vector<2x512xf32>
    %28 = arith.addf %22, %27 : vector<2x512xf32>
    %c5 = arith.constant 5 : index
    %c0_29 = arith.constant 0 : index
    %c0_30 = arith.constant 0 : index
    %29 = vector.load %arg1[%c5, %c0_29, %c0_30] : memref<9x2x256xbf16, #tpu.memory_space<vmem>>, vector<1x2x256xbf16>
    %30 = vector.shape_cast %29 : vector<1x2x256xbf16> to vector<2x256xbf16>
    %c5_31 = arith.constant 5 : index
    %c0_32 = arith.constant 0 : index
    %c0_33 = arith.constant 0 : index
    %31 = vector.load %arg2[%c5_31, %c0_32, %c0_33] : memref<9x256x512xbf16, #tpu.memory_space<vmem>>, vector<1x256x512xbf16>
    %32 = vector.shape_cast %31 : vector<1x256x512xbf16> to vector<256x512xbf16>
    %cst_34 = arith.constant dense<0.000000e+00> : vector<2x512xf32>
    %33 = tpu.matmul %30, %32, %cst_34 {dimension_numbers = #tpu.dot_dimension_numbers<[1], [0], [0], [1], [0, 0, 1, 1], [], []>} : vector<2x256xbf16>, vector<256x512xbf16>, vector<2x512xf32> -> vector<2x512xf32>
    %34 = arith.addf %28, %33 : vector<2x512xf32>
    %c6 = arith.constant 6 : index
    %c0_35 = arith.constant 0 : index
    %c0_36 = arith.constant 0 : index
    %35 = vector.load %arg1[%c6, %c0_35, %c0_36] : memref<9x2x256xbf16, #tpu.memory_space<vmem>>, vector<1x2x256xbf16>
    %36 = vector.shape_cast %35 : vector<1x2x256xbf16> to vector<2x256xbf16>
    %c6_37 = arith.constant 6 : index
    %c0_38 = arith.constant 0 : index
    %c0_39 = arith.constant 0 : index
    %37 = vector.load %arg2[%c6_37, %c0_38, %c0_39] : memref<9x256x512xbf16, #tpu.memory_space<vmem>>, vector<1x256x512xbf16>
    %38 = vector.shape_cast %37 : vector<1x256x512xbf16> to vector<256x512xbf16>
    %cst_40 = arith.constant dense<0.000000e+00> : vector<2x512xf32>
    %39 = tpu.matmul %36, %38, %cst_40 {dimension_numbers = #tpu.dot_dimension_numbers<[1], [0], [0], [1], [0, 0, 1, 1], [], []>} : vector<2x256xbf16>, vector<256x512xbf16>, vector<2x512xf32> -> vector<2x512xf32>
    %40 = arith.addf %34, %39 : vector<2x512xf32>
    %c7 = arith.constant 7 : index
    %c0_41 = arith.constant 0 : index
    %c0_42 = arith.constant 0 : index
    %41 = vector.load %arg1[%c7, %c0_41, %c0_42] : memref<9x2x256xbf16, #tpu.memory_space<vmem>>, vector<1x2x256xbf16>
    %42 = vector.shape_cast %41 : vector<1x2x256xbf16> to vector<2x256xbf16>
    %c7_43 = arith.constant 7 : index
    %c0_44 = arith.constant 0 : index
    %c0_45 = arith.constant 0 : index
    %43 = vector.load %arg2[%c7_43, %c0_44, %c0_45] : memref<9x256x512xbf16, #tpu.memory_space<vmem>>, vector<1x256x512xbf16>
    %44 = vector.shape_cast %43 : vector<1x256x512xbf16> to vector<256x512xbf16>
    %cst_46 = arith.constant dense<0.000000e+00> : vector<2x512xf32>
    %45 = tpu.matmul %42, %44, %cst_46 {dimension_numbers = #tpu.dot_dimension_numbers<[1], [0], [0], [1], [0, 0, 1, 1], [], []>} : vector<2x256xbf16>, vector<256x512xbf16>, vector<2x512xf32> -> vector<2x512xf32>
    %46 = arith.addf %40, %45 : vector<2x512xf32>
    %c8 = arith.constant 8 : index
    %c0_47 = arith.constant 0 : index
    %c0_48 = arith.constant 0 : index
    %47 = vector.load %arg1[%c8, %c0_47, %c0_48] : memref<9x2x256xbf16, #tpu.memory_space<vmem>>, vector<1x2x256xbf16>
    %48 = vector.shape_cast %47 : vector<1x2x256xbf16> to vector<2x256xbf16>
    %c8_49 = arith.constant 8 : index
    %c0_50 = arith.constant 0 : index
    %c0_51 = arith.constant 0 : index
    %49 = vector.load %arg2[%c8_49, %c0_50, %c0_51] : memref<9x256x512xbf16, #tpu.memory_space<vmem>>, vector<1x256x512xbf16>
    %50 = vector.shape_cast %49 : vector<1x256x512xbf16> to vector<256x512xbf16>
    %cst_52 = arith.constant dense<0.000000e+00> : vector<2x512xf32>
    %51 = tpu.matmul %48, %50, %cst_52 {dimension_numbers = #tpu.dot_dimension_numbers<[1], [0], [0], [1], [0, 0, 1, 1], [], []>} : vector<2x256xbf16>, vector<256x512xbf16>, vector<2x512xf32> -> vector<2x512xf32>
    %52 = arith.addf %46, %51 : vector<2x512xf32>
    %c0_53 = arith.constant 0 : index
    %c0_54 = arith.constant 0 : index
    %53 = vector.load %arg3[%c0_53, %c0_54] : memref<1x512xf32, #tpu.memory_space<vmem>>, vector<1x512xf32>
    %54 = vector.broadcast %53 : vector<1x512xf32> to vector<2x512xf32>
    %55 = arith.addf %52, %54 : vector<2x512xf32>
    %cst_55 = arith.constant 0.000000e+00 : f32
    %56 = vector.broadcast %cst_55 : f32 to vector<2x512xf32>
    %57 = arith.maximumf %55, %56 : vector<2x512xf32>
    %58 = arith.truncf %57 : vector<2x512xf32> to vector<2x512xbf16>
    %c0_56 = arith.constant 0 : index
    %c0_57 = arith.constant 0 : index
    %59 = vector.load %arg4[%c0_56, %c0_57] : memref<2x512xbf16, #tpu.memory_space<vmem>>, vector<2x512xbf16>
    tpu.vector_store %arg4[%c0_56, %c0_57], %58 {strides = array<i32>} : memref<2x512xbf16, #tpu.memory_space<vmem>>, vector<2x512xbf16>,
    return
  }
  func.func @transform_0(%arg0: i32) -> (i32, i32, i32) {
    %c0_i32 = arith.constant 0 : i32
    %c0_i32_0 = arith.constant 0 : i32
    %c0_i32_1 = arith.constant 0 : i32
    %c0_i32_2 = arith.constant 0 : i32
    return %c0_i32, %c0_i32_0, %c0_i32_1 : i32, i32, i32
  }
  func.func @transform_1(%arg0: i32) -> (i32, i32, i32) {
    %c0_i32 = arith.constant 0 : i32
    %c0_i32_0 = arith.constant 0 : i32
    %c0_i32_1 = arith.constant 0 : i32
    %c0_i32_2 = arith.constant 0 : i32
    return %c0_i32, %c0_i32_0, %c0_i32_1 : i32, i32, i32
  }
  func.func @transform_2(%arg0: i32) -> (i32, i32) {
    %c0_i32 = arith.constant 0 : i32
    %c0_i32_0 = arith.constant 0 : i32
    %c0_i32_1 = arith.constant 0 : i32
    return %c0_i32, %c0_i32_0 : i32, i32
  }
  func.func @transform_3(%arg0: i32) -> (i32, i32) {
    %c0_i32 = arith.constant 0 : i32
    %c0_i32_0 = arith.constant 0 : i32
    %c0_i32_1 = arith.constant 0 : i32
    return %c0_i32, %c0_i32_0 : i32, i32
  }
}

module attributes {stable_mosaic.version = 11 : i64} {
  func.func @_dec_conv_kernel(%arg0: i32, %arg1: memref<4x2x512xbf16, #tpu.memory_space<vmem>>, %arg2: memref<9x512x256xbf16, #tpu.memory_space<vmem>>, %arg3: memref<1x256xf32, #tpu.memory_space<vmem>>, %arg4: memref<2x1024xbf16, #tpu.memory_space<vmem>>) attributes {dimension_semantics = [#tpu.dimension_semantics<arbitrary>], iteration_bounds = array<i64: 1>, scalar_prefetch = 0 : i64, scratch_operands = 0 : i64, tpu.core_type = #tpu.core_type<tc>, window_params = [{pipeline_mode = #tpu.pipeline_mode<synchronous>, transform_indices = @transform_0, window_bounds = array<i64: 4, 2, 512>}, {pipeline_mode = #tpu.pipeline_mode<synchronous>, transform_indices = @transform_1, window_bounds = array<i64: 9, 512, 256>}, {pipeline_mode = #tpu.pipeline_mode<synchronous>, transform_indices = @transform_2, window_bounds = array<i64: 1, 256>}, {pipeline_mode = #tpu.pipeline_mode<synchronous>, transform_indices = @transform_3, window_bounds = array<i64: 2, 1024>}]} {
    %c0 = arith.constant 0 : index
    %c0_0 = arith.constant 0 : index
    %0 = vector.load %arg3[%c0, %c0_0] : memref<1x256xf32, #tpu.memory_space<vmem>>, vector<1x256xf32>
    %c0_1 = arith.constant 0 : index
    %c0_2 = arith.constant 0 : index
    %c0_3 = arith.constant 0 : index
    %1 = vector.load %arg1[%c0_1, %c0_2, %c0_3] : memref<4x2x512xbf16, #tpu.memory_space<vmem>>, vector<1x2x512xbf16>
    %2 = vector.shape_cast %1 : vector<1x2x512xbf16> to vector<2x512xbf16>
    %c0_4 = arith.constant 0 : index
    %c0_5 = arith.constant 0 : index
    %c0_6 = arith.constant 0 : index
    %3 = vector.load %arg2[%c0_4, %c0_5, %c0_6] : memref<9x512x256xbf16, #tpu.memory_space<vmem>>, vector<1x512x256xbf16>
    %4 = vector.shape_cast %3 : vector<1x512x256xbf16> to vector<512x256xbf16>
    %cst = arith.constant dense<0.000000e+00> : vector<2x256xf32>
    %5 = tpu.matmul %2, %4, %cst {dimension_numbers = #tpu.dot_dimension_numbers<[1], [0], [0], [1], [0, 0, 1, 1], [], []>} : vector<2x512xbf16>, vector<512x256xbf16>, vector<2x256xf32> -> vector<2x256xf32>
    %6 = vector.broadcast %0 : vector<1x256xf32> to vector<2x256xf32>
    %7 = arith.addf %5, %6 : vector<2x256xf32>
    %cst_7 = arith.constant 0.000000e+00 : f32
    %8 = vector.broadcast %cst_7 : f32 to vector<2x256xf32>
    %9 = arith.maximumf %7, %8 : vector<2x256xf32>
    %10 = arith.truncf %9 : vector<2x256xf32> to vector<2x256xbf16>
    %c0_8 = arith.constant 0 : index
    %c0_9 = arith.constant 0 : index
    %11 = vector.load %arg4[%c0_8, %c0_9] : memref<2x1024xbf16, #tpu.memory_space<vmem>>, vector<2x256xbf16>
    tpu.vector_store %arg4[%c0_8, %c0_9], %10 {strides = array<i32>} : memref<2x1024xbf16, #tpu.memory_space<vmem>>, vector<2x256xbf16>,
    %c0_10 = arith.constant 0 : index
    %c0_11 = arith.constant 0 : index
    %c0_12 = arith.constant 0 : index
    %12 = vector.load %arg1[%c0_10, %c0_11, %c0_12] : memref<4x2x512xbf16, #tpu.memory_space<vmem>>, vector<1x2x512xbf16>
    %13 = vector.shape_cast %12 : vector<1x2x512xbf16> to vector<2x512xbf16>
    %c1 = arith.constant 1 : index
    %c0_13 = arith.constant 0 : index
    %c0_14 = arith.constant 0 : index
    %14 = vector.load %arg2[%c1, %c0_13, %c0_14] : memref<9x512x256xbf16, #tpu.memory_space<vmem>>, vector<1x512x256xbf16>
    %15 = vector.shape_cast %14 : vector<1x512x256xbf16> to vector<512x256xbf16>
    %cst_15 = arith.constant dense<0.000000e+00> : vector<2x256xf32>
    %16 = tpu.matmul %13, %15, %cst_15 {dimension_numbers = #tpu.dot_dimension_numbers<[1], [0], [0], [1], [0, 0, 1, 1], [], []>} : vector<2x512xbf16>, vector<512x256xbf16>, vector<2x256xf32> -> vector<2x256xf32>
    %c1_16 = arith.constant 1 : index
    %c0_17 = arith.constant 0 : index
    %c0_18 = arith.constant 0 : index
    %17 = vector.load %arg1[%c1_16, %c0_17, %c0_18] : memref<4x2x512xbf16, #tpu.memory_space<vmem>>, vector<1x2x512xbf16>
    %18 = vector.shape_cast %17 : vector<1x2x512xbf16> to vector<2x512xbf16>
    %c2 = arith.constant 2 : index
    %c0_19 = arith.constant 0 : index
    %c0_20 = arith.constant 0 : index
    %19 = vector.load %arg2[%c2, %c0_19, %c0_20] : memref<9x512x256xbf16, #tpu.memory_space<vmem>>, vector<1x512x256xbf16>
    %20 = vector.shape_cast %19 : vector<1x512x256xbf16> to vector<512x256xbf16>
    %cst_21 = arith.constant dense<0.000000e+00> : vector<2x256xf32>
    %21 = tpu.matmul %18, %20, %cst_21 {dimension_numbers = #tpu.dot_dimension_numbers<[1], [0], [0], [1], [0, 0, 1, 1], [], []>} : vector<2x512xbf16>, vector<512x256xbf16>, vector<2x256xf32> -> vector<2x256xf32>
    %22 = arith.addf %16, %21 : vector<2x256xf32>
    %23 = vector.broadcast %0 : vector<1x256xf32> to vector<2x256xf32>
    %24 = arith.addf %22, %23 : vector<2x256xf32>
    %cst_22 = arith.constant 0.000000e+00 : f32
    %25 = vector.broadcast %cst_22 : f32 to vector<2x256xf32>
    %26 = arith.maximumf %24, %25 : vector<2x256xf32>
    %27 = arith.truncf %26 : vector<2x256xf32> to vector<2x256xbf16>
    %c0_23 = arith.constant 0 : index
    %c256 = arith.constant 256 : index
    %28 = vector.load %arg4[%c0_23, %c256] : memref<2x1024xbf16, #tpu.memory_space<vmem>>, vector<2x256xbf16>
    tpu.vector_store %arg4[%c0_23, %c256], %27 {strides = array<i32>} : memref<2x1024xbf16, #tpu.memory_space<vmem>>, vector<2x256xbf16>,
    %c0_24 = arith.constant 0 : index
    %c0_25 = arith.constant 0 : index
    %c0_26 = arith.constant 0 : index
    %29 = vector.load %arg1[%c0_24, %c0_25, %c0_26] : memref<4x2x512xbf16, #tpu.memory_space<vmem>>, vector<1x2x512xbf16>
    %30 = vector.shape_cast %29 : vector<1x2x512xbf16> to vector<2x512xbf16>
    %c3 = arith.constant 3 : index
    %c0_27 = arith.constant 0 : index
    %c0_28 = arith.constant 0 : index
    %31 = vector.load %arg2[%c3, %c0_27, %c0_28] : memref<9x512x256xbf16, #tpu.memory_space<vmem>>, vector<1x512x256xbf16>
    %32 = vector.shape_cast %31 : vector<1x512x256xbf16> to vector<512x256xbf16>
    %cst_29 = arith.constant dense<0.000000e+00> : vector<2x256xf32>
    %33 = tpu.matmul %30, %32, %cst_29 {dimension_numbers = #tpu.dot_dimension_numbers<[1], [0], [0], [1], [0, 0, 1, 1], [], []>} : vector<2x512xbf16>, vector<512x256xbf16>, vector<2x256xf32> -> vector<2x256xf32>
    %c2_30 = arith.constant 2 : index
    %c0_31 = arith.constant 0 : index
    %c0_32 = arith.constant 0 : index
    %34 = vector.load %arg1[%c2_30, %c0_31, %c0_32] : memref<4x2x512xbf16, #tpu.memory_space<vmem>>, vector<1x2x512xbf16>
    %35 = vector.shape_cast %34 : vector<1x2x512xbf16> to vector<2x512xbf16>
    %c4 = arith.constant 4 : index
    %c0_33 = arith.constant 0 : index
    %c0_34 = arith.constant 0 : index
    %36 = vector.load %arg2[%c4, %c0_33, %c0_34] : memref<9x512x256xbf16, #tpu.memory_space<vmem>>, vector<1x512x256xbf16>
    %37 = vector.shape_cast %36 : vector<1x512x256xbf16> to vector<512x256xbf16>
    %cst_35 = arith.constant dense<0.000000e+00> : vector<2x256xf32>
    %38 = tpu.matmul %35, %37, %cst_35 {dimension_numbers = #tpu.dot_dimension_numbers<[1], [0], [0], [1], [0, 0, 1, 1], [], []>} : vector<2x512xbf16>, vector<512x256xbf16>, vector<2x256xf32> -> vector<2x256xf32>
    %39 = arith.addf %33, %38 : vector<2x256xf32>
    %40 = vector.broadcast %0 : vector<1x256xf32> to vector<2x256xf32>
    %41 = arith.addf %39, %40 : vector<2x256xf32>
    %cst_36 = arith.constant 0.000000e+00 : f32
    %42 = vector.broadcast %cst_36 : f32 to vector<2x256xf32>
    %43 = arith.maximumf %41, %42 : vector<2x256xf32>
    %44 = arith.truncf %43 : vector<2x256xf32> to vector<2x256xbf16>
    %c0_37 = arith.constant 0 : index
    %c512 = arith.constant 512 : index
    %45 = vector.load %arg4[%c0_37, %c512] : memref<2x1024xbf16, #tpu.memory_space<vmem>>, vector<2x256xbf16>
    tpu.vector_store %arg4[%c0_37, %c512], %44 {strides = array<i32>} : memref<2x1024xbf16, #tpu.memory_space<vmem>>, vector<2x256xbf16>,
    %c0_38 = arith.constant 0 : index
    %c0_39 = arith.constant 0 : index
    %c0_40 = arith.constant 0 : index
    %46 = vector.load %arg1[%c0_38, %c0_39, %c0_40] : memref<4x2x512xbf16, #tpu.memory_space<vmem>>, vector<1x2x512xbf16>
    %47 = vector.shape_cast %46 : vector<1x2x512xbf16> to vector<2x512xbf16>
    %c5 = arith.constant 5 : index
    %c0_41 = arith.constant 0 : index
    %c0_42 = arith.constant 0 : index
    %48 = vector.load %arg2[%c5, %c0_41, %c0_42] : memref<9x512x256xbf16, #tpu.memory_space<vmem>>, vector<1x512x256xbf16>
    %49 = vector.shape_cast %48 : vector<1x512x256xbf16> to vector<512x256xbf16>
    %cst_43 = arith.constant dense<0.000000e+00> : vector<2x256xf32>
    %50 = tpu.matmul %47, %49, %cst_43 {dimension_numbers = #tpu.dot_dimension_numbers<[1], [0], [0], [1], [0, 0, 1, 1], [], []>} : vector<2x512xbf16>, vector<512x256xbf16>, vector<2x256xf32> -> vector<2x256xf32>
    %c1_44 = arith.constant 1 : index
    %c0_45 = arith.constant 0 : index
    %c0_46 = arith.constant 0 : index
    %51 = vector.load %arg1[%c1_44, %c0_45, %c0_46] : memref<4x2x512xbf16, #tpu.memory_space<vmem>>, vector<1x2x512xbf16>
    %52 = vector.shape_cast %51 : vector<1x2x512xbf16> to vector<2x512xbf16>
    %c6 = arith.constant 6 : index
    %c0_47 = arith.constant 0 : index
    %c0_48 = arith.constant 0 : index
    %53 = vector.load %arg2[%c6, %c0_47, %c0_48] : memref<9x512x256xbf16, #tpu.memory_space<vmem>>, vector<1x512x256xbf16>
    %54 = vector.shape_cast %53 : vector<1x512x256xbf16> to vector<512x256xbf16>
    %cst_49 = arith.constant dense<0.000000e+00> : vector<2x256xf32>
    %55 = tpu.matmul %52, %54, %cst_49 {dimension_numbers = #tpu.dot_dimension_numbers<[1], [0], [0], [1], [0, 0, 1, 1], [], []>} : vector<2x512xbf16>, vector<512x256xbf16>, vector<2x256xf32> -> vector<2x256xf32>
    %56 = arith.addf %50, %55 : vector<2x256xf32>
    %c2_50 = arith.constant 2 : index
    %c0_51 = arith.constant 0 : index
    %c0_52 = arith.constant 0 : index
    %57 = vector.load %arg1[%c2_50, %c0_51, %c0_52] : memref<4x2x512xbf16, #tpu.memory_space<vmem>>, vector<1x2x512xbf16>
    %58 = vector.shape_cast %57 : vector<1x2x512xbf16> to vector<2x512xbf16>
    %c7 = arith.constant 7 : index
    %c0_53 = arith.constant 0 : index
    %c0_54 = arith.constant 0 : index
    %59 = vector.load %arg2[%c7, %c0_53, %c0_54] : memref<9x512x256xbf16, #tpu.memory_space<vmem>>, vector<1x512x256xbf16>
    %60 = vector.shape_cast %59 : vector<1x512x256xbf16> to vector<512x256xbf16>
    %cst_55 = arith.constant dense<0.000000e+00> : vector<2x256xf32>
    %61 = tpu.matmul %58, %60, %cst_55 {dimension_numbers = #tpu.dot_dimension_numbers<[1], [0], [0], [1], [0, 0, 1, 1], [], []>} : vector<2x512xbf16>, vector<512x256xbf16>, vector<2x256xf32> -> vector<2x256xf32>
    %62 = arith.addf %56, %61 : vector<2x256xf32>
    %c3_56 = arith.constant 3 : index
    %c0_57 = arith.constant 0 : index
    %c0_58 = arith.constant 0 : index
    %63 = vector.load %arg1[%c3_56, %c0_57, %c0_58] : memref<4x2x512xbf16, #tpu.memory_space<vmem>>, vector<1x2x512xbf16>
    %64 = vector.shape_cast %63 : vector<1x2x512xbf16> to vector<2x512xbf16>
    %c8 = arith.constant 8 : index
    %c0_59 = arith.constant 0 : index
    %c0_60 = arith.constant 0 : index
    %65 = vector.load %arg2[%c8, %c0_59, %c0_60] : memref<9x512x256xbf16, #tpu.memory_space<vmem>>, vector<1x512x256xbf16>
    %66 = vector.shape_cast %65 : vector<1x512x256xbf16> to vector<512x256xbf16>
    %cst_61 = arith.constant dense<0.000000e+00> : vector<2x256xf32>
    %67 = tpu.matmul %64, %66, %cst_61 {dimension_numbers = #tpu.dot_dimension_numbers<[1], [0], [0], [1], [0, 0, 1, 1], [], []>} : vector<2x512xbf16>, vector<512x256xbf16>, vector<2x256xf32> -> vector<2x256xf32>
    %68 = arith.addf %62, %67 : vector<2x256xf32>
    %69 = vector.broadcast %0 : vector<1x256xf32> to vector<2x256xf32>
    %70 = arith.addf %68, %69 : vector<2x256xf32>
    %cst_62 = arith.constant 0.000000e+00 : f32
    %71 = vector.broadcast %cst_62 : f32 to vector<2x256xf32>
    %72 = arith.maximumf %70, %71 : vector<2x256xf32>
    %73 = arith.truncf %72 : vector<2x256xf32> to vector<2x256xbf16>
    %c0_63 = arith.constant 0 : index
    %c768 = arith.constant 768 : index
    %74 = vector.load %arg4[%c0_63, %c768] : memref<2x1024xbf16, #tpu.memory_space<vmem>>, vector<2x256xbf16>
    tpu.vector_store %arg4[%c0_63, %c768], %73 {strides = array<i32>} : memref<2x1024xbf16, #tpu.memory_space<vmem>>, vector<2x256xbf16>,
    return
  }
  func.func @transform_0(%arg0: i32) -> (i32, i32, i32) {
    %c0_i32 = arith.constant 0 : i32
    %c0_i32_0 = arith.constant 0 : i32
    %c0_i32_1 = arith.constant 0 : i32
    %c0_i32_2 = arith.constant 0 : i32
    return %c0_i32, %c0_i32_0, %c0_i32_1 : i32, i32, i32
  }
  func.func @transform_1(%arg0: i32) -> (i32, i32, i32) {
    %c0_i32 = arith.constant 0 : i32
    %c0_i32_0 = arith.constant 0 : i32
    %c0_i32_1 = arith.constant 0 : i32
    %c0_i32_2 = arith.constant 0 : i32
    return %c0_i32, %c0_i32_0, %c0_i32_1 : i32, i32, i32
  }
  func.func @transform_2(%arg0: i32) -> (i32, i32) {
    %c0_i32 = arith.constant 0 : i32
    %c0_i32_0 = arith.constant 0 : i32
    %c0_i32_1 = arith.constant 0 : i32
    return %c0_i32, %c0_i32_0 : i32, i32
  }
  func.func @transform_3(%arg0: i32) -> (i32, i32) {
    %c0_i32 = arith.constant 0 : i32
    %c0_i32_0 = arith.constant 0 : i32
    %c0_i32_1 = arith.constant 0 : i32
    return %c0_i32, %c0_i32_0 : i32, i32
  }
}

module attributes {stable_mosaic.version = 11 : i64} {
  func.func @_dec_conv_kernel(%arg0: i32, %arg1: memref<4x8x256xbf16, #tpu.memory_space<vmem>>, %arg2: memref<9x256x128xbf16, #tpu.memory_space<vmem>>, %arg3: memref<1x128xf32, #tpu.memory_space<vmem>>, %arg4: memref<8x512xbf16, #tpu.memory_space<vmem>>) attributes {dimension_semantics = [#tpu.dimension_semantics<arbitrary>], iteration_bounds = array<i64: 1>, scalar_prefetch = 0 : i64, scratch_operands = 0 : i64, tpu.core_type = #tpu.core_type<tc>, window_params = [{pipeline_mode = #tpu.pipeline_mode<synchronous>, transform_indices = @transform_0, window_bounds = array<i64: 4, 8, 256>}, {pipeline_mode = #tpu.pipeline_mode<synchronous>, transform_indices = @transform_1, window_bounds = array<i64: 9, 256, 128>}, {pipeline_mode = #tpu.pipeline_mode<synchronous>, transform_indices = @transform_2, window_bounds = array<i64: 1, 128>}, {pipeline_mode = #tpu.pipeline_mode<synchronous>, transform_indices = @transform_3, window_bounds = array<i64: 8, 512>}]} {
    %c0 = arith.constant 0 : index
    %c0_0 = arith.constant 0 : index
    %0 = vector.load %arg3[%c0, %c0_0] : memref<1x128xf32, #tpu.memory_space<vmem>>, vector<1x128xf32>
    %c0_1 = arith.constant 0 : index
    %c0_2 = arith.constant 0 : index
    %c0_3 = arith.constant 0 : index
    %1 = vector.load %arg1[%c0_1, %c0_2, %c0_3] : memref<4x8x256xbf16, #tpu.memory_space<vmem>>, vector<1x8x256xbf16>
    %2 = vector.shape_cast %1 : vector<1x8x256xbf16> to vector<8x256xbf16>
    %c0_4 = arith.constant 0 : index
    %c0_5 = arith.constant 0 : index
    %c0_6 = arith.constant 0 : index
    %3 = vector.load %arg2[%c0_4, %c0_5, %c0_6] : memref<9x256x128xbf16, #tpu.memory_space<vmem>>, vector<1x256x128xbf16>
    %4 = vector.shape_cast %3 : vector<1x256x128xbf16> to vector<256x128xbf16>
    %cst = arith.constant dense<0.000000e+00> : vector<8x128xf32>
    %5 = tpu.matmul %2, %4, %cst {dimension_numbers = #tpu.dot_dimension_numbers<[1], [0], [0], [1], [0, 0, 1, 1], [], []>} : vector<8x256xbf16>, vector<256x128xbf16>, vector<8x128xf32> -> vector<8x128xf32>
    %6 = vector.broadcast %0 : vector<1x128xf32> to vector<8x128xf32>
    %7 = arith.addf %5, %6 : vector<8x128xf32>
    %cst_7 = arith.constant 0.000000e+00 : f32
    %8 = vector.broadcast %cst_7 : f32 to vector<8x128xf32>
    %9 = arith.maximumf %7, %8 : vector<8x128xf32>
    %10 = arith.truncf %9 : vector<8x128xf32> to vector<8x128xbf16>
    %c0_8 = arith.constant 0 : index
    %c0_9 = arith.constant 0 : index
    %11 = vector.load %arg4[%c0_8, %c0_9] : memref<8x512xbf16, #tpu.memory_space<vmem>>, vector<8x128xbf16>
    tpu.vector_store %arg4[%c0_8, %c0_9], %10 {strides = array<i32>} : memref<8x512xbf16, #tpu.memory_space<vmem>>, vector<8x128xbf16>,
    %c0_10 = arith.constant 0 : index
    %c0_11 = arith.constant 0 : index
    %c0_12 = arith.constant 0 : index
    %12 = vector.load %arg1[%c0_10, %c0_11, %c0_12] : memref<4x8x256xbf16, #tpu.memory_space<vmem>>, vector<1x8x256xbf16>
    %13 = vector.shape_cast %12 : vector<1x8x256xbf16> to vector<8x256xbf16>
    %c1 = arith.constant 1 : index
    %c0_13 = arith.constant 0 : index
    %c0_14 = arith.constant 0 : index
    %14 = vector.load %arg2[%c1, %c0_13, %c0_14] : memref<9x256x128xbf16, #tpu.memory_space<vmem>>, vector<1x256x128xbf16>
    %15 = vector.shape_cast %14 : vector<1x256x128xbf16> to vector<256x128xbf16>
    %cst_15 = arith.constant dense<0.000000e+00> : vector<8x128xf32>
    %16 = tpu.matmul %13, %15, %cst_15 {dimension_numbers = #tpu.dot_dimension_numbers<[1], [0], [0], [1], [0, 0, 1, 1], [], []>} : vector<8x256xbf16>, vector<256x128xbf16>, vector<8x128xf32> -> vector<8x128xf32>
    %c1_16 = arith.constant 1 : index
    %c0_17 = arith.constant 0 : index
    %c0_18 = arith.constant 0 : index
    %17 = vector.load %arg1[%c1_16, %c0_17, %c0_18] : memref<4x8x256xbf16, #tpu.memory_space<vmem>>, vector<1x8x256xbf16>
    %18 = vector.shape_cast %17 : vector<1x8x256xbf16> to vector<8x256xbf16>
    %c2 = arith.constant 2 : index
    %c0_19 = arith.constant 0 : index
    %c0_20 = arith.constant 0 : index
    %19 = vector.load %arg2[%c2, %c0_19, %c0_20] : memref<9x256x128xbf16, #tpu.memory_space<vmem>>, vector<1x256x128xbf16>
    %20 = vector.shape_cast %19 : vector<1x256x128xbf16> to vector<256x128xbf16>
    %cst_21 = arith.constant dense<0.000000e+00> : vector<8x128xf32>
    %21 = tpu.matmul %18, %20, %cst_21 {dimension_numbers = #tpu.dot_dimension_numbers<[1], [0], [0], [1], [0, 0, 1, 1], [], []>} : vector<8x256xbf16>, vector<256x128xbf16>, vector<8x128xf32> -> vector<8x128xf32>
    %22 = arith.addf %16, %21 : vector<8x128xf32>
    %23 = vector.broadcast %0 : vector<1x128xf32> to vector<8x128xf32>
    %24 = arith.addf %22, %23 : vector<8x128xf32>
    %cst_22 = arith.constant 0.000000e+00 : f32
    %25 = vector.broadcast %cst_22 : f32 to vector<8x128xf32>
    %26 = arith.maximumf %24, %25 : vector<8x128xf32>
    %27 = arith.truncf %26 : vector<8x128xf32> to vector<8x128xbf16>
    %c0_23 = arith.constant 0 : index
    %c128 = arith.constant 128 : index
    %28 = vector.load %arg4[%c0_23, %c128] : memref<8x512xbf16, #tpu.memory_space<vmem>>, vector<8x128xbf16>
    tpu.vector_store %arg4[%c0_23, %c128], %27 {strides = array<i32>} : memref<8x512xbf16, #tpu.memory_space<vmem>>, vector<8x128xbf16>,
    %c0_24 = arith.constant 0 : index
    %c0_25 = arith.constant 0 : index
    %c0_26 = arith.constant 0 : index
    %29 = vector.load %arg1[%c0_24, %c0_25, %c0_26] : memref<4x8x256xbf16, #tpu.memory_space<vmem>>, vector<1x8x256xbf16>
    %30 = vector.shape_cast %29 : vector<1x8x256xbf16> to vector<8x256xbf16>
    %c3 = arith.constant 3 : index
    %c0_27 = arith.constant 0 : index
    %c0_28 = arith.constant 0 : index
    %31 = vector.load %arg2[%c3, %c0_27, %c0_28] : memref<9x256x128xbf16, #tpu.memory_space<vmem>>, vector<1x256x128xbf16>
    %32 = vector.shape_cast %31 : vector<1x256x128xbf16> to vector<256x128xbf16>
    %cst_29 = arith.constant dense<0.000000e+00> : vector<8x128xf32>
    %33 = tpu.matmul %30, %32, %cst_29 {dimension_numbers = #tpu.dot_dimension_numbers<[1], [0], [0], [1], [0, 0, 1, 1], [], []>} : vector<8x256xbf16>, vector<256x128xbf16>, vector<8x128xf32> -> vector<8x128xf32>
    %c2_30 = arith.constant 2 : index
    %c0_31 = arith.constant 0 : index
    %c0_32 = arith.constant 0 : index
    %34 = vector.load %arg1[%c2_30, %c0_31, %c0_32] : memref<4x8x256xbf16, #tpu.memory_space<vmem>>, vector<1x8x256xbf16>
    %35 = vector.shape_cast %34 : vector<1x8x256xbf16> to vector<8x256xbf16>
    %c4 = arith.constant 4 : index
    %c0_33 = arith.constant 0 : index
    %c0_34 = arith.constant 0 : index
    %36 = vector.load %arg2[%c4, %c0_33, %c0_34] : memref<9x256x128xbf16, #tpu.memory_space<vmem>>, vector<1x256x128xbf16>
    %37 = vector.shape_cast %36 : vector<1x256x128xbf16> to vector<256x128xbf16>
    %cst_35 = arith.constant dense<0.000000e+00> : vector<8x128xf32>
    %38 = tpu.matmul %35, %37, %cst_35 {dimension_numbers = #tpu.dot_dimension_numbers<[1], [0], [0], [1], [0, 0, 1, 1], [], []>} : vector<8x256xbf16>, vector<256x128xbf16>, vector<8x128xf32> -> vector<8x128xf32>
    %39 = arith.addf %33, %38 : vector<8x128xf32>
    %40 = vector.broadcast %0 : vector<1x128xf32> to vector<8x128xf32>
    %41 = arith.addf %39, %40 : vector<8x128xf32>
    %cst_36 = arith.constant 0.000000e+00 : f32
    %42 = vector.broadcast %cst_36 : f32 to vector<8x128xf32>
    %43 = arith.maximumf %41, %42 : vector<8x128xf32>
    %44 = arith.truncf %43 : vector<8x128xf32> to vector<8x128xbf16>
    %c0_37 = arith.constant 0 : index
    %c256 = arith.constant 256 : index
    %45 = vector.load %arg4[%c0_37, %c256] : memref<8x512xbf16, #tpu.memory_space<vmem>>, vector<8x128xbf16>
    tpu.vector_store %arg4[%c0_37, %c256], %44 {strides = array<i32>} : memref<8x512xbf16, #tpu.memory_space<vmem>>, vector<8x128xbf16>,
    %c0_38 = arith.constant 0 : index
    %c0_39 = arith.constant 0 : index
    %c0_40 = arith.constant 0 : index
    %46 = vector.load %arg1[%c0_38, %c0_39, %c0_40] : memref<4x8x256xbf16, #tpu.memory_space<vmem>>, vector<1x8x256xbf16>
    %47 = vector.shape_cast %46 : vector<1x8x256xbf16> to vector<8x256xbf16>
    %c5 = arith.constant 5 : index
    %c0_41 = arith.constant 0 : index
    %c0_42 = arith.constant 0 : index
    %48 = vector.load %arg2[%c5, %c0_41, %c0_42] : memref<9x256x128xbf16, #tpu.memory_space<vmem>>, vector<1x256x128xbf16>
    %49 = vector.shape_cast %48 : vector<1x256x128xbf16> to vector<256x128xbf16>
    %cst_43 = arith.constant dense<0.000000e+00> : vector<8x128xf32>
    %50 = tpu.matmul %47, %49, %cst_43 {dimension_numbers = #tpu.dot_dimension_numbers<[1], [0], [0], [1], [0, 0, 1, 1], [], []>} : vector<8x256xbf16>, vector<256x128xbf16>, vector<8x128xf32> -> vector<8x128xf32>
    %c1_44 = arith.constant 1 : index
    %c0_45 = arith.constant 0 : index
    %c0_46 = arith.constant 0 : index
    %51 = vector.load %arg1[%c1_44, %c0_45, %c0_46] : memref<4x8x256xbf16, #tpu.memory_space<vmem>>, vector<1x8x256xbf16>
    %52 = vector.shape_cast %51 : vector<1x8x256xbf16> to vector<8x256xbf16>
    %c6 = arith.constant 6 : index
    %c0_47 = arith.constant 0 : index
    %c0_48 = arith.constant 0 : index
    %53 = vector.load %arg2[%c6, %c0_47, %c0_48] : memref<9x256x128xbf16, #tpu.memory_space<vmem>>, vector<1x256x128xbf16>
    %54 = vector.shape_cast %53 : vector<1x256x128xbf16> to vector<256x128xbf16>
    %cst_49 = arith.constant dense<0.000000e+00> : vector<8x128xf32>
    %55 = tpu.matmul %52, %54, %cst_49 {dimension_numbers = #tpu.dot_dimension_numbers<[1], [0], [0], [1], [0, 0, 1, 1], [], []>} : vector<8x256xbf16>, vector<256x128xbf16>, vector<8x128xf32> -> vector<8x128xf32>
    %56 = arith.addf %50, %55 : vector<8x128xf32>
    %c2_50 = arith.constant 2 : index
    %c0_51 = arith.constant 0 : index
    %c0_52 = arith.constant 0 : index
    %57 = vector.load %arg1[%c2_50, %c0_51, %c0_52] : memref<4x8x256xbf16, #tpu.memory_space<vmem>>, vector<1x8x256xbf16>
    %58 = vector.shape_cast %57 : vector<1x8x256xbf16> to vector<8x256xbf16>
    %c7 = arith.constant 7 : index
    %c0_53 = arith.constant 0 : index
    %c0_54 = arith.constant 0 : index
    %59 = vector.load %arg2[%c7, %c0_53, %c0_54] : memref<9x256x128xbf16, #tpu.memory_space<vmem>>, vector<1x256x128xbf16>
    %60 = vector.shape_cast %59 : vector<1x256x128xbf16> to vector<256x128xbf16>
    %cst_55 = arith.constant dense<0.000000e+00> : vector<8x128xf32>
    %61 = tpu.matmul %58, %60, %cst_55 {dimension_numbers = #tpu.dot_dimension_numbers<[1], [0], [0], [1], [0, 0, 1, 1], [], []>} : vector<8x256xbf16>, vector<256x128xbf16>, vector<8x128xf32> -> vector<8x128xf32>
    %62 = arith.addf %56, %61 : vector<8x128xf32>
    %c3_56 = arith.constant 3 : index
    %c0_57 = arith.constant 0 : index
    %c0_58 = arith.constant 0 : index
    %63 = vector.load %arg1[%c3_56, %c0_57, %c0_58] : memref<4x8x256xbf16, #tpu.memory_space<vmem>>, vector<1x8x256xbf16>
    %64 = vector.shape_cast %63 : vector<1x8x256xbf16> to vector<8x256xbf16>
    %c8 = arith.constant 8 : index
    %c0_59 = arith.constant 0 : index
    %c0_60 = arith.constant 0 : index
    %65 = vector.load %arg2[%c8, %c0_59, %c0_60] : memref<9x256x128xbf16, #tpu.memory_space<vmem>>, vector<1x256x128xbf16>
    %66 = vector.shape_cast %65 : vector<1x256x128xbf16> to vector<256x128xbf16>
    %cst_61 = arith.constant dense<0.000000e+00> : vector<8x128xf32>
    %67 = tpu.matmul %64, %66, %cst_61 {dimension_numbers = #tpu.dot_dimension_numbers<[1], [0], [0], [1], [0, 0, 1, 1], [], []>} : vector<8x256xbf16>, vector<256x128xbf16>, vector<8x128xf32> -> vector<8x128xf32>
    %68 = arith.addf %62, %67 : vector<8x128xf32>
    %69 = vector.broadcast %0 : vector<1x128xf32> to vector<8x128xf32>
    %70 = arith.addf %68, %69 : vector<8x128xf32>
    %cst_62 = arith.constant 0.000000e+00 : f32
    %71 = vector.broadcast %cst_62 : f32 to vector<8x128xf32>
    %72 = arith.maximumf %70, %71 : vector<8x128xf32>
    %73 = arith.truncf %72 : vector<8x128xf32> to vector<8x128xbf16>
    %c0_63 = arith.constant 0 : index
    %c384 = arith.constant 384 : index
    %74 = vector.load %arg4[%c0_63, %c384] : memref<8x512xbf16, #tpu.memory_space<vmem>>, vector<8x128xbf16>
    tpu.vector_store %arg4[%c0_63, %c384], %73 {strides = array<i32>} : memref<8x512xbf16, #tpu.memory_space<vmem>>, vector<8x128xbf16>,
    return
  }
  func.func @transform_0(%arg0: i32) -> (i32, i32, i32) {
    %c0_i32 = arith.constant 0 : i32
    %c0_i32_0 = arith.constant 0 : i32
    %c0_i32_1 = arith.constant 0 : i32
    %c0_i32_2 = arith.constant 0 : i32
    return %c0_i32, %c0_i32_0, %c0_i32_1 : i32, i32, i32
  }
  func.func @transform_1(%arg0: i32) -> (i32, i32, i32) {
    %c0_i32 = arith.constant 0 : i32
    %c0_i32_0 = arith.constant 0 : i32
    %c0_i32_1 = arith.constant 0 : i32
    %c0_i32_2 = arith.constant 0 : i32
    return %c0_i32, %c0_i32_0, %c0_i32_1 : i32, i32, i32
  }
  func.func @transform_2(%arg0: i32) -> (i32, i32) {
    %c0_i32 = arith.constant 0 : i32
    %c0_i32_0 = arith.constant 0 : i32
    %c0_i32_1 = arith.constant 0 : i32
    return %c0_i32, %c0_i32_0 : i32, i32
  }
  func.func @transform_3(%arg0: i32) -> (i32, i32) {
    %c0_i32 = arith.constant 0 : i32
    %c0_i32_0 = arith.constant 0 : i32
    %c0_i32_1 = arith.constant 0 : i32
    return %c0_i32, %c0_i32_0 : i32, i32
  }
}

module attributes {stable_mosaic.version = 11 : i64} {
  func.func @_dec_conv_kernel(%arg0: i32, %arg1: memref<4x32x128xbf16, #tpu.memory_space<vmem>>, %arg2: memref<9x128x64xbf16, #tpu.memory_space<vmem>>, %arg3: memref<1x64xf32, #tpu.memory_space<vmem>>, %arg4: memref<32x256xbf16, #tpu.memory_space<vmem>>) attributes {dimension_semantics = [#tpu.dimension_semantics<arbitrary>], iteration_bounds = array<i64: 1>, scalar_prefetch = 0 : i64, scratch_operands = 0 : i64, tpu.core_type = #tpu.core_type<tc>, window_params = [{pipeline_mode = #tpu.pipeline_mode<synchronous>, transform_indices = @transform_0, window_bounds = array<i64: 4, 32, 128>}, {pipeline_mode = #tpu.pipeline_mode<synchronous>, transform_indices = @transform_1, window_bounds = array<i64: 9, 128, 64>}, {pipeline_mode = #tpu.pipeline_mode<synchronous>, transform_indices = @transform_2, window_bounds = array<i64: 1, 64>}, {pipeline_mode = #tpu.pipeline_mode<synchronous>, transform_indices = @transform_3, window_bounds = array<i64: 32, 256>}]} {
    %c0 = arith.constant 0 : index
    %c0_0 = arith.constant 0 : index
    %0 = vector.load %arg3[%c0, %c0_0] : memref<1x64xf32, #tpu.memory_space<vmem>>, vector<1x64xf32>
    %c0_1 = arith.constant 0 : index
    %c0_2 = arith.constant 0 : index
    %c0_3 = arith.constant 0 : index
    %1 = vector.load %arg1[%c0_1, %c0_2, %c0_3] : memref<4x32x128xbf16, #tpu.memory_space<vmem>>, vector<1x32x128xbf16>
    %2 = vector.shape_cast %1 : vector<1x32x128xbf16> to vector<32x128xbf16>
    %c0_4 = arith.constant 0 : index
    %c0_5 = arith.constant 0 : index
    %c0_6 = arith.constant 0 : index
    %3 = vector.load %arg2[%c0_4, %c0_5, %c0_6] : memref<9x128x64xbf16, #tpu.memory_space<vmem>>, vector<1x128x64xbf16>
    %4 = vector.shape_cast %3 : vector<1x128x64xbf16> to vector<128x64xbf16>
    %cst = arith.constant dense<0.000000e+00> : vector<32x64xf32>
    %5 = tpu.matmul %2, %4, %cst {dimension_numbers = #tpu.dot_dimension_numbers<[1], [0], [0], [1], [0, 0, 1, 1], [], []>} : vector<32x128xbf16>, vector<128x64xbf16>, vector<32x64xf32> -> vector<32x64xf32>
    %6 = vector.broadcast %0 : vector<1x64xf32> to vector<32x64xf32>
    %7 = arith.addf %5, %6 : vector<32x64xf32>
    %cst_7 = arith.constant 0.000000e+00 : f32
    %8 = vector.broadcast %cst_7 : f32 to vector<32x64xf32>
    %9 = arith.maximumf %7, %8 : vector<32x64xf32>
    %10 = arith.truncf %9 : vector<32x64xf32> to vector<32x64xbf16>
    %c0_8 = arith.constant 0 : index
    %c0_9 = arith.constant 0 : index
    %11 = vector.load %arg4[%c0_8, %c0_9] : memref<32x256xbf16, #tpu.memory_space<vmem>>, vector<32x64xbf16>
    tpu.vector_store %arg4[%c0_8, %c0_9], %10 {strides = array<i32>} : memref<32x256xbf16, #tpu.memory_space<vmem>>, vector<32x64xbf16>,
    %c0_10 = arith.constant 0 : index
    %c0_11 = arith.constant 0 : index
    %c0_12 = arith.constant 0 : index
    %12 = vector.load %arg1[%c0_10, %c0_11, %c0_12] : memref<4x32x128xbf16, #tpu.memory_space<vmem>>, vector<1x32x128xbf16>
    %13 = vector.shape_cast %12 : vector<1x32x128xbf16> to vector<32x128xbf16>
    %c1 = arith.constant 1 : index
    %c0_13 = arith.constant 0 : index
    %c0_14 = arith.constant 0 : index
    %14 = vector.load %arg2[%c1, %c0_13, %c0_14] : memref<9x128x64xbf16, #tpu.memory_space<vmem>>, vector<1x128x64xbf16>
    %15 = vector.shape_cast %14 : vector<1x128x64xbf16> to vector<128x64xbf16>
    %cst_15 = arith.constant dense<0.000000e+00> : vector<32x64xf32>
    %16 = tpu.matmul %13, %15, %cst_15 {dimension_numbers = #tpu.dot_dimension_numbers<[1], [0], [0], [1], [0, 0, 1, 1], [], []>} : vector<32x128xbf16>, vector<128x64xbf16>, vector<32x64xf32> -> vector<32x64xf32>
    %c1_16 = arith.constant 1 : index
    %c0_17 = arith.constant 0 : index
    %c0_18 = arith.constant 0 : index
    %17 = vector.load %arg1[%c1_16, %c0_17, %c0_18] : memref<4x32x128xbf16, #tpu.memory_space<vmem>>, vector<1x32x128xbf16>
    %18 = vector.shape_cast %17 : vector<1x32x128xbf16> to vector<32x128xbf16>
    %c2 = arith.constant 2 : index
    %c0_19 = arith.constant 0 : index
    %c0_20 = arith.constant 0 : index
    %19 = vector.load %arg2[%c2, %c0_19, %c0_20] : memref<9x128x64xbf16, #tpu.memory_space<vmem>>, vector<1x128x64xbf16>
    %20 = vector.shape_cast %19 : vector<1x128x64xbf16> to vector<128x64xbf16>
    %cst_21 = arith.constant dense<0.000000e+00> : vector<32x64xf32>
    %21 = tpu.matmul %18, %20, %cst_21 {dimension_numbers = #tpu.dot_dimension_numbers<[1], [0], [0], [1], [0, 0, 1, 1], [], []>} : vector<32x128xbf16>, vector<128x64xbf16>, vector<32x64xf32> -> vector<32x64xf32>
    %22 = arith.addf %16, %21 : vector<32x64xf32>
    %23 = vector.broadcast %0 : vector<1x64xf32> to vector<32x64xf32>
    %24 = arith.addf %22, %23 : vector<32x64xf32>
    %cst_22 = arith.constant 0.000000e+00 : f32
    %25 = vector.broadcast %cst_22 : f32 to vector<32x64xf32>
    %26 = arith.maximumf %24, %25 : vector<32x64xf32>
    %27 = arith.truncf %26 : vector<32x64xf32> to vector<32x64xbf16>
    %c0_23 = arith.constant 0 : index
    %c64 = arith.constant 64 : index
    %28 = vector.load %arg4[%c0_23, %c64] : memref<32x256xbf16, #tpu.memory_space<vmem>>, vector<32x64xbf16>
    tpu.vector_store %arg4[%c0_23, %c64], %27 {strides = array<i32>} : memref<32x256xbf16, #tpu.memory_space<vmem>>, vector<32x64xbf16>,
    %c0_24 = arith.constant 0 : index
    %c0_25 = arith.constant 0 : index
    %c0_26 = arith.constant 0 : index
    %29 = vector.load %arg1[%c0_24, %c0_25, %c0_26] : memref<4x32x128xbf16, #tpu.memory_space<vmem>>, vector<1x32x128xbf16>
    %30 = vector.shape_cast %29 : vector<1x32x128xbf16> to vector<32x128xbf16>
    %c3 = arith.constant 3 : index
    %c0_27 = arith.constant 0 : index
    %c0_28 = arith.constant 0 : index
    %31 = vector.load %arg2[%c3, %c0_27, %c0_28] : memref<9x128x64xbf16, #tpu.memory_space<vmem>>, vector<1x128x64xbf16>
    %32 = vector.shape_cast %31 : vector<1x128x64xbf16> to vector<128x64xbf16>
    %cst_29 = arith.constant dense<0.000000e+00> : vector<32x64xf32>
    %33 = tpu.matmul %30, %32, %cst_29 {dimension_numbers = #tpu.dot_dimension_numbers<[1], [0], [0], [1], [0, 0, 1, 1], [], []>} : vector<32x128xbf16>, vector<128x64xbf16>, vector<32x64xf32> -> vector<32x64xf32>
    %c2_30 = arith.constant 2 : index
    %c0_31 = arith.constant 0 : index
    %c0_32 = arith.constant 0 : index
    %34 = vector.load %arg1[%c2_30, %c0_31, %c0_32] : memref<4x32x128xbf16, #tpu.memory_space<vmem>>, vector<1x32x128xbf16>
    %35 = vector.shape_cast %34 : vector<1x32x128xbf16> to vector<32x128xbf16>
    %c4 = arith.constant 4 : index
    %c0_33 = arith.constant 0 : index
    %c0_34 = arith.constant 0 : index
    %36 = vector.load %arg2[%c4, %c0_33, %c0_34] : memref<9x128x64xbf16, #tpu.memory_space<vmem>>, vector<1x128x64xbf16>
    %37 = vector.shape_cast %36 : vector<1x128x64xbf16> to vector<128x64xbf16>
    %cst_35 = arith.constant dense<0.000000e+00> : vector<32x64xf32>
    %38 = tpu.matmul %35, %37, %cst_35 {dimension_numbers = #tpu.dot_dimension_numbers<[1], [0], [0], [1], [0, 0, 1, 1], [], []>} : vector<32x128xbf16>, vector<128x64xbf16>, vector<32x64xf32> -> vector<32x64xf32>
    %39 = arith.addf %33, %38 : vector<32x64xf32>
    %40 = vector.broadcast %0 : vector<1x64xf32> to vector<32x64xf32>
    %41 = arith.addf %39, %40 : vector<32x64xf32>
    %cst_36 = arith.constant 0.000000e+00 : f32
    %42 = vector.broadcast %cst_36 : f32 to vector<32x64xf32>
    %43 = arith.maximumf %41, %42 : vector<32x64xf32>
    %44 = arith.truncf %43 : vector<32x64xf32> to vector<32x64xbf16>
    %c0_37 = arith.constant 0 : index
    %c128 = arith.constant 128 : index
    %45 = vector.load %arg4[%c0_37, %c128] : memref<32x256xbf16, #tpu.memory_space<vmem>>, vector<32x64xbf16>
    tpu.vector_store %arg4[%c0_37, %c128], %44 {strides = array<i32>} : memref<32x256xbf16, #tpu.memory_space<vmem>>, vector<32x64xbf16>,
    %c0_38 = arith.constant 0 : index
    %c0_39 = arith.constant 0 : index
    %c0_40 = arith.constant 0 : index
    %46 = vector.load %arg1[%c0_38, %c0_39, %c0_40] : memref<4x32x128xbf16, #tpu.memory_space<vmem>>, vector<1x32x128xbf16>
    %47 = vector.shape_cast %46 : vector<1x32x128xbf16> to vector<32x128xbf16>
    %c5 = arith.constant 5 : index
    %c0_41 = arith.constant 0 : index
    %c0_42 = arith.constant 0 : index
    %48 = vector.load %arg2[%c5, %c0_41, %c0_42] : memref<9x128x64xbf16, #tpu.memory_space<vmem>>, vector<1x128x64xbf16>
    %49 = vector.shape_cast %48 : vector<1x128x64xbf16> to vector<128x64xbf16>
    %cst_43 = arith.constant dense<0.000000e+00> : vector<32x64xf32>
    %50 = tpu.matmul %47, %49, %cst_43 {dimension_numbers = #tpu.dot_dimension_numbers<[1], [0], [0], [1], [0, 0, 1, 1], [], []>} : vector<32x128xbf16>, vector<128x64xbf16>, vector<32x64xf32> -> vector<32x64xf32>
    %c1_44 = arith.constant 1 : index
    %c0_45 = arith.constant 0 : index
    %c0_46 = arith.constant 0 : index
    %51 = vector.load %arg1[%c1_44, %c0_45, %c0_46] : memref<4x32x128xbf16, #tpu.memory_space<vmem>>, vector<1x32x128xbf16>
    %52 = vector.shape_cast %51 : vector<1x32x128xbf16> to vector<32x128xbf16>
    %c6 = arith.constant 6 : index
    %c0_47 = arith.constant 0 : index
    %c0_48 = arith.constant 0 : index
    %53 = vector.load %arg2[%c6, %c0_47, %c0_48] : memref<9x128x64xbf16, #tpu.memory_space<vmem>>, vector<1x128x64xbf16>
    %54 = vector.shape_cast %53 : vector<1x128x64xbf16> to vector<128x64xbf16>
    %cst_49 = arith.constant dense<0.000000e+00> : vector<32x64xf32>
    %55 = tpu.matmul %52, %54, %cst_49 {dimension_numbers = #tpu.dot_dimension_numbers<[1], [0], [0], [1], [0, 0, 1, 1], [], []>} : vector<32x128xbf16>, vector<128x64xbf16>, vector<32x64xf32> -> vector<32x64xf32>
    %56 = arith.addf %50, %55 : vector<32x64xf32>
    %c2_50 = arith.constant 2 : index
    %c0_51 = arith.constant 0 : index
    %c0_52 = arith.constant 0 : index
    %57 = vector.load %arg1[%c2_50, %c0_51, %c0_52] : memref<4x32x128xbf16, #tpu.memory_space<vmem>>, vector<1x32x128xbf16>
    %58 = vector.shape_cast %57 : vector<1x32x128xbf16> to vector<32x128xbf16>
    %c7 = arith.constant 7 : index
    %c0_53 = arith.constant 0 : index
    %c0_54 = arith.constant 0 : index
    %59 = vector.load %arg2[%c7, %c0_53, %c0_54] : memref<9x128x64xbf16, #tpu.memory_space<vmem>>, vector<1x128x64xbf16>
    %60 = vector.shape_cast %59 : vector<1x128x64xbf16> to vector<128x64xbf16>
    %cst_55 = arith.constant dense<0.000000e+00> : vector<32x64xf32>
    %61 = tpu.matmul %58, %60, %cst_55 {dimension_numbers = #tpu.dot_dimension_numbers<[1], [0], [0], [1], [0, 0, 1, 1], [], []>} : vector<32x128xbf16>, vector<128x64xbf16>, vector<32x64xf32> -> vector<32x64xf32>
    %62 = arith.addf %56, %61 : vector<32x64xf32>
    %c3_56 = arith.constant 3 : index
    %c0_57 = arith.constant 0 : index
    %c0_58 = arith.constant 0 : index
    %63 = vector.load %arg1[%c3_56, %c0_57, %c0_58] : memref<4x32x128xbf16, #tpu.memory_space<vmem>>, vector<1x32x128xbf16>
    %64 = vector.shape_cast %63 : vector<1x32x128xbf16> to vector<32x128xbf16>
    %c8 = arith.constant 8 : index
    %c0_59 = arith.constant 0 : index
    %c0_60 = arith.constant 0 : index
    %65 = vector.load %arg2[%c8, %c0_59, %c0_60] : memref<9x128x64xbf16, #tpu.memory_space<vmem>>, vector<1x128x64xbf16>
    %66 = vector.shape_cast %65 : vector<1x128x64xbf16> to vector<128x64xbf16>
    %cst_61 = arith.constant dense<0.000000e+00> : vector<32x64xf32>
    %67 = tpu.matmul %64, %66, %cst_61 {dimension_numbers = #tpu.dot_dimension_numbers<[1], [0], [0], [1], [0, 0, 1, 1], [], []>} : vector<32x128xbf16>, vector<128x64xbf16>, vector<32x64xf32> -> vector<32x64xf32>
    %68 = arith.addf %62, %67 : vector<32x64xf32>
    %69 = vector.broadcast %0 : vector<1x64xf32> to vector<32x64xf32>
    %70 = arith.addf %68, %69 : vector<32x64xf32>
    %cst_62 = arith.constant 0.000000e+00 : f32
    %71 = vector.broadcast %cst_62 : f32 to vector<32x64xf32>
    %72 = arith.maximumf %70, %71 : vector<32x64xf32>
    %73 = arith.truncf %72 : vector<32x64xf32> to vector<32x64xbf16>
    %c0_63 = arith.constant 0 : index
    %c192 = arith.constant 192 : index
    %74 = vector.load %arg4[%c0_63, %c192] : memref<32x256xbf16, #tpu.memory_space<vmem>>, vector<32x64xbf16>
    tpu.vector_store %arg4[%c0_63, %c192], %73 {strides = array<i32>} : memref<32x256xbf16, #tpu.memory_space<vmem>>, vector<32x64xbf16>,
    return
  }
  func.func @transform_0(%arg0: i32) -> (i32, i32, i32) {
    %c0_i32 = arith.constant 0 : i32
    %c0_i32_0 = arith.constant 0 : i32
    %c0_i32_1 = arith.constant 0 : i32
    %c0_i32_2 = arith.constant 0 : i32
    return %c0_i32, %c0_i32_0, %c0_i32_1 : i32, i32, i32
  }
  func.func @transform_1(%arg0: i32) -> (i32, i32, i32) {
    %c0_i32 = arith.constant 0 : i32
    %c0_i32_0 = arith.constant 0 : i32
    %c0_i32_1 = arith.constant 0 : i32
    %c0_i32_2 = arith.constant 0 : i32
    return %c0_i32, %c0_i32_0, %c0_i32_1 : i32, i32, i32
  }
  func.func @transform_2(%arg0: i32) -> (i32, i32) {
    %c0_i32 = arith.constant 0 : i32
    %c0_i32_0 = arith.constant 0 : i32
    %c0_i32_1 = arith.constant 0 : i32
    return %c0_i32, %c0_i32_0 : i32, i32
  }
  func.func @transform_3(%arg0: i32) -> (i32, i32) {
    %c0_i32 = arith.constant 0 : i32
    %c0_i32_0 = arith.constant 0 : i32
    %c0_i32_1 = arith.constant 0 : i32
    return %c0_i32, %c0_i32_0 : i32, i32
  }
}

module attributes {stable_mosaic.version = 11 : i64} {
  func.func @_dec_conv_kernel(%arg0: i32, %arg1: memref<4x128x64xbf16, #tpu.memory_space<vmem>>, %arg2: memref<9x64x128xbf16, #tpu.memory_space<vmem>>, %arg3: memref<1x128xf32, #tpu.memory_space<vmem>>, %arg4: memref<128x512xf32, #tpu.memory_space<vmem>>) attributes {dimension_semantics = [#tpu.dimension_semantics<arbitrary>], iteration_bounds = array<i64: 1>, scalar_prefetch = 0 : i64, scratch_operands = 0 : i64, tpu.core_type = #tpu.core_type<tc>, window_params = [{pipeline_mode = #tpu.pipeline_mode<synchronous>, transform_indices = @transform_0, window_bounds = array<i64: 4, 128, 64>}, {pipeline_mode = #tpu.pipeline_mode<synchronous>, transform_indices = @transform_1, window_bounds = array<i64: 9, 64, 128>}, {pipeline_mode = #tpu.pipeline_mode<synchronous>, transform_indices = @transform_2, window_bounds = array<i64: 1, 128>}, {pipeline_mode = #tpu.pipeline_mode<synchronous>, transform_indices = @transform_3, window_bounds = array<i64: 128, 512>}]} {
    %c0 = arith.constant 0 : index
    %c0_0 = arith.constant 0 : index
    %0 = vector.load %arg3[%c0, %c0_0] : memref<1x128xf32, #tpu.memory_space<vmem>>, vector<1x128xf32>
    %c0_1 = arith.constant 0 : index
    %c0_2 = arith.constant 0 : index
    %c0_3 = arith.constant 0 : index
    %1 = vector.load %arg1[%c0_1, %c0_2, %c0_3] : memref<4x128x64xbf16, #tpu.memory_space<vmem>>, vector<1x128x64xbf16>
    %2 = vector.shape_cast %1 : vector<1x128x64xbf16> to vector<128x64xbf16>
    %c0_4 = arith.constant 0 : index
    %c0_5 = arith.constant 0 : index
    %c0_6 = arith.constant 0 : index
    %3 = vector.load %arg2[%c0_4, %c0_5, %c0_6] : memref<9x64x128xbf16, #tpu.memory_space<vmem>>, vector<1x64x128xbf16>
    %4 = vector.shape_cast %3 : vector<1x64x128xbf16> to vector<64x128xbf16>
    %cst = arith.constant dense<0.000000e+00> : vector<128x128xf32>
    %5 = tpu.matmul %2, %4, %cst {dimension_numbers = #tpu.dot_dimension_numbers<[1], [0], [0], [1], [0, 0, 1, 1], [], []>} : vector<128x64xbf16>, vector<64x128xbf16>, vector<128x128xf32> -> vector<128x128xf32>
    %6 = vector.broadcast %0 : vector<1x128xf32> to vector<128x128xf32>
    %7 = arith.addf %5, %6 : vector<128x128xf32>
    %8 = arith.negf %7 : vector<128x128xf32>
    %9 = math.exp %8 : vector<128x128xf32>
    %cst_7 = arith.constant 1.000000e+00 : f32
    %10 = vector.broadcast %cst_7 : f32 to vector<128x128xf32>
    %11 = arith.addf %10, %9 : vector<128x128xf32>
    %12 = arith.divf %10, %11 : vector<128x128xf32>
    %c0_8 = arith.constant 0 : index
    %c0_9 = arith.constant 0 : index
    %13 = vector.load %arg4[%c0_8, %c0_9] : memref<128x512xf32, #tpu.memory_space<vmem>>, vector<128x128xf32>
    tpu.vector_store %arg4[%c0_8, %c0_9], %12 {strides = array<i32>} : memref<128x512xf32, #tpu.memory_space<vmem>>, vector<128x128xf32>,
    %c0_10 = arith.constant 0 : index
    %c0_11 = arith.constant 0 : index
    %c0_12 = arith.constant 0 : index
    %14 = vector.load %arg1[%c0_10, %c0_11, %c0_12] : memref<4x128x64xbf16, #tpu.memory_space<vmem>>, vector<1x128x64xbf16>
    %15 = vector.shape_cast %14 : vector<1x128x64xbf16> to vector<128x64xbf16>
    %c1 = arith.constant 1 : index
    %c0_13 = arith.constant 0 : index
    %c0_14 = arith.constant 0 : index
    %16 = vector.load %arg2[%c1, %c0_13, %c0_14] : memref<9x64x128xbf16, #tpu.memory_space<vmem>>, vector<1x64x128xbf16>
    %17 = vector.shape_cast %16 : vector<1x64x128xbf16> to vector<64x128xbf16>
    %cst_15 = arith.constant dense<0.000000e+00> : vector<128x128xf32>
    %18 = tpu.matmul %15, %17, %cst_15 {dimension_numbers = #tpu.dot_dimension_numbers<[1], [0], [0], [1], [0, 0, 1, 1], [], []>} : vector<128x64xbf16>, vector<64x128xbf16>, vector<128x128xf32> -> vector<128x128xf32>
    %c1_16 = arith.constant 1 : index
    %c0_17 = arith.constant 0 : index
    %c0_18 = arith.constant 0 : index
    %19 = vector.load %arg1[%c1_16, %c0_17, %c0_18] : memref<4x128x64xbf16, #tpu.memory_space<vmem>>, vector<1x128x64xbf16>
    %20 = vector.shape_cast %19 : vector<1x128x64xbf16> to vector<128x64xbf16>
    %c2 = arith.constant 2 : index
    %c0_19 = arith.constant 0 : index
    %c0_20 = arith.constant 0 : index
    %21 = vector.load %arg2[%c2, %c0_19, %c0_20] : memref<9x64x128xbf16, #tpu.memory_space<vmem>>, vector<1x64x128xbf16>
    %22 = vector.shape_cast %21 : vector<1x64x128xbf16> to vector<64x128xbf16>
    %cst_21 = arith.constant dense<0.000000e+00> : vector<128x128xf32>
    %23 = tpu.matmul %20, %22, %cst_21 {dimension_numbers = #tpu.dot_dimension_numbers<[1], [0], [0], [1], [0, 0, 1, 1], [], []>} : vector<128x64xbf16>, vector<64x128xbf16>, vector<128x128xf32> -> vector<128x128xf32>
    %24 = arith.addf %18, %23 : vector<128x128xf32>
    %25 = vector.broadcast %0 : vector<1x128xf32> to vector<128x128xf32>
    %26 = arith.addf %24, %25 : vector<128x128xf32>
    %27 = arith.negf %26 : vector<128x128xf32>
    %28 = math.exp %27 : vector<128x128xf32>
    %cst_22 = arith.constant 1.000000e+00 : f32
    %29 = vector.broadcast %cst_22 : f32 to vector<128x128xf32>
    %30 = arith.addf %29, %28 : vector<128x128xf32>
    %31 = arith.divf %29, %30 : vector<128x128xf32>
    %c0_23 = arith.constant 0 : index
    %c128 = arith.constant 128 : index
    %32 = vector.load %arg4[%c0_23, %c128] : memref<128x512xf32, #tpu.memory_space<vmem>>, vector<128x128xf32>
    tpu.vector_store %arg4[%c0_23, %c128], %31 {strides = array<i32>} : memref<128x512xf32, #tpu.memory_space<vmem>>, vector<128x128xf32>,
    %c0_24 = arith.constant 0 : index
    %c0_25 = arith.constant 0 : index
    %c0_26 = arith.constant 0 : index
    %33 = vector.load %arg1[%c0_24, %c0_25, %c0_26] : memref<4x128x64xbf16, #tpu.memory_space<vmem>>, vector<1x128x64xbf16>
    %34 = vector.shape_cast %33 : vector<1x128x64xbf16> to vector<128x64xbf16>
    %c3 = arith.constant 3 : index
    %c0_27 = arith.constant 0 : index
    %c0_28 = arith.constant 0 : index
    %35 = vector.load %arg2[%c3, %c0_27, %c0_28] : memref<9x64x128xbf16, #tpu.memory_space<vmem>>, vector<1x64x128xbf16>
    %36 = vector.shape_cast %35 : vector<1x64x128xbf16> to vector<64x128xbf16>
    %cst_29 = arith.constant dense<0.000000e+00> : vector<128x128xf32>
    %37 = tpu.matmul %34, %36, %cst_29 {dimension_numbers = #tpu.dot_dimension_numbers<[1], [0], [0], [1], [0, 0, 1, 1], [], []>} : vector<128x64xbf16>, vector<64x128xbf16>, vector<128x128xf32> -> vector<128x128xf32>
    %c2_30 = arith.constant 2 : index
    %c0_31 = arith.constant 0 : index
    %c0_32 = arith.constant 0 : index
    %38 = vector.load %arg1[%c2_30, %c0_31, %c0_32] : memref<4x128x64xbf16, #tpu.memory_space<vmem>>, vector<1x128x64xbf16>
    %39 = vector.shape_cast %38 : vector<1x128x64xbf16> to vector<128x64xbf16>
    %c4 = arith.constant 4 : index
    %c0_33 = arith.constant 0 : index
    %c0_34 = arith.constant 0 : index
    %40 = vector.load %arg2[%c4, %c0_33, %c0_34] : memref<9x64x128xbf16, #tpu.memory_space<vmem>>, vector<1x64x128xbf16>
    %41 = vector.shape_cast %40 : vector<1x64x128xbf16> to vector<64x128xbf16>
    %cst_35 = arith.constant dense<0.000000e+00> : vector<128x128xf32>
    %42 = tpu.matmul %39, %41, %cst_35 {dimension_numbers = #tpu.dot_dimension_numbers<[1], [0], [0], [1], [0, 0, 1, 1], [], []>} : vector<128x64xbf16>, vector<64x128xbf16>, vector<128x128xf32> -> vector<128x128xf32>
    %43 = arith.addf %37, %42 : vector<128x128xf32>
    %44 = vector.broadcast %0 : vector<1x128xf32> to vector<128x128xf32>
    %45 = arith.addf %43, %44 : vector<128x128xf32>
    %46 = arith.negf %45 : vector<128x128xf32>
    %47 = math.exp %46 : vector<128x128xf32>
    %cst_36 = arith.constant 1.000000e+00 : f32
    %48 = vector.broadcast %cst_36 : f32 to vector<128x128xf32>
    %49 = arith.addf %48, %47 : vector<128x128xf32>
    %50 = arith.divf %48, %49 : vector<128x128xf32>
    %c0_37 = arith.constant 0 : index
    %c256 = arith.constant 256 : index
    %51 = vector.load %arg4[%c0_37, %c256] : memref<128x512xf32, #tpu.memory_space<vmem>>, vector<128x128xf32>
    tpu.vector_store %arg4[%c0_37, %c256], %50 {strides = array<i32>} : memref<128x512xf32, #tpu.memory_space<vmem>>, vector<128x128xf32>,
    %c0_38 = arith.constant 0 : index
    %c0_39 = arith.constant 0 : index
    %c0_40 = arith.constant 0 : index
    %52 = vector.load %arg1[%c0_38, %c0_39, %c0_40] : memref<4x128x64xbf16, #tpu.memory_space<vmem>>, vector<1x128x64xbf16>
    %53 = vector.shape_cast %52 : vector<1x128x64xbf16> to vector<128x64xbf16>
    %c5 = arith.constant 5 : index
    %c0_41 = arith.constant 0 : index
    %c0_42 = arith.constant 0 : index
    %54 = vector.load %arg2[%c5, %c0_41, %c0_42] : memref<9x64x128xbf16, #tpu.memory_space<vmem>>, vector<1x64x128xbf16>
    %55 = vector.shape_cast %54 : vector<1x64x128xbf16> to vector<64x128xbf16>
    %cst_43 = arith.constant dense<0.000000e+00> : vector<128x128xf32>
    %56 = tpu.matmul %53, %55, %cst_43 {dimension_numbers = #tpu.dot_dimension_numbers<[1], [0], [0], [1], [0, 0, 1, 1], [], []>} : vector<128x64xbf16>, vector<64x128xbf16>, vector<128x128xf32> -> vector<128x128xf32>
    %c1_44 = arith.constant 1 : index
    %c0_45 = arith.constant 0 : index
    %c0_46 = arith.constant 0 : index
    %57 = vector.load %arg1[%c1_44, %c0_45, %c0_46] : memref<4x128x64xbf16, #tpu.memory_space<vmem>>, vector<1x128x64xbf16>
    %58 = vector.shape_cast %57 : vector<1x128x64xbf16> to vector<128x64xbf16>
    %c6 = arith.constant 6 : index
    %c0_47 = arith.constant 0 : index
    %c0_48 = arith.constant 0 : index
    %59 = vector.load %arg2[%c6, %c0_47, %c0_48] : memref<9x64x128xbf16, #tpu.memory_space<vmem>>, vector<1x64x128xbf16>
    %60 = vector.shape_cast %59 : vector<1x64x128xbf16> to vector<64x128xbf16>
    %cst_49 = arith.constant dense<0.000000e+00> : vector<128x128xf32>
    %61 = tpu.matmul %58, %60, %cst_49 {dimension_numbers = #tpu.dot_dimension_numbers<[1], [0], [0], [1], [0, 0, 1, 1], [], []>} : vector<128x64xbf16>, vector<64x128xbf16>, vector<128x128xf32> -> vector<128x128xf32>
    %62 = arith.addf %56, %61 : vector<128x128xf32>
    %c2_50 = arith.constant 2 : index
    %c0_51 = arith.constant 0 : index
    %c0_52 = arith.constant 0 : index
    %63 = vector.load %arg1[%c2_50, %c0_51, %c0_52] : memref<4x128x64xbf16, #tpu.memory_space<vmem>>, vector<1x128x64xbf16>
    %64 = vector.shape_cast %63 : vector<1x128x64xbf16> to vector<128x64xbf16>
    %c7 = arith.constant 7 : index
    %c0_53 = arith.constant 0 : index
    %c0_54 = arith.constant 0 : index
    %65 = vector.load %arg2[%c7, %c0_53, %c0_54] : memref<9x64x128xbf16, #tpu.memory_space<vmem>>, vector<1x64x128xbf16>
    %66 = vector.shape_cast %65 : vector<1x64x128xbf16> to vector<64x128xbf16>
    %cst_55 = arith.constant dense<0.000000e+00> : vector<128x128xf32>
    %67 = tpu.matmul %64, %66, %cst_55 {dimension_numbers = #tpu.dot_dimension_numbers<[1], [0], [0], [1], [0, 0, 1, 1], [], []>} : vector<128x64xbf16>, vector<64x128xbf16>, vector<128x128xf32> -> vector<128x128xf32>
    %68 = arith.addf %62, %67 : vector<128x128xf32>
    %c3_56 = arith.constant 3 : index
    %c0_57 = arith.constant 0 : index
    %c0_58 = arith.constant 0 : index
    %69 = vector.load %arg1[%c3_56, %c0_57, %c0_58] : memref<4x128x64xbf16, #tpu.memory_space<vmem>>, vector<1x128x64xbf16>
    %70 = vector.shape_cast %69 : vector<1x128x64xbf16> to vector<128x64xbf16>
    %c8 = arith.constant 8 : index
    %c0_59 = arith.constant 0 : index
    %c0_60 = arith.constant 0 : index
    %71 = vector.load %arg2[%c8, %c0_59, %c0_60] : memref<9x64x128xbf16, #tpu.memory_space<vmem>>, vector<1x64x128xbf16>
    %72 = vector.shape_cast %71 : vector<1x64x128xbf16> to vector<64x128xbf16>
    %cst_61 = arith.constant dense<0.000000e+00> : vector<128x128xf32>
    %73 = tpu.matmul %70, %72, %cst_61 {dimension_numbers = #tpu.dot_dimension_numbers<[1], [0], [0], [1], [0, 0, 1, 1], [], []>} : vector<128x64xbf16>, vector<64x128xbf16>, vector<128x128xf32> -> vector<128x128xf32>
    %74 = arith.addf %68, %73 : vector<128x128xf32>
    %75 = vector.broadcast %0 : vector<1x128xf32> to vector<128x128xf32>
    %76 = arith.addf %74, %75 : vector<128x128xf32>
    %77 = arith.negf %76 : vector<128x128xf32>
    %78 = math.exp %77 : vector<128x128xf32>
    %cst_62 = arith.constant 1.000000e+00 : f32
    %79 = vector.broadcast %cst_62 : f32 to vector<128x128xf32>
    %80 = arith.addf %79, %78 : vector<128x128xf32>
    %81 = arith.divf %79, %80 : vector<128x128xf32>
    %c0_63 = arith.constant 0 : index
    %c384 = arith.constant 384 : index
    %82 = vector.load %arg4[%c0_63, %c384] : memref<128x512xf32, #tpu.memory_space<vmem>>, vector<128x128xf32>
    tpu.vector_store %arg4[%c0_63, %c384], %81 {strides = array<i32>} : memref<128x512xf32, #tpu.memory_space<vmem>>, vector<128x128xf32>,
    return
  }
  func.func @transform_0(%arg0: i32) -> (i32, i32, i32) {
    %c0_i32 = arith.constant 0 : i32
    %c0_i32_0 = arith.constant 0 : i32
    %c0_i32_1 = arith.constant 0 : i32
    %c0_i32_2 = arith.constant 0 : i32
    return %c0_i32, %c0_i32_0, %c0_i32_1 : i32, i32, i32
  }
  func.func @transform_1(%arg0: i32) -> (i32, i32, i32) {
    %c0_i32 = arith.constant 0 : i32
    %c0_i32_0 = arith.constant 0 : i32
    %c0_i32_1 = arith.constant 0 : i32
    %c0_i32_2 = arith.constant 0 : i32
    return %c0_i32, %c0_i32_0, %c0_i32_1 : i32, i32, i32
  }
  func.func @transform_2(%arg0: i32) -> (i32, i32) {
    %c0_i32 = arith.constant 0 : i32
    %c0_i32_0 = arith.constant 0 : i32
    %c0_i32_1 = arith.constant 0 : i32
    return %c0_i32, %c0_i32_0 : i32, i32
  }
  func.func @transform_3(%arg0: i32) -> (i32, i32) {
    %c0_i32 = arith.constant 0 : i32
    %c0_i32_0 = arith.constant 0 : i32
    %c0_i32_1 = arith.constant 0 : i32
    return %c0_i32, %c0_i32_0 : i32, i32
  }
}

</mosaic_0001>

<bundles_post_ra>
// kernel: autoencoder_forward.9
= control target key start
LH: loop header
LB: loop body
LE: loop exit
PB: predicated region body
PF: predicated region fallthrough
CT: control target
= control target key end

     0   :  { %8 = vsyncpa [#allocation3], 0  ;;  %s1586_s0 = inlined_call_operand.vmem [shape: bf16[9,32,64], index: 0, kind: input, shape index: {}]   ;;  %s1587_s1 = inlined_call_operand.hbm [shape: bf16[9,64,128], index: 1, kind: input, shape index: {}]   ;;  %s1588_s2 = inlined_call_operand.hbm [shape: f32[1,128], index: 2, kind: input, shape index: {}]   ;;  %s1589_s3 = inlined_call_operand.vmem [shape: bf16[32,128], index: 3, kind: output, shape index: {}]  }
   0x1   :  { %9 = vsyncpa [#allocation5], 0  ;;  %s1460_s12 = smov [#allocation2]   ;;  %s1412_s16 = scalar_lea.hbm %s1587_s1, 4608 }
   0x2   :  { %s17_s13 = sshll.u32 %s1460_s12, 4  ;;  %p1413_p0 = scmp.ne.s32.totalorder %s1587_s1, %s1412_s16  ;;  %s18_s13 = int_to_ptr.vmem [resolvable:$true] %s17_s13 }
   0x3   :  { %p1416_p1 = scmp.lt.u32.totalorder %s1412_s16, %s1587_s1 }
   0x5   :  { %p1418_p2 = pnand %p1416_p1, %p1413_p0 }
   0x7   :  { %1421 = shalt.err (!%p1418_p2)
}
   0x8   :  { %s1422_s21 = scalar_lea.vmem %s18_s13, 4608  ;;  %p1427_p4 = scmp.lt.s32.totalorder %s18_s13, %s18_s13 }
   0x9   :  { %p1423_p3 = scmp.ne.s32.totalorder %s18_s13, %s1422_s21  ;;  %p1428_p5 = scmp.lt.s32.totalorder %s1422_s21, %s1422_s21 }
   0xb   :  { %p1429_p6 = por %p1428_p5, %p1427_p4 }
   0xd   :  { %p1430_p7 = pnand %p1429_p6, %p1423_p3 }
   0xf   :  { %1433 = shalt.err (!%p1430_p7)
}
  0x10   :  { %s1461_s22 = smov 64   ;;  %s1462_s23 = smov 4  }
  0x11   :  { %23 = dma.hbm_to_vmem [thread:$0]  %s1587_s1, 4608, %s18_s13, [#allocation3], %s1461_s22, %s1461_s22, %s1462_s23  }
  0x12   :  { %s1463_s26 = smov [#allocation4]   ;;  %s1434_s30 = scalar_lea.hbm %s1588_s2, 16 }
  0x13   :  { %s30_s27 = sshll.u32 %s1463_s26, 4  ;;  %p1435_p8 = scmp.ne.s32.totalorder %s1588_s2, %s1434_s30  ;;  %s31_s27 = int_to_ptr.vmem [resolvable:$true] %s30_s27 }
  0x14   :  { %p1438_p9 = scmp.lt.u32.totalorder %s1434_s30, %s1588_s2 }
  0x16   :  { %p1440_p10 = pnand %p1438_p9, %p1435_p8 }
  0x18   :  { %1443 = shalt.err (!%p1440_p10)
}
  0x19   :  { %s1444_s8 = scalar_lea.vmem %s31_s27, 16  ;;  %s1448_s1 = scalar_lea.vmem %s31_s27, 32 }
  0x1a   :  { %p1445_p11 = scmp.ne.s32.totalorder %s31_s27, %s1444_s8  ;;  %p1449_p12 = scmp.lt.s32.totalorder %s31_s27, %s31_s27 }
  0x1b   :  { %p1450_p13 = scmp.lt.s32.totalorder %s1448_s1, %s1444_s8 }
  0x1d   :  { %p1451_p0 = por %p1450_p13, %p1449_p12 }
  0x1f   :  { %p1452_p1 = pnand %p1451_p0, %p1445_p11 }
  0x21   :  { %1455 = shalt.err (!%p1452_p1)
}
  0x22   :  { %33 = dma.hbm_to_vmem [thread:$0]  %s1588_s2, 16, %s31_s27, [#allocation5]  }
  0x23   :  { %1456 = dma.done.wait [#allocation3], 4608  }
  0x24   :  { %1457 = vsyncadd [#allocation3], 4294962688 }
  0x25   :  { %1458 = dma.done.wait [#allocation5], 16  }
  0x26   :  { %1459 = vsyncadd [#allocation5], 4294967280  ;;  %v1358_v0 = vld [vmem:[#allocation2 + $0x20] sm:$0xff]   ;;  %v1360_v2 = vld [vmem:[#allocation2 + $0x28] sm:$0xff]   ;;  %vm101_vm0 = vcmask 523264  }
  0x27   :  { %v1359_v1 = vld [vmem:[#allocation2 + $0x80] sm:$0xff]   ;;  %1214 = vmatprep.subr.bf16.mxu1 %v1358_v0  ;;  %v1361_v3 = vld [vmem:[#allocation2 + $0x88] sm:$0xff]   ;;  %v1362_v4 = vld [vmem:[#allocation2 + $0x30] sm:$0xff]  }
  0x28   :  { %1262 = vmatprep.subr.bf16.mxu0 %v1359_v1  ;;  %1215 = vmatpush3.bf16.msra.mxu1 %v1358_v0  ;;  %v1363_v5 = vld [vmem:[#allocation2 + $0x90] sm:$0xff]   ;;  %v1364_v6 = vld [vmem:[#allocation2 + $0x38] sm:$0xff]   ;;  %v1368_v9 = vld [vmem:[%s1586_s0 + $0x40] sm:$0xff]  }
  0x29   :  { %1263 = vmatpush3.bf16.msra.mxu0 %v1359_v1  ;;  %1216 = vmatprep.subr.bf16.mxu1 %v1360_v2  ;;  %v1366_v7 = vld [vmem:[%s1586_s0 + $0x10] sm:$0xff]   ;;  %v1365_v8 = vld [vmem:[#allocation2 + $0x98] sm:$0xff]   ;;  %v1367_v10 = vld [vmem:[#allocation2] sm:$0xff]  }
  0x2a   :  { %1264 = vmatprep.subr.bf16.mxu0 %v1361_v3  ;;  %1222 = vmatprep.mubr.msk.bf16.mxu1 %vm101_vm0, %v1366_v7  ;;  %v1369_v11 = vld [vmem:[#allocation2 + $0xa0] sm:$0xff]   ;;  %v1370_v12 = vld [vmem:[%s1586_s0 + $0x18] sm:$0xff]   ;;  %v1371_v13 = vld [vmem:[%s1586_s0 + $0x48] sm:$0xff]  }
  0x2b   :  { %1270 = vmatprep.mubr.msk.bf16.mxu0 %vm101_vm0, %v1368_v9  ;;  %v1372_v14 = vld [vmem:[#allocation2 + $0x8] sm:$0xff]   ;;  %v1374_v16 = vld [vmem:[#allocation2 + $0x10] sm:$0xff]   ;;  %v1378_v17 = vld [vmem:[%s1586_s0] sm:$0xff]  }
  0x2c   :  { %1217 = vmatpush3.bf16.msra.mxu1 %v1360_v2  ;;  %v1373_v15 = vld [vmem:[#allocation2 + $0xa8] sm:$0xff]   ;;  %v1375_v18 = vld [vmem:[#allocation2 + $0xb0] sm:$0xff]   ;;  %v1376_v20 = vld [vmem:[#allocation2 + $0x18] sm:$0xff]  }
  0x2d   :  { %1265 = vmatpush3.bf16.msra.mxu0 %v1361_v3  ;;  %1218 = vmatprep.subr.bf16.mxu1 %v1362_v4  ;;  %v1380_v19 = vld [vmem:[%s1586_s0 + $0x50] sm:$0xff]   ;;  %v1377_v21 = vld [vmem:[#allocation2 + $0xb8] sm:$0xff]   ;;  %v1379_v22 = vld [vmem:[#allocation2 + $0x40] sm:$0xff]  }
  0x2e   :  { %1266 = vmatprep.subr.bf16.mxu0 %v1363_v5  ;;  %v1381_v23 = vld [vmem:[#allocation2 + $0xc0] sm:$0xff]   ;;  %v1382_v24 = vld [vmem:[%s1586_s0 + $0x8] sm:$0xff]   ;;  %v1383_v25 = vld [vmem:[%s1586_s0 + $0x58] sm:$0xff]  }
  0x2f   :  { %v1384_v26 = vld [vmem:[#allocation2 + $0x48] sm:$0xff]   ;;  %v1390_v28 = vld [vmem:[%s1586_s0 + $0x20] sm:$0xff]   ;;  %v1386_v30 = vld [vmem:[#allocation2 + $0x50] sm:$0xff]  }
  0x30   :  { %1219 = vmatpush3.bf16.msra.mxu1 %v1362_v4  ;;  %v1385_v27 = vld [vmem:[#allocation2 + $0xc8] sm:$0xff]   ;;  %v1392_v29 = vld [vmem:[%s1586_s0 + $0x60] sm:$0xff]   ;;  %v1387_v31 = vld [vmem:[#allocation2 + $0xd0] sm:$0xff]  }
  0x31   :  { %1267 = vmatpush3.bf16.msra.mxu0 %v1363_v5  ;;  %1220 = vmatprep.subr.bf16.mxu1 %v1364_v6  ;;  %v1388_v32 = vld [vmem:[#allocation2 + $0x58] sm:$0xff]   ;;  %v1391_v34 = vld [vmem:[#allocation2 + $0x60] sm:$0xff]   ;;  %v1394_v36 = vld [vmem:[%s1586_s0 + $0x28] sm:$0xff]  }
  0x32   :  { %1268 = vmatprep.subr.bf16.mxu0 %v1365_v8  ;;  %v1389_v33 = vld [vmem:[#allocation2 + $0xd8] sm:$0xff]   ;;  %v1393_v35 = vld [vmem:[#allocation2 + $0xe0] sm:$0xff]   ;;  %v1395_v37 = vld [vmem:[%s1586_s0 + $0x68] sm:$0xff]  }
  0x33   :  { %v1396_v38 = vld [vmem:[#allocation2 + $0x68] sm:$0xff]   ;;  %v1402_v40 = vld [vmem:[%s1586_s0 + $0x30] sm:$0xff]   ;;  %v1400_v44 = vld [vmem:[#allocation2 + $0x78] sm:$0xff]  }
  0x34   :  { %1221 = vmatpush3.bf16.msra.mxu1 %v1364_v6  ;;  %v1397_v39 = vld [vmem:[#allocation2 + $0xe8] sm:$0xff]   ;;  %v1404_v41 = vld [vmem:[%s1586_s0 + $0x70] sm:$0xff]   ;;  %v1401_v45 = vld [vmem:[#allocation2 + $0xf8] sm:$0xff]  }
  0x35   :  { %1269 = vmatpush3.bf16.msra.mxu0 %v1365_v8  ;;  %1226 = vmatprep.subr.bf16.mxu1 %v1367_v10  ;;  %v1398_v42 = vld [vmem:[#allocation2 + $0x70] sm:$0xff]   ;;  %v1405_v46 = vld [vmem:[#allocation2 + $0x100] sm:$0xff]   ;;  %v1403_v47 = vld [vmem:[%s1586_s0 + $0x38] sm:$0xff]  }
  0x36   :  { %1274 = vmatprep.subr.bf16.mxu0 %v1369_v11  ;;  %v1399_v43 = vld [vmem:[#allocation2 + $0xf0] sm:$0xff]   ;;  %v1406_v48 = vld [vmem:[%s1586_s0 + $0x78] sm:$0xff]   ;;  %v1410_v49 = vld [vmem:[%s1586_s0 + $0x80] sm:$0xff]  }
  0x37   :  { %1223 = vmatmul.mubr.msk.bf16.vlgmr.msra.gmra.mrb[0].mxu1 %vm101_vm0, %v1370_v12  ;;  %v1407_v50 = vld [vmem:[#allocation2 + $0x108] sm:$0xff]   ;;  %v1408_v51 = vld [vmem:[#allocation2 + $0x110] sm:$0xff]   ;;  %v1409_v52 = vld [vmem:[#allocation2 + $0x118] sm:$0xff]  }
  0x38   :  { %1227 = vmatpush3.bf16.msra.mxu1 %v1367_v10  ;;  %1271 = vmatmul.mubr.msk.bf16.vlgmr.msra.gmra.mrb[0].mxu0 %vm101_vm0, %v1371_v13  ;;  %v1411_v53 = vld [vmem:[%s1586_s0 + $0x88] sm:$0xff]   ;;  %v1140_v59 = vld [vmem:[#allocation4] ss:$0 sm:$0xff] }
  0x39   :  { %1275 = vmatpush3.bf16.msra.mxu0 %v1369_v11  ;;  %1228 = vmatprep.subr.bf16.mxu1 %v1372_v14 }
  0x3a   :  { %1276 = vmatprep.subr.bf16.mxu0 %v1373_v15  ;;  %1234 = vmatprep.mubr.msk.bf16.mxu1 %vm101_vm0, %v1378_v17 }
  0x3b   :  { %1282 = vmatprep.mubr.msk.bf16.mxu0 %vm101_vm0, %v1380_v19 }
  0x3c   :  { %1229 = vmatpush3.bf16.msra.mxu1 %v1372_v14 }
  0x3d   :  { %1277 = vmatpush3.bf16.msra.mxu0 %v1373_v15  ;;  %1230 = vmatprep.subr.bf16.mxu1 %v1374_v16 }
  0x3e   :  { %1278 = vmatprep.subr.bf16.mxu0 %v1375_v18 }
  0x40   :  { %1231 = vmatpush3.bf16.msra.mxu1 %v1374_v16 }
  0x41   :  { %1279 = vmatpush3.bf16.msra.mxu0 %v1375_v18  ;;  %1232 = vmatprep.subr.bf16.mxu1 %v1376_v20 }
  0x42   :  { %1280 = vmatprep.subr.bf16.mxu0 %v1377_v21 }
  0x44   :  { %1233 = vmatpush3.bf16.msra.mxu1 %v1376_v20 }
  0x45   :  { %1281 = vmatpush3.bf16.msra.mxu0 %v1377_v21  ;;  %1238 = vmatprep.subr.bf16.mxu1 %v1379_v22 }
  0x46   :  { %1286 = vmatprep.subr.bf16.mxu0 %v1381_v23 }
  0x47   :  { %1235 = vmatmul.mubr.msk.bf16.vlgmr.msra.gmra.mrb[0].mxu1 %vm101_vm0, %v1382_v24 }
  0x48   :  { %1239 = vmatpush3.bf16.msra.mxu1 %v1379_v22  ;;  %1283 = vmatmul.mubr.msk.bf16.vlgmr.msra.gmra.mrb[0].mxu0 %vm101_vm0, %v1383_v25 }
  0x49   :  { %1287 = vmatpush3.bf16.msra.mxu0 %v1381_v23  ;;  %1240 = vmatprep.subr.bf16.mxu1 %v1384_v26 }
  0x4a   :  { %1288 = vmatprep.subr.bf16.mxu0 %v1385_v27  ;;  %1246 = vmatprep.mubr.msk.bf16.mxu1 %vm101_vm0, %v1390_v28 }
  0x4b   :  { %1294 = vmatprep.mubr.msk.bf16.mxu0 %vm101_vm0, %v1392_v29 }
  0x4c   :  { %1241 = vmatpush3.bf16.msra.mxu1 %v1384_v26 }
  0x4d   :  { %1289 = vmatpush3.bf16.msra.mxu0 %v1385_v27  ;;  %1242 = vmatprep.subr.bf16.mxu1 %v1386_v30 }
  0x4e   :  { %1290 = vmatprep.subr.bf16.mxu0 %v1387_v31 }
  0x50   :  { %1243 = vmatpush3.bf16.msra.mxu1 %v1386_v30 }
  0x51   :  { %1291 = vmatpush3.bf16.msra.mxu0 %v1387_v31  ;;  %1244 = vmatprep.subr.bf16.mxu1 %v1388_v32 }
  0x52   :  { %1292 = vmatprep.subr.bf16.mxu0 %v1389_v33 }
  0x54   :  { %1245 = vmatpush3.bf16.msra.mxu1 %v1388_v32 }
  0x55   :  { %1293 = vmatpush3.bf16.msra.mxu0 %v1389_v33  ;;  %1250 = vmatprep.subr.bf16.mxu1 %v1391_v34 }
  0x56   :  { %1298 = vmatprep.subr.bf16.mxu0 %v1393_v35 }
  0x57   :  { %1247 = vmatmul.mubr.msk.bf16.vlgmr.msra.gmra.mrb[0].mxu1 %vm101_vm0, %v1394_v36 }
  0x58   :  { %1251 = vmatpush3.bf16.msra.mxu1 %v1391_v34  ;;  %1295 = vmatmul.mubr.msk.bf16.vlgmr.msra.gmra.mrb[0].mxu0 %vm101_vm0, %v1395_v37 }
  0x59   :  { %1299 = vmatpush3.bf16.msra.mxu0 %v1393_v35  ;;  %1252 = vmatprep.subr.bf16.mxu1 %v1396_v38 }
  0x5a   :  { %1300 = vmatprep.subr.bf16.mxu0 %v1397_v39  ;;  %1258 = vmatprep.mubr.msk.bf16.mxu1 %vm101_vm0, %v1402_v40 }
  0x5b   :  { %1306 = vmatprep.mubr.msk.bf16.mxu0 %vm101_vm0, %v1404_v41 }
  0x5c   :  { %1253 = vmatpush3.bf16.msra.mxu1 %v1396_v38 }
  0x5d   :  { %1301 = vmatpush3.bf16.msra.mxu0 %v1397_v39  ;;  %1254 = vmatprep.subr.bf16.mxu1 %v1398_v42 }
  0x5e   :  { %1302 = vmatprep.subr.bf16.mxu0 %v1399_v43 }
  0x60   :  { %1255 = vmatpush3.bf16.msra.mxu1 %v1398_v42 }
  0x61   :  { %1303 = vmatpush3.bf16.msra.mxu0 %v1399_v43  ;;  %1256 = vmatprep.subr.bf16.mxu1 %v1400_v44 }
  0x62   :  { %1304 = vmatprep.subr.bf16.mxu0 %v1401_v45 }
  0x64   :  { %1257 = vmatpush3.bf16.msra.mxu1 %v1400_v44 }
  0x65   :  { %1305 = vmatpush3.bf16.msra.mxu0 %v1401_v45 }
  0x66   :  { %1310 = vmatprep.subr.bf16.mxu0 %v1405_v46 }
  0x67   :  { %1259 = vmatmul.mubr.msk.bf16.vlgmr.msra.gmra.mrb[0].mxu1 %vm101_vm0, %v1403_v47 }
  0x68   :  { %1307 = vmatmul.mubr.msk.bf16.vlgmr.msra.gmra.mrb[0].mxu0 %vm101_vm0, %v1406_v48 }
  0x69   :  { %1311 = vmatpush3.bf16.msra.mxu0 %v1405_v46  ;;  %1318 = vmatprep.mubr.msk.bf16.mxu0 %vm101_vm0, %v1410_v49 }
  0x6a   :  { %1312 = vmatprep.subr.bf16.mxu0 %v1407_v50 }
  0x6d   :  { %1313 = vmatpush3.bf16.msra.mxu0 %v1407_v50 }
  0x6e   :  { %1314 = vmatprep.subr.bf16.mxu0 %v1408_v51 }
  0x71   :  { %1315 = vmatpush3.bf16.msra.mxu0 %v1408_v51 }
  0x72   :  { %1316 = vmatprep.subr.bf16.mxu0 %v1409_v52 }
  0x75   :  { %1317 = vmatpush3.bf16.msra.mxu0 %v1409_v52 }
  0x78   :  { %1319 = vmatmul.mubr.msk.bf16.vlgmr.msra.gmra.mrb[0].mxu0 %vm101_vm0, %v1411_v53 }
 0x13a   :  { %v1260_v54 = vpop.f32.mrb[0].mxu1 }
 0x13b   :  { %v441_v55 = vpop.f32.mrb[1].mxu1 }
 0x13c   :  { %v1261_v56 = vpop.f32.mrb[2].mxu1 }
 0x13d   :  { %v444_v57 = vpop.f32.mrb[3].mxu1 }
 0x14b   :  { %v1320_v58 = vpop.f32.mrb[0].mxu0 }
 0x14c   :  { %v1322_v60 = vadd.f32 %v1320_v58, %v1260_v54  ;;  %v976_v61 = vpop.f32.mrb[1].mxu0 }
 0x14d   :  { %v1323_v62 = vadd.f32 %v976_v61, %v441_v55  ;;  %v1321_v63 = vpop.f32.mrb[2].mxu0 }
 0x14e   :  { %v1004_v0 = vadd.f32 %v1322_v60, %v1140_v59  ;;  %v1324_v1 = vadd.f32 %v1321_v63, %v1261_v56  ;;  %v979_v2 = vpop.f32.mrb[3].mxu0 }
 0x14f   :  { %v1002_v3 = vadd.f32 %v1323_v62, %v1140_v59  ;;  %v1325_v4 = vadd.f32 %v979_v2, %v444_v57 }
 0x150   :  { %v1005_v5 = vadd.f32 %v1324_v1, %v1140_v59  ;;  %v1008_v7 = vmax.f32 %v1004_v0, 0.0 }
 0x151   :  { %v1003_v6 = vadd.f32 %v1325_v4, %v1140_v59  ;;  %v1006_v9 = vmax.f32 %v1002_v3, 0.0 }
 0x152   :  { %v1009_v8 = vmax.f32 %v1005_v5, 0.0 }
 0x153   :  { %v1007_v10 = vmax.f32 %v1003_v6, 0.0 }
 0x154   :  { %v1157_v11 = vpack.c.bf16 %v1009_v8, %v1008_v7 }
 0x155   :  { %v1152_v12 = vpack.c.bf16 %v1007_v10, %v1006_v9 }
 0x156   :  { %1159 = vst [vmem:[%s1589_s3 + $0x8] sm:$0xff] %v1157_v11  }
 0x157   :  { %1153 = vst [vmem:[%s1589_s3] sm:$0xff] %v1152_v12  }
 0x158   :  { %1034 = vsyncpa [#allocation3], 1 }
 0x159   :  { %1035 = vsyncpa [#allocation5], 1 }

// kernel: autoencoder_forward.8
= control target key start
LH: loop header
LB: loop body
LE: loop exit
PB: predicated region body
PF: predicated region fallthrough
CT: control target
= control target key end

     0   :  { %8 = vsyncpa [#allocation3], 0  ;;  %s3168_s0 = inlined_call_operand.vmem [shape: bf16[9,128,3], index: 0, kind: input, shape index: {}]   ;;  %s3169_s1 = inlined_call_operand.hbm [shape: bf16[9,3,64], index: 1, kind: input, shape index: {}]   ;;  %s3170_s2 = inlined_call_operand.hbm [shape: f32[1,64], index: 2, kind: input, shape index: {}]   ;;  %s3171_s3 = inlined_call_operand.vmem [shape: bf16[128,64], index: 3, kind: output, shape index: {}]  }
   0x1   :  { %9 = vsyncpa [#allocation5], 0  ;;  %s2732_s12 = smov [#allocation2]   ;;  %s2684_s16 = scalar_lea.hbm %s3169_s1, 288 }
   0x2   :  { %s17_s13 = sshll.u32 %s2732_s12, 4  ;;  %p2685_p0 = scmp.ne.s32.totalorder %s3169_s1, %s2684_s16  ;;  %s18_s13 = int_to_ptr.vmem [resolvable:$true] %s17_s13 }
   0x3   :  { %p2688_p1 = scmp.lt.u32.totalorder %s2684_s16, %s3169_s1 }
   0x5   :  { %p2690_p2 = pnand %p2688_p1, %p2685_p0 }
   0x7   :  { %2693 = shalt.err (!%p2690_p2)
}
   0x8   :  { %s2694_s21 = scalar_lea.vmem %s18_s13, 288  ;;  %p2699_p4 = scmp.lt.s32.totalorder %s18_s13, %s18_s13 }
   0x9   :  { %p2695_p3 = scmp.ne.s32.totalorder %s18_s13, %s2694_s21  ;;  %p2700_p5 = scmp.lt.s32.totalorder %s2694_s21, %s2694_s21 }
   0xb   :  { %p2701_p6 = por %p2700_p5, %p2699_p4 }
   0xd   :  { %p2702_p7 = pnand %p2701_p6, %p2695_p3 }
   0xf   :  { %2705 = shalt.err (!%p2702_p7)
}
  0x10   :  { %s2733_s22 = smov 32   ;;  %s2734_s23 = smov 2  }
  0x11   :  { %23 = dma.hbm_to_vmem [thread:$0]  %s3169_s1, 288, %s18_s13, [#allocation3], %s2733_s22, %s2733_s22, %s2734_s23  }
  0x12   :  { %s2735_s26 = smov [#allocation4]   ;;  %s2706_s30 = scalar_lea.hbm %s3170_s2, 16 }
  0x13   :  { %s30_s27 = sshll.u32 %s2735_s26, 4  ;;  %p2707_p8 = scmp.ne.s32.totalorder %s3170_s2, %s2706_s30  ;;  %s31_s27 = int_to_ptr.vmem [resolvable:$true] %s30_s27 }
  0x14   :  { %p2710_p9 = scmp.lt.u32.totalorder %s2706_s30, %s3170_s2 }
  0x16   :  { %p2712_p10 = pnand %p2710_p9, %p2707_p8 }
  0x18   :  { %2715 = shalt.err (!%p2712_p10)
}
  0x19   :  { %s2716_s8 = scalar_lea.vmem %s31_s27, 16  ;;  %s2720_s1 = scalar_lea.vmem %s31_s27, 32 }
  0x1a   :  { %p2717_p11 = scmp.ne.s32.totalorder %s31_s27, %s2716_s8  ;;  %p2721_p12 = scmp.lt.s32.totalorder %s31_s27, %s31_s27 }
  0x1b   :  { %p2722_p13 = scmp.lt.s32.totalorder %s2720_s1, %s2716_s8 }
  0x1d   :  { %p2723_p0 = por %p2722_p13, %p2721_p12 }
  0x1f   :  { %p2724_p1 = pnand %p2723_p0, %p2717_p11 }
  0x21   :  { %2727 = shalt.err (!%p2724_p1)
}
  0x22   :  { %33 = dma.hbm_to_vmem [thread:$0]  %s3170_s2, 16, %s31_s27, [#allocation5]  }
  0x23   :  { %2728 = dma.done.wait [#allocation3], 288  }
  0x24   :  { %2729 = vsyncadd [#allocation3], 4294967008 }
  0x25   :  { %2730 = dma.done.wait [#allocation5], 16  }
  0x26   :  { %2731 = vsyncadd [#allocation5], 4294967280  ;;  %vm142_vm0 = vcmask 1040384   ;;  %vm143_vm1 = vcmask 1041408   ;;  %v2736_v0 = vmov 65535   ;;  %v2612_v7 = vld [vmem:[%s3168_s0 + $0x40] sm:$0xff]  }
  0x27   :  { %v144_v1 = vsel %vm142_vm0, 4294967295, %v2736_v0  ;;  %v76_v3 = vld [vmem:[#allocation2 + $0x2] sm:$0x3]  ;;  %v826_v4 = vld [vmem:[#allocation2 + $0x8] sm:$0x3]  ;;  %vm117_vm2 = vcmask 23552  }
  0x28   :  { %v2781_v2 = vsel %vm143_vm1, %v144_v1, 0  ;;  %v2613_v8 = vld [vmem:[%s3168_s0 + $0x100] sm:$0xff]   ;;  %v2614_v9 = vld [vmem:[%s3168_s0 + $0x48] sm:$0xff]   ;;  %2317 = vmatprep.mubr.msk.bf16.mxu1 %vm117_vm2, %v2612_v7  ;;  %v2616_v15 = vld [vmem:[%s3168_s0 + $0x50] sm:$0xff]   ;;  %vm1906_vm3 = vcmask 519168  }
  0x29   :  { %v147_v5 = vand.u32 %v2781_v2, %v76_v3  ;;  %v2785_v6 = vand.u32 %v826_v4, %v2781_v2  ;;  %v57_v10 = vld [vmem:[#allocation2] sm:$0x3]  ;;  %v2615_v12 = vld [vmem:[%s3168_s0 + $0x108] sm:$0xff]   ;;  %2389 = vmatprep.mubr.msk.bf16.mxu0 %vm117_vm2, %v2613_v8  ;;  %v2617_v16 = vld [vmem:[%s3168_s0 + $0x110] sm:$0xff]  }
  0x2a   :  { %v311_v11 = vand.u32 %v2781_v2, %v57_v10  ;;  %v1025_v13 = vld [vmem:[#allocation2 + $0xa] sm:$0x3]  ;;  %v2618_v17 = vld [vmem:[%s3168_s0 + $0x58] sm:$0xff]   ;;  %v2620_v19 = vld [vmem:[%s3168_s0 + $0x60] sm:$0xff]  }
  0x2b   :  { %2315 = vmatprep.subr.bf16.mxu1 %v147_v5  ;;  %2387 = vmatprep.subr.bf16.mxu0 %v2785_v6  ;;  %v1091_v14 = vand.u32 %v1025_v13, %v2781_v2  ;;  %v2619_v18 = vld [vmem:[%s3168_s0 + $0x118] sm:$0xff]   ;;  %v2621_v20 = vld [vmem:[%s3168_s0 + $0x140] sm:$0xff]   ;;  %v1224_v21 = vld [vmem:[#allocation2 + $0xc] sm:$0x3] }
  0x2c   :  { %2316 = vmatpush3.bf16.msra.mxu1 %v147_v5  ;;  %2388 = vmatpush3.bf16.msra.mxu0 %v2785_v6  ;;  %v1290_v22 = vand.u32 %v1224_v21, %v2781_v2  ;;  %v2622_v23 = vld [vmem:[%s3168_s0 + $0x68] sm:$0xff]   ;;  %v2624_v25 = vld [vmem:[%s3168_s0 + $0x70] sm:$0xff]   ;;  %v428_v26 = vld [vmem:[#allocation2 + $0x4] sm:$0x3] }
  0x2d   :  { %2333 = vmatprep.subr.bf16.mxu1 %v311_v11  ;;  %2405 = vmatprep.subr.bf16.mxu0 %v1091_v14  ;;  %v2623_v24 = vld [vmem:[%s3168_s0 + $0x148] sm:$0xff]   ;;  %v2625_v27 = vld [vmem:[%s3168_s0 + $0x150] sm:$0xff]   ;;  %v494_v28 = vand.u32 %v428_v26, %v2781_v2  ;;  %v2626_v29 = vld [vmem:[%s3168_s0 + $0x78] sm:$0xff]  }
  0x2e   :  { %v2627_v30 = vld [vmem:[%s3168_s0 + $0x158] sm:$0xff]   ;;  %v2628_v31 = vld [vmem:[%s3168_s0] sm:$0xff]   ;;  %v1423_v33 = vld [vmem:[#allocation2 + $0xe] sm:$0x3] }
  0x2f   :  { %2318 = vmatmul.mubr.msk.bf16.vlgmr.msra.gmra.mrb[0].mxu1 %vm117_vm2, %v2614_v9  ;;  %2390 = vmatmul.mubr.msk.bf16.vlgmr.msra.gmra.mrb[0].mxu0 %vm117_vm2, %v2615_v12  ;;  %v2629_v32 = vld [vmem:[%s3168_s0 + $0x160] sm:$0xff]   ;;  %v1489_v34 = vand.u32 %v1423_v33, %v2781_v2  ;;  %v2630_v35 = vld [vmem:[%s3168_s0 + $0x8] sm:$0xff]   ;;  %v2632_v37 = vld [vmem:[%s3168_s0 + $0x10] sm:$0xff]  }
  0x30   :  { %2334 = vmatpush3.bf16.msra.mxu1 %v311_v11  ;;  %2406 = vmatpush3.bf16.msra.mxu0 %v1091_v14  ;;  %v2631_v36 = vld [vmem:[%s3168_s0 + $0x168] sm:$0xff]   ;;  %v2633_v38 = vld [vmem:[%s3168_s0 + $0x170] sm:$0xff]   ;;  %v627_v39 = vld [vmem:[#allocation2 + $0x6] sm:$0x3] }
  0x31   :  { %2321 = vmatprep.mubr.msk.bf16.mxu1 %vm117_vm2, %v2616_v15  ;;  %2393 = vmatprep.mubr.msk.bf16.mxu0 %vm117_vm2, %v2617_v16  ;;  %v693_v40 = vand.u32 %v627_v39, %v2781_v2  ;;  %v2634_v41 = vld [vmem:[%s3168_s0 + $0x18] sm:$0xff]   ;;  %v2636_v43 = vld [vmem:[%s3168_s0 + $0x20] sm:$0xff]   ;;  %v2638_v45 = vld [vmem:[%s3168_s0 + $0x28] sm:$0xff]  }
  0x32   :  { %2423 = vmatprep.subr.bf16.mxu0 %v1290_v22  ;;  %2351 = vmatprep.subr.bf16.mxu1 %v494_v28  ;;  %v2635_v42 = vld [vmem:[%s3168_s0 + $0x178] sm:$0xff]   ;;  %v2637_v44 = vld [vmem:[%s3168_s0 + $0x180] sm:$0xff]   ;;  %v1622_v46 = vld [vmem:[#allocation2 + $0x10] sm:$0x3] }
  0x33   :  { %v2639_v47 = vld [vmem:[%s3168_s0 + $0x188] sm:$0xff]   ;;  %v2640_v48 = vld [vmem:[%s3168_s0 + $0x30] sm:$0xff]   ;;  %v1688_v50 = vand.u32 %v1622_v46, %v2781_v2  ;;  %v2642_v51 = vld [vmem:[%s3168_s0 + $0x38] sm:$0xff]  }
  0x34   :  { %v2641_v49 = vld [vmem:[%s3168_s0 + $0x190] sm:$0xff]   ;;  %v2643_v52 = vld [vmem:[%s3168_s0 + $0x198] sm:$0xff]   ;;  %v2644_v53 = vld [vmem:[%s3168_s0 + $0x80] sm:$0xff]  }
  0x35   :  { %v2645_v54 = vld [vmem:[%s3168_s0 + $0x1a0] sm:$0xff]   ;;  %v2646_v55 = vld [vmem:[%s3168_s0 + $0x88] sm:$0xff]   ;;  %v2648_v57 = vld [vmem:[%s3168_s0 + $0x90] sm:$0xff]  }
  0x36   :  { %v2647_v56 = vld [vmem:[%s3168_s0 + $0x1a8] sm:$0xff]   ;;  %v2649_v58 = vld [vmem:[%s3168_s0 + $0x1b0] sm:$0xff]   ;;  %v2650_v59 = vld [vmem:[%s3168_s0 + $0x98] sm:$0xff]  }
  0x37   :  { %2322 = vmatmul.mubr.msk.bf16.gmra.mrb[4].mxu1 %vm117_vm2, %v2618_v17  ;;  %2394 = vmatmul.mubr.msk.bf16.gmra.mrb[4].mxu0 %vm117_vm2, %v2619_v18  ;;  %v2651_v60 = vld [vmem:[%s3168_s0 + $0x1b8] sm:$0xff]   ;;  %v2652_v61 = vld [vmem:[%s3168_s0 + $0xa0] sm:$0xff]   ;;  %v2654_v63 = vld [vmem:[%s3168_s0 + $0xa8] sm:$0xff]  }
  0x38   :  { %2325 = vmatprep.mubr.msk.bf16.mxu1 %vm117_vm2, %v2620_v19  ;;  %2407 = vmatprep.mubr.msk.bf16.mxu0 %vm117_vm2, %v2621_v20  ;;  %v2653_v62 = vld [vmem:[%s3168_s0 + $0x1c0] sm:$0xff]   ;;  %v2655_v0 = vld [vmem:[%s3168_s0 + $0x1c8] sm:$0xff]   ;;  %v2656_v1 = vld [vmem:[%s3168_s0 + $0xb0] sm:$0xff]  }
  0x39   :  { %v2657_v2 = vld [vmem:[%s3168_s0 + $0x1d0] sm:$0xff]   ;;  %v2658_v3 = vld [vmem:[%s3168_s0 + $0xb8] sm:$0xff]   ;;  %v2660_v5 = vld [vmem:[%s3168_s0 + $0xc0] sm:$0xff]  }
  0x3a   :  { %v2659_v4 = vld [vmem:[%s3168_s0 + $0x1d8] sm:$0xff]   ;;  %v2661_v7 = vld [vmem:[%s3168_s0 + $0x1e0] sm:$0xff]   ;;  %v2662_v8 = vld [vmem:[%s3168_s0 + $0xc8] sm:$0xff]  }
  0x3b   :  { %v2663_v9 = vld [vmem:[%s3168_s0 + $0x1e8] sm:$0xff]   ;;  %v2664_v10 = vld [vmem:[%s3168_s0 + $0xd0] sm:$0xff]   ;;  %v2666_v12 = vld [vmem:[%s3168_s0 + $0xd8] sm:$0xff]  }
  0x3c   :  { %v2665_v11 = vld [vmem:[%s3168_s0 + $0x1f0] sm:$0xff]   ;;  %v2667_v13 = vld [vmem:[%s3168_s0 + $0x1f8] sm:$0xff]   ;;  %v2668_v14 = vld [vmem:[%s3168_s0 + $0xe0] sm:$0xff]  }
  0x3d   :  { %v2670_v15 = vld [vmem:[%s3168_s0 + $0xe8] sm:$0xff]   ;;  %v2672_v17 = vld [vmem:[%s3168_s0 + $0xf0] sm:$0xff]   ;;  %v2674_v19 = vld [vmem:[%s3168_s0 + $0xf8] sm:$0xff]  }
  0x3e   :  { %v2671_v16 = vld [vmem:[%s3168_s0 + $0x208] sm:$0xff]   ;;  %v2673_v18 = vld [vmem:[%s3168_s0 + $0x210] sm:$0xff]   ;;  %v2675_v20 = vld [vmem:[%s3168_s0 + $0x218] sm:$0xff]  }
  0x3f   :  { %2326 = vmatmul.mubr.msk.bf16.gmra.mrb[8].mxu1 %vm117_vm2, %v2622_v23  ;;  %2408 = vmatmul.mubr.msk.bf16.vlgmr.msra.gmra.mrb[0].mxu0 %vm117_vm2, %v2623_v24  ;;  %v2676_v21 = vld [vmem:[%s3168_s0 + $0x120] sm:$0xff]   ;;  %v2678_v23 = vld [vmem:[%s3168_s0 + $0x128] sm:$0xff]   ;;  %v2681_v26 = vld [vmem:[%s3168_s0 + $0x230] sm:$0xff]  }
  0x40   :  { %2424 = vmatpush3.bf16.msra.mxu0 %v1290_v22  ;;  %2329 = vmatprep.mubr.msk.bf16.mxu1 %vm117_vm2, %v2624_v25  ;;  %v2677_v22 = vld [vmem:[%s3168_s0 + $0x220] sm:$0xff]   ;;  %v2679_v24 = vld [vmem:[%s3168_s0 + $0x228] sm:$0xff]   ;;  %v2680_v25 = vld [vmem:[%s3168_s0 + $0x130] sm:$0xff]  }
  0x41   :  { %2411 = vmatprep.mubr.msk.bf16.mxu0 %vm117_vm2, %v2625_v27  ;;  %2441 = vmatprep.subr.bf16.mxu0 %v1489_v34  ;;  %v2682_v27 = vld [vmem:[%s3168_s0 + $0x138] sm:$0xff]  }
  0x47   :  { %2330 = vmatmul.mubr.msk.bf16.gmra.mrb[12].mxu1 %vm117_vm2, %v2626_v29  ;;  %2412 = vmatmul.mubr.msk.bf16.gmra.mrb[4].mxu0 %vm117_vm2, %v2627_v30 }
  0x48   :  { %2335 = vmatprep.mubr.msk.bf16.mxu1 %vm117_vm2, %v2628_v31  ;;  %2415 = vmatprep.mubr.msk.bf16.mxu0 %vm117_vm2, %v2629_v32 }
  0x4f   :  { %2336 = vmatmul.mubr.msk.bf16.vlgmr.msra.gmra.mrb[0].mxu1 %vm117_vm2, %v2630_v35  ;;  %2416 = vmatmul.mubr.msk.bf16.gmra.mrb[8].mxu0 %vm117_vm2, %v2631_v36 }
  0x50   :  { %2352 = vmatpush3.bf16.msra.mxu1 %v494_v28  ;;  %2339 = vmatprep.mubr.msk.bf16.mxu1 %vm117_vm2, %v2632_v37  ;;  %v2683_v28 = vld [vmem:[%s3168_s0 + $0x238] sm:$0xff]  }
  0x51   :  { %2419 = vmatprep.mubr.msk.bf16.mxu0 %vm117_vm2, %v2633_v38  ;;  %2369 = vmatprep.subr.bf16.mxu1 %v693_v40  ;;  %v3086_v38 = vld [vmem:[#allocation4] ss:$0 sm:$0xff] }
  0x57   :  { %2340 = vmatmul.mubr.msk.bf16.gmra.mrb[4].mxu1 %vm117_vm2, %v2634_v41  ;;  %2420 = vmatmul.mubr.msk.bf16.gmra.mrb[12].mxu0 %vm117_vm2, %v2635_v42 }
  0x58   :  { %2343 = vmatprep.mubr.msk.bf16.mxu1 %vm117_vm2, %v2636_v43  ;;  %2425 = vmatprep.mubr.msk.bf16.mxu0 %vm117_vm2, %v2637_v44 }
  0x5f   :  { %2344 = vmatmul.mubr.msk.bf16.gmra.mrb[8].mxu1 %vm117_vm2, %v2638_v45  ;;  %2426 = vmatmul.mubr.msk.bf16.vlgmr.msra.gmra.mrb[0].mxu0 %vm117_vm2, %v2639_v47 }
  0x60   :  { %2442 = vmatpush3.bf16.msra.mxu0 %v1489_v34  ;;  %2347 = vmatprep.mubr.msk.bf16.mxu1 %vm117_vm2, %v2640_v48 }
  0x61   :  { %2429 = vmatprep.mubr.msk.bf16.mxu0 %vm117_vm2, %v2641_v49  ;;  %2459 = vmatprep.subr.bf16.mxu0 %v1688_v50 }
  0x67   :  { %2348 = vmatmul.mubr.msk.bf16.gmra.mrb[12].mxu1 %vm117_vm2, %v2642_v51  ;;  %2430 = vmatmul.mubr.msk.bf16.gmra.mrb[4].mxu0 %vm117_vm2, %v2643_v52 }
  0x68   :  { %2353 = vmatprep.mubr.msk.bf16.mxu1 %vm117_vm2, %v2644_v53  ;;  %2433 = vmatprep.mubr.msk.bf16.mxu0 %vm117_vm2, %v2645_v54 }
  0x6f   :  { %2354 = vmatmul.mubr.msk.bf16.vlgmr.msra.gmra.mrb[0].mxu1 %vm117_vm2, %v2646_v55  ;;  %2434 = vmatmul.mubr.msk.bf16.gmra.mrb[8].mxu0 %vm117_vm2, %v2647_v56 }
  0x70   :  { %2370 = vmatpush3.bf16.msra.mxu1 %v693_v40  ;;  %2357 = vmatprep.mubr.msk.bf16.mxu1 %vm117_vm2, %v2648_v57 }
  0x71   :  { %2437 = vmatprep.mubr.msk.bf16.mxu0 %vm117_vm2, %v2649_v58  ;;  %2477 = vmatprep.subr.bf16.mxu1 %v2785_v6 }
  0x77   :  { %2358 = vmatmul.mubr.msk.bf16.gmra.mrb[4].mxu1 %vm117_vm2, %v2650_v59  ;;  %2438 = vmatmul.mubr.msk.bf16.gmra.mrb[12].mxu0 %vm117_vm2, %v2651_v60 }
  0x78   :  { %2361 = vmatprep.mubr.msk.bf16.mxu1 %vm117_vm2, %v2652_v61  ;;  %2443 = vmatprep.mubr.msk.bf16.mxu0 %vm117_vm2, %v2653_v62 }
  0x7f   :  { %2362 = vmatmul.mubr.msk.bf16.gmra.mrb[8].mxu1 %vm117_vm2, %v2654_v63  ;;  %2444 = vmatmul.mubr.msk.bf16.vlgmr.msra.gmra.mrb[0].mxu0 %vm117_vm2, %v2655_v0 }
  0x80   :  { %2460 = vmatpush3.bf16.msra.mxu0 %v1688_v50  ;;  %2365 = vmatprep.mubr.msk.bf16.mxu1 %vm117_vm2, %v2656_v1 }
  0x81   :  { %2447 = vmatprep.mubr.msk.bf16.mxu0 %vm117_vm2, %v2657_v2 }
  0x87   :  { %2366 = vmatmul.mubr.msk.bf16.gmra.mrb[12].mxu1 %vm117_vm2, %v2658_v3  ;;  %2448 = vmatmul.mubr.msk.bf16.gmra.mrb[4].mxu0 %vm117_vm2, %v2659_v4 }
  0x88   :  { %2371 = vmatprep.mubr.msk.bf16.mxu1 %vm117_vm2, %v2660_v5  ;;  %2451 = vmatprep.mubr.msk.bf16.mxu0 %vm117_vm2, %v2661_v7 }
  0x8f   :  { %2372 = vmatmul.mubr.msk.bf16.vlgmr.msra.gmra.mrb[0].mxu1 %vm117_vm2, %v2662_v8  ;;  %2452 = vmatmul.mubr.msk.bf16.gmra.mrb[8].mxu0 %vm117_vm2, %v2663_v9 }
  0x90   :  { %2478 = vmatpush3.bf16.msra.mxu1 %v2785_v6  ;;  %2375 = vmatprep.mubr.msk.bf16.mxu1 %vm117_vm2, %v2664_v10  ;;  %v2669_v6 = vld [vmem:[%s3168_s0 + $0x200] sm:$0xff]  }
  0x91   :  { %2455 = vmatprep.mubr.msk.bf16.mxu0 %vm117_vm2, %v2665_v11 }
  0x97   :  { %2376 = vmatmul.mubr.msk.bf16.gmra.mrb[4].mxu1 %vm117_vm2, %v2666_v12  ;;  %2456 = vmatmul.mubr.msk.bf16.gmra.mrb[12].mxu0 %vm117_vm2, %v2667_v13 }
  0x98   :  { %2379 = vmatprep.mubr.msk.bf16.mxu1 %vm117_vm2, %v2668_v14  ;;  %2461 = vmatprep.mubr.msk.bf16.mxu0 %vm117_vm2, %v2669_v6 }
  0x9f   :  { %2380 = vmatmul.mubr.msk.bf16.gmra.mrb[8].mxu1 %vm117_vm2, %v2670_v15  ;;  %2462 = vmatmul.mubr.msk.bf16.vlgmr.msra.gmra.mrb[0].mxu0 %vm117_vm2, %v2671_v16 }
  0xa0   :  { %2383 = vmatprep.mubr.msk.bf16.mxu1 %vm117_vm2, %v2672_v17  ;;  %2465 = vmatprep.mubr.msk.bf16.mxu0 %vm117_vm2, %v2673_v18 }
  0xa7   :  { %2384 = vmatmul.mubr.msk.bf16.gmra.mrb[12].mxu1 %vm117_vm2, %v2674_v19  ;;  %2466 = vmatmul.mubr.msk.bf16.gmra.mrb[4].mxu0 %vm117_vm2, %v2675_v20 }
  0xa8   :  { %2397 = vmatprep.mubr.msk.bf16.mxu1 %vm117_vm2, %v2676_v21  ;;  %2469 = vmatprep.mubr.msk.bf16.mxu0 %vm117_vm2, %v2677_v22 }
  0xaf   :  { %2398 = vmatmul.mubr.msk.bf16.vlgmr.msra.gmra.mrb[8].mxu1 %vm117_vm2, %v2678_v23  ;;  %2470 = vmatmul.mubr.msk.bf16.gmra.mrb[8].mxu0 %vm117_vm2, %v2679_v24 }
  0xb0   :  { %2401 = vmatprep.mubr.msk.bf16.mxu1 %vm117_vm2, %v2680_v25  ;;  %2473 = vmatprep.mubr.msk.bf16.mxu0 %vm117_vm2, %v2681_v26 }
  0xb7   :  { %2402 = vmatmul.mubr.msk.bf16.gmra.mrb[12].mxu1 %vm117_vm2, %v2682_v27  ;;  %2474 = vmatmul.mubr.msk.bf16.gmra.mrb[12].mxu0 %vm117_vm2, %v2683_v28 }
 0x162   :  { %v2373_v29 = vpop.f32.mrb[0].mxu1 }
 0x163   :  { %v729_v30 = vpop.f32.mrb[1].mxu1 }
 0x164   :  { %v2374_v31 = vpop.f32.mrb[2].mxu1 }
 0x165   :  { %v732_v32 = vpop.f32.mrb[3].mxu1 }
 0x16a   :  { %v2377_v33 = vpop.f32.mrb[4].mxu1 }
 0x16b   :  { %v745_v34 = vpop.f32.mrb[5].mxu1 }
 0x16c   :  { %v2378_v35 = vpop.f32.mrb[6].mxu1 }
 0x16d   :  { %v748_v36 = vpop.f32.mrb[7].mxu1 }
 0x172   :  { %v2463_v37 = vpop.f32.mrb[0].mxu0 }
 0x173   :  { %v2479_v39 = vadd.f32 %v2463_v37, %v2373_v29  ;;  %v1724_v40 = vpop.f32.mrb[1].mxu0 }
 0x174   :  { %v2480_v41 = vadd.f32 %v1724_v40, %v729_v30  ;;  %v2464_v42 = vpop.f32.mrb[2].mxu0 }
 0x175   :  { %v1812_v43 = vadd.f32 %v2479_v39, %v3086_v38  ;;  %v2481_v44 = vadd.f32 %v2464_v42, %v2374_v31  ;;  %v1727_v45 = vpop.f32.mrb[3].mxu0 }
 0x176   :  { %v1810_v46 = vadd.f32 %v2480_v41, %v3086_v38  ;;  %v2482_v47 = vadd.f32 %v1727_v45, %v732_v32 }
 0x177   :  { %v1828_v48 = vmax.f32 %v1812_v43, 0.0  ;;  %v1813_v49 = vadd.f32 %v2481_v44, %v3086_v38 }
 0x178   :  { %v1826_v50 = vmax.f32 %v1810_v46, 0.0  ;;  %v1811_v51 = vadd.f32 %v2482_v47, %v3086_v38 }
 0x179   :  { %v2220_v52 = vpack.c.bf16 %v1828_v48, %v1828_v48  ;;  %v1829_v53 = vmax.f32 %v1813_v49, 0.0 }
 0x17a   :  { %v2218_v54 = vpack.c.bf16 %v1826_v50, %v1826_v50  ;;  %v1827_v55 = vmax.f32 %v1811_v51, 0.0  ;;  %v2467_v56 = vpop.f32.mrb[4].mxu0 }
 0x17b   :  { %1909 = vst.msk [vmem:[%s3171_s3 + $0x8] sm:$0xf] %vm1906_vm3, %v2220_v52  ;;  %v2221_v57 = vpack.c.bf16 %v1829_v53, %v1829_v53  ;;  %v2483_v58 = vadd.f32 %v2467_v56, %v2377_v33  ;;  %v1740_v59 = vpop.f32.mrb[5].mxu0 }
 0x17c   :  { %1907 = vst.msk [vmem:[%s3171_s3] sm:$0xf] %vm1906_vm3, %v2218_v54  ;;  %v2219_v60 = vpack.c.bf16 %v1827_v55, %v1827_v55  ;;  %v2484_v61 = vadd.f32 %v1740_v59, %v745_v34  ;;  %v2468_v62 = vpop.f32.mrb[6].mxu0 }
 0x17d   :  { %1910 = vst.msk [vmem:[%s3171_s3 + $0xc] sm:$0xf] %vm1906_vm3, %v2221_v57  ;;  %v1816_v63 = vadd.f32 %v2483_v58, %v3086_v38  ;;  %v2485_v0 = vadd.f32 %v2468_v62, %v2378_v35  ;;  %v1743_v1 = vpop.f32.mrb[7].mxu0 }
 0x17e   :  { %1908 = vst.msk [vmem:[%s3171_s3 + $0x4] sm:$0xf] %vm1906_vm3, %v2219_v60  ;;  %v1814_v2 = vadd.f32 %v2484_v61, %v3086_v38  ;;  %v2486_v3 = vadd.f32 %v1743_v1, %v748_v36 }
 0x17f   :  { %v1832_v4 = vmax.f32 %v1816_v63, 0.0  ;;  %v1817_v5 = vadd.f32 %v2485_v0, %v3086_v38 }
 0x180   :  { %v1830_v7 = vmax.f32 %v1814_v2, 0.0  ;;  %v1815_v8 = vadd.f32 %v2486_v3, %v3086_v38 }
 0x181   :  { %v2224_v9 = vpack.c.bf16 %v1832_v4, %v1832_v4  ;;  %v1833_v10 = vmax.f32 %v1817_v5, 0.0 }
 0x182   :  { %v2222_v11 = vpack.c.bf16 %v1830_v7, %v1830_v7  ;;  %v1831_v12 = vmax.f32 %v1815_v8, 0.0  ;;  %v2399_v13 = vpop.f32.mrb[8].mxu1  ;;  %v2471_v14 = vpop.f32.mrb[8].mxu0 }
 0x183   :  { %1913 = vst.msk [vmem:[%s3171_s3 + $0x18] sm:$0xf] %vm1906_vm3, %v2224_v9  ;;  %v2225_v6 = vpack.c.bf16 %v1833_v10, %v1833_v10  ;;  %v2487_v15 = vadd.f32 %v2471_v14, %v2399_v13  ;;  %v960_v16 = vpop.f32.mrb[9].mxu1  ;;  %v1756_v17 = vpop.f32.mrb[9].mxu0 }
 0x184   :  { %1911 = vst.msk [vmem:[%s3171_s3 + $0x10] sm:$0xf] %vm1906_vm3, %v2222_v11  ;;  %v2223_v18 = vpack.c.bf16 %v1831_v12, %v1831_v12  ;;  %v2488_v19 = vadd.f32 %v1756_v17, %v960_v16  ;;  %v2400_v20 = vpop.f32.mrb[10].mxu1  ;;  %v2472_v21 = vpop.f32.mrb[10].mxu0 }
 0x185   :  { %1914 = vst.msk [vmem:[%s3171_s3 + $0x1c] sm:$0xf] %vm1906_vm3, %v2225_v6  ;;  %v1820_v22 = vadd.f32 %v2487_v15, %v3086_v38  ;;  %v2489_v23 = vadd.f32 %v2472_v21, %v2400_v20  ;;  %v963_v24 = vpop.f32.mrb[11].mxu1  ;;  %v1759_v25 = vpop.f32.mrb[11].mxu0 }
 0x186   :  { %1912 = vst.msk [vmem:[%s3171_s3 + $0x14] sm:$0xf] %vm1906_vm3, %v2223_v18  ;;  %v1818_v26 = vadd.f32 %v2488_v19, %v3086_v38  ;;  %v2490_v27 = vadd.f32 %v1759_v25, %v963_v24 }
 0x187   :  { %v1836_v28 = vmax.f32 %v1820_v22, 0.0  ;;  %v1821_v29 = vadd.f32 %v2489_v23, %v3086_v38 }
 0x188   :  { %v1834_v30 = vmax.f32 %v1818_v26, 0.0  ;;  %v1819_v31 = vadd.f32 %v2490_v27, %v3086_v38 }
 0x189   :  { %v2228_v32 = vpack.c.bf16 %v1836_v28, %v1836_v28  ;;  %v1837_v33 = vmax.f32 %v1821_v29, 0.0 }
 0x18a   :  { %v2226_v34 = vpack.c.bf16 %v1834_v30, %v1834_v30  ;;  %v1835_v35 = vmax.f32 %v1819_v31, 0.0  ;;  %v2403_v36 = vpop.f32.mrb[12].mxu1  ;;  %v2475_v37 = vpop.f32.mrb[12].mxu0 }
 0x18b   :  { %1917 = vst.msk [vmem:[%s3171_s3 + $0x28] sm:$0xf] %vm1906_vm3, %v2228_v32  ;;  %v2229_v39 = vpack.c.bf16 %v1837_v33, %v1837_v33  ;;  %v2491_v40 = vadd.f32 %v2475_v37, %v2403_v36  ;;  %v976_v41 = vpop.f32.mrb[13].mxu1  ;;  %v1772_v42 = vpop.f32.mrb[13].mxu0 }
 0x18c   :  { %1915 = vst.msk [vmem:[%s3171_s3 + $0x20] sm:$0xf] %vm1906_vm3, %v2226_v34  ;;  %v2227_v43 = vpack.c.bf16 %v1835_v35, %v1835_v35  ;;  %v2492_v44 = vadd.f32 %v1772_v42, %v976_v41  ;;  %v2404_v45 = vpop.f32.mrb[14].mxu1  ;;  %v2476_v46 = vpop.f32.mrb[14].mxu0 }
 0x18d   :  { %1918 = vst.msk [vmem:[%s3171_s3 + $0x2c] sm:$0xf] %vm1906_vm3, %v2229_v39  ;;  %v1824_v47 = vadd.f32 %v2491_v40, %v3086_v38  ;;  %v2493_v48 = vadd.f32 %v2476_v46, %v2404_v45  ;;  %v979_v49 = vpop.f32.mrb[15].mxu1  ;;  %v1775_v50 = vpop.f32.mrb[15].mxu0 }
 0x18e   :  { %1916 = vst.msk [vmem:[%s3171_s3 + $0x24] sm:$0xf] %vm1906_vm3, %v2227_v43  ;;  %v1822_v51 = vadd.f32 %v2492_v44, %v3086_v38  ;;  %v2494_v52 = vadd.f32 %v1775_v50, %v979_v49 }
 0x18f   :  { %v1840_v53 = vmax.f32 %v1824_v47, 0.0  ;;  %v1825_v54 = vadd.f32 %v2493_v48, %v3086_v38 }
 0x190   :  { %v1838_v55 = vmax.f32 %v1822_v51, 0.0  ;;  %v1823_v56 = vadd.f32 %v2494_v52, %v3086_v38 }
 0x191   :  { %v2232_v57 = vpack.c.bf16 %v1840_v53, %v1840_v53  ;;  %v1841_v58 = vmax.f32 %v1825_v54, 0.0 }
 0x192   :  { %v2230_v59 = vpack.c.bf16 %v1838_v55, %v1838_v55  ;;  %v1839_v60 = vmax.f32 %v1823_v56, 0.0 }
 0x193   :  { %1921 = vst.msk [vmem:[%s3171_s3 + $0x38] sm:$0xf] %vm1906_vm3, %v2232_v57  ;;  %v2233_v61 = vpack.c.bf16 %v1841_v58, %v1841_v58 }
 0x194   :  { %1919 = vst.msk [vmem:[%s3171_s3 + $0x30] sm:$0xf] %vm1906_vm3, %v2230_v59  ;;  %v2231_v62 = vpack.c.bf16 %v1839_v60, %v1839_v60 }
 0x195   :  { %1922 = vst.msk [vmem:[%s3171_s3 + $0x3c] sm:$0xf] %vm1906_vm3, %v2233_v61 }
 0x196   :  { %1920 = vst.msk [vmem:[%s3171_s3 + $0x34] sm:$0xf] %vm1906_vm3, %v2231_v62 }
 0x197   :  { %1927 = vsyncpa [#allocation3], 1 }
 0x198   :  { %1928 = vsyncpa [#allocation5], 1 }

// kernel: autoencoder_forward.10
= control target key start
LH: loop header
LB: loop body
LE: loop exit
PB: predicated region body
PF: predicated region fallthrough
CT: control target
= control target key end

     0   :  { %8 = vsyncpa [#allocation3], 0  ;;  %s1855_s0 = inlined_call_operand.vmem [shape: bf16[9,8,128], index: 0, kind: input, shape index: {}]   ;;  %s1856_s1 = inlined_call_operand.hbm [shape: bf16[9,128,256], index: 1, kind: input, shape index: {}]   ;;  %s1857_s2 = inlined_call_operand.hbm [shape: f32[1,256], index: 2, kind: input, shape index: {}]   ;;  %s1858_s3 = inlined_call_operand.vmem [shape: bf16[8,256], index: 3, kind: output, shape index: {}]  }
   0x1   :  { %9 = vsyncpa [#allocation5], 0  ;;  %s1767_s12 = smov [#allocation2]   ;;  %s1719_s16 = scalar_lea.hbm %s1856_s1, 18432 }
   0x2   :  { %s17_s13 = sshll.u32 %s1767_s12, 4  ;;  %p1720_p0 = scmp.ne.s32.totalorder %s1856_s1, %s1719_s16  ;;  %s18_s13 = int_to_ptr.vmem [resolvable:$true] %s17_s13 }
   0x3   :  { %p1723_p1 = scmp.lt.u32.totalorder %s1719_s16, %s1856_s1 }
   0x5   :  { %p1725_p2 = pnand %p1723_p1, %p1720_p0 }
   0x7   :  { %1728 = shalt.err (!%p1725_p2)
}
   0x8   :  { %s1729_s21 = scalar_lea.vmem %s18_s13, 18432  ;;  %p1734_p4 = scmp.lt.s32.totalorder %s18_s13, %s18_s13 }
   0x9   :  { %p1730_p3 = scmp.ne.s32.totalorder %s18_s13, %s1729_s21  ;;  %p1735_p5 = scmp.lt.s32.totalorder %s1729_s21, %s1729_s21 }
   0xb   :  { %p1736_p6 = por %p1735_p5, %p1734_p4 }
   0xd   :  { %p1737_p7 = pnand %p1736_p6, %p1730_p3 }
   0xf   :  { %1740 = shalt.err (!%p1737_p7)
}
  0x10   :  { %s1768_s22 = smov 128   ;;  %s1769_s23 = smov 8  }
  0x11   :  { %23 = dma.hbm_to_vmem [thread:$0]  %s1856_s1, 18432, %s18_s13, [#allocation3], %s1768_s22, %s1768_s22, %s1769_s23  }
  0x12   :  { %s1770_s26 = smov [#allocation4]   ;;  %s1741_s30 = scalar_lea.hbm %s1857_s2, 32 }
  0x13   :  { %s30_s27 = sshll.u32 %s1770_s26, 4  ;;  %p1742_p8 = scmp.ne.s32.totalorder %s1857_s2, %s1741_s30  ;;  %s31_s27 = int_to_ptr.vmem [resolvable:$true] %s30_s27 }
  0x14   :  { %p1745_p9 = scmp.lt.u32.totalorder %s1741_s30, %s1857_s2 }
  0x16   :  { %p1747_p10 = pnand %p1745_p9, %p1742_p8 }
  0x18   :  { %1750 = shalt.err (!%p1747_p10)
}
  0x19   :  { %s1751_s8 = scalar_lea.vmem %s31_s27, 32  ;;  %p1756_p12 = scmp.lt.s32.totalorder %s31_s27, %s31_s27 }
  0x1a   :  { %p1752_p11 = scmp.ne.s32.totalorder %s31_s27, %s1751_s8  ;;  %p1757_p13 = scmp.lt.s32.totalorder %s1751_s8, %s1751_s8 }
  0x1c   :  { %p1758_p0 = por %p1757_p13, %p1756_p12 }
  0x1e   :  { %p1759_p1 = pnand %p1758_p0, %p1752_p11 }
  0x20   :  { %1762 = shalt.err (!%p1759_p1)
}
  0x21   :  { %33 = dma.hbm_to_vmem [thread:$0]  %s1857_s2, 32, %s31_s27, [#allocation5]  }
  0x22   :  { %1763 = dma.done.wait [#allocation3], 18432  }
  0x23   :  { %1764 = vsyncadd [#allocation3], 4294948864 }
  0x24   :  { %1765 = dma.done.wait [#allocation5], 32  }
  0x25   :  { %1766 = vsyncadd [#allocation5], 4294967264  ;;  %v1771_v0 = vmov 0   ;;  %v1503_v1 = vld [vmem:[#allocation2 + $0x84] ss:$8 sps:$4 sm:$0xff]  }
  0x26   :  { %189 = vmatprep.mubr.bf16.mxu0 %v1771_v0  ;;  %310 = vmatprep.mubr.bf16.mxu1 %v1771_v0  ;;  %v1505_v2 = vld [vmem:[#allocation2 + $0x4] ss:$8 sps:$4 sm:$0xff]   ;;  %v1507_v3 = vld [vmem:[#allocation2 + $0x80] ss:$8 sps:$4 sm:$0xff]   ;;  %v1509_v5 = vld [vmem:[#allocation2 + $0x94] ss:$8 sps:$4 sm:$0xff]  }
  0x27   :  { %157 = vmatprep.subr.bf16.mxu0 %v1503_v1  ;;  %v1508_v4 = vld [vmem:[#allocation2] ss:$8 sps:$4 sm:$0xff]   ;;  %278 = vmatprep.subr.bf16.mxu1 %v1505_v2  ;;  %v1511_v6 = vld [vmem:[#allocation2 + $0x14] ss:$8 sps:$4 sm:$0xff]   ;;  %v1513_v7 = vld [vmem:[#allocation2 + $0x90] ss:$8 sps:$4 sm:$0xff]  }
  0x28   :  { %158 = vmatpush1.bf16.msra.mxu0 %v1507_v3  ;;  %279 = vmatpush1.bf16.msra.mxu1 %v1508_v4  ;;  %v1514_v8 = vld [vmem:[#allocation2 + $0x10] ss:$8 sps:$4 sm:$0xff]   ;;  %v1515_v9 = vld [vmem:[#allocation2 + $0xa4] ss:$8 sps:$4 sm:$0xff]   ;;  %v1519_v11 = vld [vmem:[#allocation2 + $0xa0] ss:$8 sps:$4 sm:$0xff]  }
  0x29   :  { %159 = vmatprep.subr.bf16.mxu0 %v1509_v5  ;;  %280 = vmatprep.subr.bf16.mxu1 %v1511_v6  ;;  %v1517_v10 = vld [vmem:[#allocation2 + $0x24] ss:$8 sps:$4 sm:$0xff]   ;;  %v1520_v12 = vld [vmem:[#allocation2 + $0x20] ss:$8 sps:$4 sm:$0xff]   ;;  %v1521_v13 = vld [vmem:[#allocation2 + $0xb4] ss:$8 sps:$4 sm:$0xff]  }
  0x2a   :  { %v1523_v14 = vld [vmem:[#allocation2 + $0x34] ss:$8 sps:$4 sm:$0xff]   ;;  %v1525_v15 = vld [vmem:[#allocation2 + $0xb0] ss:$8 sps:$4 sm:$0xff]   ;;  %v1527_v17 = vld [vmem:[#allocation2 + $0xc4] ss:$8 sps:$4 sm:$0xff]  }
  0x2b   :  { %v1526_v16 = vld [vmem:[#allocation2 + $0x30] ss:$8 sps:$4 sm:$0xff]   ;;  %v1529_v18 = vld [vmem:[#allocation2 + $0x44] ss:$8 sps:$4 sm:$0xff]   ;;  %v1531_v19 = vld [vmem:[#allocation2 + $0xc0] ss:$8 sps:$4 sm:$0xff]  }
  0x2c   :  { %160 = vmatpush1.bf16.msra.mxu0 %v1513_v7  ;;  %281 = vmatpush1.bf16.msra.mxu1 %v1514_v8  ;;  %v1532_v20 = vld [vmem:[#allocation2 + $0x40] ss:$8 sps:$4 sm:$0xff]   ;;  %v1533_v21 = vld [vmem:[#allocation2 + $0xd4] ss:$8 sps:$4 sm:$0xff]   ;;  %v1537_v23 = vld [vmem:[#allocation2 + $0xd0] ss:$8 sps:$4 sm:$0xff]  }
  0x2d   :  { %161 = vmatprep.subr.bf16.mxu0 %v1515_v9  ;;  %282 = vmatprep.subr.bf16.mxu1 %v1517_v10  ;;  %v1535_v22 = vld [vmem:[#allocation2 + $0x54] ss:$8 sps:$4 sm:$0xff]   ;;  %v1538_v24 = vld [vmem:[#allocation2 + $0x50] ss:$8 sps:$4 sm:$0xff]   ;;  %v1539_v25 = vld [vmem:[#allocation2 + $0xe4] ss:$8 sps:$4 sm:$0xff]  }
  0x2e   :  { %v1541_v26 = vld [vmem:[#allocation2 + $0x64] ss:$8 sps:$4 sm:$0xff]   ;;  %v1543_v27 = vld [vmem:[#allocation2 + $0xe0] ss:$8 sps:$4 sm:$0xff]   ;;  %v1545_v29 = vld [vmem:[#allocation2 + $0xf4] ss:$8 sps:$4 sm:$0xff]  }
  0x2f   :  { %v1544_v28 = vld [vmem:[#allocation2 + $0x60] ss:$8 sps:$4 sm:$0xff]   ;;  %v1547_v30 = vld [vmem:[#allocation2 + $0x74] ss:$8 sps:$4 sm:$0xff]   ;;  %v1549_v31 = vld [vmem:[#allocation2 + $0xf0] ss:$8 sps:$4 sm:$0xff]  }
  0x30   :  { %162 = vmatpush1.bf16.msra.mxu0 %v1519_v11  ;;  %283 = vmatpush1.bf16.msra.mxu1 %v1520_v12  ;;  %v1550_v32 = vld [vmem:[#allocation2 + $0x70] ss:$8 sps:$4 sm:$0xff]   ;;  %v1553_v33 = vld [vmem:[#allocation2 + $0x104] ss:$8 sps:$4 sm:$0xff]   ;;  %v41_v36 = vld [vmem:[%s1855_s0] sm:$0xf] }
  0x31   :  { %163 = vmatprep.subr.bf16.mxu0 %v1521_v13  ;;  %284 = vmatprep.subr.bf16.mxu1 %v1523_v14  ;;  %v1556_v34 = vld [vmem:[#allocation2 + $0x184] ss:$8 sps:$4 sm:$0xff]   ;;  %v1551_v37 = vld [vmem:[#allocation2 + $0x100] ss:$8 sps:$4 sm:$0xff]   ;;  %v1559_v39 = vld [vmem:[#allocation2 + $0x114] ss:$8 sps:$4 sm:$0xff]  }
  0x32   :  { %v1344_v35 = vld [vmem:[%s1855_s0 + $0x4] sm:$0xf]  ;;  %v1554_v38 = vld [vmem:[#allocation2 + $0x180] ss:$8 sps:$4 sm:$0xff]   ;;  %v1562_v40 = vld [vmem:[#allocation2 + $0x194] ss:$8 sps:$4 sm:$0xff]  }
  0x33   :  { %v1557_v41 = vld [vmem:[#allocation2 + $0x110] ss:$8 sps:$4 sm:$0xff]   ;;  %v1565_v43 = vld [vmem:[#allocation2 + $0x124] ss:$8 sps:$4 sm:$0xff]   ;;  %v1563_v45 = vld [vmem:[#allocation2 + $0x120] ss:$8 sps:$4 sm:$0xff]  }
  0x34   :  { %164 = vmatpush1.bf16.msra.mxu0 %v1525_v15  ;;  %285 = vmatpush1.bf16.msra.mxu1 %v1526_v16  ;;  %v1560_v42 = vld [vmem:[#allocation2 + $0x190] ss:$8 sps:$4 sm:$0xff]   ;;  %v1568_v44 = vld [vmem:[#allocation2 + $0x1a4] ss:$8 sps:$4 sm:$0xff]   ;;  %v1566_v46 = vld [vmem:[#allocation2 + $0x1a0] ss:$8 sps:$4 sm:$0xff]  }
  0x35   :  { %165 = vmatprep.subr.bf16.mxu0 %v1527_v17  ;;  %286 = vmatprep.subr.bf16.mxu1 %v1529_v18  ;;  %v1571_v47 = vld [vmem:[#allocation2 + $0x134] ss:$8 sps:$4 sm:$0xff]   ;;  %v1569_v49 = vld [vmem:[#allocation2 + $0x130] ss:$8 sps:$4 sm:$0xff]   ;;  %v1577_v51 = vld [vmem:[#allocation2 + $0x144] ss:$8 sps:$4 sm:$0xff]  }
  0x36   :  { %v1574_v48 = vld [vmem:[#allocation2 + $0x1b4] ss:$8 sps:$4 sm:$0xff]   ;;  %v1572_v50 = vld [vmem:[#allocation2 + $0x1b0] ss:$8 sps:$4 sm:$0xff]   ;;  %v1580_v52 = vld [vmem:[#allocation2 + $0x1c4] ss:$8 sps:$4 sm:$0xff]  }
  0x37   :  { %v1575_v53 = vld [vmem:[#allocation2 + $0x140] ss:$8 sps:$4 sm:$0xff]   ;;  %v1583_v55 = vld [vmem:[#allocation2 + $0x154] ss:$8 sps:$4 sm:$0xff]   ;;  %v1581_v57 = vld [vmem:[#allocation2 + $0x150] ss:$8 sps:$4 sm:$0xff]  }
  0x38   :  { %166 = vmatpush1.bf16.msra.mxu0 %v1531_v19  ;;  %287 = vmatpush1.bf16.msra.mxu1 %v1532_v20  ;;  %v1578_v54 = vld [vmem:[#allocation2 + $0x1c0] ss:$8 sps:$4 sm:$0xff]   ;;  %v1586_v56 = vld [vmem:[#allocation2 + $0x1d4] ss:$8 sps:$4 sm:$0xff]   ;;  %v1584_v58 = vld [vmem:[#allocation2 + $0x1d0] ss:$8 sps:$4 sm:$0xff]  }
  0x39   :  { %167 = vmatprep.subr.bf16.mxu0 %v1533_v21  ;;  %288 = vmatprep.subr.bf16.mxu1 %v1535_v22  ;;  %v1589_v59 = vld [vmem:[#allocation2 + $0x164] ss:$8 sps:$4 sm:$0xff]   ;;  %v1587_v61 = vld [vmem:[#allocation2 + $0x160] ss:$8 sps:$4 sm:$0xff]   ;;  %v1595_v63 = vld [vmem:[#allocation2 + $0x174] ss:$8 sps:$4 sm:$0xff]  }
  0x3a   :  { %v1592_v60 = vld [vmem:[#allocation2 + $0x1e4] ss:$8 sps:$4 sm:$0xff]   ;;  %v1590_v62 = vld [vmem:[#allocation2 + $0x1e0] ss:$8 sps:$4 sm:$0xff]   ;;  %v1598_v1 = vld [vmem:[#allocation2 + $0x1f4] ss:$8 sps:$4 sm:$0xff]  }
  0x3b   :  { %v1593_v2 = vld [vmem:[#allocation2 + $0x170] ss:$8 sps:$4 sm:$0xff]   ;;  %v1601_v4 = vld [vmem:[#allocation2 + $0x204] ss:$8 sps:$4 sm:$0xff]   ;;  %v1377_v6 = vld [vmem:[%s1855_s0 + $0x8] sm:$0xf] }
  0x3c   :  { %168 = vmatpush1.bf16.msra.mxu0 %v1537_v23  ;;  %289 = vmatpush1.bf16.msra.mxu1 %v1538_v24  ;;  %v1596_v3 = vld [vmem:[#allocation2 + $0x1f0] ss:$8 sps:$4 sm:$0xff]   ;;  %v1604_v5 = vld [vmem:[#allocation2 + $0x284] ss:$8 sps:$4 sm:$0xff]   ;;  %v1599_v7 = vld [vmem:[#allocation2 + $0x200] ss:$8 sps:$4 sm:$0xff]  }
  0x3d   :  { %169 = vmatprep.subr.bf16.mxu0 %v1539_v25  ;;  %290 = vmatprep.subr.bf16.mxu1 %v1541_v26  ;;  %v1394_v8 = vld [vmem:[%s1855_s0 + $0xc] sm:$0xf]  ;;  %v1602_v9 = vld [vmem:[#allocation2 + $0x280] ss:$8 sps:$4 sm:$0xff]   ;;  %v1607_v10 = vld [vmem:[#allocation2 + $0x214] ss:$8 sps:$4 sm:$0xff]  }
  0x3e   :  { %v1610_v11 = vld [vmem:[#allocation2 + $0x294] ss:$8 sps:$4 sm:$0xff]   ;;  %v1605_v12 = vld [vmem:[#allocation2 + $0x210] ss:$8 sps:$4 sm:$0xff]   ;;  %v1613_v14 = vld [vmem:[#allocation2 + $0x224] ss:$8 sps:$4 sm:$0xff]  }
  0x3f   :  { %v1608_v13 = vld [vmem:[#allocation2 + $0x290] ss:$8 sps:$4 sm:$0xff]   ;;  %v1616_v15 = vld [vmem:[#allocation2 + $0x2a4] ss:$8 sps:$4 sm:$0xff]   ;;  %v1611_v16 = vld [vmem:[#allocation2 + $0x220] ss:$8 sps:$4 sm:$0xff]  }
  0x40   :  { %170 = vmatpush1.bf16.msra.mxu0 %v1543_v27  ;;  %291 = vmatpush1.bf16.msra.mxu1 %v1544_v28  ;;  %v1614_v17 = vld [vmem:[#allocation2 + $0x2a0] ss:$8 sps:$4 sm:$0xff]   ;;  %v1619_v18 = vld [vmem:[#allocation2 + $0x234] ss:$8 sps:$4 sm:$0xff]   ;;  %v1617_v20 = vld [vmem:[#allocation2 + $0x230] ss:$8 sps:$4 sm:$0xff]  }
  0x41   :  { %171 = vmatprep.subr.bf16.mxu0 %v1545_v29  ;;  %292 = vmatprep.subr.bf16.mxu1 %v1547_v30  ;;  %v1622_v19 = vld [vmem:[#allocation2 + $0x2b4] ss:$8 sps:$4 sm:$0xff]   ;;  %v1620_v21 = vld [vmem:[#allocation2 + $0x2b0] ss:$8 sps:$4 sm:$0xff]   ;;  %v1625_v22 = vld [vmem:[#allocation2 + $0x244] ss:$8 sps:$4 sm:$0xff]  }
  0x42   :  { %v1628_v23 = vld [vmem:[#allocation2 + $0x2c4] ss:$8 sps:$4 sm:$0xff]   ;;  %v1623_v24 = vld [vmem:[#allocation2 + $0x240] ss:$8 sps:$4 sm:$0xff]   ;;  %v1631_v26 = vld [vmem:[#allocation2 + $0x254] ss:$8 sps:$4 sm:$0xff]  }
  0x43   :  { %v1626_v25 = vld [vmem:[#allocation2 + $0x2c0] ss:$8 sps:$4 sm:$0xff]   ;;  %v1634_v27 = vld [vmem:[#allocation2 + $0x2d4] ss:$8 sps:$4 sm:$0xff]   ;;  %v1629_v28 = vld [vmem:[#allocation2 + $0x250] ss:$8 sps:$4 sm:$0xff]  }
  0x44   :  { %172 = vmatpush1.bf16.msra.mxu0 %v1549_v31  ;;  %293 = vmatpush1.bf16.msra.mxu1 %v1550_v32  ;;  %v1632_v29 = vld [vmem:[#allocation2 + $0x2d0] ss:$8 sps:$4 sm:$0xff]   ;;  %v1637_v30 = vld [vmem:[#allocation2 + $0x264] ss:$8 sps:$4 sm:$0xff]   ;;  %v1635_v32 = vld [vmem:[#allocation2 + $0x260] ss:$8 sps:$4 sm:$0xff]  }
  0x45   :  { %418 = vmatprep.subr.bf16.mxu0 %v1553_v33  ;;  %560 = vmatprep.subr.bf16.mxu1 %v1556_v34  ;;  %v1640_v31 = vld [vmem:[#allocation2 + $0x2e4] ss:$8 sps:$4 sm:$0xff]   ;;  %v1638_v33 = vld [vmem:[#allocation2 + $0x2e0] ss:$8 sps:$4 sm:$0xff]   ;;  %v1643_v34 = vld [vmem:[#allocation2 + $0x274] ss:$8 sps:$4 sm:$0xff]  }
  0x47   :  { %190 = vmatmul.mubr.bf16.vlgmr.msra.gmra.mrb[0].mxu0 %v1344_v35  ;;  %311 = vmatmul.mubr.bf16.vlgmr.msra.gmra.mrb[0].mxu1 %v41_v36  ;;  %v1646_v35 = vld [vmem:[#allocation2 + $0x2f4] ss:$8 sps:$4 sm:$0xff]   ;;  %v1641_v36 = vld [vmem:[#allocation2 + $0x270] ss:$8 sps:$4 sm:$0xff]  }
  0x48   :  { %419 = vmatpush1.bf16.msra.mxu0 %v1551_v37  ;;  %561 = vmatpush1.bf16.msra.mxu1 %v1554_v38  ;;  %v1644_v37 = vld [vmem:[#allocation2 + $0x2f0] ss:$8 sps:$4 sm:$0xff]   ;;  %v1649_v38 = vld [vmem:[#allocation2 + $0x304] ss:$8 sps:$4 sm:$0xff]  }
  0x49   :  { %420 = vmatprep.subr.bf16.mxu0 %v1559_v39  ;;  %562 = vmatprep.subr.bf16.mxu1 %v1562_v40  ;;  %v1652_v39 = vld [vmem:[#allocation2 + $0x384] ss:$8 sps:$4 sm:$0xff]   ;;  %v1411_v40 = vld [vmem:[%s1855_s0 + $0x10] sm:$0xf] }
  0x4a   :  { %450 = vmatprep.mubr.bf16.mxu0 %v1771_v0  ;;  %592 = vmatprep.mubr.bf16.mxu1 %v1771_v0 }
  0x4c   :  { %421 = vmatpush1.bf16.msra.mxu0 %v1557_v41  ;;  %563 = vmatpush1.bf16.msra.mxu1 %v1560_v42  ;;  %v1647_v41 = vld [vmem:[#allocation2 + $0x300] ss:$8 sps:$4 sm:$0xff]   ;;  %v1428_v42 = vld [vmem:[%s1855_s0 + $0x14] sm:$0xf] }
  0x4d   :  { %422 = vmatprep.subr.bf16.mxu0 %v1565_v43  ;;  %564 = vmatprep.subr.bf16.mxu1 %v1568_v44  ;;  %v1650_v43 = vld [vmem:[#allocation2 + $0x380] ss:$8 sps:$4 sm:$0xff]   ;;  %v1655_v44 = vld [vmem:[#allocation2 + $0x314] ss:$8 sps:$4 sm:$0xff]  }
  0x50   :  { %423 = vmatpush1.bf16.msra.mxu0 %v1563_v45  ;;  %565 = vmatpush1.bf16.msra.mxu1 %v1566_v46  ;;  %v1658_v45 = vld [vmem:[#allocation2 + $0x394] ss:$8 sps:$4 sm:$0xff]   ;;  %v1653_v46 = vld [vmem:[#allocation2 + $0x310] ss:$8 sps:$4 sm:$0xff]  }
  0x51   :  { %424 = vmatprep.subr.bf16.mxu0 %v1571_v47  ;;  %566 = vmatprep.subr.bf16.mxu1 %v1574_v48  ;;  %v1656_v47 = vld [vmem:[#allocation2 + $0x390] ss:$8 sps:$4 sm:$0xff]   ;;  %v1661_v48 = vld [vmem:[#allocation2 + $0x324] ss:$8 sps:$4 sm:$0xff]  }
  0x54   :  { %425 = vmatpush1.bf16.msra.mxu0 %v1569_v49  ;;  %567 = vmatpush1.bf16.msra.mxu1 %v1572_v50  ;;  %v1664_v49 = vld [vmem:[#allocation2 + $0x3a4] ss:$8 sps:$4 sm:$0xff]   ;;  %v1659_v50 = vld [vmem:[#allocation2 + $0x320] ss:$8 sps:$4 sm:$0xff]  }
  0x55   :  { %426 = vmatprep.subr.bf16.mxu0 %v1577_v51  ;;  %568 = vmatprep.subr.bf16.mxu1 %v1580_v52  ;;  %v1662_v51 = vld [vmem:[#allocation2 + $0x3a0] ss:$8 sps:$4 sm:$0xff]   ;;  %v1667_v52 = vld [vmem:[#allocation2 + $0x334] ss:$8 sps:$4 sm:$0xff]  }
  0x58   :  { %427 = vmatpush1.bf16.msra.mxu0 %v1575_v53  ;;  %569 = vmatpush1.bf16.msra.mxu1 %v1578_v54  ;;  %v1670_v53 = vld [vmem:[#allocation2 + $0x3b4] ss:$8 sps:$4 sm:$0xff]   ;;  %v1665_v54 = vld [vmem:[#allocation2 + $0x330] ss:$8 sps:$4 sm:$0xff]  }
  0x59   :  { %428 = vmatprep.subr.bf16.mxu0 %v1583_v55  ;;  %570 = vmatprep.subr.bf16.mxu1 %v1586_v56  ;;  %v1668_v55 = vld [vmem:[#allocation2 + $0x3b0] ss:$8 sps:$4 sm:$0xff]   ;;  %v1673_v56 = vld [vmem:[#allocation2 + $0x344] ss:$8 sps:$4 sm:$0xff]  }
  0x5c   :  { %429 = vmatpush1.bf16.msra.mxu0 %v1581_v57  ;;  %571 = vmatpush1.bf16.msra.mxu1 %v1584_v58  ;;  %v1676_v57 = vld [vmem:[#allocation2 + $0x3c4] ss:$8 sps:$4 sm:$0xff]   ;;  %v1671_v58 = vld [vmem:[#allocation2 + $0x340] ss:$8 sps:$4 sm:$0xff]  }
  0x5d   :  { %430 = vmatprep.subr.bf16.mxu0 %v1589_v59  ;;  %572 = vmatprep.subr.bf16.mxu1 %v1592_v60  ;;  %v1674_v59 = vld [vmem:[#allocation2 + $0x3c0] ss:$8 sps:$4 sm:$0xff]   ;;  %v1679_v60 = vld [vmem:[#allocation2 + $0x354] ss:$8 sps:$4 sm:$0xff]  }
  0x60   :  { %431 = vmatpush1.bf16.msra.mxu0 %v1587_v61  ;;  %573 = vmatpush1.bf16.msra.mxu1 %v1590_v62  ;;  %v1682_v61 = vld [vmem:[#allocation2 + $0x3d4] ss:$8 sps:$4 sm:$0xff]   ;;  %v1677_v62 = vld [vmem:[#allocation2 + $0x350] ss:$8 sps:$4 sm:$0xff]  }
  0x61   :  { %432 = vmatprep.subr.bf16.mxu0 %v1595_v63  ;;  %574 = vmatprep.subr.bf16.mxu1 %v1598_v1  ;;  %v1680_v63 = vld [vmem:[#allocation2 + $0x3d0] ss:$8 sps:$4 sm:$0xff]   ;;  %v1685_v1 = vld [vmem:[#allocation2 + $0x364] ss:$8 sps:$4 sm:$0xff]  }
  0x64   :  { %433 = vmatpush1.bf16.msra.mxu0 %v1593_v2  ;;  %575 = vmatpush1.bf16.msra.mxu1 %v1596_v3  ;;  %v1688_v2 = vld [vmem:[#allocation2 + $0x3e4] ss:$8 sps:$4 sm:$0xff]   ;;  %v1683_v3 = vld [vmem:[#allocation2 + $0x360] ss:$8 sps:$4 sm:$0xff]  }
  0x65   :  { %702 = vmatprep.subr.bf16.mxu0 %v1601_v4  ;;  %844 = vmatprep.subr.bf16.mxu1 %v1604_v5  ;;  %v1686_v4 = vld [vmem:[#allocation2 + $0x3e0] ss:$8 sps:$4 sm:$0xff]   ;;  %v1691_v5 = vld [vmem:[#allocation2 + $0x374] ss:$8 sps:$4 sm:$0xff]  }
  0x67   :  { %451 = vmatmul.mubr.bf16.vlgmr.msra.gmra.mrb[4].mxu0 %v1377_v6  ;;  %593 = vmatmul.mubr.bf16.vlgmr.msra.gmra.mrb[4].mxu1 %v1394_v8  ;;  %v1694_v6 = vld [vmem:[#allocation2 + $0x3f4] ss:$8 sps:$4 sm:$0xff]   ;;  %v1692_v8 = vld [vmem:[#allocation2 + $0x3f0] ss:$8 sps:$4 sm:$0xff]  }
  0x68   :  { %703 = vmatpush1.bf16.msra.mxu0 %v1599_v7  ;;  %845 = vmatpush1.bf16.msra.mxu1 %v1602_v9  ;;  %v1689_v7 = vld [vmem:[#allocation2 + $0x370] ss:$8 sps:$4 sm:$0xff]   ;;  %v1697_v9 = vld [vmem:[#allocation2 + $0x404] ss:$8 sps:$4 sm:$0xff]  }
  0x69   :  { %704 = vmatprep.subr.bf16.mxu0 %v1607_v10  ;;  %846 = vmatprep.subr.bf16.mxu1 %v1610_v11  ;;  %v1445_v10 = vld [vmem:[%s1855_s0 + $0x18] sm:$0xf]  ;;  %v1695_v11 = vld [vmem:[#allocation2 + $0x400] ss:$8 sps:$4 sm:$0xff]  }
  0x6a   :  { %734 = vmatprep.mubr.bf16.mxu0 %v1771_v0  ;;  %876 = vmatprep.mubr.bf16.mxu1 %v1771_v0 }
  0x6c   :  { %705 = vmatpush1.bf16.msra.mxu0 %v1605_v12  ;;  %847 = vmatpush1.bf16.msra.mxu1 %v1608_v13  ;;  %v1462_v12 = vld [vmem:[%s1855_s0 + $0x1c] sm:$0xf] }
  0x6d   :  { %706 = vmatprep.subr.bf16.mxu0 %v1613_v14  ;;  %848 = vmatprep.subr.bf16.mxu1 %v1616_v15  ;;  %v1700_v13 = vld [vmem:[#allocation2 + $0x414] ss:$8 sps:$4 sm:$0xff]   ;;  %v1698_v14 = vld [vmem:[#allocation2 + $0x410] ss:$8 sps:$4 sm:$0xff]   ;;  %v1703_v15 = vld [vmem:[#allocation2 + $0x424] ss:$8 sps:$4 sm:$0xff]  }
  0x70   :  { %707 = vmatpush1.bf16.msra.mxu0 %v1611_v16  ;;  %849 = vmatpush1.bf16.msra.mxu1 %v1614_v17  ;;  %v1701_v16 = vld [vmem:[#allocation2 + $0x420] ss:$8 sps:$4 sm:$0xff]   ;;  %v1706_v17 = vld [vmem:[#allocation2 + $0x434] ss:$8 sps:$4 sm:$0xff]  }
  0x71   :  { %708 = vmatprep.subr.bf16.mxu0 %v1619_v18  ;;  %850 = vmatprep.subr.bf16.mxu1 %v1622_v19  ;;  %v1704_v18 = vld [vmem:[#allocation2 + $0x430] ss:$8 sps:$4 sm:$0xff]   ;;  %v1709_v19 = vld [vmem:[#allocation2 + $0x444] ss:$8 sps:$4 sm:$0xff]  }
  0x74   :  { %709 = vmatpush1.bf16.msra.mxu0 %v1617_v20  ;;  %851 = vmatpush1.bf16.msra.mxu1 %v1620_v21  ;;  %v1707_v20 = vld [vmem:[#allocation2 + $0x440] ss:$8 sps:$4 sm:$0xff]   ;;  %v1712_v21 = vld [vmem:[#allocation2 + $0x454] ss:$8 sps:$4 sm:$0xff]  }
  0x75   :  { %710 = vmatprep.subr.bf16.mxu0 %v1625_v22  ;;  %852 = vmatprep.subr.bf16.mxu1 %v1628_v23  ;;  %v1710_v22 = vld [vmem:[#allocation2 + $0x450] ss:$8 sps:$4 sm:$0xff]   ;;  %v1715_v23 = vld [vmem:[#allocation2 + $0x464] ss:$8 sps:$4 sm:$0xff]  }
  0x78   :  { %711 = vmatpush1.bf16.msra.mxu0 %v1623_v24  ;;  %853 = vmatpush1.bf16.msra.mxu1 %v1626_v25  ;;  %v1718_v24 = vld [vmem:[#allocation2 + $0x474] ss:$8 sps:$4 sm:$0xff]   ;;  %v1716_v25 = vld [vmem:[#allocation2 + $0x470] ss:$8 sps:$4 sm:$0xff]  }
  0x79   :  { %712 = vmatprep.subr.bf16.mxu0 %v1631_v26  ;;  %854 = vmatprep.subr.bf16.mxu1 %v1634_v27  ;;  %v1479_v26 = vld [vmem:[%s1855_s0 + $0x20] sm:$0xf] }
  0x7c   :  { %713 = vmatpush1.bf16.msra.mxu0 %v1629_v28  ;;  %855 = vmatpush1.bf16.msra.mxu1 %v1632_v29 }
  0x7d   :  { %714 = vmatprep.subr.bf16.mxu0 %v1637_v30  ;;  %856 = vmatprep.subr.bf16.mxu1 %v1640_v31 }
  0x80   :  { %715 = vmatpush1.bf16.msra.mxu0 %v1635_v32  ;;  %857 = vmatpush1.bf16.msra.mxu1 %v1638_v33 }
  0x81   :  { %716 = vmatprep.subr.bf16.mxu0 %v1643_v34  ;;  %858 = vmatprep.subr.bf16.mxu1 %v1646_v35 }
  0x84   :  { %717 = vmatpush1.bf16.msra.mxu0 %v1641_v36  ;;  %859 = vmatpush1.bf16.msra.mxu1 %v1644_v37 }
  0x85   :  { %986 = vmatprep.subr.bf16.mxu0 %v1649_v38  ;;  %1128 = vmatprep.subr.bf16.mxu1 %v1652_v39 }
  0x87   :  { %735 = vmatmul.mubr.bf16.vlgmr.msra.gmra.mrb[8].mxu0 %v1411_v40  ;;  %877 = vmatmul.mubr.bf16.vlgmr.msra.gmra.mrb[8].mxu1 %v1428_v42 }
  0x88   :  { %987 = vmatpush1.bf16.msra.mxu0 %v1647_v41  ;;  %1129 = vmatpush1.bf16.msra.mxu1 %v1650_v43 }
  0x89   :  { %988 = vmatprep.subr.bf16.mxu0 %v1655_v44  ;;  %1130 = vmatprep.subr.bf16.mxu1 %v1658_v45 }
  0x8a   :  { %1018 = vmatprep.mubr.bf16.mxu0 %v1771_v0  ;;  %1160 = vmatprep.mubr.bf16.mxu1 %v1771_v0 }
  0x8c   :  { %989 = vmatpush1.bf16.msra.mxu0 %v1653_v46  ;;  %1131 = vmatpush1.bf16.msra.mxu1 %v1656_v47 }
  0x8d   :  { %990 = vmatprep.subr.bf16.mxu0 %v1661_v48  ;;  %1132 = vmatprep.subr.bf16.mxu1 %v1664_v49 }
  0x90   :  { %991 = vmatpush1.bf16.msra.mxu0 %v1659_v50  ;;  %1133 = vmatpush1.bf16.msra.mxu1 %v1662_v51 }
  0x91   :  { %992 = vmatprep.subr.bf16.mxu0 %v1667_v52  ;;  %1134 = vmatprep.subr.bf16.mxu1 %v1670_v53 }
  0x94   :  { %993 = vmatpush1.bf16.msra.mxu0 %v1665_v54  ;;  %1135 = vmatpush1.bf16.msra.mxu1 %v1668_v55 }
  0x95   :  { %994 = vmatprep.subr.bf16.mxu0 %v1673_v56  ;;  %1136 = vmatprep.subr.bf16.mxu1 %v1676_v57 }
  0x98   :  { %995 = vmatpush1.bf16.msra.mxu0 %v1671_v58  ;;  %1137 = vmatpush1.bf16.msra.mxu1 %v1674_v59 }
  0x99   :  { %996 = vmatprep.subr.bf16.mxu0 %v1679_v60  ;;  %1138 = vmatprep.subr.bf16.mxu1 %v1682_v61 }
  0x9c   :  { %997 = vmatpush1.bf16.msra.mxu0 %v1677_v62  ;;  %1139 = vmatpush1.bf16.msra.mxu1 %v1680_v63 }
  0x9d   :  { %998 = vmatprep.subr.bf16.mxu0 %v1685_v1  ;;  %1140 = vmatprep.subr.bf16.mxu1 %v1688_v2 }
  0xa0   :  { %999 = vmatpush1.bf16.msra.mxu0 %v1683_v3  ;;  %1141 = vmatpush1.bf16.msra.mxu1 %v1686_v4 }
  0xa1   :  { %1000 = vmatprep.subr.bf16.mxu0 %v1691_v5  ;;  %1142 = vmatprep.subr.bf16.mxu1 %v1694_v6 }
  0xa4   :  { %1001 = vmatpush1.bf16.msra.mxu0 %v1689_v7  ;;  %1143 = vmatpush1.bf16.msra.mxu1 %v1692_v8 }
  0xa5   :  { %1270 = vmatprep.subr.bf16.mxu0 %v1697_v9 }
  0xa7   :  { %1019 = vmatmul.mubr.bf16.vlgmr.msra.gmra.mrb[12].mxu0 %v1445_v10  ;;  %1161 = vmatmul.mubr.bf16.vlgmr.msra.gmra.mrb[12].mxu1 %v1462_v12  ;;  %v1315_v10 = vlaneseq }
  0xa8   :  { %1271 = vmatpush1.bf16.msra.mxu0 %v1695_v11  ;;  %1302 = vmatprep.mubr.bf16.mxu0 %v1771_v0  ;;  %v1713_v0 = vld [vmem:[#allocation2 + $0x460] ss:$8 sps:$4 sm:$0xff]  }
  0xa9   :  { %1272 = vmatprep.subr.bf16.mxu0 %v1700_v13  ;;  %v1316_v11 = vshrl.u32 %v1315_v10, 7  ;;  %v1313_v13 = vld [vmem:[#allocation4] sm:$0x3] }
  0xab   :  { %v1317_v12 = vsub.s32 0, %v1316_v11 }
  0xac   :  { %1273 = vmatpush1.bf16.msra.mxu0 %v1698_v14  ;;  %v1321_v14 = vsub.s32 1, %v1316_v11 }
  0xad   :  { %1274 = vmatprep.subr.bf16.mxu0 %v1703_v15  ;;  %v1318_v15 = vrot.slane %v1313_v13, %v1317_v12 }
  0xb0   :  { %1275 = vmatpush1.bf16.msra.mxu0 %v1701_v16 }
  0xb1   :  { %1276 = vmatprep.subr.bf16.mxu0 %v1706_v17  ;;  %v1322_v17 = vrot.slane %v1313_v13, %v1321_v14 }
  0xb4   :  { %1277 = vmatpush1.bf16.msra.mxu0 %v1704_v18 }
  0xb5   :  { %1278 = vmatprep.subr.bf16.mxu0 %v1709_v19 }
  0xb8   :  { %1279 = vmatpush1.bf16.msra.mxu0 %v1707_v20 }
  0xb9   :  { %1280 = vmatprep.subr.bf16.mxu0 %v1712_v21 }
  0xbc   :  { %1281 = vmatpush1.bf16.msra.mxu0 %v1710_v22 }
  0xbd   :  { %1282 = vmatprep.subr.bf16.mxu0 %v1715_v23 }
  0xc0   :  { %1283 = vmatpush1.bf16.msra.mxu0 %v1713_v0 }
  0xc1   :  { %1284 = vmatprep.subr.bf16.mxu0 %v1718_v24 }
  0xc4   :  { %1285 = vmatpush1.bf16.msra.mxu0 %v1716_v25 }
  0xc7   :  { %1303 = vmatmul.mubr.bf16.vlgmr.msra.gmra.mrb[16].mxu0 %v1479_v26 }
 0x11a   :  { %v191_v27 = vpop.f32.mrb[0].mxu0  ;;  %v312_v28 = vpop.f32.mrb[0].mxu1 }
 0x11b   :  { %v313_v29 = vadd.f32 %v312_v28, %v191_v27  ;;  %v193_v30 = vpop.f32.mrb[1].mxu0  ;;  %v314_v31 = vpop.f32.mrb[1].mxu1 }
 0x11c   :  { %v315_v32 = vadd.f32 %v314_v31, %v193_v30  ;;  %v195_v33 = vpop.f32.mrb[2].mxu0  ;;  %v316_v34 = vpop.f32.mrb[2].mxu1 }
 0x11d   :  { %v196_v35 = vpop.f32.mrb[3].mxu0  ;;  %v317_v36 = vpop.f32.mrb[3].mxu1 }
 0x13a   :  { %v452_v37 = vpop.f32.mrb[4].mxu0  ;;  %v594_v38 = vpop.f32.mrb[4].mxu1 }
 0x13b   :  { %v459_v39 = vadd.f32 %v452_v37, %v313_v29  ;;  %v454_v40 = vpop.f32.mrb[5].mxu0  ;;  %v596_v41 = vpop.f32.mrb[5].mxu1 }
 0x13c   :  { %v460_v42 = vadd.f32 %v454_v40, %v315_v32  ;;  %v456_v43 = vpop.f32.mrb[6].mxu0  ;;  %v598_v44 = vpop.f32.mrb[6].mxu1 }
 0x13d   :  { %v601_v45 = vadd.f32 %v594_v38, %v459_v39  ;;  %v457_v46 = vpop.f32.mrb[7].mxu0  ;;  %v599_v47 = vpop.f32.mrb[7].mxu1 }
 0x13e   :  { %v602_v48 = vadd.f32 %v596_v41, %v460_v42 }
 0x15a   :  { %v736_v49 = vpop.f32.mrb[8].mxu0  ;;  %v878_v50 = vpop.f32.mrb[8].mxu1 }
 0x15b   :  { %v743_v51 = vadd.f32 %v736_v49, %v601_v45  ;;  %v738_v52 = vpop.f32.mrb[9].mxu0  ;;  %v880_v53 = vpop.f32.mrb[9].mxu1 }
 0x15c   :  { %v744_v54 = vadd.f32 %v738_v52, %v602_v48  ;;  %v740_v55 = vpop.f32.mrb[10].mxu0  ;;  %v882_v56 = vpop.f32.mrb[10].mxu1 }
 0x15d   :  { %v885_v57 = vadd.f32 %v878_v50, %v743_v51  ;;  %v741_v58 = vpop.f32.mrb[11].mxu0  ;;  %v883_v59 = vpop.f32.mrb[11].mxu1 }
 0x15e   :  { %v886_v60 = vadd.f32 %v880_v53, %v744_v54 }
 0x17a   :  { %v1020_v61 = vpop.f32.mrb[12].mxu0  ;;  %v1162_v62 = vpop.f32.mrb[12].mxu1 }
 0x17b   :  { %v1027_v63 = vadd.f32 %v1020_v61, %v885_v57  ;;  %v1022_v1 = vpop.f32.mrb[13].mxu0  ;;  %v1164_v2 = vpop.f32.mrb[13].mxu1 }
 0x17c   :  { %v1028_v3 = vadd.f32 %v1022_v1, %v886_v60  ;;  %v1024_v4 = vpop.f32.mrb[14].mxu0  ;;  %v1166_v5 = vpop.f32.mrb[14].mxu1 }
 0x17d   :  { %v1169_v6 = vadd.f32 %v1162_v62, %v1027_v63  ;;  %v1025_v7 = vpop.f32.mrb[15].mxu0  ;;  %v1167_v8 = vpop.f32.mrb[15].mxu1 }
 0x17e   :  { %v1170_v9 = vadd.f32 %v1164_v2, %v1028_v3 }
 0x19a   :  { %v1304_v16 = vpop.f32.mrb[16].mxu0 }
 0x19b   :  { %v1311_v18 = vadd.f32 %v1304_v16, %v1169_v6  ;;  %v1306_v19 = vpop.f32.mrb[17].mxu0 }
 0x19c   :  { %v1312_v20 = vadd.f32 %v1306_v19, %v1170_v9  ;;  %v1308_v21 = vpop.f32.mrb[18].mxu0 }
 0x19d   :  { %v1325_v22 = vadd.f32 %v1318_v15, %v1311_v18  ;;  %v1309_v23 = vpop.f32.mrb[19].mxu0 }
 0x19e   :  { %v1326_v0 = vadd.f32 %v1322_v17, %v1312_v20 }
 0x19f   :  { %v1327_v24 = vmax.f32 %v1325_v22, 0.0 }
 0x1a0   :  { %v1328_v25 = vmax.f32 %v1326_v0, 0.0 }
 0x1a2   :  { %v1497_v26 = vpack.c.bf16 %v1328_v25, %v1327_v24 }
 0x1a4   :  { %1337 = vst [vmem:[%s1858_s3] sm:$0xff] %v1497_v26 }
 0x1a5   :  { %1342 = vsyncpa [#allocation3], 1 }
 0x1a6   :  { %1343 = vsyncpa [#allocation5], 1 }

// kernel: autoencoder_forward.13
= control target key start
LH: loop header
LB: loop body
LE: loop exit
PB: predicated region body
PF: predicated region fallthrough
CT: control target
= control target key end

     0   :  { %s2925_s1 = inlined_call_operand.vmem [shape: bf16[9,256,128], index: 1, kind: input, shape index: {}]   ;;  %s2926_s0 = inlined_call_operand.vmem [shape: bf16[4,8,256], index: 0, kind: input, shape index: {}]   ;;  %s2927_s2 = inlined_call_operand.vmem [shape: f32[1,128], index: 2, kind: input, shape index: {}]   ;;  %s2928_s3 = inlined_call_operand.vmem [shape: bf16[8,512], index: 3, kind: output, shape index: {}]  }
   0x1   :  { %v2260_v0 = vld [vmem:[%s2925_s1 + $0x40] sm:$0xff]   ;;  %v2264_v4 = vld [vmem:[%s2925_s1 + $0x48] sm:$0xff]   ;;  %v2268_v8 = vld [vmem:[%s2925_s1 + $0x50] sm:$0xff]  }
   0x2   :  { %v2261_v1 = vld [vmem:[%s2925_s1] sm:$0xff]   ;;  %2062 = vmatprep.subr.bf16.mxu0 %v2260_v0  ;;  %v2265_v5 = vld [vmem:[%s2925_s1 + $0x8] sm:$0xff]   ;;  %v2269_v9 = vld [vmem:[%s2925_s1 + $0x10] sm:$0xff]  }
   0x3   :  { %v2262_v2 = vld [vmem:[%s2925_s1 + $0x140] sm:$0xff]   ;;  %2063 = vmatpush3.bf16.msra.mxu0 %v2261_v1  ;;  %v2266_v6 = vld [vmem:[%s2925_s1 + $0x148] sm:$0xff]   ;;  %v2270_v10 = vld [vmem:[%s2925_s1 + $0x150] sm:$0xff]  }
   0x4   :  { %v2263_v3 = vld [vmem:[%s2925_s1 + $0x100] sm:$0xff]   ;;  %2084 = vmatprep.subr.bf16.mxu1 %v2262_v2  ;;  %2064 = vmatprep.subr.bf16.mxu0 %v2264_v4  ;;  %v2267_v7 = vld [vmem:[%s2925_s1 + $0x108] sm:$0xff]   ;;  %v2271_v11 = vld [vmem:[%s2925_s1 + $0x110] sm:$0xff]  }
   0x5   :  { %2085 = vmatpush3.bf16.msra.mxu1 %v2263_v3  ;;  %v2272_v12 = vld [vmem:[%s2925_s1 + $0x58] sm:$0xff]   ;;  %v2276_v16 = vld [vmem:[%s2925_s1 + $0x60] sm:$0xff]   ;;  %v2280_v20 = vld [vmem:[%s2925_s1 + $0x68] sm:$0xff]  }
   0x6   :  { %2086 = vmatprep.subr.bf16.mxu1 %v2266_v6  ;;  %v2273_v13 = vld [vmem:[%s2925_s1 + $0x18] sm:$0xff]   ;;  %v2277_v17 = vld [vmem:[%s2925_s1 + $0x20] sm:$0xff]   ;;  %v2281_v21 = vld [vmem:[%s2925_s1 + $0x28] sm:$0xff]  }
   0x7   :  { %2065 = vmatpush3.bf16.msra.mxu0 %v2265_v5  ;;  %v2274_v14 = vld [vmem:[%s2925_s1 + $0x158] sm:$0xff]   ;;  %v2278_v18 = vld [vmem:[%s2925_s1 + $0x160] sm:$0xff]   ;;  %v2282_v22 = vld [vmem:[%s2925_s1 + $0x168] sm:$0xff]  }
   0x8   :  { %2066 = vmatprep.subr.bf16.mxu0 %v2268_v8  ;;  %v2275_v15 = vld [vmem:[%s2925_s1 + $0x118] sm:$0xff]   ;;  %v2279_v19 = vld [vmem:[%s2925_s1 + $0x120] sm:$0xff]   ;;  %v2283_v23 = vld [vmem:[%s2925_s1 + $0x128] sm:$0xff]  }
   0x9   :  { %2087 = vmatpush3.bf16.msra.mxu1 %v2267_v7  ;;  %v2284_v24 = vld [vmem:[%s2925_s1 + $0x70] sm:$0xff]   ;;  %v2288_v28 = vld [vmem:[%s2925_s1 + $0x78] sm:$0xff]   ;;  %v16_v31 = vld [vmem:[%s2926_s0] sm:$0xff] }
   0xa   :  { %2088 = vmatprep.subr.bf16.mxu1 %v2270_v10  ;;  %v2285_v25 = vld [vmem:[%s2925_s1 + $0x30] sm:$0xff]   ;;  %v2289_v29 = vld [vmem:[%s2925_s1 + $0x38] sm:$0xff]   ;;  %v2528_v32 = vcombine.low %v16_v31, %v16_v31  ;;  %v2530_v33 = vcombine.high %v16_v31, %v16_v31  ;;  %v2294_v35 = vld [vmem:[%s2925_s1 + $0xc0] sm:$0xff]  }
   0xb   :  { %2067 = vmatpush3.bf16.msra.mxu0 %v2269_v9  ;;  %v2286_v26 = vld [vmem:[%s2925_s1 + $0x170] sm:$0xff]   ;;  %v2290_v30 = vld [vmem:[%s2925_s1 + $0x178] sm:$0xff]   ;;  %v2295_v36 = vld [vmem:[%s2925_s1 + $0x80] sm:$0xff]  }
   0xc   :  { %2068 = vmatprep.subr.bf16.mxu0 %v2272_v12  ;;  %v2287_v27 = vld [vmem:[%s2925_s1 + $0x130] sm:$0xff]   ;;  %v2293_v34 = vld [vmem:[%s2925_s1 + $0x138] sm:$0xff]   ;;  %190 = vmatprep.mubr.bf16.mxu0 %v2530_v33  ;;  %v1689_v37 = vld [vmem:[%s2926_s0 + $0x8] sm:$0xff] }
   0xd   :  { %2089 = vmatpush3.bf16.msra.mxu1 %v2271_v11  ;;  %v2546_v38 = vcombine.low %v1689_v37, %v1689_v37  ;;  %v2548_v39 = vcombine.high %v1689_v37, %v1689_v37  ;;  %v2298_v40 = vld [vmem:[%s2925_s1 + $0x240] sm:$0xff]   ;;  %v2300_v42 = vld [vmem:[%s2925_s1 + $0xc8] sm:$0xff]   ;;  %v2304_v46 = vld [vmem:[%s2925_s1 + $0xd0] sm:$0xff]  }
   0xe   :  { %2090 = vmatprep.subr.bf16.mxu1 %v2274_v14  ;;  %v2299_v41 = vld [vmem:[%s2925_s1 + $0x200] sm:$0xff]   ;;  %v2301_v43 = vld [vmem:[%s2925_s1 + $0x88] sm:$0xff]   ;;  %v2305_v47 = vld [vmem:[%s2925_s1 + $0x90] sm:$0xff]  }
   0xf   :  { %2069 = vmatpush3.bf16.msra.mxu0 %v2273_v13  ;;  %405 = vmatprep.mubr.bf16.mxu1 %v2548_v39  ;;  %v2302_v44 = vld [vmem:[%s2925_s1 + $0x248] sm:$0xff]   ;;  %v2306_v48 = vld [vmem:[%s2925_s1 + $0x250] sm:$0xff]   ;;  %v2308_v50 = vld [vmem:[%s2925_s1 + $0xd8] sm:$0xff]  }
  0x10   :  { %2070 = vmatprep.subr.bf16.mxu0 %v2276_v16  ;;  %v2303_v45 = vld [vmem:[%s2925_s1 + $0x208] sm:$0xff]   ;;  %v2307_v49 = vld [vmem:[%s2925_s1 + $0x210] sm:$0xff]   ;;  %v2309_v51 = vld [vmem:[%s2925_s1 + $0x98] sm:$0xff]  }
  0x11   :  { %2091 = vmatpush3.bf16.msra.mxu1 %v2275_v15  ;;  %v2310_v52 = vld [vmem:[%s2925_s1 + $0x258] sm:$0xff]   ;;  %v2312_v54 = vld [vmem:[%s2925_s1 + $0xe0] sm:$0xff]   ;;  %v2316_v58 = vld [vmem:[%s2925_s1 + $0xe8] sm:$0xff]  }
  0x12   :  { %2092 = vmatprep.subr.bf16.mxu1 %v2278_v18  ;;  %v2311_v53 = vld [vmem:[%s2925_s1 + $0x218] sm:$0xff]   ;;  %v2313_v55 = vld [vmem:[%s2925_s1 + $0xa0] sm:$0xff]   ;;  %v2317_v59 = vld [vmem:[%s2925_s1 + $0xa8] sm:$0xff]  }
  0x13   :  { %2071 = vmatpush3.bf16.msra.mxu0 %v2277_v17  ;;  %v2314_v56 = vld [vmem:[%s2925_s1 + $0x260] sm:$0xff]   ;;  %v2318_v60 = vld [vmem:[%s2925_s1 + $0x268] sm:$0xff]   ;;  %v2320_v62 = vld [vmem:[%s2925_s1 + $0xf0] sm:$0xff]  }
  0x14   :  { %2072 = vmatprep.subr.bf16.mxu0 %v2280_v20  ;;  %v2315_v57 = vld [vmem:[%s2925_s1 + $0x220] sm:$0xff]   ;;  %v2319_v61 = vld [vmem:[%s2925_s1 + $0x228] sm:$0xff]   ;;  %v2321_v63 = vld [vmem:[%s2925_s1 + $0xb0] sm:$0xff]  }
  0x15   :  { %2093 = vmatpush3.bf16.msra.mxu1 %v2279_v19  ;;  %v2322_v0 = vld [vmem:[%s2925_s1 + $0x270] sm:$0xff]   ;;  %v2324_v2 = vld [vmem:[%s2925_s1 + $0xf8] sm:$0xff]   ;;  %v2328_v6 = vld [vmem:[%s2925_s1 + $0x1c0] sm:$0xff]  }
  0x16   :  { %2094 = vmatprep.subr.bf16.mxu1 %v2282_v22  ;;  %v2323_v1 = vld [vmem:[%s2925_s1 + $0x230] sm:$0xff]   ;;  %v2325_v3 = vld [vmem:[%s2925_s1 + $0xb8] sm:$0xff]   ;;  %v2329_v7 = vld [vmem:[%s2925_s1 + $0x180] sm:$0xff]  }
  0x17   :  { %2073 = vmatpush3.bf16.msra.mxu0 %v2281_v21  ;;  %v2326_v4 = vld [vmem:[%s2925_s1 + $0x278] sm:$0xff]   ;;  %v1790_v8 = vld [vmem:[%s2926_s0 + $0x10] sm:$0xff]  ;;  %v2332_v11 = vld [vmem:[%s2925_s1 + $0x340] sm:$0xff]  }
  0x18   :  { %2074 = vmatprep.subr.bf16.mxu0 %v2284_v24  ;;  %v2327_v5 = vld [vmem:[%s2925_s1 + $0x238] sm:$0xff]   ;;  %v2653_v9 = vcombine.low %v1790_v8, %v1790_v8  ;;  %v2655_v10 = vcombine.high %v1790_v8, %v1790_v8  ;;  %v2333_v12 = vld [vmem:[%s2925_s1 + $0x300] sm:$0xff]   ;;  %v2334_v13 = vld [vmem:[%s2925_s1 + $0x1c8] sm:$0xff]  }
  0x19   :  { %2095 = vmatpush3.bf16.msra.mxu1 %v2283_v23  ;;  %v2335_v14 = vld [vmem:[%s2925_s1 + $0x188] sm:$0xff]   ;;  %v2338_v17 = vld [vmem:[%s2925_s1 + $0x1d0] sm:$0xff]   ;;  %v2342_v21 = vld [vmem:[%s2925_s1 + $0x1d8] sm:$0xff]  }
  0x1a   :  { %2096 = vmatprep.subr.bf16.mxu1 %v2286_v26  ;;  %v2336_v15 = vld [vmem:[%s2925_s1 + $0x348] sm:$0xff]   ;;  %v2339_v18 = vld [vmem:[%s2925_s1 + $0x190] sm:$0xff]   ;;  %v2343_v22 = vld [vmem:[%s2925_s1 + $0x198] sm:$0xff]  }
  0x1b   :  { %2075 = vmatpush3.bf16.msra.mxu0 %v2285_v25  ;;  %v2337_v16 = vld [vmem:[%s2925_s1 + $0x308] sm:$0xff]   ;;  %v2340_v19 = vld [vmem:[%s2925_s1 + $0x350] sm:$0xff]   ;;  %v2344_v23 = vld [vmem:[%s2925_s1 + $0x358] sm:$0xff]  }
  0x1c   :  { %2076 = vmatprep.subr.bf16.mxu0 %v2288_v28  ;;  %v2341_v20 = vld [vmem:[%s2925_s1 + $0x310] sm:$0xff]   ;;  %v2345_v24 = vld [vmem:[%s2925_s1 + $0x318] sm:$0xff]   ;;  %v2346_v25 = vld [vmem:[%s2925_s1 + $0x1e0] sm:$0xff]  }
  0x1d   :  { %2097 = vmatpush3.bf16.msra.mxu1 %v2287_v27  ;;  %v2347_v26 = vld [vmem:[%s2925_s1 + $0x1a0] sm:$0xff]   ;;  %v2352_v31 = vld [vmem:[%s2925_s1 + $0x368] sm:$0xff]   ;;  %v2356_v37 = vld [vmem:[%s2925_s1 + $0x370] sm:$0xff]  }
  0x1e   :  { %2098 = vmatprep.subr.bf16.mxu1 %v2290_v30  ;;  %v2348_v27 = vld [vmem:[%s2925_s1 + $0x360] sm:$0xff]   ;;  %v2351_v30 = vld [vmem:[%s2925_s1 + $0x1a8] sm:$0xff]   ;;  %v2392_v8 = vld [vmem:[%s2925_s1 + $0x3f8] sm:$0xff]  }
  0x1f   :  { %2077 = vmatpush3.bf16.msra.mxu0 %v2289_v29  ;;  %v2349_v28 = vld [vmem:[%s2925_s1 + $0x320] sm:$0xff]   ;;  %v2350_v29 = vld [vmem:[%s2925_s1 + $0x1e8] sm:$0xff]  }
  0x20   :  { %2106 = vmatprep.subr.bf16.mxu0 %v2294_v35  ;;  %v2354_v35 = vld [vmem:[%s2925_s1 + $0x1f0] sm:$0xff]  }
  0x21   :  { %2099 = vmatpush3.bf16.msra.mxu1 %v2293_v34  ;;  %v2353_v34 = vld [vmem:[%s2925_s1 + $0x328] sm:$0xff]  }
  0x22   :  { %191 = vmatmul.mubr.bf16.vlgmr.msra.gmra.mrb[0].mxu0 %v2528_v32  ;;  %2128 = vmatprep.subr.bf16.mxu1 %v2298_v40  ;;  %v2358_v40 = vld [vmem:[%s2925_s1 + $0x1f8] sm:$0xff]  }
  0x23   :  { %2107 = vmatpush3.bf16.msra.mxu0 %v2295_v36  ;;  %548 = vmatprep.mubr.bf16.mxu0 %v2530_v33  ;;  %v2355_v36 = vld [vmem:[%s2925_s1 + $0x1b0] sm:$0xff]  }
  0x24   :  { %406 = vmatmul.mubr.bf16.vlgmr.msra.gmra.mrb[0].mxu1 %v2546_v38  ;;  %2108 = vmatprep.subr.bf16.mxu0 %v2300_v42  ;;  %v2360_v42 = vld [vmem:[%s2925_s1 + $0x378] sm:$0xff]  }
  0x25   :  { %2129 = vmatpush3.bf16.msra.mxu1 %v2299_v41  ;;  %764 = vmatprep.mubr.bf16.mxu1 %v2655_v10  ;;  %v2359_v41 = vld [vmem:[%s2925_s1 + $0x1b8] sm:$0xff]  }
  0x26   :  { %2130 = vmatprep.subr.bf16.mxu1 %v2302_v44  ;;  %v2362_v44 = vld [vmem:[%s2925_s1 + $0x2c0] sm:$0xff]  }
  0x27   :  { %2109 = vmatpush3.bf16.msra.mxu0 %v2301_v43  ;;  %v2361_v43 = vld [vmem:[%s2925_s1 + $0x338] sm:$0xff]  }
  0x28   :  { %2110 = vmatprep.subr.bf16.mxu0 %v2304_v46  ;;  %v2364_v46 = vld [vmem:[%s2925_s1 + $0x3c0] sm:$0xff]  }
  0x29   :  { %2131 = vmatpush3.bf16.msra.mxu1 %v2303_v45  ;;  %v2363_v45 = vld [vmem:[%s2925_s1 + $0x280] sm:$0xff]  }
  0x2a   :  { %2132 = vmatprep.subr.bf16.mxu1 %v2306_v48  ;;  %v2366_v48 = vld [vmem:[%s2925_s1 + $0x2c8] sm:$0xff]  }
  0x2b   :  { %2111 = vmatpush3.bf16.msra.mxu0 %v2305_v47  ;;  %v2365_v47 = vld [vmem:[%s2925_s1 + $0x380] sm:$0xff]  }
  0x2c   :  { %2112 = vmatprep.subr.bf16.mxu0 %v2308_v50  ;;  %v2368_v50 = vld [vmem:[%s2925_s1 + $0x3c8] sm:$0xff]  }
  0x2d   :  { %2133 = vmatpush3.bf16.msra.mxu1 %v2307_v49  ;;  %v2367_v49 = vld [vmem:[%s2925_s1 + $0x288] sm:$0xff]  }
  0x2e   :  { %2134 = vmatprep.subr.bf16.mxu1 %v2310_v52  ;;  %v2372_v52 = vld [vmem:[%s2925_s1 + $0x3d0] sm:$0xff]  }
  0x2f   :  { %2113 = vmatpush3.bf16.msra.mxu0 %v2309_v51  ;;  %v2369_v51 = vld [vmem:[%s2925_s1 + $0x388] sm:$0xff]  }
  0x30   :  { %2114 = vmatprep.subr.bf16.mxu0 %v2312_v54  ;;  %v2374_v54 = vld [vmem:[%s2925_s1 + $0x2d8] sm:$0xff]  }
  0x31   :  { %2135 = vmatpush3.bf16.msra.mxu1 %v2311_v53  ;;  %v2373_v53 = vld [vmem:[%s2925_s1 + $0x390] sm:$0xff]  }
  0x32   :  { %2136 = vmatprep.subr.bf16.mxu1 %v2314_v56  ;;  %v2376_v56 = vld [vmem:[%s2925_s1 + $0x3d8] sm:$0xff]  }
  0x33   :  { %2115 = vmatpush3.bf16.msra.mxu0 %v2313_v55  ;;  %v2375_v55 = vld [vmem:[%s2925_s1 + $0x298] sm:$0xff]  }
  0x34   :  { %2116 = vmatprep.subr.bf16.mxu0 %v2316_v58  ;;  %v2378_v58 = vld [vmem:[%s2925_s1 + $0x2e0] sm:$0xff]  }
  0x35   :  { %2137 = vmatpush3.bf16.msra.mxu1 %v2315_v57  ;;  %v2377_v57 = vld [vmem:[%s2925_s1 + $0x398] sm:$0xff]  }
  0x36   :  { %2138 = vmatprep.subr.bf16.mxu1 %v2318_v60  ;;  %v2380_v60 = vld [vmem:[%s2925_s1 + $0x3e0] sm:$0xff]  }
  0x37   :  { %2117 = vmatpush3.bf16.msra.mxu0 %v2317_v59  ;;  %v2379_v59 = vld [vmem:[%s2925_s1 + $0x2a0] sm:$0xff]  }
  0x38   :  { %2118 = vmatprep.subr.bf16.mxu0 %v2320_v62  ;;  %v2382_v62 = vld [vmem:[%s2925_s1 + $0x2e8] sm:$0xff]  }
  0x39   :  { %2139 = vmatpush3.bf16.msra.mxu1 %v2319_v61  ;;  %v2381_v61 = vld [vmem:[%s2925_s1 + $0x3a0] sm:$0xff]  }
  0x3a   :  { %2140 = vmatprep.subr.bf16.mxu1 %v2322_v0  ;;  %v2384_v0 = vld [vmem:[%s2925_s1 + $0x3e8] sm:$0xff]  }
  0x3b   :  { %2119 = vmatpush3.bf16.msra.mxu0 %v2321_v63  ;;  %v2383_v63 = vld [vmem:[%s2925_s1 + $0x2a8] sm:$0xff]  }
  0x3c   :  { %2120 = vmatprep.subr.bf16.mxu0 %v2324_v2  ;;  %v2386_v2 = vld [vmem:[%s2925_s1 + $0x2f0] sm:$0xff]  }
  0x3d   :  { %2141 = vmatpush3.bf16.msra.mxu1 %v2323_v1  ;;  %v2385_v1 = vld [vmem:[%s2925_s1 + $0x3a8] sm:$0xff]  }
  0x3e   :  { %2142 = vmatprep.subr.bf16.mxu1 %v2326_v4  ;;  %v2388_v4 = vld [vmem:[%s2925_s1 + $0x3f0] sm:$0xff]  }
  0x3f   :  { %2121 = vmatpush3.bf16.msra.mxu0 %v2325_v3  ;;  %v2387_v3 = vld [vmem:[%s2925_s1 + $0x2b0] sm:$0xff]  }
  0x40   :  { %2150 = vmatprep.subr.bf16.mxu0 %v2328_v6  ;;  %v2390_v6 = vld [vmem:[%s2925_s1 + $0x2f8] sm:$0xff]  }
  0x41   :  { %2143 = vmatpush3.bf16.msra.mxu1 %v2327_v5  ;;  %v2389_v5 = vld [vmem:[%s2925_s1 + $0x3b0] sm:$0xff]  }
  0x42   :  { %549 = vmatmul.mubr.bf16.vlgmr.msra.gmra.mrb[4].mxu0 %v2528_v32  ;;  %2172 = vmatprep.subr.bf16.mxu1 %v2332_v11  ;;  %v2394_v11 = vld [vmem:[%s2925_s1 + $0x440] sm:$0xff]  }
  0x43   :  { %907 = vmatprep.mubr.bf16.mxu0 %v2530_v33  ;;  %2151 = vmatpush3.bf16.msra.mxu0 %v2329_v7  ;;  %v2391_v7 = vld [vmem:[%s2925_s1 + $0x2b8] sm:$0xff]  }
  0x44   :  { %765 = vmatmul.mubr.bf16.vlgmr.msra.gmra.mrb[4].mxu1 %v2653_v9  ;;  %2152 = vmatprep.subr.bf16.mxu0 %v2334_v13  ;;  %v2396_v13 = vld [vmem:[%s2925_s1 + $0x448] sm:$0xff]  }
  0x45   :  { %2173 = vmatpush3.bf16.msra.mxu1 %v2333_v12  ;;  %1122 = vmatprep.mubr.bf16.mxu1 %v2548_v39  ;;  %v2357_v39 = vld [vmem:[%s2925_s1 + $0x330] sm:$0xff]   ;;  %v2395_v12 = vld [vmem:[%s2925_s1 + $0x400] sm:$0xff]  }
  0x46   :  { %2174 = vmatprep.subr.bf16.mxu1 %v2336_v15  ;;  %v2398_v15 = vld [vmem:[%s2925_s1 + $0x450] sm:$0xff]  }
  0x47   :  { %2153 = vmatpush3.bf16.msra.mxu0 %v2335_v14  ;;  %v2397_v14 = vld [vmem:[%s2925_s1 + $0x408] sm:$0xff]  }
  0x48   :  { %2154 = vmatprep.subr.bf16.mxu0 %v2338_v17  ;;  %v2402_v17 = vld [vmem:[%s2925_s1 + $0x460] sm:$0xff]  }
  0x49   :  { %2175 = vmatpush3.bf16.msra.mxu1 %v2337_v16  ;;  %v2399_v16 = vld [vmem:[%s2925_s1 + $0x410] sm:$0xff]  }
  0x4a   :  { %2176 = vmatprep.subr.bf16.mxu1 %v2340_v19  ;;  %v2011_v19 = vld [vmem:[%s2926_s0 + $0x18] sm:$0xff] }
  0x4b   :  { %2155 = vmatpush3.bf16.msra.mxu0 %v2339_v18  ;;  %v2403_v18 = vld [vmem:[%s2925_s1 + $0x420] sm:$0xff]  }
  0x4c   :  { %2156 = vmatprep.subr.bf16.mxu0 %v2342_v21  ;;  %v2045_v21 = vcombine.high %v2011_v19, %v2011_v19 }
  0x4d   :  { %2177 = vmatpush3.bf16.msra.mxu1 %v2341_v20  ;;  %v2404_v20 = vld [vmem:[%s2925_s1 + $0x468] sm:$0xff]  }
  0x4e   :  { %2178 = vmatprep.subr.bf16.mxu1 %v2344_v23  ;;  %v2406_v23 = vld [vmem:[%s2925_s1 + $0x470] sm:$0xff]  }
  0x4f   :  { %2157 = vmatpush3.bf16.msra.mxu0 %v2343_v22  ;;  %v2405_v22 = vld [vmem:[%s2925_s1 + $0x428] sm:$0xff]  }
  0x50   :  { %2158 = vmatprep.subr.bf16.mxu0 %v2346_v25  ;;  %v2408_v25 = vld [vmem:[%s2925_s1 + $0x478] sm:$0xff]  }
  0x51   :  { %2179 = vmatpush3.bf16.msra.mxu1 %v2345_v24  ;;  %v2407_v24 = vld [vmem:[%s2925_s1 + $0x430] sm:$0xff]  }
  0x52   :  { %2180 = vmatprep.subr.bf16.mxu1 %v2348_v27  ;;  %v2044_v27 = vcombine.low %v2011_v19, %v2011_v19 }
  0x53   :  { %2159 = vmatpush3.bf16.msra.mxu0 %v2347_v26  ;;  %v2409_v26 = vld [vmem:[%s2925_s1 + $0x438] sm:$0xff]  }
  0x54   :  { %2160 = vmatprep.subr.bf16.mxu0 %v2350_v29  ;;  %v2907_v29 = vld [vmem:[%s2927_s2] ss:$0 sm:$0xff] }
  0x55   :  { %2181 = vmatpush3.bf16.msra.mxu1 %v2349_v28 }
  0x56   :  { %2182 = vmatprep.subr.bf16.mxu1 %v2352_v31 }
  0x57   :  { %2161 = vmatpush3.bf16.msra.mxu0 %v2351_v30 }
  0x58   :  { %2162 = vmatprep.subr.bf16.mxu0 %v2354_v35 }
  0x59   :  { %2183 = vmatpush3.bf16.msra.mxu1 %v2353_v34 }
  0x5a   :  { %2184 = vmatprep.subr.bf16.mxu1 %v2356_v37 }
  0x5b   :  { %2163 = vmatpush3.bf16.msra.mxu0 %v2355_v36 }
  0x5c   :  { %2164 = vmatprep.subr.bf16.mxu0 %v2358_v40 }
  0x5d   :  { %2185 = vmatpush3.bf16.msra.mxu1 %v2357_v39 }
  0x5e   :  { %2186 = vmatprep.subr.bf16.mxu1 %v2360_v42 }
  0x5f   :  { %2165 = vmatpush3.bf16.msra.mxu0 %v2359_v41 }
  0x60   :  { %2194 = vmatprep.subr.bf16.mxu0 %v2362_v44 }
  0x61   :  { %2187 = vmatpush3.bf16.msra.mxu1 %v2361_v43 }
  0x62   :  { %908 = vmatmul.mubr.bf16.vlgmr.msra.gmra.mrb[8].mxu0 %v2528_v32  ;;  %2216 = vmatprep.subr.bf16.mxu1 %v2364_v46 }
  0x63   :  { %2195 = vmatpush3.bf16.msra.mxu0 %v2363_v45  ;;  %1265 = vmatprep.mubr.bf16.mxu0 %v2530_v33  ;;  %v2371_v33 = vld [vmem:[%s2925_s1 + $0x290] sm:$0xff]  }
  0x64   :  { %1123 = vmatmul.mubr.bf16.vlgmr.msra.gmra.mrb[8].mxu1 %v2546_v38  ;;  %2196 = vmatprep.subr.bf16.mxu0 %v2366_v48  ;;  %v2370_v38 = vld [vmem:[%s2925_s1 + $0x2d0] sm:$0xff]  }
  0x65   :  { %2217 = vmatpush3.bf16.msra.mxu1 %v2365_v47  ;;  %1442 = vmatprep.mubr.bf16.mxu1 %v2655_v10  ;;  %v2393_v10 = vld [vmem:[%s2925_s1 + $0x3b8] sm:$0xff]  }
  0x66   :  { %2218 = vmatprep.subr.bf16.mxu1 %v2368_v50 }
  0x67   :  { %2197 = vmatpush3.bf16.msra.mxu0 %v2367_v49 }
  0x68   :  { %2198 = vmatprep.subr.bf16.mxu0 %v2370_v38 }
  0x69   :  { %2219 = vmatpush3.bf16.msra.mxu1 %v2369_v51 }
  0x6a   :  { %2220 = vmatprep.subr.bf16.mxu1 %v2372_v52 }
  0x6b   :  { %2199 = vmatpush3.bf16.msra.mxu0 %v2371_v33 }
  0x6c   :  { %2200 = vmatprep.subr.bf16.mxu0 %v2374_v54 }
  0x6d   :  { %2221 = vmatpush3.bf16.msra.mxu1 %v2373_v53 }
  0x6e   :  { %2222 = vmatprep.subr.bf16.mxu1 %v2376_v56 }
  0x6f   :  { %2201 = vmatpush3.bf16.msra.mxu0 %v2375_v55 }
  0x70   :  { %2202 = vmatprep.subr.bf16.mxu0 %v2378_v58 }
  0x71   :  { %2223 = vmatpush3.bf16.msra.mxu1 %v2377_v57 }
  0x72   :  { %2224 = vmatprep.subr.bf16.mxu1 %v2380_v60 }
  0x73   :  { %2203 = vmatpush3.bf16.msra.mxu0 %v2379_v59 }
  0x74   :  { %2204 = vmatprep.subr.bf16.mxu0 %v2382_v62 }
  0x75   :  { %2225 = vmatpush3.bf16.msra.mxu1 %v2381_v61 }
  0x76   :  { %2226 = vmatprep.subr.bf16.mxu1 %v2384_v0 }
  0x77   :  { %2205 = vmatpush3.bf16.msra.mxu0 %v2383_v63 }
  0x78   :  { %2206 = vmatprep.subr.bf16.mxu0 %v2386_v2 }
  0x79   :  { %2227 = vmatpush3.bf16.msra.mxu1 %v2385_v1 }
  0x7a   :  { %2228 = vmatprep.subr.bf16.mxu1 %v2388_v4 }
  0x7b   :  { %2207 = vmatpush3.bf16.msra.mxu0 %v2387_v3 }
  0x7c   :  { %2208 = vmatprep.subr.bf16.mxu0 %v2390_v6 }
  0x7d   :  { %2229 = vmatpush3.bf16.msra.mxu1 %v2389_v5 }
  0x7e   :  { %2230 = vmatprep.subr.bf16.mxu1 %v2392_v8 }
  0x7f   :  { %2209 = vmatpush3.bf16.msra.mxu0 %v2391_v7 }
  0x80   :  { %2238 = vmatprep.subr.bf16.mxu0 %v2394_v11 }
  0x81   :  { %2231 = vmatpush3.bf16.msra.mxu1 %v2393_v10 }
  0x82   :  { %1266 = vmatmul.mubr.bf16.vlgmr.msra.gmra.mrb[12].mxu0 %v2528_v32  ;;  %v2400_v32 = vld [vmem:[%s2925_s1 + $0x458] sm:$0xff]  }
  0x83   :  { %2239 = vmatpush3.bf16.msra.mxu0 %v2395_v12  ;;  %1621 = vmatprep.mubr.bf16.mxu0 %v2045_v21 }
  0x84   :  { %1443 = vmatmul.mubr.bf16.vlgmr.msra.gmra.mrb[12].mxu1 %v2653_v9  ;;  %2240 = vmatprep.subr.bf16.mxu0 %v2396_v13  ;;  %v2401_v9 = vld [vmem:[%s2925_s1 + $0x418] sm:$0xff]  }
  0x87   :  { %2241 = vmatpush3.bf16.msra.mxu0 %v2397_v14 }
  0x88   :  { %2242 = vmatprep.subr.bf16.mxu0 %v2398_v15 }
  0x8b   :  { %2243 = vmatpush3.bf16.msra.mxu0 %v2399_v16 }
  0x8c   :  { %2244 = vmatprep.subr.bf16.mxu0 %v2400_v32 }
  0x8f   :  { %2245 = vmatpush3.bf16.msra.mxu0 %v2401_v9 }
  0x90   :  { %2246 = vmatprep.subr.bf16.mxu0 %v2402_v17 }
  0x93   :  { %2247 = vmatpush3.bf16.msra.mxu0 %v2403_v18 }
  0x94   :  { %2248 = vmatprep.subr.bf16.mxu0 %v2404_v20 }
  0x97   :  { %2249 = vmatpush3.bf16.msra.mxu0 %v2405_v22 }
  0x98   :  { %2250 = vmatprep.subr.bf16.mxu0 %v2406_v23 }
  0x9b   :  { %2251 = vmatpush3.bf16.msra.mxu0 %v2407_v24 }
  0x9c   :  { %2252 = vmatprep.subr.bf16.mxu0 %v2408_v25 }
  0x9f   :  { %2253 = vmatpush3.bf16.msra.mxu0 %v2409_v26 }
  0xa2   :  { %1622 = vmatmul.mubr.bf16.vlgmr.msra.gmra.mrb[16].mxu0 %v2044_v27 }
  0xf5   :  { %v2078_v28 = vpop.f32.mrb[0].mxu0 }
  0xf6   :  { %v2079_v30 = vpop.f32.mrb[1].mxu0 }
  0xf7   :  { %v2080_v31 = vadd.f32 %v2079_v30, %v2078_v28  ;;  %v2081_v34 = vpop.f32.mrb[2].mxu0  ;;  %v2100_v36 = vpop.f32.mrb[0].mxu1 }
  0xf8   :  { %v2082_v35 = vpop.f32.mrb[3].mxu0  ;;  %v2101_v39 = vpop.f32.mrb[1].mxu1 }
  0xf9   :  { %v193_v37 = vadd.f32 %v2080_v31, %v2907_v29  ;;  %v2102_v40 = vadd.f32 %v2101_v39, %v2100_v36  ;;  %v2103_v41 = vpop.f32.mrb[2].mxu1 }
  0xfa   :  { %v2104_v43 = vpop.f32.mrb[3].mxu1 }
  0xfb   :  { %v198_v42 = vmax.f32 %v193_v37, 0.0 }
  0xfd   :  { %v199_v44 = vpack.c.bf16 %v198_v42, %v198_v42 }
  0xff   :  { %200 = vst [vmem:[%s2928_s3] sm:$0xf] %v199_v44 }
 0x115   :  { %v2122_v45 = vpop.f32.mrb[4].mxu0 }
 0x116   :  { %v2123_v46 = vpop.f32.mrb[5].mxu0 }
 0x117   :  { %v2124_v47 = vadd.f32 %v2123_v46, %v2122_v45  ;;  %v2125_v48 = vpop.f32.mrb[6].mxu0  ;;  %v2144_v50 = vpop.f32.mrb[4].mxu1 }
 0x118   :  { %v2126_v49 = vpop.f32.mrb[7].mxu0  ;;  %v2145_v38 = vpop.f32.mrb[5].mxu1 }
 0x119   :  { %v551_v51 = vadd.f32 %v2124_v47, %v2102_v40  ;;  %v2146_v33 = vadd.f32 %v2145_v38, %v2144_v50  ;;  %v2147_v52 = vpop.f32.mrb[6].mxu1 }
 0x11a   :  { %v2148_v54 = vpop.f32.mrb[7].mxu1 }
 0x11b   :  { %v556_v53 = vadd.f32 %v2907_v29, %v551_v51 }
 0x11d   :  { %v557_v55 = vmax.f32 %v556_v53, 0.0 }
 0x11f   :  { %v558_v56 = vpack.c.bf16 %v557_v55, %v557_v55 }
 0x121   :  { %559 = vst [vmem:[%s2928_s3 + $0x4] sm:$0xf] %v558_v56 }
 0x135   :  { %v2166_v57 = vpop.f32.mrb[8].mxu0 }
 0x136   :  { %v2167_v58 = vpop.f32.mrb[9].mxu0 }
 0x137   :  { %v2168_v59 = vadd.f32 %v2167_v58, %v2166_v57  ;;  %v2169_v60 = vpop.f32.mrb[10].mxu0  ;;  %v2188_v61 = vpop.f32.mrb[8].mxu1 }
 0x138   :  { %v2170_v62 = vpop.f32.mrb[11].mxu0  ;;  %v2189_v63 = vpop.f32.mrb[9].mxu1 }
 0x139   :  { %v910_v0 = vadd.f32 %v2168_v59, %v2146_v33  ;;  %v2190_v1 = vadd.f32 %v2189_v63, %v2188_v61  ;;  %v2191_v2 = vpop.f32.mrb[10].mxu1 }
 0x13a   :  { %v2192_v3 = vpop.f32.mrb[11].mxu1 }
 0x13b   :  { %v915_v4 = vadd.f32 %v2907_v29, %v910_v0 }
 0x13d   :  { %v916_v5 = vmax.f32 %v915_v4, 0.0 }
 0x13f   :  { %v917_v6 = vpack.c.bf16 %v916_v5, %v916_v5 }
 0x141   :  { %918 = vst [vmem:[%s2928_s3 + $0x8] sm:$0xf] %v917_v6 }
 0x155   :  { %v2210_v7 = vpop.f32.mrb[12].mxu0 }
 0x156   :  { %v2211_v8 = vpop.f32.mrb[13].mxu0 }
 0x157   :  { %v2212_v10 = vadd.f32 %v2211_v8, %v2210_v7  ;;  %v2213_v11 = vpop.f32.mrb[14].mxu0  ;;  %v2232_v12 = vpop.f32.mrb[12].mxu1 }
 0x158   :  { %v2214_v13 = vpop.f32.mrb[15].mxu0  ;;  %v2233_v14 = vpop.f32.mrb[13].mxu1 }
 0x159   :  { %v1268_v15 = vadd.f32 %v2212_v10, %v2190_v1  ;;  %v2234_v16 = vadd.f32 %v2233_v14, %v2232_v12  ;;  %v2235_v32 = vpop.f32.mrb[14].mxu1 }
 0x15a   :  { %v2236_v9 = vpop.f32.mrb[15].mxu1 }
 0x15b   :  { %v1450_v17 = vadd.f32 %v2234_v16, %v1268_v15 }
 0x175   :  { %v2254_v18 = vpop.f32.mrb[16].mxu0 }
 0x176   :  { %v2255_v19 = vpop.f32.mrb[17].mxu0 }
 0x177   :  { %v2256_v20 = vadd.f32 %v2255_v19, %v2254_v18  ;;  %v2257_v21 = vpop.f32.mrb[18].mxu0 }
 0x178   :  { %v2258_v22 = vpop.f32.mrb[19].mxu0 }
 0x179   :  { %v1629_v23 = vadd.f32 %v2256_v20, %v1450_v17 }
 0x17b   :  { %v1630_v24 = vadd.f32 %v2907_v29, %v1629_v23 }
 0x17d   :  { %v1631_v25 = vmax.f32 %v1630_v24, 0.0 }
 0x17f   :  { %v1632_v26 = vpack.c.bf16 %v1631_v25, %v1631_v25 }
 0x181   :  { %1633 = vst [vmem:[%s2928_s3 + $0xc] sm:$0xf] %v1632_v26 }

// kernel: autoencoder_forward.11
= control target key start
LH: loop header
LB: loop body
LE: loop exit
PB: predicated region body
PF: predicated region fallthrough
CT: control target
= control target key end

     0   :  { %v6527_v38 = vmov 1966171168   ;;  %v158_v40 = vlaneseq  ;;  %s8438_s1 = inlined_call_operand.vmem [shape: bf16[9,256,512], index: 1, kind: input, shape index: {}]   ;;  %s8439_s0 = inlined_call_operand.vmem [shape: bf16[9,2,256], index: 0, kind: input, shape index: {}]   ;;  %s8440_s2 = inlined_call_operand.vmem [shape: f32[1,512], index: 2, kind: input, shape index: {}]   ;;  %s8441_s3 = inlined_call_operand.vmem [shape: bf16[2,512], index: 3, kind: output, shape index: {}]  }
   0x1   :  { %v5663_v0 = vld [vmem:[%s8438_s1 + $0x204] ss:$16 sps:$4 sm:$0xff]   ;;  %v5665_v1 = vld [vmem:[%s8438_s1 + $0x20c] ss:$16 sps:$4 sm:$0xff]   ;;  %v5667_v2 = vld [vmem:[%s8438_s1 + $0x200] ss:$16 sps:$4 sm:$0xff]   ;;  %v156_v39 = vunpack.c.l.s4 %v6527_v38 }
   0x2   :  { %491 = vmatprep.subr.bf16.mxu0 %v5663_v0  ;;  %v5668_v3 = vld [vmem:[%s8438_s1 + $0x208] ss:$16 sps:$4 sm:$0xff]   ;;  %532 = vmatprep.subr.bf16.mxu1 %v5665_v1  ;;  %v5669_v4 = vld [vmem:[%s8438_s1 + $0x224] ss:$16 sps:$4 sm:$0xff]   ;;  %v5671_v5 = vld [vmem:[%s8438_s1 + $0x22c] ss:$16 sps:$4 sm:$0xff]  }
   0x3   :  { %492 = vmatpush1.bf16.msra.mxu0 %v5667_v2  ;;  %533 = vmatpush1.bf16.msra.mxu1 %v5668_v3  ;;  %v5673_v6 = vld [vmem:[%s8438_s1 + $0x220] ss:$16 sps:$4 sm:$0xff]   ;;  %v5674_v7 = vld [vmem:[%s8438_s1 + $0x228] ss:$16 sps:$4 sm:$0xff]   ;;  %v5675_v8 = vld [vmem:[%s8438_s1 + $0x244] ss:$16 sps:$4 sm:$0xff]   ;;  %v157_v45 = vunpack.c.0.s8 %v156_v39 }
   0x4   :  { %493 = vmatprep.subr.bf16.mxu0 %v5669_v4  ;;  %534 = vmatprep.subr.bf16.mxu1 %v5671_v5  ;;  %v5677_v9 = vld [vmem:[%s8438_s1 + $0x24c] ss:$16 sps:$4 sm:$0xff]   ;;  %v5679_v10 = vld [vmem:[%s8438_s1 + $0x240] ss:$16 sps:$4 sm:$0xff]   ;;  %v5680_v11 = vld [vmem:[%s8438_s1 + $0x248] ss:$16 sps:$4 sm:$0xff]  }
   0x5   :  { %v5681_v12 = vld [vmem:[%s8438_s1 + $0x264] ss:$16 sps:$4 sm:$0xff]   ;;  %v5683_v13 = vld [vmem:[%s8438_s1 + $0x26c] ss:$16 sps:$4 sm:$0xff]   ;;  %v5685_v14 = vld [vmem:[%s8438_s1 + $0x260] ss:$16 sps:$4 sm:$0xff]  }
   0x6   :  { %v5686_v15 = vld [vmem:[%s8438_s1 + $0x268] ss:$16 sps:$4 sm:$0xff]   ;;  %v5687_v16 = vld [vmem:[%s8438_s1 + $0x284] ss:$16 sps:$4 sm:$0xff]   ;;  %v5689_v17 = vld [vmem:[%s8438_s1 + $0x28c] ss:$16 sps:$4 sm:$0xff]  }
   0x7   :  { %494 = vmatpush1.bf16.msra.mxu0 %v5673_v6  ;;  %535 = vmatpush1.bf16.msra.mxu1 %v5674_v7  ;;  %v5691_v18 = vld [vmem:[%s8438_s1 + $0x280] ss:$16 sps:$4 sm:$0xff]   ;;  %v5692_v19 = vld [vmem:[%s8438_s1 + $0x288] ss:$16 sps:$4 sm:$0xff]   ;;  %v5693_v20 = vld [vmem:[%s8438_s1 + $0x2a4] ss:$16 sps:$4 sm:$0xff]  }
   0x8   :  { %495 = vmatprep.subr.bf16.mxu0 %v5675_v8  ;;  %536 = vmatprep.subr.bf16.mxu1 %v5677_v9  ;;  %v5695_v21 = vld [vmem:[%s8438_s1 + $0x2ac] ss:$16 sps:$4 sm:$0xff]   ;;  %v5697_v22 = vld [vmem:[%s8438_s1 + $0x2a0] ss:$16 sps:$4 sm:$0xff]   ;;  %v5698_v23 = vld [vmem:[%s8438_s1 + $0x2a8] ss:$16 sps:$4 sm:$0xff]  }
   0x9   :  { %v5699_v24 = vld [vmem:[%s8438_s1 + $0x2c4] ss:$16 sps:$4 sm:$0xff]   ;;  %v5701_v25 = vld [vmem:[%s8438_s1 + $0x2cc] ss:$16 sps:$4 sm:$0xff]   ;;  %v5703_v26 = vld [vmem:[%s8438_s1 + $0x2c0] ss:$16 sps:$4 sm:$0xff]  }
   0xa   :  { %v5704_v27 = vld [vmem:[%s8438_s1 + $0x2c8] ss:$16 sps:$4 sm:$0xff]   ;;  %v5705_v28 = vld [vmem:[%s8438_s1 + $0x2e4] ss:$16 sps:$4 sm:$0xff]   ;;  %v5707_v29 = vld [vmem:[%s8438_s1 + $0x2ec] ss:$16 sps:$4 sm:$0xff]  }
   0xb   :  { %496 = vmatpush1.bf16.msra.mxu0 %v5679_v10  ;;  %537 = vmatpush1.bf16.msra.mxu1 %v5680_v11  ;;  %v5709_v30 = vld [vmem:[%s8438_s1 + $0x2e0] ss:$16 sps:$4 sm:$0xff]   ;;  %v5710_v31 = vld [vmem:[%s8438_s1 + $0x2e8] ss:$16 sps:$4 sm:$0xff]   ;;  %v5711_v32 = vld [vmem:[%s8438_s1 + $0x304] ss:$16 sps:$4 sm:$0xff]  }
   0xc   :  { %497 = vmatprep.subr.bf16.mxu0 %v5681_v12  ;;  %538 = vmatprep.subr.bf16.mxu1 %v5683_v13  ;;  %v5713_v33 = vld [vmem:[%s8438_s1 + $0x30c] ss:$16 sps:$4 sm:$0xff]   ;;  %v5715_v34 = vld [vmem:[%s8438_s1 + $0x300] ss:$16 sps:$4 sm:$0xff]   ;;  %v5716_v35 = vld [vmem:[%s8438_s1 + $0x308] ss:$16 sps:$4 sm:$0xff]  }
   0xd   :  { %v5717_v36 = vld [vmem:[%s8438_s1 + $0x324] ss:$16 sps:$4 sm:$0xff]   ;;  %v5719_v37 = vld [vmem:[%s8438_s1 + $0x32c] ss:$16 sps:$4 sm:$0xff]   ;;  %v5721_v41 = vld [vmem:[%s8438_s1 + $0x320] ss:$16 sps:$4 sm:$0xff]  }
   0xe   :  { %v5722_v42 = vld [vmem:[%s8438_s1 + $0x328] ss:$16 sps:$4 sm:$0xff]   ;;  %v5723_v43 = vld [vmem:[%s8438_s1 + $0x344] ss:$16 sps:$4 sm:$0xff]   ;;  %v5725_v44 = vld [vmem:[%s8438_s1 + $0x34c] ss:$16 sps:$4 sm:$0xff]  }
   0xf   :  { %498 = vmatpush1.bf16.msra.mxu0 %v5685_v14  ;;  %539 = vmatpush1.bf16.msra.mxu1 %v5686_v15  ;;  %v6674_v46 = vshrl.u32 %v158_v40, 7  ;;  %v5727_v47 = vld [vmem:[%s8438_s1 + $0x340] ss:$16 sps:$4 sm:$0xff]   ;;  %v5728_v48 = vld [vmem:[%s8438_s1 + $0x348] ss:$16 sps:$4 sm:$0xff]  }
  0x10   :  { %499 = vmatprep.subr.bf16.mxu0 %v5687_v16  ;;  %540 = vmatprep.subr.bf16.mxu1 %v5689_v17  ;;  %v5729_v49 = vld [vmem:[%s8438_s1 + $0x364] ss:$16 sps:$4 sm:$0xff]   ;;  %v5731_v50 = vld [vmem:[%s8438_s1 + $0x36c] ss:$16 sps:$4 sm:$0xff]   ;;  %v5733_v53 = vld [vmem:[%s8438_s1 + $0x360] ss:$16 sps:$4 sm:$0xff]  }
  0x11   :  { %v6689_v51 = vsub.s32 %v157_v45, %v6674_v46  ;;  %v4619_v52 = vld.sshfl [vmem:[%s8439_s0 + $0x2] sm:$0x11 pattern:$0x75316420]  ;;  %v5734_v54 = vld [vmem:[%s8438_s1 + $0x368] ss:$16 sps:$4 sm:$0xff]  }
  0x12   :  { %v154_v55 = vcombine.high %v4619_v52, %v4619_v52  ;;  %v5735_v56 = vld [vmem:[%s8438_s1 + $0x384] ss:$16 sps:$4 sm:$0xff]   ;;  %v5737_v57 = vld [vmem:[%s8438_s1 + $0x38c] ss:$16 sps:$4 sm:$0xff]   ;;  %v5739_v59 = vld [vmem:[%s8438_s1 + $0x380] ss:$16 sps:$4 sm:$0xff]  }
  0x13   :  { %500 = vmatpush1.bf16.msra.mxu0 %v5691_v18  ;;  %541 = vmatpush1.bf16.msra.mxu1 %v5692_v19  ;;  %v5740_v60 = vld [vmem:[%s8438_s1 + $0x388] ss:$16 sps:$4 sm:$0xff]   ;;  %v5741_v61 = vld [vmem:[%s8438_s1 + $0x3a4] ss:$16 sps:$4 sm:$0xff]   ;;  %v5743_v62 = vld [vmem:[%s8438_s1 + $0x3ac] ss:$16 sps:$4 sm:$0xff]   ;;  %v161_v11 = vrot.slane %v4619_v52, %v6689_v51 }
  0x14   :  { %501 = vmatprep.subr.bf16.mxu0 %v5693_v20  ;;  %542 = vmatprep.subr.bf16.mxu1 %v5695_v21  ;;  %v168_v58 = vrot.slane %v154_v55, %v6689_v51  ;;  %v5745_v63 = vld [vmem:[%s8438_s1 + $0x3a0] ss:$16 sps:$4 sm:$0xff]   ;;  %v5746_v0 = vld [vmem:[%s8438_s1 + $0x3a8] ss:$16 sps:$4 sm:$0xff]   ;;  %v5747_v1 = vld [vmem:[%s8438_s1 + $0x3c4] ss:$16 sps:$4 sm:$0xff]  }
  0x15   :  { %v5749_v2 = vld [vmem:[%s8438_s1 + $0x3cc] ss:$16 sps:$4 sm:$0xff]   ;;  %v5751_v3 = vld [vmem:[%s8438_s1 + $0x3c0] ss:$16 sps:$4 sm:$0xff]   ;;  %v5752_v4 = vld [vmem:[%s8438_s1 + $0x3c8] ss:$16 sps:$4 sm:$0xff]  }
  0x16   :  { %523 = vmatprep.mubr.bf16.mxu0 %v168_v58  ;;  %564 = vmatprep.mubr.bf16.mxu1 %v168_v58  ;;  %v5753_v5 = vld [vmem:[%s8438_s1 + $0x3e4] ss:$16 sps:$4 sm:$0xff]   ;;  %v5755_v6 = vld [vmem:[%s8438_s1 + $0x3ec] ss:$16 sps:$4 sm:$0xff]   ;;  %v5757_v7 = vld [vmem:[%s8438_s1 + $0x3e0] ss:$16 sps:$4 sm:$0xff]  }
  0x17   :  { %502 = vmatpush1.bf16.msra.mxu0 %v5697_v22  ;;  %543 = vmatpush1.bf16.msra.mxu1 %v5698_v23  ;;  %v5758_v8 = vld [vmem:[%s8438_s1 + $0x3e8] ss:$16 sps:$4 sm:$0xff]   ;;  %v5761_v9 = vld [vmem:[%s8438_s1 + $0x4] ss:$16 sps:$4 sm:$0xff]   ;;  %v5764_v10 = vld [vmem:[%s8438_s1 + $0xc] ss:$16 sps:$4 sm:$0xff]  }
  0x18   :  { %503 = vmatprep.subr.bf16.mxu0 %v5699_v24  ;;  %544 = vmatprep.subr.bf16.mxu1 %v5701_v25  ;;  %v5759_v12 = vld [vmem:[%s8438_s1] ss:$16 sps:$4 sm:$0xff]   ;;  %v5762_v13 = vld [vmem:[%s8438_s1 + $0x8] ss:$16 sps:$4 sm:$0xff]   ;;  %v5767_v14 = vld [vmem:[%s8438_s1 + $0x24] ss:$16 sps:$4 sm:$0xff]  }
  0x19   :  { %v5770_v15 = vld [vmem:[%s8438_s1 + $0x2c] ss:$16 sps:$4 sm:$0xff]   ;;  %v5765_v16 = vld [vmem:[%s8438_s1 + $0x20] ss:$16 sps:$4 sm:$0xff]   ;;  %v5768_v17 = vld [vmem:[%s8438_s1 + $0x28] ss:$16 sps:$4 sm:$0xff]  }
  0x1a   :  { %v5773_v18 = vld [vmem:[%s8438_s1 + $0x44] ss:$16 sps:$4 sm:$0xff]   ;;  %v5776_v19 = vld [vmem:[%s8438_s1 + $0x4c] ss:$16 sps:$4 sm:$0xff]   ;;  %v5771_v20 = vld [vmem:[%s8438_s1 + $0x40] ss:$16 sps:$4 sm:$0xff]  }
  0x1b   :  { %504 = vmatpush1.bf16.msra.mxu0 %v5703_v26  ;;  %545 = vmatpush1.bf16.msra.mxu1 %v5704_v27  ;;  %v5774_v21 = vld [vmem:[%s8438_s1 + $0x48] ss:$16 sps:$4 sm:$0xff]   ;;  %v5779_v22 = vld [vmem:[%s8438_s1 + $0x64] ss:$16 sps:$4 sm:$0xff]   ;;  %v5782_v23 = vld [vmem:[%s8438_s1 + $0x6c] ss:$16 sps:$4 sm:$0xff]  }
  0x1c   :  { %505 = vmatprep.subr.bf16.mxu0 %v5705_v28  ;;  %546 = vmatprep.subr.bf16.mxu1 %v5707_v29  ;;  %v5777_v24 = vld [vmem:[%s8438_s1 + $0x60] ss:$16 sps:$4 sm:$0xff]   ;;  %v5780_v25 = vld [vmem:[%s8438_s1 + $0x68] ss:$16 sps:$4 sm:$0xff]   ;;  %v5785_v26 = vld [vmem:[%s8438_s1 + $0x84] ss:$16 sps:$4 sm:$0xff]  }
  0x1d   :  { %v5788_v27 = vld [vmem:[%s8438_s1 + $0x8c] ss:$16 sps:$4 sm:$0xff]   ;;  %v5783_v28 = vld [vmem:[%s8438_s1 + $0x80] ss:$16 sps:$4 sm:$0xff]   ;;  %v5786_v29 = vld [vmem:[%s8438_s1 + $0x88] ss:$16 sps:$4 sm:$0xff]  }
  0x1e   :  { %v5795_v38 = vld [vmem:[%s8438_s1 + $0xc0] ss:$16 sps:$4 sm:$0xff]   ;;  %v5798_v39 = vld [vmem:[%s8438_s1 + $0xc8] ss:$16 sps:$4 sm:$0xff]   ;;  %v5803_v40 = vld [vmem:[%s8438_s1 + $0xe4] ss:$16 sps:$4 sm:$0xff]  }
  0x1f   :  { %506 = vmatpush1.bf16.msra.mxu0 %v5709_v30  ;;  %547 = vmatpush1.bf16.msra.mxu1 %v5710_v31  ;;  %v5791_v30 = vld [vmem:[%s8438_s1 + $0xa4] ss:$16 sps:$4 sm:$0xff]   ;;  %v5794_v31 = vld [vmem:[%s8438_s1 + $0xac] ss:$16 sps:$4 sm:$0xff]   ;;  %v5822_v58 = vld [vmem:[%s8438_s1 + $0x148] ss:$16 sps:$4 sm:$0xff]  }
  0x20   :  { %507 = vmatprep.subr.bf16.mxu0 %v5711_v32  ;;  %548 = vmatprep.subr.bf16.mxu1 %v5713_v33  ;;  %v5789_v32 = vld [vmem:[%s8438_s1 + $0xa0] ss:$16 sps:$4 sm:$0xff]   ;;  %v5792_v33 = vld [vmem:[%s8438_s1 + $0xa8] ss:$16 sps:$4 sm:$0xff]   ;;  %v5809_v45 = vld [vmem:[%s8438_s1 + $0x104] ss:$16 sps:$4 sm:$0xff]  }
  0x21   :  { %v5818_v52 = vld [vmem:[%s8438_s1 + $0x12c] ss:$16 sps:$4 sm:$0xff]   ;;  %v5821_v55 = vld [vmem:[%s8438_s1 + $0x144] ss:$16 sps:$4 sm:$0xff]  }
  0x23   :  { %508 = vmatpush1.bf16.msra.mxu0 %v5715_v34  ;;  %549 = vmatpush1.bf16.msra.mxu1 %v5716_v35  ;;  %v5797_v34 = vld [vmem:[%s8438_s1 + $0xc4] ss:$16 sps:$4 sm:$0xff]   ;;  %v5800_v35 = vld [vmem:[%s8438_s1 + $0xcc] ss:$16 sps:$4 sm:$0xff]  }
  0x24   :  { %509 = vmatprep.subr.bf16.mxu0 %v5717_v36  ;;  %550 = vmatprep.subr.bf16.mxu1 %v5719_v37  ;;  %v6831_v36 = vld.sshfl [vmem:[%s8439_s0] sm:$0x11 pattern:$0x75316420] }
  0x25   :  { %v581_v37 = vcombine.high %v6831_v36, %v6831_v36 }
  0x27   :  { %510 = vmatpush1.bf16.msra.mxu0 %v5721_v41  ;;  %551 = vmatpush1.bf16.msra.mxu1 %v5722_v42  ;;  %v5806_v41 = vld [vmem:[%s8438_s1 + $0xec] ss:$16 sps:$4 sm:$0xff]   ;;  %v595_v42 = vrot.slane %v581_v37, %v6689_v51  ;;  %v5879_v37 = vld [vmem:[%s8438_s1 + $0x480] ss:$16 sps:$4 sm:$0xff]  }
  0x28   :  { %511 = vmatprep.subr.bf16.mxu0 %v5723_v43  ;;  %552 = vmatprep.subr.bf16.mxu1 %v5725_v44  ;;  %v5801_v43 = vld [vmem:[%s8438_s1 + $0xe0] ss:$16 sps:$4 sm:$0xff]   ;;  %v5804_v44 = vld [vmem:[%s8438_s1 + $0xe8] ss:$16 sps:$4 sm:$0xff]  }
  0x2b   :  { %512 = vmatpush1.bf16.msra.mxu0 %v5727_v47  ;;  %553 = vmatpush1.bf16.msra.mxu1 %v5728_v48  ;;  %v5812_v47 = vld [vmem:[%s8438_s1 + $0x10c] ss:$16 sps:$4 sm:$0xff]   ;;  %v5807_v48 = vld [vmem:[%s8438_s1 + $0x100] ss:$16 sps:$4 sm:$0xff]  }
  0x2c   :  { %513 = vmatprep.subr.bf16.mxu0 %v5729_v49  ;;  %554 = vmatprep.subr.bf16.mxu1 %v5731_v50  ;;  %v5810_v49 = vld [vmem:[%s8438_s1 + $0x108] ss:$16 sps:$4 sm:$0xff]   ;;  %v5815_v50 = vld [vmem:[%s8438_s1 + $0x124] ss:$16 sps:$4 sm:$0xff]  }
  0x2f   :  { %514 = vmatpush1.bf16.msra.mxu0 %v5733_v53  ;;  %555 = vmatpush1.bf16.msra.mxu1 %v5734_v54  ;;  %v5813_v53 = vld [vmem:[%s8438_s1 + $0x120] ss:$16 sps:$4 sm:$0xff]   ;;  %v5816_v54 = vld [vmem:[%s8438_s1 + $0x128] ss:$16 sps:$4 sm:$0xff]  }
  0x30   :  { %515 = vmatprep.subr.bf16.mxu0 %v5735_v56  ;;  %556 = vmatprep.subr.bf16.mxu1 %v5737_v57  ;;  %v5824_v56 = vld [vmem:[%s8438_s1 + $0x14c] ss:$16 sps:$4 sm:$0xff]   ;;  %v5819_v57 = vld [vmem:[%s8438_s1 + $0x140] ss:$16 sps:$4 sm:$0xff]  }
  0x33   :  { %516 = vmatpush1.bf16.msra.mxu0 %v5739_v59  ;;  %557 = vmatpush1.bf16.msra.mxu1 %v5740_v60  ;;  %v5827_v59 = vld [vmem:[%s8438_s1 + $0x164] ss:$16 sps:$4 sm:$0xff]   ;;  %v5830_v60 = vld [vmem:[%s8438_s1 + $0x16c] ss:$16 sps:$4 sm:$0xff]  }
  0x34   :  { %517 = vmatprep.subr.bf16.mxu0 %v5741_v61  ;;  %558 = vmatprep.subr.bf16.mxu1 %v5743_v62  ;;  %v5825_v61 = vld [vmem:[%s8438_s1 + $0x160] ss:$16 sps:$4 sm:$0xff]   ;;  %v5828_v62 = vld [vmem:[%s8438_s1 + $0x168] ss:$16 sps:$4 sm:$0xff]  }
  0x37   :  { %518 = vmatpush1.bf16.msra.mxu0 %v5745_v63  ;;  %559 = vmatpush1.bf16.msra.mxu1 %v5746_v0  ;;  %v5833_v63 = vld [vmem:[%s8438_s1 + $0x184] ss:$16 sps:$4 sm:$0xff]   ;;  %v5836_v0 = vld [vmem:[%s8438_s1 + $0x18c] ss:$16 sps:$4 sm:$0xff]  }
  0x38   :  { %519 = vmatprep.subr.bf16.mxu0 %v5747_v1  ;;  %560 = vmatprep.subr.bf16.mxu1 %v5749_v2  ;;  %v5831_v1 = vld [vmem:[%s8438_s1 + $0x180] ss:$16 sps:$4 sm:$0xff]   ;;  %v5834_v2 = vld [vmem:[%s8438_s1 + $0x188] ss:$16 sps:$4 sm:$0xff]  }
  0x3b   :  { %520 = vmatpush1.bf16.msra.mxu0 %v5751_v3  ;;  %561 = vmatpush1.bf16.msra.mxu1 %v5752_v4  ;;  %v5839_v3 = vld [vmem:[%s8438_s1 + $0x1a4] ss:$16 sps:$4 sm:$0xff]   ;;  %v5842_v4 = vld [vmem:[%s8438_s1 + $0x1ac] ss:$16 sps:$4 sm:$0xff]  }
  0x3c   :  { %521 = vmatprep.subr.bf16.mxu0 %v5753_v5  ;;  %562 = vmatprep.subr.bf16.mxu1 %v5755_v6  ;;  %v5837_v5 = vld [vmem:[%s8438_s1 + $0x1a0] ss:$16 sps:$4 sm:$0xff]   ;;  %v5840_v6 = vld [vmem:[%s8438_s1 + $0x1a8] ss:$16 sps:$4 sm:$0xff]  }
  0x3f   :  { %522 = vmatpush1.bf16.msra.mxu0 %v5757_v7  ;;  %563 = vmatpush1.bf16.msra.mxu1 %v5758_v8  ;;  %v5845_v7 = vld [vmem:[%s8438_s1 + $0x1c4] ss:$16 sps:$4 sm:$0xff]   ;;  %v5848_v8 = vld [vmem:[%s8438_s1 + $0x1cc] ss:$16 sps:$4 sm:$0xff]  }
  0x40   :  { %918 = vmatprep.subr.bf16.mxu0 %v5761_v9  ;;  %959 = vmatprep.subr.bf16.mxu1 %v5764_v10  ;;  %v5843_v9 = vld [vmem:[%s8438_s1 + $0x1c0] ss:$16 sps:$4 sm:$0xff]   ;;  %v5846_v10 = vld [vmem:[%s8438_s1 + $0x1c8] ss:$16 sps:$4 sm:$0xff]  }
  0x42   :  { %524 = vmatmul.mubr.bf16.vlgmr.msra.gmra.mrb[0].mxu0 %v161_v11  ;;  %565 = vmatmul.mubr.bf16.vlgmr.msra.gmra.mrb[0].mxu1 %v161_v11  ;;  %v5851_v11 = vld [vmem:[%s8438_s1 + $0x1e4] ss:$16 sps:$4 sm:$0xff]  }
  0x43   :  { %919 = vmatpush1.bf16.msra.mxu0 %v5759_v12  ;;  %960 = vmatpush1.bf16.msra.mxu1 %v5762_v13  ;;  %v5854_v12 = vld [vmem:[%s8438_s1 + $0x1ec] ss:$16 sps:$4 sm:$0xff]   ;;  %v5849_v13 = vld [vmem:[%s8438_s1 + $0x1e0] ss:$16 sps:$4 sm:$0xff]  }
  0x44   :  { %920 = vmatprep.subr.bf16.mxu0 %v5767_v14  ;;  %961 = vmatprep.subr.bf16.mxu1 %v5770_v15  ;;  %v5852_v14 = vld [vmem:[%s8438_s1 + $0x1e8] ss:$16 sps:$4 sm:$0xff]   ;;  %v5857_v15 = vld [vmem:[%s8438_s1 + $0x404] ss:$16 sps:$4 sm:$0xff]  }
  0x45   :  { %950 = vmatprep.mubr.bf16.mxu0 %v595_v42  ;;  %991 = vmatprep.mubr.bf16.mxu1 %v595_v42  ;;  %v5888_v42 = vld [vmem:[%s8438_s1 + $0x4a8] ss:$16 sps:$4 sm:$0xff]  }
  0x47   :  { %921 = vmatpush1.bf16.msra.mxu0 %v5765_v16  ;;  %962 = vmatpush1.bf16.msra.mxu1 %v5768_v17  ;;  %v5860_v16 = vld [vmem:[%s8438_s1 + $0x40c] ss:$16 sps:$4 sm:$0xff]   ;;  %v5855_v17 = vld [vmem:[%s8438_s1 + $0x400] ss:$16 sps:$4 sm:$0xff]  }
  0x48   :  { %922 = vmatprep.subr.bf16.mxu0 %v5773_v18  ;;  %963 = vmatprep.subr.bf16.mxu1 %v5776_v19  ;;  %v588_v18 = vrot.slane %v6831_v36, %v6689_v51  ;;  %v5858_v19 = vld [vmem:[%s8438_s1 + $0x408] ss:$16 sps:$4 sm:$0xff]   ;;  %v5884_v36 = vld [vmem:[%s8438_s1 + $0x48c] ss:$16 sps:$4 sm:$0xff]  }
  0x4b   :  { %923 = vmatpush1.bf16.msra.mxu0 %v5771_v20  ;;  %964 = vmatpush1.bf16.msra.mxu1 %v5774_v21  ;;  %v5863_v20 = vld [vmem:[%s8438_s1 + $0x424] ss:$16 sps:$4 sm:$0xff]   ;;  %v5866_v21 = vld [vmem:[%s8438_s1 + $0x42c] ss:$16 sps:$4 sm:$0xff]  }
  0x4c   :  { %924 = vmatprep.subr.bf16.mxu0 %v5779_v22  ;;  %965 = vmatprep.subr.bf16.mxu1 %v5782_v23  ;;  %v6973_v22 = vld.sshfl [vmem:[%s8439_s0 + $0x4] sm:$0x11 pattern:$0x75316420] }
  0x4d   :  { %v1075_v23 = vcombine.high %v6973_v22, %v6973_v22 }
  0x4f   :  { %925 = vmatpush1.bf16.msra.mxu0 %v5777_v24  ;;  %966 = vmatpush1.bf16.msra.mxu1 %v5780_v25  ;;  %v5861_v24 = vld [vmem:[%s8438_s1 + $0x420] ss:$16 sps:$4 sm:$0xff]   ;;  %v5864_v25 = vld [vmem:[%s8438_s1 + $0x428] ss:$16 sps:$4 sm:$0xff]  }
  0x50   :  { %926 = vmatprep.subr.bf16.mxu0 %v5785_v26  ;;  %967 = vmatprep.subr.bf16.mxu1 %v5788_v27  ;;  %v5869_v26 = vld [vmem:[%s8438_s1 + $0x444] ss:$16 sps:$4 sm:$0xff]   ;;  %v1089_v27 = vrot.slane %v1075_v23, %v6689_v51 }
  0x51   :  { %v5953_v23 = vld [vmem:[%s8438_s1 + $0x604] ss:$16 sps:$4 sm:$0xff]  }
  0x53   :  { %927 = vmatpush1.bf16.msra.mxu0 %v5783_v28  ;;  %968 = vmatpush1.bf16.msra.mxu1 %v5786_v29  ;;  %v5872_v28 = vld [vmem:[%s8438_s1 + $0x44c] ss:$16 sps:$4 sm:$0xff]   ;;  %v5867_v29 = vld [vmem:[%s8438_s1 + $0x440] ss:$16 sps:$4 sm:$0xff]  }
  0x54   :  { %928 = vmatprep.subr.bf16.mxu0 %v5791_v30  ;;  %969 = vmatprep.subr.bf16.mxu1 %v5794_v31  ;;  %v5870_v30 = vld [vmem:[%s8438_s1 + $0x448] ss:$16 sps:$4 sm:$0xff]   ;;  %v5875_v31 = vld [vmem:[%s8438_s1 + $0x464] ss:$16 sps:$4 sm:$0xff]  }
  0x57   :  { %929 = vmatpush1.bf16.msra.mxu0 %v5789_v32  ;;  %970 = vmatpush1.bf16.msra.mxu1 %v5792_v33  ;;  %v5878_v32 = vld [vmem:[%s8438_s1 + $0x46c] ss:$16 sps:$4 sm:$0xff]   ;;  %v5873_v33 = vld [vmem:[%s8438_s1 + $0x460] ss:$16 sps:$4 sm:$0xff]  }
  0x58   :  { %930 = vmatprep.subr.bf16.mxu0 %v5797_v34  ;;  %971 = vmatprep.subr.bf16.mxu1 %v5800_v35  ;;  %v5876_v34 = vld [vmem:[%s8438_s1 + $0x468] ss:$16 sps:$4 sm:$0xff]   ;;  %v5881_v35 = vld [vmem:[%s8438_s1 + $0x484] ss:$16 sps:$4 sm:$0xff]  }
  0x5b   :  { %931 = vmatpush1.bf16.msra.mxu0 %v5795_v38  ;;  %972 = vmatpush1.bf16.msra.mxu1 %v5798_v39  ;;  %v5882_v38 = vld [vmem:[%s8438_s1 + $0x488] ss:$16 sps:$4 sm:$0xff]   ;;  %v5887_v39 = vld [vmem:[%s8438_s1 + $0x4a4] ss:$16 sps:$4 sm:$0xff]  }
  0x5c   :  { %932 = vmatprep.subr.bf16.mxu0 %v5803_v40  ;;  %973 = vmatprep.subr.bf16.mxu1 %v5806_v41  ;;  %v5890_v40 = vld [vmem:[%s8438_s1 + $0x4ac] ss:$16 sps:$4 sm:$0xff]   ;;  %v5885_v41 = vld [vmem:[%s8438_s1 + $0x4a0] ss:$16 sps:$4 sm:$0xff]  }
  0x5f   :  { %933 = vmatpush1.bf16.msra.mxu0 %v5801_v43  ;;  %974 = vmatpush1.bf16.msra.mxu1 %v5804_v44  ;;  %v5893_v43 = vld [vmem:[%s8438_s1 + $0x4c4] ss:$16 sps:$4 sm:$0xff]   ;;  %v5896_v44 = vld [vmem:[%s8438_s1 + $0x4cc] ss:$16 sps:$4 sm:$0xff]  }
  0x60   :  { %934 = vmatprep.subr.bf16.mxu0 %v5809_v45  ;;  %975 = vmatprep.subr.bf16.mxu1 %v5812_v47  ;;  %v5891_v45 = vld [vmem:[%s8438_s1 + $0x4c0] ss:$16 sps:$4 sm:$0xff]   ;;  %v5894_v47 = vld [vmem:[%s8438_s1 + $0x4c8] ss:$16 sps:$4 sm:$0xff]  }
  0x63   :  { %935 = vmatpush1.bf16.msra.mxu0 %v5807_v48  ;;  %976 = vmatpush1.bf16.msra.mxu1 %v5810_v49  ;;  %v5899_v48 = vld [vmem:[%s8438_s1 + $0x4e4] ss:$16 sps:$4 sm:$0xff]   ;;  %v5902_v49 = vld [vmem:[%s8438_s1 + $0x4ec] ss:$16 sps:$4 sm:$0xff]  }
  0x64   :  { %936 = vmatprep.subr.bf16.mxu0 %v5815_v50  ;;  %977 = vmatprep.subr.bf16.mxu1 %v5818_v52  ;;  %v5897_v50 = vld [vmem:[%s8438_s1 + $0x4e0] ss:$16 sps:$4 sm:$0xff]   ;;  %v5900_v52 = vld [vmem:[%s8438_s1 + $0x4e8] ss:$16 sps:$4 sm:$0xff]  }
  0x67   :  { %937 = vmatpush1.bf16.msra.mxu0 %v5813_v53  ;;  %978 = vmatpush1.bf16.msra.mxu1 %v5816_v54  ;;  %v5905_v53 = vld [vmem:[%s8438_s1 + $0x504] ss:$16 sps:$4 sm:$0xff]   ;;  %v5908_v54 = vld [vmem:[%s8438_s1 + $0x50c] ss:$16 sps:$4 sm:$0xff]  }
  0x68   :  { %938 = vmatprep.subr.bf16.mxu0 %v5821_v55  ;;  %979 = vmatprep.subr.bf16.mxu1 %v5824_v56  ;;  %v5903_v55 = vld [vmem:[%s8438_s1 + $0x500] ss:$16 sps:$4 sm:$0xff]   ;;  %v5906_v56 = vld [vmem:[%s8438_s1 + $0x508] ss:$16 sps:$4 sm:$0xff]  }
  0x6b   :  { %939 = vmatpush1.bf16.msra.mxu0 %v5819_v57  ;;  %980 = vmatpush1.bf16.msra.mxu1 %v5822_v58  ;;  %v5911_v57 = vld [vmem:[%s8438_s1 + $0x524] ss:$16 sps:$4 sm:$0xff]   ;;  %v5914_v58 = vld [vmem:[%s8438_s1 + $0x52c] ss:$16 sps:$4 sm:$0xff]  }
  0x6c   :  { %940 = vmatprep.subr.bf16.mxu0 %v5827_v59  ;;  %981 = vmatprep.subr.bf16.mxu1 %v5830_v60  ;;  %v5909_v59 = vld [vmem:[%s8438_s1 + $0x520] ss:$16 sps:$4 sm:$0xff]   ;;  %v5912_v60 = vld [vmem:[%s8438_s1 + $0x528] ss:$16 sps:$4 sm:$0xff]  }
  0x6f   :  { %941 = vmatpush1.bf16.msra.mxu0 %v5825_v61  ;;  %982 = vmatpush1.bf16.msra.mxu1 %v5828_v62  ;;  %v5917_v61 = vld [vmem:[%s8438_s1 + $0x544] ss:$16 sps:$4 sm:$0xff]   ;;  %v5920_v62 = vld [vmem:[%s8438_s1 + $0x54c] ss:$16 sps:$4 sm:$0xff]  }
  0x70   :  { %942 = vmatprep.subr.bf16.mxu0 %v5833_v63  ;;  %983 = vmatprep.subr.bf16.mxu1 %v5836_v0  ;;  %v5915_v63 = vld [vmem:[%s8438_s1 + $0x540] ss:$16 sps:$4 sm:$0xff]   ;;  %v5918_v0 = vld [vmem:[%s8438_s1 + $0x548] ss:$16 sps:$4 sm:$0xff]  }
  0x73   :  { %943 = vmatpush1.bf16.msra.mxu0 %v5831_v1  ;;  %984 = vmatpush1.bf16.msra.mxu1 %v5834_v2  ;;  %v5923_v1 = vld [vmem:[%s8438_s1 + $0x564] ss:$16 sps:$4 sm:$0xff]   ;;  %v5926_v2 = vld [vmem:[%s8438_s1 + $0x56c] ss:$16 sps:$4 sm:$0xff]  }
  0x74   :  { %944 = vmatprep.subr.bf16.mxu0 %v5839_v3  ;;  %985 = vmatprep.subr.bf16.mxu1 %v5842_v4  ;;  %v5921_v3 = vld [vmem:[%s8438_s1 + $0x560] ss:$16 sps:$4 sm:$0xff]   ;;  %v5924_v4 = vld [vmem:[%s8438_s1 + $0x568] ss:$16 sps:$4 sm:$0xff]  }
  0x77   :  { %945 = vmatpush1.bf16.msra.mxu0 %v5837_v5  ;;  %986 = vmatpush1.bf16.msra.mxu1 %v5840_v6  ;;  %v5929_v5 = vld [vmem:[%s8438_s1 + $0x584] ss:$16 sps:$4 sm:$0xff]   ;;  %v5932_v6 = vld [vmem:[%s8438_s1 + $0x58c] ss:$16 sps:$4 sm:$0xff]  }
  0x78   :  { %946 = vmatprep.subr.bf16.mxu0 %v5845_v7  ;;  %987 = vmatprep.subr.bf16.mxu1 %v5848_v8  ;;  %v5927_v7 = vld [vmem:[%s8438_s1 + $0x580] ss:$16 sps:$4 sm:$0xff]   ;;  %v5930_v8 = vld [vmem:[%s8438_s1 + $0x588] ss:$16 sps:$4 sm:$0xff]  }
  0x7b   :  { %947 = vmatpush1.bf16.msra.mxu0 %v5843_v9  ;;  %988 = vmatpush1.bf16.msra.mxu1 %v5846_v10  ;;  %v5935_v9 = vld [vmem:[%s8438_s1 + $0x5a4] ss:$16 sps:$4 sm:$0xff]   ;;  %v5938_v10 = vld [vmem:[%s8438_s1 + $0x5ac] ss:$16 sps:$4 sm:$0xff]  }
  0x7c   :  { %948 = vmatprep.subr.bf16.mxu0 %v5851_v11  ;;  %989 = vmatprep.subr.bf16.mxu1 %v5854_v12  ;;  %v5933_v11 = vld [vmem:[%s8438_s1 + $0x5a0] ss:$16 sps:$4 sm:$0xff]   ;;  %v5936_v12 = vld [vmem:[%s8438_s1 + $0x5a8] ss:$16 sps:$4 sm:$0xff]  }
  0x7f   :  { %949 = vmatpush1.bf16.msra.mxu0 %v5849_v13  ;;  %990 = vmatpush1.bf16.msra.mxu1 %v5852_v14  ;;  %v5941_v13 = vld [vmem:[%s8438_s1 + $0x5c4] ss:$16 sps:$4 sm:$0xff]   ;;  %v5944_v14 = vld [vmem:[%s8438_s1 + $0x5cc] ss:$16 sps:$4 sm:$0xff]  }
  0x80   :  { %1412 = vmatprep.subr.bf16.mxu0 %v5857_v15  ;;  %1453 = vmatprep.subr.bf16.mxu1 %v5860_v16  ;;  %v5939_v15 = vld [vmem:[%s8438_s1 + $0x5c0] ss:$16 sps:$4 sm:$0xff]   ;;  %v5942_v16 = vld [vmem:[%s8438_s1 + $0x5c8] ss:$16 sps:$4 sm:$0xff]  }
  0x82   :  { %951 = vmatmul.mubr.bf16.vlgmr.msra.gmra.mrb[4].mxu0 %v588_v18  ;;  %992 = vmatmul.mubr.bf16.vlgmr.msra.gmra.mrb[4].mxu1 %v588_v18  ;;  %v5950_v18 = vld [vmem:[%s8438_s1 + $0x5ec] ss:$16 sps:$4 sm:$0xff]  }
  0x83   :  { %1413 = vmatpush1.bf16.msra.mxu0 %v5855_v17  ;;  %1454 = vmatpush1.bf16.msra.mxu1 %v5858_v19  ;;  %v5947_v17 = vld [vmem:[%s8438_s1 + $0x5e4] ss:$16 sps:$4 sm:$0xff]   ;;  %v5945_v19 = vld [vmem:[%s8438_s1 + $0x5e0] ss:$16 sps:$4 sm:$0xff]  }
  0x84   :  { %1414 = vmatprep.subr.bf16.mxu0 %v5863_v20  ;;  %1455 = vmatprep.subr.bf16.mxu1 %v5866_v21  ;;  %v5948_v20 = vld [vmem:[%s8438_s1 + $0x5e8] ss:$16 sps:$4 sm:$0xff]   ;;  %v7155_v21 = vld.sshfl [vmem:[%s8439_s0 + $0x6] sm:$0x11 pattern:$0x75316420] }
  0x85   :  { %1444 = vmatprep.mubr.bf16.mxu0 %v1089_v27  ;;  %1485 = vmatprep.mubr.bf16.mxu1 %v1089_v27  ;;  %v5951_v27 = vld [vmem:[%s8438_s1 + $0x600] ss:$16 sps:$4 sm:$0xff]  }
  0x87   :  { %1415 = vmatpush1.bf16.msra.mxu0 %v5861_v24  ;;  %1456 = vmatpush1.bf16.msra.mxu1 %v5864_v25  ;;  %v5956_v24 = vld [vmem:[%s8438_s1 + $0x60c] ss:$16 sps:$4 sm:$0xff]   ;;  %v1573_v25 = vcombine.high %v7155_v21, %v7155_v21 }
  0x88   :  { %1416 = vmatprep.subr.bf16.mxu0 %v5869_v26  ;;  %1457 = vmatprep.subr.bf16.mxu1 %v5872_v28  ;;  %v1082_v26 = vrot.slane %v6973_v22, %v6689_v51  ;;  %v5954_v28 = vld [vmem:[%s8438_s1 + $0x608] ss:$16 sps:$4 sm:$0xff]   ;;  %v5962_v22 = vld [vmem:[%s8438_s1 + $0x62c] ss:$16 sps:$4 sm:$0xff]  }
  0x8b   :  { %1417 = vmatpush1.bf16.msra.mxu0 %v5867_v29  ;;  %1458 = vmatpush1.bf16.msra.mxu1 %v5870_v30  ;;  %v5959_v29 = vld [vmem:[%s8438_s1 + $0x624] ss:$16 sps:$4 sm:$0xff]   ;;  %v1587_v30 = vrot.slane %v1573_v25, %v6689_v51 }
  0x8c   :  { %1418 = vmatprep.subr.bf16.mxu0 %v5875_v31  ;;  %1459 = vmatprep.subr.bf16.mxu1 %v5878_v32  ;;  %v5957_v31 = vld [vmem:[%s8438_s1 + $0x620] ss:$16 sps:$4 sm:$0xff]   ;;  %v5960_v32 = vld [vmem:[%s8438_s1 + $0x628] ss:$16 sps:$4 sm:$0xff]   ;;  %v6043_v25 = vld [vmem:[%s8438_s1 + $0x7e4] ss:$16 sps:$4 sm:$0xff]  }
  0x8f   :  { %1419 = vmatpush1.bf16.msra.mxu0 %v5873_v33  ;;  %1460 = vmatpush1.bf16.msra.mxu1 %v5876_v34  ;;  %v5965_v33 = vld [vmem:[%s8438_s1 + $0x644] ss:$16 sps:$4 sm:$0xff]   ;;  %v5968_v34 = vld [vmem:[%s8438_s1 + $0x64c] ss:$16 sps:$4 sm:$0xff]  }
  0x90   :  { %1420 = vmatprep.subr.bf16.mxu0 %v5881_v35  ;;  %1461 = vmatprep.subr.bf16.mxu1 %v5884_v36  ;;  %v5963_v35 = vld [vmem:[%s8438_s1 + $0x640] ss:$16 sps:$4 sm:$0xff]   ;;  %v5966_v36 = vld [vmem:[%s8438_s1 + $0x648] ss:$16 sps:$4 sm:$0xff]  }
  0x93   :  { %1421 = vmatpush1.bf16.msra.mxu0 %v5879_v37  ;;  %1462 = vmatpush1.bf16.msra.mxu1 %v5882_v38  ;;  %v5971_v37 = vld [vmem:[%s8438_s1 + $0x664] ss:$16 sps:$4 sm:$0xff]   ;;  %v5974_v38 = vld [vmem:[%s8438_s1 + $0x66c] ss:$16 sps:$4 sm:$0xff]  }
  0x94   :  { %1422 = vmatprep.subr.bf16.mxu0 %v5887_v39  ;;  %1463 = vmatprep.subr.bf16.mxu1 %v5890_v40  ;;  %v5969_v39 = vld [vmem:[%s8438_s1 + $0x660] ss:$16 sps:$4 sm:$0xff]   ;;  %v5972_v40 = vld [vmem:[%s8438_s1 + $0x668] ss:$16 sps:$4 sm:$0xff]  }
  0x97   :  { %1423 = vmatpush1.bf16.msra.mxu0 %v5885_v41  ;;  %1464 = vmatpush1.bf16.msra.mxu1 %v5888_v42  ;;  %v5977_v41 = vld [vmem:[%s8438_s1 + $0x684] ss:$16 sps:$4 sm:$0xff]   ;;  %v5980_v42 = vld [vmem:[%s8438_s1 + $0x68c] ss:$16 sps:$4 sm:$0xff]  }
  0x98   :  { %1424 = vmatprep.subr.bf16.mxu0 %v5893_v43  ;;  %1465 = vmatprep.subr.bf16.mxu1 %v5896_v44  ;;  %v5975_v43 = vld [vmem:[%s8438_s1 + $0x680] ss:$16 sps:$4 sm:$0xff]   ;;  %v5978_v44 = vld [vmem:[%s8438_s1 + $0x688] ss:$16 sps:$4 sm:$0xff]  }
  0x9b   :  { %1425 = vmatpush1.bf16.msra.mxu0 %v5891_v45  ;;  %1466 = vmatpush1.bf16.msra.mxu1 %v5894_v47  ;;  %v5983_v45 = vld [vmem:[%s8438_s1 + $0x6a4] ss:$16 sps:$4 sm:$0xff]   ;;  %v5986_v47 = vld [vmem:[%s8438_s1 + $0x6ac] ss:$16 sps:$4 sm:$0xff]  }
  0x9c   :  { %1426 = vmatprep.subr.bf16.mxu0 %v5899_v48  ;;  %1467 = vmatprep.subr.bf16.mxu1 %v5902_v49  ;;  %v5981_v48 = vld [vmem:[%s8438_s1 + $0x6a0] ss:$16 sps:$4 sm:$0xff]   ;;  %v5984_v49 = vld [vmem:[%s8438_s1 + $0x6a8] ss:$16 sps:$4 sm:$0xff]  }
  0x9f   :  { %1427 = vmatpush1.bf16.msra.mxu0 %v5897_v50  ;;  %1468 = vmatpush1.bf16.msra.mxu1 %v5900_v52  ;;  %v5989_v50 = vld [vmem:[%s8438_s1 + $0x6c4] ss:$16 sps:$4 sm:$0xff]   ;;  %v5992_v52 = vld [vmem:[%s8438_s1 + $0x6cc] ss:$16 sps:$4 sm:$0xff]  }
  0xa0   :  { %1428 = vmatprep.subr.bf16.mxu0 %v5905_v53  ;;  %1469 = vmatprep.subr.bf16.mxu1 %v5908_v54  ;;  %v5987_v53 = vld [vmem:[%s8438_s1 + $0x6c0] ss:$16 sps:$4 sm:$0xff]   ;;  %v5990_v54 = vld [vmem:[%s8438_s1 + $0x6c8] ss:$16 sps:$4 sm:$0xff]  }
  0xa3   :  { %1429 = vmatpush1.bf16.msra.mxu0 %v5903_v55  ;;  %1470 = vmatpush1.bf16.msra.mxu1 %v5906_v56  ;;  %v5995_v55 = vld [vmem:[%s8438_s1 + $0x6e4] ss:$16 sps:$4 sm:$0xff]   ;;  %v5998_v56 = vld [vmem:[%s8438_s1 + $0x6ec] ss:$16 sps:$4 sm:$0xff]  }
  0xa4   :  { %1430 = vmatprep.subr.bf16.mxu0 %v5911_v57  ;;  %1471 = vmatprep.subr.bf16.mxu1 %v5914_v58  ;;  %v5993_v57 = vld [vmem:[%s8438_s1 + $0x6e0] ss:$16 sps:$4 sm:$0xff]   ;;  %v5996_v58 = vld [vmem:[%s8438_s1 + $0x6e8] ss:$16 sps:$4 sm:$0xff]  }
  0xa7   :  { %1431 = vmatpush1.bf16.msra.mxu0 %v5909_v59  ;;  %1472 = vmatpush1.bf16.msra.mxu1 %v5912_v60  ;;  %v6001_v59 = vld [vmem:[%s8438_s1 + $0x704] ss:$16 sps:$4 sm:$0xff]   ;;  %v6004_v60 = vld [vmem:[%s8438_s1 + $0x70c] ss:$16 sps:$4 sm:$0xff]  }
  0xa8   :  { %1432 = vmatprep.subr.bf16.mxu0 %v5917_v61  ;;  %1473 = vmatprep.subr.bf16.mxu1 %v5920_v62  ;;  %v5999_v61 = vld [vmem:[%s8438_s1 + $0x700] ss:$16 sps:$4 sm:$0xff]   ;;  %v6002_v62 = vld [vmem:[%s8438_s1 + $0x708] ss:$16 sps:$4 sm:$0xff]  }
  0xab   :  { %1433 = vmatpush1.bf16.msra.mxu0 %v5915_v63  ;;  %1474 = vmatpush1.bf16.msra.mxu1 %v5918_v0  ;;  %v6007_v63 = vld [vmem:[%s8438_s1 + $0x724] ss:$16 sps:$4 sm:$0xff]   ;;  %v6010_v0 = vld [vmem:[%s8438_s1 + $0x72c] ss:$16 sps:$4 sm:$0xff]  }
  0xac   :  { %1434 = vmatprep.subr.bf16.mxu0 %v5923_v1  ;;  %1475 = vmatprep.subr.bf16.mxu1 %v5926_v2  ;;  %v6005_v1 = vld [vmem:[%s8438_s1 + $0x720] ss:$16 sps:$4 sm:$0xff]   ;;  %v6008_v2 = vld [vmem:[%s8438_s1 + $0x728] ss:$16 sps:$4 sm:$0xff]  }
  0xaf   :  { %1435 = vmatpush1.bf16.msra.mxu0 %v5921_v3  ;;  %1476 = vmatpush1.bf16.msra.mxu1 %v5924_v4  ;;  %v6013_v3 = vld [vmem:[%s8438_s1 + $0x744] ss:$16 sps:$4 sm:$0xff]   ;;  %v6016_v4 = vld [vmem:[%s8438_s1 + $0x74c] ss:$16 sps:$4 sm:$0xff]  }
  0xb0   :  { %1436 = vmatprep.subr.bf16.mxu0 %v5929_v5  ;;  %1477 = vmatprep.subr.bf16.mxu1 %v5932_v6  ;;  %v6011_v5 = vld [vmem:[%s8438_s1 + $0x740] ss:$16 sps:$4 sm:$0xff]   ;;  %v6014_v6 = vld [vmem:[%s8438_s1 + $0x748] ss:$16 sps:$4 sm:$0xff]  }
  0xb3   :  { %1437 = vmatpush1.bf16.msra.mxu0 %v5927_v7  ;;  %1478 = vmatpush1.bf16.msra.mxu1 %v5930_v8  ;;  %v6019_v7 = vld [vmem:[%s8438_s1 + $0x764] ss:$16 sps:$4 sm:$0xff]   ;;  %v6022_v8 = vld [vmem:[%s8438_s1 + $0x76c] ss:$16 sps:$4 sm:$0xff]  }
  0xb4   :  { %1438 = vmatprep.subr.bf16.mxu0 %v5935_v9  ;;  %1479 = vmatprep.subr.bf16.mxu1 %v5938_v10  ;;  %v6017_v9 = vld [vmem:[%s8438_s1 + $0x760] ss:$16 sps:$4 sm:$0xff]   ;;  %v6020_v10 = vld [vmem:[%s8438_s1 + $0x768] ss:$16 sps:$4 sm:$0xff]  }
  0xb7   :  { %1439 = vmatpush1.bf16.msra.mxu0 %v5933_v11  ;;  %1480 = vmatpush1.bf16.msra.mxu1 %v5936_v12  ;;  %v6025_v11 = vld [vmem:[%s8438_s1 + $0x784] ss:$16 sps:$4 sm:$0xff]   ;;  %v6028_v12 = vld [vmem:[%s8438_s1 + $0x78c] ss:$16 sps:$4 sm:$0xff]  }
  0xb8   :  { %1440 = vmatprep.subr.bf16.mxu0 %v5941_v13  ;;  %1481 = vmatprep.subr.bf16.mxu1 %v5944_v14  ;;  %v6023_v13 = vld [vmem:[%s8438_s1 + $0x780] ss:$16 sps:$4 sm:$0xff]   ;;  %v6026_v14 = vld [vmem:[%s8438_s1 + $0x788] ss:$16 sps:$4 sm:$0xff]  }
  0xbb   :  { %1441 = vmatpush1.bf16.msra.mxu0 %v5939_v15  ;;  %1482 = vmatpush1.bf16.msra.mxu1 %v5942_v16  ;;  %v6031_v15 = vld [vmem:[%s8438_s1 + $0x7a4] ss:$16 sps:$4 sm:$0xff]   ;;  %v6034_v16 = vld [vmem:[%s8438_s1 + $0x7ac] ss:$16 sps:$4 sm:$0xff]  }
  0xbc   :  { %1442 = vmatprep.subr.bf16.mxu0 %v5947_v17  ;;  %1483 = vmatprep.subr.bf16.mxu1 %v5950_v18  ;;  %v6029_v17 = vld [vmem:[%s8438_s1 + $0x7a0] ss:$16 sps:$4 sm:$0xff]   ;;  %v6032_v18 = vld [vmem:[%s8438_s1 + $0x7a8] ss:$16 sps:$4 sm:$0xff]  }
  0xbf   :  { %1443 = vmatpush1.bf16.msra.mxu0 %v5945_v19  ;;  %1484 = vmatpush1.bf16.msra.mxu1 %v5948_v20  ;;  %v6037_v19 = vld [vmem:[%s8438_s1 + $0x7c4] ss:$16 sps:$4 sm:$0xff]   ;;  %v6040_v20 = vld [vmem:[%s8438_s1 + $0x7cc] ss:$16 sps:$4 sm:$0xff]  }
  0xc0   :  { %1910 = vmatprep.subr.bf16.mxu0 %v5953_v23  ;;  %1951 = vmatprep.subr.bf16.mxu1 %v5956_v24  ;;  %v6035_v23 = vld [vmem:[%s8438_s1 + $0x7c0] ss:$16 sps:$4 sm:$0xff]   ;;  %v6038_v24 = vld [vmem:[%s8438_s1 + $0x7c8] ss:$16 sps:$4 sm:$0xff]  }
  0xc2   :  { %1445 = vmatmul.mubr.bf16.vlgmr.msra.gmra.mrb[8].mxu0 %v1082_v26  ;;  %1486 = vmatmul.mubr.bf16.vlgmr.msra.gmra.mrb[8].mxu1 %v1082_v26  ;;  %v6046_v26 = vld [vmem:[%s8438_s1 + $0x7ec] ss:$16 sps:$4 sm:$0xff]  }
  0xc3   :  { %1911 = vmatpush1.bf16.msra.mxu0 %v5951_v27  ;;  %1952 = vmatpush1.bf16.msra.mxu1 %v5954_v28  ;;  %v6041_v27 = vld [vmem:[%s8438_s1 + $0x7e0] ss:$16 sps:$4 sm:$0xff]   ;;  %v7354_v28 = vld.sshfl [vmem:[%s8439_s0 + $0x8] sm:$0x11 pattern:$0x75316420] }
  0xc4   :  { %1912 = vmatprep.subr.bf16.mxu0 %v5959_v29  ;;  %1953 = vmatprep.subr.bf16.mxu1 %v5962_v22  ;;  %v6044_v29 = vld [vmem:[%s8438_s1 + $0x7e8] ss:$16 sps:$4 sm:$0xff]   ;;  %v6049_v22 = vld [vmem:[%s8438_s1 + $0x804] ss:$16 sps:$4 sm:$0xff]  }
  0xc5   :  { %1942 = vmatprep.mubr.bf16.mxu0 %v1587_v30  ;;  %1983 = vmatprep.mubr.bf16.mxu1 %v1587_v30  ;;  %v6052_v30 = vld [vmem:[%s8438_s1 + $0x80c] ss:$16 sps:$4 sm:$0xff]  }
  0xc7   :  { %1913 = vmatpush1.bf16.msra.mxu0 %v5957_v31  ;;  %1954 = vmatpush1.bf16.msra.mxu1 %v5960_v32  ;;  %v2071_v31 = vcombine.high %v7354_v28, %v7354_v28  ;;  %v1580_v32 = vrot.slane %v7155_v21, %v6689_v51  ;;  %v6058_v21 = vld [vmem:[%s8438_s1 + $0x82c] ss:$16 sps:$4 sm:$0xff]  }
  0xc8   :  { %1914 = vmatprep.subr.bf16.mxu0 %v5965_v33  ;;  %1955 = vmatprep.subr.bf16.mxu1 %v5968_v34  ;;  %v6047_v33 = vld [vmem:[%s8438_s1 + $0x800] ss:$16 sps:$4 sm:$0xff]   ;;  %v6050_v34 = vld [vmem:[%s8438_s1 + $0x808] ss:$16 sps:$4 sm:$0xff]  }
  0xcb   :  { %1915 = vmatpush1.bf16.msra.mxu0 %v5963_v35  ;;  %1956 = vmatpush1.bf16.msra.mxu1 %v5966_v36  ;;  %v6055_v35 = vld [vmem:[%s8438_s1 + $0x824] ss:$16 sps:$4 sm:$0xff]   ;;  %v2085_v36 = vrot.slane %v2071_v31, %v6689_v51 }
  0xcc   :  { %1916 = vmatprep.subr.bf16.mxu0 %v5971_v37  ;;  %1957 = vmatprep.subr.bf16.mxu1 %v5974_v38  ;;  %v6053_v37 = vld [vmem:[%s8438_s1 + $0x820] ss:$16 sps:$4 sm:$0xff]   ;;  %v6056_v38 = vld [vmem:[%s8438_s1 + $0x828] ss:$16 sps:$4 sm:$0xff]   ;;  %v6127_v31 = vld [vmem:[%s8438_s1 + $0x9a4] ss:$16 sps:$4 sm:$0xff]  }
  0xcf   :  { %1917 = vmatpush1.bf16.msra.mxu0 %v5969_v39  ;;  %1958 = vmatpush1.bf16.msra.mxu1 %v5972_v40  ;;  %v6061_v39 = vld [vmem:[%s8438_s1 + $0x844] ss:$16 sps:$4 sm:$0xff]   ;;  %v6064_v40 = vld [vmem:[%s8438_s1 + $0x84c] ss:$16 sps:$4 sm:$0xff]  }
  0xd0   :  { %1918 = vmatprep.subr.bf16.mxu0 %v5977_v41  ;;  %1959 = vmatprep.subr.bf16.mxu1 %v5980_v42  ;;  %v6059_v41 = vld [vmem:[%s8438_s1 + $0x840] ss:$16 sps:$4 sm:$0xff]   ;;  %v6062_v42 = vld [vmem:[%s8438_s1 + $0x848] ss:$16 sps:$4 sm:$0xff]  }
  0xd3   :  { %1919 = vmatpush1.bf16.msra.mxu0 %v5975_v43  ;;  %1960 = vmatpush1.bf16.msra.mxu1 %v5978_v44  ;;  %v6067_v43 = vld [vmem:[%s8438_s1 + $0x864] ss:$16 sps:$4 sm:$0xff]   ;;  %v6070_v44 = vld [vmem:[%s8438_s1 + $0x86c] ss:$16 sps:$4 sm:$0xff]  }
  0xd4   :  { %1920 = vmatprep.subr.bf16.mxu0 %v5983_v45  ;;  %1961 = vmatprep.subr.bf16.mxu1 %v5986_v47  ;;  %v6065_v45 = vld [vmem:[%s8438_s1 + $0x860] ss:$16 sps:$4 sm:$0xff]   ;;  %v6068_v47 = vld [vmem:[%s8438_s1 + $0x868] ss:$16 sps:$4 sm:$0xff]  }
  0xd7   :  { %1921 = vmatpush1.bf16.msra.mxu0 %v5981_v48  ;;  %1962 = vmatpush1.bf16.msra.mxu1 %v5984_v49  ;;  %v6073_v48 = vld [vmem:[%s8438_s1 + $0x884] ss:$16 sps:$4 sm:$0xff]   ;;  %v6076_v49 = vld [vmem:[%s8438_s1 + $0x88c] ss:$16 sps:$4 sm:$0xff]  }
  0xd8   :  { %1922 = vmatprep.subr.bf16.mxu0 %v5989_v50  ;;  %1963 = vmatprep.subr.bf16.mxu1 %v5992_v52  ;;  %v6071_v50 = vld [vmem:[%s8438_s1 + $0x880] ss:$16 sps:$4 sm:$0xff]   ;;  %v6074_v52 = vld [vmem:[%s8438_s1 + $0x888] ss:$16 sps:$4 sm:$0xff]  }
  0xdb   :  { %1923 = vmatpush1.bf16.msra.mxu0 %v5987_v53  ;;  %1964 = vmatpush1.bf16.msra.mxu1 %v5990_v54  ;;  %v6079_v53 = vld [vmem:[%s8438_s1 + $0x8a4] ss:$16 sps:$4 sm:$0xff]   ;;  %v6082_v54 = vld [vmem:[%s8438_s1 + $0x8ac] ss:$16 sps:$4 sm:$0xff]  }
  0xdc   :  { %1924 = vmatprep.subr.bf16.mxu0 %v5995_v55  ;;  %1965 = vmatprep.subr.bf16.mxu1 %v5998_v56  ;;  %v6077_v55 = vld [vmem:[%s8438_s1 + $0x8a0] ss:$16 sps:$4 sm:$0xff]   ;;  %v6080_v56 = vld [vmem:[%s8438_s1 + $0x8a8] ss:$16 sps:$4 sm:$0xff]  }
  0xdf   :  { %1925 = vmatpush1.bf16.msra.mxu0 %v5993_v57  ;;  %1966 = vmatpush1.bf16.msra.mxu1 %v5996_v58  ;;  %v6085_v57 = vld [vmem:[%s8438_s1 + $0x8c4] ss:$16 sps:$4 sm:$0xff]   ;;  %v6088_v58 = vld [vmem:[%s8438_s1 + $0x8cc] ss:$16 sps:$4 sm:$0xff]  }
  0xe0   :  { %1926 = vmatprep.subr.bf16.mxu0 %v6001_v59  ;;  %1967 = vmatprep.subr.bf16.mxu1 %v6004_v60 }
  0xe3   :  { %1927 = vmatpush1.bf16.msra.mxu0 %v5999_v61  ;;  %1968 = vmatpush1.bf16.msra.mxu1 %v6002_v62  ;;  %v6083_v61 = vld [vmem:[%s8438_s1 + $0x8c0] ss:$16 sps:$4 sm:$0xff]   ;;  %v6086_v62 = vld [vmem:[%s8438_s1 + $0x8c8] ss:$16 sps:$4 sm:$0xff]  }
  0xe4   :  { %1928 = vmatprep.subr.bf16.mxu0 %v6007_v63  ;;  %1969 = vmatprep.subr.bf16.mxu1 %v6010_v0 }
  0xe7   :  { %1929 = vmatpush1.bf16.msra.mxu0 %v6005_v1  ;;  %1970 = vmatpush1.bf16.msra.mxu1 %v6008_v2 }
  0xe8   :  { %1930 = vmatprep.subr.bf16.mxu0 %v6013_v3  ;;  %1971 = vmatprep.subr.bf16.mxu1 %v6016_v4 }
  0xeb   :  { %1931 = vmatpush1.bf16.msra.mxu0 %v6011_v5  ;;  %1972 = vmatpush1.bf16.msra.mxu1 %v6014_v6  ;;  %v6091_v5 = vld [vmem:[%s8438_s1 + $0x8e4] ss:$16 sps:$4 sm:$0xff]   ;;  %v6094_v6 = vld [vmem:[%s8438_s1 + $0x8ec] ss:$16 sps:$4 sm:$0xff]  }
  0xec   :  { %1932 = vmatprep.subr.bf16.mxu0 %v6019_v7  ;;  %1973 = vmatprep.subr.bf16.mxu1 %v6022_v8  ;;  %v6089_v7 = vld [vmem:[%s8438_s1 + $0x8e0] ss:$16 sps:$4 sm:$0xff]   ;;  %v6092_v8 = vld [vmem:[%s8438_s1 + $0x8e8] ss:$16 sps:$4 sm:$0xff]  }
  0xef   :  { %1933 = vmatpush1.bf16.msra.mxu0 %v6017_v9  ;;  %1974 = vmatpush1.bf16.msra.mxu1 %v6020_v10  ;;  %v6097_v9 = vld [vmem:[%s8438_s1 + $0x904] ss:$16 sps:$4 sm:$0xff]   ;;  %v6100_v10 = vld [vmem:[%s8438_s1 + $0x90c] ss:$16 sps:$4 sm:$0xff]  }
  0xf0   :  { %1934 = vmatprep.subr.bf16.mxu0 %v6025_v11  ;;  %1975 = vmatprep.subr.bf16.mxu1 %v6028_v12  ;;  %v6095_v11 = vld [vmem:[%s8438_s1 + $0x900] ss:$16 sps:$4 sm:$0xff]   ;;  %v6098_v12 = vld [vmem:[%s8438_s1 + $0x908] ss:$16 sps:$4 sm:$0xff]  }
  0xf3   :  { %1935 = vmatpush1.bf16.msra.mxu0 %v6023_v13  ;;  %1976 = vmatpush1.bf16.msra.mxu1 %v6026_v14  ;;  %v6103_v13 = vld [vmem:[%s8438_s1 + $0x924] ss:$16 sps:$4 sm:$0xff]   ;;  %v6106_v14 = vld [vmem:[%s8438_s1 + $0x92c] ss:$16 sps:$4 sm:$0xff]  }
  0xf4   :  { %1936 = vmatprep.subr.bf16.mxu0 %v6031_v15  ;;  %1977 = vmatprep.subr.bf16.mxu1 %v6034_v16  ;;  %v6101_v15 = vld [vmem:[%s8438_s1 + $0x920] ss:$16 sps:$4 sm:$0xff]   ;;  %v6104_v16 = vld [vmem:[%s8438_s1 + $0x928] ss:$16 sps:$4 sm:$0xff]  }
  0xf7   :  { %1937 = vmatpush1.bf16.msra.mxu0 %v6029_v17  ;;  %1978 = vmatpush1.bf16.msra.mxu1 %v6032_v18  ;;  %v6109_v17 = vld [vmem:[%s8438_s1 + $0x944] ss:$16 sps:$4 sm:$0xff]   ;;  %v6112_v18 = vld [vmem:[%s8438_s1 + $0x94c] ss:$16 sps:$4 sm:$0xff]  }
  0xf8   :  { %1938 = vmatprep.subr.bf16.mxu0 %v6037_v19  ;;  %1979 = vmatprep.subr.bf16.mxu1 %v6040_v20  ;;  %v6107_v19 = vld [vmem:[%s8438_s1 + $0x940] ss:$16 sps:$4 sm:$0xff]   ;;  %v6110_v20 = vld [vmem:[%s8438_s1 + $0x948] ss:$16 sps:$4 sm:$0xff]  }
  0xfb   :  { %1939 = vmatpush1.bf16.msra.mxu0 %v6035_v23  ;;  %1980 = vmatpush1.bf16.msra.mxu1 %v6038_v24  ;;  %v6115_v23 = vld [vmem:[%s8438_s1 + $0x964] ss:$16 sps:$4 sm:$0xff]   ;;  %v6118_v24 = vld [vmem:[%s8438_s1 + $0x96c] ss:$16 sps:$4 sm:$0xff]  }
  0xfc   :  { %1940 = vmatprep.subr.bf16.mxu0 %v6043_v25  ;;  %1981 = vmatprep.subr.bf16.mxu1 %v6046_v26  ;;  %v6113_v25 = vld [vmem:[%s8438_s1 + $0x960] ss:$16 sps:$4 sm:$0xff]   ;;  %v6116_v26 = vld [vmem:[%s8438_s1 + $0x968] ss:$16 sps:$4 sm:$0xff]  }
  0xff   :  { %1941 = vmatpush1.bf16.msra.mxu0 %v6041_v27  ;;  %1982 = vmatpush1.bf16.msra.mxu1 %v6044_v29  ;;  %v6121_v27 = vld [vmem:[%s8438_s1 + $0x984] ss:$16 sps:$4 sm:$0xff]   ;;  %v6124_v29 = vld [vmem:[%s8438_s1 + $0x98c] ss:$16 sps:$4 sm:$0xff]  }
 0x100   :  { %2408 = vmatprep.subr.bf16.mxu0 %v6049_v22  ;;  %2449 = vmatprep.subr.bf16.mxu1 %v6052_v30  ;;  %v6119_v22 = vld [vmem:[%s8438_s1 + $0x980] ss:$16 sps:$4 sm:$0xff]   ;;  %v6122_v30 = vld [vmem:[%s8438_s1 + $0x988] ss:$16 sps:$4 sm:$0xff]  }
 0x102   :  { %1943 = vmatmul.mubr.bf16.vlgmr.msra.gmra.mrb[12].mxu0 %v1580_v32  ;;  %1984 = vmatmul.mubr.bf16.vlgmr.msra.gmra.mrb[12].mxu1 %v1580_v32  ;;  %v6130_v32 = vld [vmem:[%s8438_s1 + $0x9ac] ss:$16 sps:$4 sm:$0xff]  }
 0x103   :  { %2409 = vmatpush1.bf16.msra.mxu0 %v6047_v33  ;;  %2450 = vmatpush1.bf16.msra.mxu1 %v6050_v34  ;;  %v6125_v33 = vld [vmem:[%s8438_s1 + $0x9a0] ss:$16 sps:$4 sm:$0xff]   ;;  %v6128_v34 = vld [vmem:[%s8438_s1 + $0x9a8] ss:$16 sps:$4 sm:$0xff]  }
 0x104   :  { %2410 = vmatprep.subr.bf16.mxu0 %v6055_v35  ;;  %2451 = vmatprep.subr.bf16.mxu1 %v6058_v21  ;;  %v6133_v35 = vld [vmem:[%s8438_s1 + $0x9c4] ss:$16 sps:$4 sm:$0xff]   ;;  %v6136_v21 = vld [vmem:[%s8438_s1 + $0x9cc] ss:$16 sps:$4 sm:$0xff]  }
 0x105   :  { %2440 = vmatprep.mubr.bf16.mxu0 %v2085_v36  ;;  %2481 = vmatprep.mubr.bf16.mxu1 %v2085_v36  ;;  %v6131_v36 = vld [vmem:[%s8438_s1 + $0x9c0] ss:$16 sps:$4 sm:$0xff]  }
 0x107   :  { %2411 = vmatpush1.bf16.msra.mxu0 %v6053_v37  ;;  %2452 = vmatpush1.bf16.msra.mxu1 %v6056_v38  ;;  %v6134_v37 = vld [vmem:[%s8438_s1 + $0x9c8] ss:$16 sps:$4 sm:$0xff]   ;;  %v6139_v38 = vld [vmem:[%s8438_s1 + $0x9e4] ss:$16 sps:$4 sm:$0xff]  }
 0x108   :  { %2412 = vmatprep.subr.bf16.mxu0 %v6061_v39  ;;  %2453 = vmatprep.subr.bf16.mxu1 %v6064_v40  ;;  %v6142_v39 = vld [vmem:[%s8438_s1 + $0x9ec] ss:$16 sps:$4 sm:$0xff]   ;;  %v7561_v40 = vld.sshfl [vmem:[%s8439_s0 + $0xa] sm:$0x11 pattern:$0x75316420] }
 0x10b   :  { %2413 = vmatpush1.bf16.msra.mxu0 %v6059_v41  ;;  %2454 = vmatpush1.bf16.msra.mxu1 %v6062_v42  ;;  %v6137_v41 = vld [vmem:[%s8438_s1 + $0x9e0] ss:$16 sps:$4 sm:$0xff]   ;;  %v6140_v42 = vld [vmem:[%s8438_s1 + $0x9e8] ss:$16 sps:$4 sm:$0xff]  }
 0x10c   :  { %2414 = vmatprep.subr.bf16.mxu0 %v6067_v43  ;;  %2455 = vmatprep.subr.bf16.mxu1 %v6070_v44  ;;  %v6145_v43 = vld [vmem:[%s8438_s1 + $0xa04] ss:$16 sps:$4 sm:$0xff]   ;;  %v6148_v44 = vld [vmem:[%s8438_s1 + $0xa0c] ss:$16 sps:$4 sm:$0xff]  }
 0x10f   :  { %2415 = vmatpush1.bf16.msra.mxu0 %v6065_v45  ;;  %2456 = vmatpush1.bf16.msra.mxu1 %v6068_v47  ;;  %v6143_v45 = vld [vmem:[%s8438_s1 + $0xa00] ss:$16 sps:$4 sm:$0xff]   ;;  %v6146_v47 = vld [vmem:[%s8438_s1 + $0xa08] ss:$16 sps:$4 sm:$0xff]  }
 0x110   :  { %2416 = vmatprep.subr.bf16.mxu0 %v6073_v48  ;;  %2457 = vmatprep.subr.bf16.mxu1 %v6076_v49  ;;  %v2569_v48 = vcombine.high %v7561_v40, %v7561_v40  ;;  %v2078_v49 = vrot.slane %v7354_v28, %v6689_v51  ;;  %v6149_v28 = vld [vmem:[%s8438_s1 + $0xa20] ss:$16 sps:$4 sm:$0xff]  }
 0x113   :  { %2417 = vmatpush1.bf16.msra.mxu0 %v6071_v50  ;;  %2458 = vmatpush1.bf16.msra.mxu1 %v6074_v52  ;;  %v6151_v50 = vld [vmem:[%s8438_s1 + $0xa24] ss:$16 sps:$4 sm:$0xff]   ;;  %v6154_v52 = vld [vmem:[%s8438_s1 + $0xa2c] ss:$16 sps:$4 sm:$0xff]  }
 0x114   :  { %2418 = vmatprep.subr.bf16.mxu0 %v6079_v53  ;;  %2459 = vmatprep.subr.bf16.mxu1 %v6082_v54  ;;  %v2583_v53 = vrot.slane %v2569_v48, %v6689_v51  ;;  %v6152_v54 = vld [vmem:[%s8438_s1 + $0xa28] ss:$16 sps:$4 sm:$0xff]   ;;  %v6215_v48 = vld [vmem:[%s8438_s1 + $0xb80] ss:$16 sps:$4 sm:$0xff]  }
 0x115   :  { %v7442_v59 = vpop.f32.mrb[0].mxu0  ;;  %v7444_v60 = vpop.f32.mrb[0].mxu1 }
 0x116   :  { %v7452_v63 = vpop.f32.mrb[1].mxu0  ;;  %v7454_v0 = vpop.f32.mrb[1].mxu1 }
 0x117   :  { %v529_v1 = vpop.f32.mrb[2].mxu0  ;;  %v570_v2 = vpop.f32.mrb[2].mxu1  ;;  %2419 = vmatpush1.bf16.msra.mxu0 %v6077_v55  ;;  %2460 = vmatpush1.bf16.msra.mxu1 %v6080_v56  ;;  %v6157_v55 = vld [vmem:[%s8438_s1 + $0xa44] ss:$16 sps:$4 sm:$0xff]   ;;  %v6160_v56 = vld [vmem:[%s8438_s1 + $0xa4c] ss:$16 sps:$4 sm:$0xff]  }
 0x118   :  { %v530_v3 = vpop.f32.mrb[3].mxu0  ;;  %v571_v4 = vpop.f32.mrb[3].mxu1  ;;  %2420 = vmatprep.subr.bf16.mxu0 %v6085_v57  ;;  %2461 = vmatprep.subr.bf16.mxu1 %v6088_v58  ;;  %v6155_v57 = vld [vmem:[%s8438_s1 + $0xa40] ss:$16 sps:$4 sm:$0xff]   ;;  %v6158_v58 = vld [vmem:[%s8438_s1 + $0xa48] ss:$16 sps:$4 sm:$0xff]  }
 0x119   :  { %v6161_v1 = vld [vmem:[%s8438_s1 + $0xa60] ss:$16 sps:$4 sm:$0xff]   ;;  %v6164_v2 = vld [vmem:[%s8438_s1 + $0xa68] ss:$16 sps:$4 sm:$0xff]   ;;  %v6169_v3 = vld [vmem:[%s8438_s1 + $0xa84] ss:$16 sps:$4 sm:$0xff]  }
 0x11a   :  { %v6172_v4 = vld [vmem:[%s8438_s1 + $0xa8c] ss:$16 sps:$4 sm:$0xff]  }
 0x11b   :  { %2421 = vmatpush1.bf16.msra.mxu0 %v6083_v61  ;;  %2462 = vmatpush1.bf16.msra.mxu1 %v6086_v62  ;;  %v6163_v61 = vld [vmem:[%s8438_s1 + $0xa64] ss:$16 sps:$4 sm:$0xff]   ;;  %v6166_v62 = vld [vmem:[%s8438_s1 + $0xa6c] ss:$16 sps:$4 sm:$0xff]  }
 0x11c   :  { %2422 = vmatprep.subr.bf16.mxu0 %v6091_v5  ;;  %2463 = vmatprep.subr.bf16.mxu1 %v6094_v6  ;;  %v6167_v5 = vld [vmem:[%s8438_s1 + $0xa80] ss:$16 sps:$4 sm:$0xff]   ;;  %v6170_v6 = vld [vmem:[%s8438_s1 + $0xa88] ss:$16 sps:$4 sm:$0xff]  }
 0x11f   :  { %2423 = vmatpush1.bf16.msra.mxu0 %v6089_v7  ;;  %2464 = vmatpush1.bf16.msra.mxu1 %v6092_v8  ;;  %v6175_v7 = vld [vmem:[%s8438_s1 + $0xaa4] ss:$16 sps:$4 sm:$0xff]   ;;  %v6178_v8 = vld [vmem:[%s8438_s1 + $0xaac] ss:$16 sps:$4 sm:$0xff]  }
 0x120   :  { %2424 = vmatprep.subr.bf16.mxu0 %v6097_v9  ;;  %2465 = vmatprep.subr.bf16.mxu1 %v6100_v10  ;;  %v6173_v9 = vld [vmem:[%s8438_s1 + $0xaa0] ss:$16 sps:$4 sm:$0xff]   ;;  %v6176_v10 = vld [vmem:[%s8438_s1 + $0xaa8] ss:$16 sps:$4 sm:$0xff]  }
 0x123   :  { %2425 = vmatpush1.bf16.msra.mxu0 %v6095_v11  ;;  %2466 = vmatpush1.bf16.msra.mxu1 %v6098_v12  ;;  %v6181_v11 = vld [vmem:[%s8438_s1 + $0xac4] ss:$16 sps:$4 sm:$0xff]   ;;  %v6184_v12 = vld [vmem:[%s8438_s1 + $0xacc] ss:$16 sps:$4 sm:$0xff]  }
 0x124   :  { %2426 = vmatprep.subr.bf16.mxu0 %v6103_v13  ;;  %2467 = vmatprep.subr.bf16.mxu1 %v6106_v14 }
 0x127   :  { %2427 = vmatpush1.bf16.msra.mxu0 %v6101_v15  ;;  %2468 = vmatpush1.bf16.msra.mxu1 %v6104_v16  ;;  %v6179_v15 = vld [vmem:[%s8438_s1 + $0xac0] ss:$16 sps:$4 sm:$0xff]   ;;  %v6182_v16 = vld [vmem:[%s8438_s1 + $0xac8] ss:$16 sps:$4 sm:$0xff]  }
 0x128   :  { %2428 = vmatprep.subr.bf16.mxu0 %v6109_v17  ;;  %2469 = vmatprep.subr.bf16.mxu1 %v6112_v18 }
 0x12b   :  { %2429 = vmatpush1.bf16.msra.mxu0 %v6107_v19  ;;  %2470 = vmatpush1.bf16.msra.mxu1 %v6110_v20 }
 0x12c   :  { %2430 = vmatprep.subr.bf16.mxu0 %v6115_v23  ;;  %2471 = vmatprep.subr.bf16.mxu1 %v6118_v24 }
 0x12f   :  { %2431 = vmatpush1.bf16.msra.mxu0 %v6113_v25  ;;  %2472 = vmatpush1.bf16.msra.mxu1 %v6116_v26 }
 0x130   :  { %2432 = vmatprep.subr.bf16.mxu0 %v6121_v27  ;;  %2473 = vmatprep.subr.bf16.mxu1 %v6124_v29 }
 0x133   :  { %2433 = vmatpush1.bf16.msra.mxu0 %v6119_v22  ;;  %2474 = vmatpush1.bf16.msra.mxu1 %v6122_v30  ;;  %v6193_v22 = vld [vmem:[%s8438_s1 + $0xb04] ss:$16 sps:$4 sm:$0xff]   ;;  %v6196_v30 = vld [vmem:[%s8438_s1 + $0xb0c] ss:$16 sps:$4 sm:$0xff]  }
 0x134   :  { %2434 = vmatprep.subr.bf16.mxu0 %v6127_v31  ;;  %2475 = vmatprep.subr.bf16.mxu1 %v6130_v32  ;;  %v6191_v31 = vld [vmem:[%s8438_s1 + $0xb00] ss:$16 sps:$4 sm:$0xff]   ;;  %v6194_v32 = vld [vmem:[%s8438_s1 + $0xb08] ss:$16 sps:$4 sm:$0xff]  }
 0x137   :  { %2435 = vmatpush1.bf16.msra.mxu0 %v6125_v33  ;;  %2476 = vmatpush1.bf16.msra.mxu1 %v6128_v34  ;;  %v6199_v33 = vld [vmem:[%s8438_s1 + $0xb24] ss:$16 sps:$4 sm:$0xff]   ;;  %v6202_v34 = vld [vmem:[%s8438_s1 + $0xb2c] ss:$16 sps:$4 sm:$0xff]  }
 0x138   :  { %2436 = vmatprep.subr.bf16.mxu0 %v6133_v35  ;;  %2477 = vmatprep.subr.bf16.mxu1 %v6136_v21  ;;  %v6197_v35 = vld [vmem:[%s8438_s1 + $0xb20] ss:$16 sps:$4 sm:$0xff]   ;;  %v6200_v21 = vld [vmem:[%s8438_s1 + $0xb28] ss:$16 sps:$4 sm:$0xff]  }
 0x13b   :  { %2437 = vmatpush1.bf16.msra.mxu0 %v6131_v36  ;;  %2478 = vmatpush1.bf16.msra.mxu1 %v6134_v37  ;;  %v6205_v36 = vld [vmem:[%s8438_s1 + $0xb44] ss:$16 sps:$4 sm:$0xff]   ;;  %v6208_v37 = vld [vmem:[%s8438_s1 + $0xb4c] ss:$16 sps:$4 sm:$0xff]  }
 0x13c   :  { %2438 = vmatprep.subr.bf16.mxu0 %v6139_v38  ;;  %2479 = vmatprep.subr.bf16.mxu1 %v6142_v39  ;;  %v6203_v38 = vld [vmem:[%s8438_s1 + $0xb40] ss:$16 sps:$4 sm:$0xff]   ;;  %v6206_v39 = vld [vmem:[%s8438_s1 + $0xb48] ss:$16 sps:$4 sm:$0xff]  }
 0x13f   :  { %2439 = vmatpush1.bf16.msra.mxu0 %v6137_v41  ;;  %2480 = vmatpush1.bf16.msra.mxu1 %v6140_v42  ;;  %v6211_v41 = vld [vmem:[%s8438_s1 + $0xb64] ss:$16 sps:$4 sm:$0xff]   ;;  %v6214_v42 = vld [vmem:[%s8438_s1 + $0xb6c] ss:$16 sps:$4 sm:$0xff]  }
 0x140   :  { %2906 = vmatprep.subr.bf16.mxu0 %v6145_v43  ;;  %2947 = vmatprep.subr.bf16.mxu1 %v6148_v44  ;;  %v6209_v43 = vld [vmem:[%s8438_s1 + $0xb60] ss:$16 sps:$4 sm:$0xff]   ;;  %v6212_v44 = vld [vmem:[%s8438_s1 + $0xb68] ss:$16 sps:$4 sm:$0xff]  }
 0x142   :  { %2441 = vmatmul.mubr.bf16.vlgmr.msra.gmra.mrb[16].mxu0 %v2078_v49  ;;  %2482 = vmatmul.mubr.bf16.vlgmr.msra.gmra.mrb[16].mxu1 %v2078_v49  ;;  %v6218_v49 = vld [vmem:[%s8438_s1 + $0xb88] ss:$16 sps:$4 sm:$0xff]  }
 0x143   :  { %2907 = vmatpush1.bf16.msra.mxu0 %v6143_v45  ;;  %2948 = vmatpush1.bf16.msra.mxu1 %v6146_v47  ;;  %v6217_v45 = vld [vmem:[%s8438_s1 + $0xb84] ss:$16 sps:$4 sm:$0xff]   ;;  %v6220_v47 = vld [vmem:[%s8438_s1 + $0xb8c] ss:$16 sps:$4 sm:$0xff]  }
 0x144   :  { %2908 = vmatprep.subr.bf16.mxu0 %v6151_v50  ;;  %2949 = vmatprep.subr.bf16.mxu1 %v6154_v52  ;;  %v6223_v50 = vld [vmem:[%s8438_s1 + $0xba4] ss:$16 sps:$4 sm:$0xff]   ;;  %v6226_v52 = vld [vmem:[%s8438_s1 + $0xbac] ss:$16 sps:$4 sm:$0xff]  }
 0x145   :  { %2938 = vmatprep.mubr.bf16.mxu0 %v2583_v53  ;;  %2979 = vmatprep.mubr.bf16.mxu1 %v2583_v53  ;;  %v6221_v53 = vld [vmem:[%s8438_s1 + $0xba0] ss:$16 sps:$4 sm:$0xff]  }
 0x147   :  { %2909 = vmatpush1.bf16.msra.mxu0 %v6149_v28  ;;  %2950 = vmatpush1.bf16.msra.mxu1 %v6152_v54  ;;  %v6224_v28 = vld [vmem:[%s8438_s1 + $0xba8] ss:$16 sps:$4 sm:$0xff]   ;;  %v6229_v54 = vld [vmem:[%s8438_s1 + $0xbc4] ss:$16 sps:$4 sm:$0xff]  }
 0x148   :  { %2910 = vmatprep.subr.bf16.mxu0 %v6157_v55  ;;  %2951 = vmatprep.subr.bf16.mxu1 %v6160_v56  ;;  %v6232_v55 = vld [vmem:[%s8438_s1 + $0xbcc] ss:$16 sps:$4 sm:$0xff]   ;;  %v6227_v56 = vld [vmem:[%s8438_s1 + $0xbc0] ss:$16 sps:$4 sm:$0xff]  }
 0x14b   :  { %2911 = vmatpush1.bf16.msra.mxu0 %v6155_v57  ;;  %2952 = vmatpush1.bf16.msra.mxu1 %v6158_v58  ;;  %v6230_v57 = vld [vmem:[%s8438_s1 + $0xbc8] ss:$16 sps:$4 sm:$0xff]   ;;  %v6235_v58 = vld [vmem:[%s8438_s1 + $0xbe4] ss:$16 sps:$4 sm:$0xff]  }
 0x14c   :  { %2912 = vmatprep.subr.bf16.mxu0 %v6163_v61  ;;  %2953 = vmatprep.subr.bf16.mxu1 %v6166_v62  ;;  %v6238_v61 = vld [vmem:[%s8438_s1 + $0xbec] ss:$16 sps:$4 sm:$0xff]  }
 0x14d   :  { %v7775_v62 = vld.sshfl [vmem:[%s8439_s0 + $0xc] sm:$0x11 pattern:$0x75316420] }
 0x14f   :  { %2913 = vmatpush1.bf16.msra.mxu0 %v6161_v1  ;;  %2954 = vmatpush1.bf16.msra.mxu1 %v6164_v2  ;;  %v6233_v1 = vld [vmem:[%s8438_s1 + $0xbe0] ss:$16 sps:$4 sm:$0xff]   ;;  %v6236_v2 = vld [vmem:[%s8438_s1 + $0xbe8] ss:$16 sps:$4 sm:$0xff]  }
 0x150   :  { %2914 = vmatprep.subr.bf16.mxu0 %v6169_v3  ;;  %2955 = vmatprep.subr.bf16.mxu1 %v6172_v4  ;;  %v6241_v3 = vld [vmem:[%s8438_s1 + $0xc04] ss:$16 sps:$4 sm:$0xff]   ;;  %v6244_v4 = vld [vmem:[%s8438_s1 + $0xc0c] ss:$16 sps:$4 sm:$0xff]  }
 0x153   :  { %2915 = vmatpush1.bf16.msra.mxu0 %v6167_v5  ;;  %2956 = vmatpush1.bf16.msra.mxu1 %v6170_v6  ;;  %v3067_v5 = vcombine.high %v7775_v62, %v7775_v62  ;;  %v2576_v6 = vrot.slane %v7561_v40, %v6689_v51  ;;  %v6250_v40 = vld [vmem:[%s8438_s1 + $0xc2c] ss:$16 sps:$4 sm:$0xff]  }
 0x154   :  { %2916 = vmatprep.subr.bf16.mxu0 %v6175_v7  ;;  %2957 = vmatprep.subr.bf16.mxu1 %v6178_v8  ;;  %v6239_v7 = vld [vmem:[%s8438_s1 + $0xc00] ss:$16 sps:$4 sm:$0xff]   ;;  %v6242_v8 = vld [vmem:[%s8438_s1 + $0xc08] ss:$16 sps:$4 sm:$0xff]  }
 0x155   :  { %v952_v13 = vpop.f32.mrb[4].mxu0  ;;  %v993_v14 = vpop.f32.mrb[4].mxu1 }
 0x156   :  { %v7659_v17 = vadd.f32 %v952_v13, %v7442_v59  ;;  %v7662_v18 = vadd.f32 %v993_v14, %v7444_v60  ;;  %v954_v19 = vpop.f32.mrb[5].mxu0  ;;  %v995_v20 = vpop.f32.mrb[5].mxu1  ;;  %v6187_v59 = vld [vmem:[%s8438_s1 + $0xae4] ss:$16 sps:$4 sm:$0xff]   ;;  %v6190_v60 = vld [vmem:[%s8438_s1 + $0xaec] ss:$16 sps:$4 sm:$0xff]  }
 0x157   :  { %v7665_v23 = vadd.f32 %v954_v19, %v7452_v63  ;;  %v7668_v24 = vadd.f32 %v995_v20, %v7454_v0  ;;  %v956_v25 = vpop.f32.mrb[6].mxu0  ;;  %v997_v26 = vpop.f32.mrb[6].mxu1  ;;  %2917 = vmatpush1.bf16.msra.mxu0 %v6173_v9  ;;  %2958 = vmatpush1.bf16.msra.mxu1 %v6176_v10  ;;  %v6185_v63 = vld [vmem:[%s8438_s1 + $0xae0] ss:$16 sps:$4 sm:$0xff]   ;;  %v6188_v0 = vld [vmem:[%s8438_s1 + $0xae8] ss:$16 sps:$4 sm:$0xff]   ;;  %v3081_v10 = vrot.slane %v3067_v5, %v6689_v51 }
 0x158   :  { %v957_v27 = vpop.f32.mrb[7].mxu0  ;;  %v998_v29 = vpop.f32.mrb[7].mxu1  ;;  %2918 = vmatprep.subr.bf16.mxu0 %v6181_v11  ;;  %2959 = vmatprep.subr.bf16.mxu1 %v6184_v12  ;;  %v6247_v9 = vld [vmem:[%s8438_s1 + $0xc24] ss:$16 sps:$4 sm:$0xff]   ;;  %v6245_v11 = vld [vmem:[%s8438_s1 + $0xc20] ss:$16 sps:$4 sm:$0xff]  }
 0x159   :  { %v6248_v12 = vld [vmem:[%s8438_s1 + $0xc28] ss:$16 sps:$4 sm:$0xff]   ;;  %v6253_v13 = vld [vmem:[%s8438_s1 + $0xc44] ss:$16 sps:$4 sm:$0xff]   ;;  %v6256_v14 = vld [vmem:[%s8438_s1 + $0xc4c] ss:$16 sps:$4 sm:$0xff]  }
 0x15a   :  { %v6259_v19 = vld [vmem:[%s8438_s1 + $0xc64] ss:$16 sps:$4 sm:$0xff]   ;;  %v6262_v20 = vld [vmem:[%s8438_s1 + $0xc6c] ss:$16 sps:$4 sm:$0xff]   ;;  %v6257_v25 = vld [vmem:[%s8438_s1 + $0xc60] ss:$16 sps:$4 sm:$0xff]  }
 0x15b   :  { %2919 = vmatpush1.bf16.msra.mxu0 %v6179_v15  ;;  %2960 = vmatpush1.bf16.msra.mxu1 %v6182_v16  ;;  %v6251_v15 = vld [vmem:[%s8438_s1 + $0xc40] ss:$16 sps:$4 sm:$0xff]   ;;  %v6254_v16 = vld [vmem:[%s8438_s1 + $0xc48] ss:$16 sps:$4 sm:$0xff]   ;;  %v6265_v27 = vld [vmem:[%s8438_s1 + $0xc84] ss:$16 sps:$4 sm:$0xff]  }
 0x15c   :  { %2920 = vmatprep.subr.bf16.mxu0 %v6187_v59  ;;  %2961 = vmatprep.subr.bf16.mxu1 %v6190_v60  ;;  %v6260_v26 = vld [vmem:[%s8438_s1 + $0xc68] ss:$16 sps:$4 sm:$0xff]   ;;  %v6268_v29 = vld [vmem:[%s8438_s1 + $0xc8c] ss:$16 sps:$4 sm:$0xff]   ;;  %v6263_v59 = vld [vmem:[%s8438_s1 + $0xc80] ss:$16 sps:$4 sm:$0xff]  }
 0x15d   :  { %v6266_v60 = vld [vmem:[%s8438_s1 + $0xc88] ss:$16 sps:$4 sm:$0xff]   ;;  %v6313_v5 = vld [vmem:[%s8438_s1 + $0xd84] ss:$16 sps:$4 sm:$0xff]  }
 0x15f   :  { %2921 = vmatpush1.bf16.msra.mxu0 %v6185_v63  ;;  %2962 = vmatpush1.bf16.msra.mxu1 %v6188_v0  ;;  %v6271_v63 = vld [vmem:[%s8438_s1 + $0xca4] ss:$16 sps:$4 sm:$0xff]   ;;  %v6274_v0 = vld [vmem:[%s8438_s1 + $0xcac] ss:$16 sps:$4 sm:$0xff]  }
 0x160   :  { %2922 = vmatprep.subr.bf16.mxu0 %v6193_v22  ;;  %2963 = vmatprep.subr.bf16.mxu1 %v6196_v30  ;;  %v6269_v22 = vld [vmem:[%s8438_s1 + $0xca0] ss:$16 sps:$4 sm:$0xff]   ;;  %v6272_v30 = vld [vmem:[%s8438_s1 + $0xca8] ss:$16 sps:$4 sm:$0xff]  }
 0x163   :  { %2923 = vmatpush1.bf16.msra.mxu0 %v6191_v31  ;;  %2964 = vmatpush1.bf16.msra.mxu1 %v6194_v32  ;;  %v6277_v31 = vld [vmem:[%s8438_s1 + $0xcc4] ss:$16 sps:$4 sm:$0xff]   ;;  %v6280_v32 = vld [vmem:[%s8438_s1 + $0xccc] ss:$16 sps:$4 sm:$0xff]  }
 0x164   :  { %2924 = vmatprep.subr.bf16.mxu0 %v6199_v33  ;;  %2965 = vmatprep.subr.bf16.mxu1 %v6202_v34 }
 0x167   :  { %2925 = vmatpush1.bf16.msra.mxu0 %v6197_v35  ;;  %2966 = vmatpush1.bf16.msra.mxu1 %v6200_v21 }
 0x168   :  { %2926 = vmatprep.subr.bf16.mxu0 %v6205_v36  ;;  %2967 = vmatprep.subr.bf16.mxu1 %v6208_v37 }
 0x16b   :  { %2927 = vmatpush1.bf16.msra.mxu0 %v6203_v38  ;;  %2968 = vmatpush1.bf16.msra.mxu1 %v6206_v39 }
 0x16c   :  { %2928 = vmatprep.subr.bf16.mxu0 %v6211_v41  ;;  %2969 = vmatprep.subr.bf16.mxu1 %v6214_v42 }
 0x16f   :  { %2929 = vmatpush1.bf16.msra.mxu0 %v6209_v43  ;;  %2970 = vmatpush1.bf16.msra.mxu1 %v6212_v44 }
 0x170   :  { %2930 = vmatprep.subr.bf16.mxu0 %v6217_v45  ;;  %2971 = vmatprep.subr.bf16.mxu1 %v6220_v47  ;;  %v6281_v45 = vld [vmem:[%s8438_s1 + $0xce0] ss:$16 sps:$4 sm:$0xff]   ;;  %v6284_v47 = vld [vmem:[%s8438_s1 + $0xce8] ss:$16 sps:$4 sm:$0xff]  }
 0x173   :  { %2931 = vmatpush1.bf16.msra.mxu0 %v6215_v48  ;;  %2972 = vmatpush1.bf16.msra.mxu1 %v6218_v49  ;;  %v6289_v48 = vld [vmem:[%s8438_s1 + $0xd04] ss:$16 sps:$4 sm:$0xff]   ;;  %v6292_v49 = vld [vmem:[%s8438_s1 + $0xd0c] ss:$16 sps:$4 sm:$0xff]  }
 0x174   :  { %2932 = vmatprep.subr.bf16.mxu0 %v6223_v50  ;;  %2973 = vmatprep.subr.bf16.mxu1 %v6226_v52  ;;  %v6287_v50 = vld [vmem:[%s8438_s1 + $0xd00] ss:$16 sps:$4 sm:$0xff]   ;;  %v6290_v52 = vld [vmem:[%s8438_s1 + $0xd08] ss:$16 sps:$4 sm:$0xff]  }
 0x177   :  { %2933 = vmatpush1.bf16.msra.mxu0 %v6221_v53  ;;  %2974 = vmatpush1.bf16.msra.mxu1 %v6224_v28  ;;  %v6295_v53 = vld [vmem:[%s8438_s1 + $0xd24] ss:$16 sps:$4 sm:$0xff]   ;;  %v6298_v28 = vld [vmem:[%s8438_s1 + $0xd2c] ss:$16 sps:$4 sm:$0xff]  }
 0x178   :  { %2934 = vmatprep.subr.bf16.mxu0 %v6229_v54  ;;  %2975 = vmatprep.subr.bf16.mxu1 %v6232_v55  ;;  %v6293_v54 = vld [vmem:[%s8438_s1 + $0xd20] ss:$16 sps:$4 sm:$0xff]   ;;  %v6296_v55 = vld [vmem:[%s8438_s1 + $0xd28] ss:$16 sps:$4 sm:$0xff]  }
 0x17b   :  { %2935 = vmatpush1.bf16.msra.mxu0 %v6227_v56  ;;  %2976 = vmatpush1.bf16.msra.mxu1 %v6230_v57  ;;  %v6301_v56 = vld [vmem:[%s8438_s1 + $0xd44] ss:$16 sps:$4 sm:$0xff]   ;;  %v6304_v57 = vld [vmem:[%s8438_s1 + $0xd4c] ss:$16 sps:$4 sm:$0xff]  }
 0x17c   :  { %2936 = vmatprep.subr.bf16.mxu0 %v6235_v58  ;;  %2977 = vmatprep.subr.bf16.mxu1 %v6238_v61  ;;  %v6299_v58 = vld [vmem:[%s8438_s1 + $0xd40] ss:$16 sps:$4 sm:$0xff]   ;;  %v6302_v61 = vld [vmem:[%s8438_s1 + $0xd48] ss:$16 sps:$4 sm:$0xff]  }
 0x17f   :  { %2937 = vmatpush1.bf16.msra.mxu0 %v6233_v1  ;;  %2978 = vmatpush1.bf16.msra.mxu1 %v6236_v2  ;;  %v6307_v1 = vld [vmem:[%s8438_s1 + $0xd64] ss:$16 sps:$4 sm:$0xff]   ;;  %v6310_v2 = vld [vmem:[%s8438_s1 + $0xd6c] ss:$16 sps:$4 sm:$0xff]  }
 0x180   :  { %3404 = vmatprep.subr.bf16.mxu0 %v6241_v3  ;;  %3445 = vmatprep.subr.bf16.mxu1 %v6244_v4  ;;  %v6305_v3 = vld [vmem:[%s8438_s1 + $0xd60] ss:$16 sps:$4 sm:$0xff]   ;;  %v6308_v4 = vld [vmem:[%s8438_s1 + $0xd68] ss:$16 sps:$4 sm:$0xff]  }
 0x182   :  { %2939 = vmatmul.mubr.bf16.vlgmr.msra.gmra.mrb[20].mxu0 %v2576_v6  ;;  %2980 = vmatmul.mubr.bf16.vlgmr.msra.gmra.mrb[20].mxu1 %v2576_v6  ;;  %v6316_v6 = vld [vmem:[%s8438_s1 + $0xd8c] ss:$16 sps:$4 sm:$0xff]  }
 0x183   :  { %3405 = vmatpush1.bf16.msra.mxu0 %v6239_v7  ;;  %3446 = vmatpush1.bf16.msra.mxu1 %v6242_v8  ;;  %v6311_v7 = vld [vmem:[%s8438_s1 + $0xd80] ss:$16 sps:$4 sm:$0xff]   ;;  %v6314_v8 = vld [vmem:[%s8438_s1 + $0xd88] ss:$16 sps:$4 sm:$0xff]  }
 0x184   :  { %3406 = vmatprep.subr.bf16.mxu0 %v6247_v9  ;;  %3447 = vmatprep.subr.bf16.mxu1 %v6250_v40  ;;  %v6319_v9 = vld [vmem:[%s8438_s1 + $0xda4] ss:$16 sps:$4 sm:$0xff]   ;;  %v6322_v40 = vld [vmem:[%s8438_s1 + $0xdac] ss:$16 sps:$4 sm:$0xff]  }
 0x185   :  { %3436 = vmatprep.mubr.bf16.mxu0 %v3081_v10  ;;  %3477 = vmatprep.mubr.bf16.mxu1 %v3081_v10  ;;  %v6317_v10 = vld [vmem:[%s8438_s1 + $0xda0] ss:$16 sps:$4 sm:$0xff]  }
 0x187   :  { %3407 = vmatpush1.bf16.msra.mxu0 %v6245_v11  ;;  %3448 = vmatpush1.bf16.msra.mxu1 %v6248_v12  ;;  %v6320_v11 = vld [vmem:[%s8438_s1 + $0xda8] ss:$16 sps:$4 sm:$0xff]   ;;  %v6325_v12 = vld [vmem:[%s8438_s1 + $0xdc4] ss:$16 sps:$4 sm:$0xff]  }
 0x188   :  { %3408 = vmatprep.subr.bf16.mxu0 %v6253_v13  ;;  %3449 = vmatprep.subr.bf16.mxu1 %v6256_v14  ;;  %v6328_v13 = vld [vmem:[%s8438_s1 + $0xdcc] ss:$16 sps:$4 sm:$0xff]   ;;  %v6323_v14 = vld [vmem:[%s8438_s1 + $0xdc0] ss:$16 sps:$4 sm:$0xff]  }
 0x18b   :  { %3409 = vmatpush1.bf16.msra.mxu0 %v6251_v15  ;;  %3450 = vmatpush1.bf16.msra.mxu1 %v6254_v16  ;;  %v6326_v15 = vld [vmem:[%s8438_s1 + $0xdc8] ss:$16 sps:$4 sm:$0xff]   ;;  %v6331_v16 = vld [vmem:[%s8438_s1 + $0xde4] ss:$16 sps:$4 sm:$0xff]  }
 0x18c   :  { %3410 = vmatprep.subr.bf16.mxu0 %v6259_v19  ;;  %3451 = vmatprep.subr.bf16.mxu1 %v6262_v20  ;;  %v6334_v19 = vld [vmem:[%s8438_s1 + $0xdec] ss:$16 sps:$4 sm:$0xff]  }
 0x18d   :  { %v7989_v20 = vld.sshfl [vmem:[%s8439_s0 + $0xe] sm:$0x11 pattern:$0x75316420] }
 0x18f   :  { %3411 = vmatpush1.bf16.msra.mxu0 %v6257_v25  ;;  %3452 = vmatpush1.bf16.msra.mxu1 %v6260_v26  ;;  %v6329_v25 = vld [vmem:[%s8438_s1 + $0xde0] ss:$16 sps:$4 sm:$0xff]   ;;  %v6332_v26 = vld [vmem:[%s8438_s1 + $0xde8] ss:$16 sps:$4 sm:$0xff]  }
 0x190   :  { %3412 = vmatprep.subr.bf16.mxu0 %v6265_v27  ;;  %3453 = vmatprep.subr.bf16.mxu1 %v6268_v29  ;;  %v6337_v27 = vld [vmem:[%s8438_s1 + $0xe04] ss:$16 sps:$4 sm:$0xff]   ;;  %v6340_v29 = vld [vmem:[%s8438_s1 + $0xe0c] ss:$16 sps:$4 sm:$0xff]  }
 0x193   :  { %3413 = vmatpush1.bf16.msra.mxu0 %v6263_v59  ;;  %3454 = vmatpush1.bf16.msra.mxu1 %v6266_v60  ;;  %v3565_v59 = vcombine.high %v7989_v20, %v7989_v20  ;;  %v3074_v60 = vrot.slane %v7775_v62, %v6689_v51  ;;  %v6346_v62 = vld [vmem:[%s8438_s1 + $0xe2c] ss:$16 sps:$4 sm:$0xff]  }
 0x194   :  { %3414 = vmatprep.subr.bf16.mxu0 %v6271_v63  ;;  %3455 = vmatprep.subr.bf16.mxu1 %v6274_v0  ;;  %v6335_v63 = vld [vmem:[%s8438_s1 + $0xe00] ss:$16 sps:$4 sm:$0xff]   ;;  %v6338_v0 = vld [vmem:[%s8438_s1 + $0xe08] ss:$16 sps:$4 sm:$0xff]  }
 0x195   :  { %v1446_v33 = vpop.f32.mrb[8].mxu0  ;;  %v1487_v34 = vpop.f32.mrb[8].mxu1 }
 0x196   :  { %v7867_v35 = vadd.f32 %v1446_v33, %v7659_v17  ;;  %v7870_v21 = vadd.f32 %v1487_v34, %v7662_v18  ;;  %v1448_v36 = vpop.f32.mrb[9].mxu0  ;;  %v1489_v37 = vpop.f32.mrb[9].mxu1  ;;  %v6275_v17 = vld [vmem:[%s8438_s1 + $0xcc0] ss:$16 sps:$4 sm:$0xff]   ;;  %v6278_v18 = vld [vmem:[%s8438_s1 + $0xcc8] ss:$16 sps:$4 sm:$0xff]  }
 0x197   :  { %v7873_v38 = vadd.f32 %v1448_v36, %v7665_v23  ;;  %v7876_v39 = vadd.f32 %v1489_v37, %v7668_v24  ;;  %v1450_v41 = vpop.f32.mrb[10].mxu0  ;;  %v1491_v42 = vpop.f32.mrb[10].mxu1  ;;  %3415 = vmatpush1.bf16.msra.mxu0 %v6269_v22  ;;  %3456 = vmatpush1.bf16.msra.mxu1 %v6272_v30  ;;  %v6283_v23 = vld [vmem:[%s8438_s1 + $0xce4] ss:$16 sps:$4 sm:$0xff]   ;;  %v6286_v24 = vld [vmem:[%s8438_s1 + $0xcec] ss:$16 sps:$4 sm:$0xff]   ;;  %v3579_v30 = vrot.slane %v3565_v59, %v6689_v51 }
 0x198   :  { %v1451_v43 = vpop.f32.mrb[11].mxu0  ;;  %v1492_v44 = vpop.f32.mrb[11].mxu1  ;;  %3416 = vmatprep.subr.bf16.mxu0 %v6277_v31  ;;  %3457 = vmatprep.subr.bf16.mxu1 %v6280_v32  ;;  %v6343_v22 = vld [vmem:[%s8438_s1 + $0xe24] ss:$16 sps:$4 sm:$0xff]   ;;  %v6341_v31 = vld [vmem:[%s8438_s1 + $0xe20] ss:$16 sps:$4 sm:$0xff]  }
 0x199   :  { %v6344_v32 = vld [vmem:[%s8438_s1 + $0xe28] ss:$16 sps:$4 sm:$0xff]   ;;  %v6349_v33 = vld [vmem:[%s8438_s1 + $0xe44] ss:$16 sps:$4 sm:$0xff]   ;;  %v6352_v34 = vld [vmem:[%s8438_s1 + $0xe4c] ss:$16 sps:$4 sm:$0xff]  }
 0x19a   :  { %v6347_v36 = vld [vmem:[%s8438_s1 + $0xe40] ss:$16 sps:$4 sm:$0xff]   ;;  %v6350_v37 = vld [vmem:[%s8438_s1 + $0xe48] ss:$16 sps:$4 sm:$0xff]   ;;  %v6355_v41 = vld [vmem:[%s8438_s1 + $0xe64] ss:$16 sps:$4 sm:$0xff]  }
 0x19b   :  { %3417 = vmatpush1.bf16.msra.mxu0 %v6275_v17  ;;  %3458 = vmatpush1.bf16.msra.mxu1 %v6278_v18  ;;  %v6358_v42 = vld [vmem:[%s8438_s1 + $0xe6c] ss:$16 sps:$4 sm:$0xff]   ;;  %v6353_v17 = vld [vmem:[%s8438_s1 + $0xe60] ss:$16 sps:$4 sm:$0xff]   ;;  %v6356_v18 = vld [vmem:[%s8438_s1 + $0xe68] ss:$16 sps:$4 sm:$0xff]  }
 0x19c   :  { %3418 = vmatprep.subr.bf16.mxu0 %v6283_v23  ;;  %3459 = vmatprep.subr.bf16.mxu1 %v6286_v24  ;;  %v6361_v43 = vld [vmem:[%s8438_s1 + $0xe84] ss:$16 sps:$4 sm:$0xff]   ;;  %v6364_v44 = vld [vmem:[%s8438_s1 + $0xe8c] ss:$16 sps:$4 sm:$0xff]   ;;  %v6359_v23 = vld [vmem:[%s8438_s1 + $0xe80] ss:$16 sps:$4 sm:$0xff]  }
 0x19d   :  { %v6362_v24 = vld [vmem:[%s8438_s1 + $0xe88] ss:$16 sps:$4 sm:$0xff]   ;;  %v6409_v59 = vld [vmem:[%s8438_s1 + $0xf84] ss:$16 sps:$4 sm:$0xff]  }
 0x19f   :  { %3419 = vmatpush1.bf16.msra.mxu0 %v6281_v45  ;;  %3460 = vmatpush1.bf16.msra.mxu1 %v6284_v47  ;;  %v6367_v45 = vld [vmem:[%s8438_s1 + $0xea4] ss:$16 sps:$4 sm:$0xff]   ;;  %v6370_v47 = vld [vmem:[%s8438_s1 + $0xeac] ss:$16 sps:$4 sm:$0xff]  }
 0x1a0   :  { %3420 = vmatprep.subr.bf16.mxu0 %v6289_v48  ;;  %3461 = vmatprep.subr.bf16.mxu1 %v6292_v49  ;;  %v6365_v48 = vld [vmem:[%s8438_s1 + $0xea0] ss:$16 sps:$4 sm:$0xff]   ;;  %v6368_v49 = vld [vmem:[%s8438_s1 + $0xea8] ss:$16 sps:$4 sm:$0xff]  }
 0x1a3   :  { %3421 = vmatpush1.bf16.msra.mxu0 %v6287_v50  ;;  %3462 = vmatpush1.bf16.msra.mxu1 %v6290_v52  ;;  %v6373_v50 = vld [vmem:[%s8438_s1 + $0xec4] ss:$16 sps:$4 sm:$0xff]   ;;  %v6376_v52 = vld [vmem:[%s8438_s1 + $0xecc] ss:$16 sps:$4 sm:$0xff]  }
 0x1a4   :  { %3422 = vmatprep.subr.bf16.mxu0 %v6295_v53  ;;  %3463 = vmatprep.subr.bf16.mxu1 %v6298_v28 }
 0x1a7   :  { %3423 = vmatpush1.bf16.msra.mxu0 %v6293_v54  ;;  %3464 = vmatpush1.bf16.msra.mxu1 %v6296_v55 }
 0x1a8   :  { %3424 = vmatprep.subr.bf16.mxu0 %v6301_v56  ;;  %3465 = vmatprep.subr.bf16.mxu1 %v6304_v57 }
 0x1ab   :  { %3425 = vmatpush1.bf16.msra.mxu0 %v6299_v58  ;;  %3466 = vmatpush1.bf16.msra.mxu1 %v6302_v61 }
 0x1ac   :  { %3426 = vmatprep.subr.bf16.mxu0 %v6307_v1  ;;  %3467 = vmatprep.subr.bf16.mxu1 %v6310_v2 }
 0x1af   :  { %3427 = vmatpush1.bf16.msra.mxu0 %v6305_v3  ;;  %3468 = vmatpush1.bf16.msra.mxu1 %v6308_v4 }
 0x1b0   :  { %3428 = vmatprep.subr.bf16.mxu0 %v6313_v5  ;;  %3469 = vmatprep.subr.bf16.mxu1 %v6316_v6  ;;  %v6377_v5 = vld [vmem:[%s8438_s1 + $0xee0] ss:$16 sps:$4 sm:$0xff]   ;;  %v6380_v6 = vld [vmem:[%s8438_s1 + $0xee8] ss:$16 sps:$4 sm:$0xff]  }
 0x1b3   :  { %3429 = vmatpush1.bf16.msra.mxu0 %v6311_v7  ;;  %3470 = vmatpush1.bf16.msra.mxu1 %v6314_v8  ;;  %v6385_v7 = vld [vmem:[%s8438_s1 + $0xf04] ss:$16 sps:$4 sm:$0xff]   ;;  %v6388_v8 = vld [vmem:[%s8438_s1 + $0xf0c] ss:$16 sps:$4 sm:$0xff]  }
 0x1b4   :  { %3430 = vmatprep.subr.bf16.mxu0 %v6319_v9  ;;  %3471 = vmatprep.subr.bf16.mxu1 %v6322_v40  ;;  %v6383_v9 = vld [vmem:[%s8438_s1 + $0xf00] ss:$16 sps:$4 sm:$0xff]   ;;  %v6386_v40 = vld [vmem:[%s8438_s1 + $0xf08] ss:$16 sps:$4 sm:$0xff]  }
 0x1b7   :  { %3431 = vmatpush1.bf16.msra.mxu0 %v6317_v10  ;;  %3472 = vmatpush1.bf16.msra.mxu1 %v6320_v11  ;;  %v6391_v10 = vld [vmem:[%s8438_s1 + $0xf24] ss:$16 sps:$4 sm:$0xff]   ;;  %v6394_v11 = vld [vmem:[%s8438_s1 + $0xf2c] ss:$16 sps:$4 sm:$0xff]  }
 0x1b8   :  { %3432 = vmatprep.subr.bf16.mxu0 %v6325_v12  ;;  %3473 = vmatprep.subr.bf16.mxu1 %v6328_v13  ;;  %v6389_v12 = vld [vmem:[%s8438_s1 + $0xf20] ss:$16 sps:$4 sm:$0xff]   ;;  %v6392_v13 = vld [vmem:[%s8438_s1 + $0xf28] ss:$16 sps:$4 sm:$0xff]  }
 0x1bb   :  { %3433 = vmatpush1.bf16.msra.mxu0 %v6323_v14  ;;  %3474 = vmatpush1.bf16.msra.mxu1 %v6326_v15  ;;  %v6397_v14 = vld [vmem:[%s8438_s1 + $0xf44] ss:$16 sps:$4 sm:$0xff]   ;;  %v6400_v15 = vld [vmem:[%s8438_s1 + $0xf4c] ss:$16 sps:$4 sm:$0xff]  }
 0x1bc   :  { %3434 = vmatprep.subr.bf16.mxu0 %v6331_v16  ;;  %3475 = vmatprep.subr.bf16.mxu1 %v6334_v19  ;;  %v6395_v16 = vld [vmem:[%s8438_s1 + $0xf40] ss:$16 sps:$4 sm:$0xff]   ;;  %v6398_v19 = vld [vmem:[%s8438_s1 + $0xf48] ss:$16 sps:$4 sm:$0xff]  }
 0x1bf   :  { %3435 = vmatpush1.bf16.msra.mxu0 %v6329_v25  ;;  %3476 = vmatpush1.bf16.msra.mxu1 %v6332_v26  ;;  %v6403_v25 = vld [vmem:[%s8438_s1 + $0xf64] ss:$16 sps:$4 sm:$0xff]   ;;  %v6406_v26 = vld [vmem:[%s8438_s1 + $0xf6c] ss:$16 sps:$4 sm:$0xff]  }
 0x1c0   :  { %3902 = vmatprep.subr.bf16.mxu0 %v6337_v27  ;;  %3943 = vmatprep.subr.bf16.mxu1 %v6340_v29  ;;  %v6401_v27 = vld [vmem:[%s8438_s1 + $0xf60] ss:$16 sps:$4 sm:$0xff]   ;;  %v6404_v29 = vld [vmem:[%s8438_s1 + $0xf68] ss:$16 sps:$4 sm:$0xff]  }
 0x1c2   :  { %3437 = vmatmul.mubr.bf16.vlgmr.msra.gmra.mrb[24].mxu0 %v3074_v60  ;;  %3478 = vmatmul.mubr.bf16.vlgmr.msra.gmra.mrb[24].mxu1 %v3074_v60  ;;  %v6412_v60 = vld [vmem:[%s8438_s1 + $0xf8c] ss:$16 sps:$4 sm:$0xff]  }
 0x1c3   :  { %3903 = vmatpush1.bf16.msra.mxu0 %v6335_v63  ;;  %3944 = vmatpush1.bf16.msra.mxu1 %v6338_v0  ;;  %v6407_v63 = vld [vmem:[%s8438_s1 + $0xf80] ss:$16 sps:$4 sm:$0xff]   ;;  %v6410_v0 = vld [vmem:[%s8438_s1 + $0xf88] ss:$16 sps:$4 sm:$0xff]  }
 0x1c4   :  { %3904 = vmatprep.subr.bf16.mxu0 %v6343_v22  ;;  %3945 = vmatprep.subr.bf16.mxu1 %v6346_v62  ;;  %v6415_v22 = vld [vmem:[%s8438_s1 + $0xfa4] ss:$16 sps:$4 sm:$0xff]   ;;  %v6418_v62 = vld [vmem:[%s8438_s1 + $0xfac] ss:$16 sps:$4 sm:$0xff]  }
 0x1c5   :  { %3934 = vmatprep.mubr.bf16.mxu0 %v3579_v30  ;;  %3975 = vmatprep.mubr.bf16.mxu1 %v3579_v30  ;;  %v6413_v30 = vld [vmem:[%s8438_s1 + $0xfa0] ss:$16 sps:$4 sm:$0xff]  }
 0x1c7   :  { %3905 = vmatpush1.bf16.msra.mxu0 %v6341_v31  ;;  %3946 = vmatpush1.bf16.msra.mxu1 %v6344_v32  ;;  %v6416_v31 = vld [vmem:[%s8438_s1 + $0xfa8] ss:$16 sps:$4 sm:$0xff]   ;;  %v6421_v32 = vld [vmem:[%s8438_s1 + $0xfc4] ss:$16 sps:$4 sm:$0xff]  }
 0x1c8   :  { %3906 = vmatprep.subr.bf16.mxu0 %v6349_v33  ;;  %3947 = vmatprep.subr.bf16.mxu1 %v6352_v34  ;;  %v6424_v33 = vld [vmem:[%s8438_s1 + $0xfcc] ss:$16 sps:$4 sm:$0xff]   ;;  %v6419_v34 = vld [vmem:[%s8438_s1 + $0xfc0] ss:$16 sps:$4 sm:$0xff]  }
 0x1cb   :  { %3907 = vmatpush1.bf16.msra.mxu0 %v6347_v36  ;;  %3948 = vmatpush1.bf16.msra.mxu1 %v6350_v37  ;;  %v6422_v36 = vld [vmem:[%s8438_s1 + $0xfc8] ss:$16 sps:$4 sm:$0xff]   ;;  %v6427_v37 = vld [vmem:[%s8438_s1 + $0xfe4] ss:$16 sps:$4 sm:$0xff]  }
 0x1cc   :  { %3908 = vmatprep.subr.bf16.mxu0 %v6355_v41  ;;  %3949 = vmatprep.subr.bf16.mxu1 %v6358_v42  ;;  %v6430_v41 = vld [vmem:[%s8438_s1 + $0xfec] ss:$16 sps:$4 sm:$0xff]   ;;  %v8203_v42 = vld.sshfl [vmem:[%s8439_s0 + $0x10] sm:$0x11 pattern:$0x75316420] }
 0x1cf   :  { %3909 = vmatpush1.bf16.msra.mxu0 %v6353_v17  ;;  %3950 = vmatpush1.bf16.msra.mxu1 %v6356_v18  ;;  %v6425_v17 = vld [vmem:[%s8438_s1 + $0xfe0] ss:$16 sps:$4 sm:$0xff]   ;;  %v6428_v18 = vld [vmem:[%s8438_s1 + $0xfe8] ss:$16 sps:$4 sm:$0xff]  }
 0x1d0   :  { %3910 = vmatprep.subr.bf16.mxu0 %v6361_v43  ;;  %3951 = vmatprep.subr.bf16.mxu1 %v6364_v44  ;;  %v6433_v43 = vld [vmem:[%s8438_s1 + $0x1004] ss:$16 sps:$4 sm:$0xff]   ;;  %v6436_v44 = vld [vmem:[%s8438_s1 + $0x100c] ss:$16 sps:$4 sm:$0xff]  }
 0x1d3   :  { %3911 = vmatpush1.bf16.msra.mxu0 %v6359_v23  ;;  %3952 = vmatpush1.bf16.msra.mxu1 %v6362_v24  ;;  %v4063_v23 = vcombine.high %v8203_v42, %v8203_v42  ;;  %v3572_v24 = vrot.slane %v7989_v20, %v6689_v51  ;;  %v6442_v20 = vld [vmem:[%s8438_s1 + $0x102c] ss:$16 sps:$4 sm:$0xff]  }
 0x1d4   :  { %3912 = vmatprep.subr.bf16.mxu0 %v6367_v45  ;;  %3953 = vmatprep.subr.bf16.mxu1 %v6370_v47  ;;  %v6431_v45 = vld [vmem:[%s8438_s1 + $0x1000] ss:$16 sps:$4 sm:$0xff]   ;;  %v6434_v47 = vld [vmem:[%s8438_s1 + $0x1008] ss:$16 sps:$4 sm:$0xff]  }
 0x1d5   :  { %v1944_v53 = vpop.f32.mrb[12].mxu0  ;;  %v1985_v28 = vpop.f32.mrb[12].mxu1 }
 0x1d6   :  { %v8081_v54 = vadd.f32 %v1944_v53, %v7867_v35  ;;  %v8084_v55 = vadd.f32 %v1985_v28, %v7870_v21  ;;  %v1946_v56 = vpop.f32.mrb[13].mxu0  ;;  %v1987_v57 = vpop.f32.mrb[13].mxu1  ;;  %v6371_v35 = vld [vmem:[%s8438_s1 + $0xec0] ss:$16 sps:$4 sm:$0xff]   ;;  %v6374_v21 = vld [vmem:[%s8438_s1 + $0xec8] ss:$16 sps:$4 sm:$0xff]  }
 0x1d7   :  { %v8087_v58 = vadd.f32 %v1946_v56, %v7873_v38  ;;  %v8090_v61 = vadd.f32 %v1987_v57, %v7876_v39  ;;  %v1948_v1 = vpop.f32.mrb[14].mxu0  ;;  %v1989_v2 = vpop.f32.mrb[14].mxu1  ;;  %3913 = vmatpush1.bf16.msra.mxu0 %v6365_v48  ;;  %3954 = vmatpush1.bf16.msra.mxu1 %v6368_v49  ;;  %v6379_v38 = vld [vmem:[%s8438_s1 + $0xee4] ss:$16 sps:$4 sm:$0xff]   ;;  %v6382_v39 = vld [vmem:[%s8438_s1 + $0xeec] ss:$16 sps:$4 sm:$0xff]   ;;  %v4077_v49 = vrot.slane %v4063_v23, %v6689_v51 }
 0x1d8   :  { %v1949_v3 = vpop.f32.mrb[15].mxu0  ;;  %v1990_v4 = vpop.f32.mrb[15].mxu1  ;;  %3914 = vmatprep.subr.bf16.mxu0 %v6373_v50  ;;  %3955 = vmatprep.subr.bf16.mxu1 %v6376_v52  ;;  %v6439_v48 = vld [vmem:[%s8438_s1 + $0x1024] ss:$16 sps:$4 sm:$0xff]   ;;  %v6437_v50 = vld [vmem:[%s8438_s1 + $0x1020] ss:$16 sps:$4 sm:$0xff]  }
 0x1d9   :  { %v6440_v52 = vld [vmem:[%s8438_s1 + $0x1028] ss:$16 sps:$4 sm:$0xff]   ;;  %v6445_v53 = vld [vmem:[%s8438_s1 + $0x1044] ss:$16 sps:$4 sm:$0xff]   ;;  %v6448_v28 = vld [vmem:[%s8438_s1 + $0x104c] ss:$16 sps:$4 sm:$0xff]  }
 0x1da   :  { %v6443_v56 = vld [vmem:[%s8438_s1 + $0x1040] ss:$16 sps:$4 sm:$0xff]   ;;  %v6446_v57 = vld [vmem:[%s8438_s1 + $0x1048] ss:$16 sps:$4 sm:$0xff]   ;;  %v6451_v1 = vld [vmem:[%s8438_s1 + $0x1064] ss:$16 sps:$4 sm:$0xff]  }
 0x1db   :  { %3915 = vmatpush1.bf16.msra.mxu0 %v6371_v35  ;;  %3956 = vmatpush1.bf16.msra.mxu1 %v6374_v21  ;;  %v6454_v2 = vld [vmem:[%s8438_s1 + $0x106c] ss:$16 sps:$4 sm:$0xff]   ;;  %v6449_v35 = vld [vmem:[%s8438_s1 + $0x1060] ss:$16 sps:$4 sm:$0xff]   ;;  %v6452_v21 = vld [vmem:[%s8438_s1 + $0x1068] ss:$16 sps:$4 sm:$0xff]  }
 0x1dc   :  { %3916 = vmatprep.subr.bf16.mxu0 %v6379_v38  ;;  %3957 = vmatprep.subr.bf16.mxu1 %v6382_v39  ;;  %v6457_v3 = vld [vmem:[%s8438_s1 + $0x1084] ss:$16 sps:$4 sm:$0xff]   ;;  %v6460_v4 = vld [vmem:[%s8438_s1 + $0x108c] ss:$16 sps:$4 sm:$0xff]   ;;  %v6455_v38 = vld [vmem:[%s8438_s1 + $0x1080] ss:$16 sps:$4 sm:$0xff]  }
 0x1dd   :  { %v6458_v39 = vld [vmem:[%s8438_s1 + $0x1088] ss:$16 sps:$4 sm:$0xff]   ;;  %v6505_v23 = vld [vmem:[%s8438_s1 + $0x1184] ss:$16 sps:$4 sm:$0xff]  }
 0x1df   :  { %3917 = vmatpush1.bf16.msra.mxu0 %v6377_v5  ;;  %3958 = vmatpush1.bf16.msra.mxu1 %v6380_v6  ;;  %v6463_v5 = vld [vmem:[%s8438_s1 + $0x10a4] ss:$16 sps:$4 sm:$0xff]   ;;  %v6466_v6 = vld [vmem:[%s8438_s1 + $0x10ac] ss:$16 sps:$4 sm:$0xff]  }
 0x1e0   :  { %3918 = vmatprep.subr.bf16.mxu0 %v6385_v7  ;;  %3959 = vmatprep.subr.bf16.mxu1 %v6388_v8  ;;  %v6461_v7 = vld [vmem:[%s8438_s1 + $0x10a0] ss:$16 sps:$4 sm:$0xff]   ;;  %v6464_v8 = vld [vmem:[%s8438_s1 + $0x10a8] ss:$16 sps:$4 sm:$0xff]  }
 0x1e3   :  { %3919 = vmatpush1.bf16.msra.mxu0 %v6383_v9  ;;  %3960 = vmatpush1.bf16.msra.mxu1 %v6386_v40  ;;  %v6469_v9 = vld [vmem:[%s8438_s1 + $0x10c4] ss:$16 sps:$4 sm:$0xff]   ;;  %v6472_v40 = vld [vmem:[%s8438_s1 + $0x10cc] ss:$16 sps:$4 sm:$0xff]  }
 0x1e4   :  { %3920 = vmatprep.subr.bf16.mxu0 %v6391_v10  ;;  %3961 = vmatprep.subr.bf16.mxu1 %v6394_v11 }
 0x1e7   :  { %3921 = vmatpush1.bf16.msra.mxu0 %v6389_v12  ;;  %3962 = vmatpush1.bf16.msra.mxu1 %v6392_v13 }
 0x1e8   :  { %3922 = vmatprep.subr.bf16.mxu0 %v6397_v14  ;;  %3963 = vmatprep.subr.bf16.mxu1 %v6400_v15 }
 0x1eb   :  { %3923 = vmatpush1.bf16.msra.mxu0 %v6395_v16  ;;  %3964 = vmatpush1.bf16.msra.mxu1 %v6398_v19 }
 0x1ec   :  { %3924 = vmatprep.subr.bf16.mxu0 %v6403_v25  ;;  %3965 = vmatprep.subr.bf16.mxu1 %v6406_v26 }
 0x1ef   :  { %3925 = vmatpush1.bf16.msra.mxu0 %v6401_v27  ;;  %3966 = vmatpush1.bf16.msra.mxu1 %v6404_v29 }
 0x1f0   :  { %3926 = vmatprep.subr.bf16.mxu0 %v6409_v59  ;;  %3967 = vmatprep.subr.bf16.mxu1 %v6412_v60  ;;  %v6473_v59 = vld [vmem:[%s8438_s1 + $0x10e0] ss:$16 sps:$4 sm:$0xff]   ;;  %v6476_v60 = vld [vmem:[%s8438_s1 + $0x10e8] ss:$16 sps:$4 sm:$0xff]  }
 0x1f3   :  { %3927 = vmatpush1.bf16.msra.mxu0 %v6407_v63  ;;  %3968 = vmatpush1.bf16.msra.mxu1 %v6410_v0  ;;  %v6481_v63 = vld [vmem:[%s8438_s1 + $0x1104] ss:$16 sps:$4 sm:$0xff]   ;;  %v6484_v0 = vld [vmem:[%s8438_s1 + $0x110c] ss:$16 sps:$4 sm:$0xff]  }
 0x1f4   :  { %3928 = vmatprep.subr.bf16.mxu0 %v6415_v22  ;;  %3969 = vmatprep.subr.bf16.mxu1 %v6418_v62  ;;  %v6479_v22 = vld [vmem:[%s8438_s1 + $0x1100] ss:$16 sps:$4 sm:$0xff]   ;;  %v6482_v62 = vld [vmem:[%s8438_s1 + $0x1108] ss:$16 sps:$4 sm:$0xff]  }
 0x1f7   :  { %3929 = vmatpush1.bf16.msra.mxu0 %v6413_v30  ;;  %3970 = vmatpush1.bf16.msra.mxu1 %v6416_v31  ;;  %v6487_v30 = vld [vmem:[%s8438_s1 + $0x1124] ss:$16 sps:$4 sm:$0xff]   ;;  %v6490_v31 = vld [vmem:[%s8438_s1 + $0x112c] ss:$16 sps:$4 sm:$0xff]  }
 0x1f8   :  { %3930 = vmatprep.subr.bf16.mxu0 %v6421_v32  ;;  %3971 = vmatprep.subr.bf16.mxu1 %v6424_v33  ;;  %v6485_v32 = vld [vmem:[%s8438_s1 + $0x1120] ss:$16 sps:$4 sm:$0xff]   ;;  %v6488_v33 = vld [vmem:[%s8438_s1 + $0x1128] ss:$16 sps:$4 sm:$0xff]  }
 0x1fb   :  { %3931 = vmatpush1.bf16.msra.mxu0 %v6419_v34  ;;  %3972 = vmatpush1.bf16.msra.mxu1 %v6422_v36  ;;  %v6493_v34 = vld [vmem:[%s8438_s1 + $0x1144] ss:$16 sps:$4 sm:$0xff]   ;;  %v6496_v36 = vld [vmem:[%s8438_s1 + $0x114c] ss:$16 sps:$4 sm:$0xff]  }
 0x1fc   :  { %3932 = vmatprep.subr.bf16.mxu0 %v6427_v37  ;;  %3973 = vmatprep.subr.bf16.mxu1 %v6430_v41  ;;  %v6491_v37 = vld [vmem:[%s8438_s1 + $0x1140] ss:$16 sps:$4 sm:$0xff]   ;;  %v6494_v41 = vld [vmem:[%s8438_s1 + $0x1148] ss:$16 sps:$4 sm:$0xff]  }
 0x1ff   :  { %3933 = vmatpush1.bf16.msra.mxu0 %v6425_v17  ;;  %3974 = vmatpush1.bf16.msra.mxu1 %v6428_v18  ;;  %v6499_v17 = vld [vmem:[%s8438_s1 + $0x1164] ss:$16 sps:$4 sm:$0xff]   ;;  %v6502_v18 = vld [vmem:[%s8438_s1 + $0x116c] ss:$16 sps:$4 sm:$0xff]  }
 0x200   :  { %4400 = vmatprep.subr.bf16.mxu0 %v6433_v43  ;;  %4441 = vmatprep.subr.bf16.mxu1 %v6436_v44  ;;  %v6497_v43 = vld [vmem:[%s8438_s1 + $0x1160] ss:$16 sps:$4 sm:$0xff]   ;;  %v6500_v44 = vld [vmem:[%s8438_s1 + $0x1168] ss:$16 sps:$4 sm:$0xff]  }
 0x202   :  { %3935 = vmatmul.mubr.bf16.vlgmr.msra.gmra.mrb[28].mxu0 %v3572_v24  ;;  %3976 = vmatmul.mubr.bf16.vlgmr.msra.gmra.mrb[28].mxu1 %v3572_v24  ;;  %v6508_v24 = vld [vmem:[%s8438_s1 + $0x118c] ss:$16 sps:$4 sm:$0xff]  }
 0x203   :  { %4401 = vmatpush1.bf16.msra.mxu0 %v6431_v45  ;;  %4442 = vmatpush1.bf16.msra.mxu1 %v6434_v47  ;;  %v6503_v45 = vld [vmem:[%s8438_s1 + $0x1180] ss:$16 sps:$4 sm:$0xff]   ;;  %v6506_v47 = vld [vmem:[%s8438_s1 + $0x1188] ss:$16 sps:$4 sm:$0xff]  }
 0x204   :  { %4402 = vmatprep.subr.bf16.mxu0 %v6439_v48  ;;  %4443 = vmatprep.subr.bf16.mxu1 %v6442_v20  ;;  %v6511_v48 = vld [vmem:[%s8438_s1 + $0x11a4] ss:$16 sps:$4 sm:$0xff]   ;;  %v6514_v20 = vld [vmem:[%s8438_s1 + $0x11ac] ss:$16 sps:$4 sm:$0xff]  }
 0x205   :  { %4432 = vmatprep.mubr.bf16.mxu0 %v4077_v49  ;;  %4473 = vmatprep.mubr.bf16.mxu1 %v4077_v49  ;;  %v6509_v49 = vld [vmem:[%s8438_s1 + $0x11a0] ss:$16 sps:$4 sm:$0xff]  }
 0x207   :  { %4403 = vmatpush1.bf16.msra.mxu0 %v6437_v50  ;;  %4444 = vmatpush1.bf16.msra.mxu1 %v6440_v52  ;;  %v6512_v50 = vld [vmem:[%s8438_s1 + $0x11a8] ss:$16 sps:$4 sm:$0xff]   ;;  %v6517_v52 = vld [vmem:[%s8438_s1 + $0x11c4] ss:$16 sps:$4 sm:$0xff]  }
 0x208   :  { %4404 = vmatprep.subr.bf16.mxu0 %v6445_v53  ;;  %4445 = vmatprep.subr.bf16.mxu1 %v6448_v28  ;;  %v6520_v53 = vld [vmem:[%s8438_s1 + $0x11cc] ss:$16 sps:$4 sm:$0xff]   ;;  %v6515_v28 = vld [vmem:[%s8438_s1 + $0x11c0] ss:$16 sps:$4 sm:$0xff]  }
 0x20b   :  { %4405 = vmatpush1.bf16.msra.mxu0 %v6443_v56  ;;  %4446 = vmatpush1.bf16.msra.mxu1 %v6446_v57  ;;  %v6518_v56 = vld [vmem:[%s8438_s1 + $0x11c8] ss:$16 sps:$4 sm:$0xff]   ;;  %v6523_v57 = vld [vmem:[%s8438_s1 + $0x11e4] ss:$16 sps:$4 sm:$0xff]  }
 0x20c   :  { %4406 = vmatprep.subr.bf16.mxu0 %v6451_v1  ;;  %4447 = vmatprep.subr.bf16.mxu1 %v6454_v2  ;;  %v6526_v1 = vld [vmem:[%s8438_s1 + $0x11ec] ss:$16 sps:$4 sm:$0xff]   ;;  %v6521_v2 = vld [vmem:[%s8438_s1 + $0x11e0] ss:$16 sps:$4 sm:$0xff]  }
 0x20f   :  { %4407 = vmatpush1.bf16.msra.mxu0 %v6449_v35  ;;  %4448 = vmatpush1.bf16.msra.mxu1 %v6452_v21  ;;  %v6524_v35 = vld [vmem:[%s8438_s1 + $0x11e8] ss:$16 sps:$4 sm:$0xff]   ;;  %v4070_v21 = vrot.slane %v8203_v42, %v6689_v51 }
 0x210   :  { %4408 = vmatprep.subr.bf16.mxu0 %v6457_v3  ;;  %4449 = vmatprep.subr.bf16.mxu1 %v6460_v4 }
 0x213   :  { %4409 = vmatpush1.bf16.msra.mxu0 %v6455_v38  ;;  %4450 = vmatpush1.bf16.msra.mxu1 %v6458_v39 }
 0x214   :  { %4410 = vmatprep.subr.bf16.mxu0 %v6463_v5  ;;  %4451 = vmatprep.subr.bf16.mxu1 %v6466_v6 }
 0x215   :  { %v2442_v10 = vpop.f32.mrb[16].mxu0  ;;  %v2483_v11 = vpop.f32.mrb[16].mxu1 }
 0x216   :  { %v8295_v12 = vadd.f32 %v2442_v10, %v8081_v54  ;;  %v8298_v13 = vadd.f32 %v2483_v11, %v8084_v55  ;;  %v2444_v14 = vpop.f32.mrb[17].mxu0  ;;  %v2485_v15 = vpop.f32.mrb[17].mxu1  ;;  %v6467_v54 = vld [vmem:[%s8438_s1 + $0x10c0] ss:$16 sps:$4 sm:$0xff]   ;;  %v6470_v55 = vld [vmem:[%s8438_s1 + $0x10c8] ss:$16 sps:$4 sm:$0xff]  }
 0x217   :  { %v8301_v16 = vadd.f32 %v2444_v14, %v8087_v58  ;;  %v8304_v19 = vadd.f32 %v2485_v15, %v8090_v61  ;;  %v2446_v25 = vpop.f32.mrb[18].mxu0  ;;  %v2487_v26 = vpop.f32.mrb[18].mxu1  ;;  %4411 = vmatpush1.bf16.msra.mxu0 %v6461_v7  ;;  %4452 = vmatpush1.bf16.msra.mxu1 %v6464_v8  ;;  %v6475_v58 = vld [vmem:[%s8438_s1 + $0x10e4] ss:$16 sps:$4 sm:$0xff]   ;;  %v6478_v61 = vld [vmem:[%s8438_s1 + $0x10ec] ss:$16 sps:$4 sm:$0xff]  }
 0x218   :  { %v2447_v27 = vpop.f32.mrb[19].mxu0  ;;  %v2488_v29 = vpop.f32.mrb[19].mxu1  ;;  %4412 = vmatprep.subr.bf16.mxu0 %v6469_v9  ;;  %4453 = vmatprep.subr.bf16.mxu1 %v6472_v40 }
 0x21b   :  { %4413 = vmatpush1.bf16.msra.mxu0 %v6467_v54  ;;  %4454 = vmatpush1.bf16.msra.mxu1 %v6470_v55 }
 0x21c   :  { %4414 = vmatprep.subr.bf16.mxu0 %v6475_v58  ;;  %4455 = vmatprep.subr.bf16.mxu1 %v6478_v61 }
 0x21f   :  { %4415 = vmatpush1.bf16.msra.mxu0 %v6473_v59  ;;  %4456 = vmatpush1.bf16.msra.mxu1 %v6476_v60 }
 0x220   :  { %4416 = vmatprep.subr.bf16.mxu0 %v6481_v63  ;;  %4457 = vmatprep.subr.bf16.mxu1 %v6484_v0 }
 0x223   :  { %4417 = vmatpush1.bf16.msra.mxu0 %v6479_v22  ;;  %4458 = vmatpush1.bf16.msra.mxu1 %v6482_v62 }
 0x224   :  { %4418 = vmatprep.subr.bf16.mxu0 %v6487_v30  ;;  %4459 = vmatprep.subr.bf16.mxu1 %v6490_v31 }
 0x227   :  { %4419 = vmatpush1.bf16.msra.mxu0 %v6485_v32  ;;  %4460 = vmatpush1.bf16.msra.mxu1 %v6488_v33  ;;  %v4490_v33 = vsub.s32 0, %v6674_v46 }
 0x228   :  { %4420 = vmatprep.subr.bf16.mxu0 %v6493_v34  ;;  %4461 = vmatprep.subr.bf16.mxu1 %v6496_v36  ;;  %v4498_v34 = vsub.s32 2, %v6674_v46  ;;  %v4486_v36 = vld [vmem:[%s8440_s2] sm:$0xf] }
 0x22b   :  { %4421 = vmatpush1.bf16.msra.mxu0 %v6491_v37  ;;  %4462 = vmatpush1.bf16.msra.mxu1 %v6494_v41  ;;  %v4494_v37 = vsub.s32 1, %v6674_v46  ;;  %v4502_v41 = vsub.s32 3, %v6674_v46 }
 0x22c   :  { %4422 = vmatprep.subr.bf16.mxu0 %v6499_v17  ;;  %4463 = vmatprep.subr.bf16.mxu1 %v6502_v18  ;;  %v4491_v17 = vrot.slane %v4486_v36, %v4490_v33  ;;  %v4499_v18 = vrot.slane %v4486_v36, %v4498_v34 }
 0x22f   :  { %4423 = vmatpush1.bf16.msra.mxu0 %v6497_v43  ;;  %4464 = vmatpush1.bf16.msra.mxu1 %v6500_v44 }
 0x230   :  { %4424 = vmatprep.subr.bf16.mxu0 %v6505_v23  ;;  %4465 = vmatprep.subr.bf16.mxu1 %v6508_v24  ;;  %v4495_v23 = vrot.slane %v4486_v36, %v4494_v37  ;;  %v4503_v24 = vrot.slane %v4486_v36, %v4502_v41 }
 0x233   :  { %4425 = vmatpush1.bf16.msra.mxu0 %v6503_v45  ;;  %4466 = vmatpush1.bf16.msra.mxu1 %v6506_v47 }
 0x234   :  { %4426 = vmatprep.subr.bf16.mxu0 %v6511_v48  ;;  %4467 = vmatprep.subr.bf16.mxu1 %v6514_v20 }
 0x237   :  { %4427 = vmatpush1.bf16.msra.mxu0 %v6509_v49  ;;  %4468 = vmatpush1.bf16.msra.mxu1 %v6512_v50 }
 0x238   :  { %4428 = vmatprep.subr.bf16.mxu0 %v6517_v52  ;;  %4469 = vmatprep.subr.bf16.mxu1 %v6520_v53 }
 0x23b   :  { %4429 = vmatpush1.bf16.msra.mxu0 %v6515_v28  ;;  %4470 = vmatpush1.bf16.msra.mxu1 %v6518_v56 }
 0x23c   :  { %4430 = vmatprep.subr.bf16.mxu0 %v6523_v57  ;;  %4471 = vmatprep.subr.bf16.mxu1 %v6526_v1 }
 0x23f   :  { %4431 = vmatpush1.bf16.msra.mxu0 %v6521_v2  ;;  %4472 = vmatpush1.bf16.msra.mxu1 %v6524_v35 }
 0x242   :  { %4433 = vmatmul.mubr.bf16.vlgmr.msra.gmra.mrb[32].mxu0 %v4070_v21  ;;  %4474 = vmatmul.mubr.bf16.vlgmr.msra.gmra.mrb[32].mxu1 %v4070_v21 }
 0x255   :  { %v2940_v3 = vpop.f32.mrb[20].mxu0  ;;  %v2981_v4 = vpop.f32.mrb[20].mxu1 }
 0x256   :  { %v2988_v38 = vadd.f32 %v2940_v3, %v8295_v12  ;;  %v2990_v39 = vadd.f32 %v2981_v4, %v8298_v13  ;;  %v2942_v5 = vpop.f32.mrb[21].mxu0  ;;  %v2983_v6 = vpop.f32.mrb[21].mxu1 }
 0x257   :  { %v2989_v7 = vadd.f32 %v2942_v5, %v8301_v16  ;;  %v2991_v8 = vadd.f32 %v2983_v6, %v8304_v19  ;;  %v2944_v9 = vpop.f32.mrb[22].mxu0  ;;  %v2985_v40 = vpop.f32.mrb[22].mxu1 }
 0x258   :  { %v2945_v10 = vpop.f32.mrb[23].mxu0  ;;  %v2986_v42 = vpop.f32.mrb[23].mxu1 }
 0x295   :  { %v3438_v11 = vpop.f32.mrb[24].mxu0  ;;  %v3479_v14 = vpop.f32.mrb[24].mxu1 }
 0x296   :  { %v3486_v15 = vadd.f32 %v3438_v11, %v2988_v38  ;;  %v3488_v25 = vadd.f32 %v3479_v14, %v2990_v39  ;;  %v3440_v26 = vpop.f32.mrb[25].mxu0  ;;  %v3481_v54 = vpop.f32.mrb[25].mxu1 }
 0x297   :  { %v3487_v55 = vadd.f32 %v3440_v26, %v2989_v7  ;;  %v3489_v12 = vadd.f32 %v3481_v54, %v2991_v8  ;;  %v3442_v27 = vpop.f32.mrb[26].mxu0  ;;  %v3483_v13 = vpop.f32.mrb[26].mxu1 }
 0x298   :  { %v3443_v29 = vpop.f32.mrb[27].mxu0  ;;  %v3484_v58 = vpop.f32.mrb[27].mxu1 }
 0x2d5   :  { %v3936_v61 = vpop.f32.mrb[28].mxu0  ;;  %v3977_v16 = vpop.f32.mrb[28].mxu1 }
 0x2d6   :  { %v3984_v59 = vadd.f32 %v3936_v61, %v3486_v15  ;;  %v3986_v19 = vadd.f32 %v3977_v16, %v3488_v25  ;;  %v3938_v60 = vpop.f32.mrb[29].mxu0  ;;  %v3979_v63 = vpop.f32.mrb[29].mxu1 }
 0x2d7   :  { %v3985_v0 = vadd.f32 %v3938_v60, %v3487_v55  ;;  %v3987_v22 = vadd.f32 %v3979_v63, %v3489_v12  ;;  %v3940_v62 = vpop.f32.mrb[30].mxu0  ;;  %v3981_v30 = vpop.f32.mrb[30].mxu1 }
 0x2d8   :  { %v3941_v31 = vpop.f32.mrb[31].mxu0  ;;  %v3982_v32 = vpop.f32.mrb[31].mxu1 }
 0x315   :  { %v4434_v43 = vpop.f32.mrb[32].mxu0  ;;  %v4475_v44 = vpop.f32.mrb[32].mxu1 }
 0x316   :  { %v4482_v45 = vadd.f32 %v4434_v43, %v3984_v59  ;;  %v4484_v47 = vadd.f32 %v4475_v44, %v3986_v19  ;;  %v4436_v48 = vpop.f32.mrb[33].mxu0  ;;  %v4477_v20 = vpop.f32.mrb[33].mxu1 }
 0x317   :  { %v4483_v49 = vadd.f32 %v4436_v48, %v3985_v0  ;;  %v4485_v50 = vadd.f32 %v4477_v20, %v3987_v22  ;;  %v4438_v52 = vpop.f32.mrb[34].mxu0  ;;  %v4479_v53 = vpop.f32.mrb[34].mxu1 }
 0x318   :  { %v4508_v28 = vadd.f32 %v4491_v17, %v4482_v45  ;;  %v4510_v56 = vadd.f32 %v4499_v18, %v4484_v47  ;;  %v4439_v57 = vpop.f32.mrb[35].mxu0  ;;  %v4480_v1 = vpop.f32.mrb[35].mxu1 }
 0x319   :  { %v4509_v2 = vadd.f32 %v4495_v23, %v4483_v49  ;;  %v4511_v46 = vadd.f32 %v4503_v24, %v4485_v50 }
 0x31a   :  { %v4512_v35 = vmax.f32 %v4508_v28, 0.0  ;;  %v4514_v21 = vmax.f32 %v4510_v56, 0.0 }
 0x31b   :  { %v4513_v3 = vmax.f32 %v4509_v2, 0.0  ;;  %v4515_v4 = vmax.f32 %v4511_v46, 0.0 }
 0x31d   :  { %v5659_v38 = vpack.c.bf16 %v4513_v3, %v4512_v35  ;;  %v5660_v39 = vpack.c.bf16 %v4515_v4, %v4514_v21 }
 0x31f   :  { %v4532_v5 = vrot.slane %v5659_v38, %v6689_v51  ;;  %v4539_v6 = vrot.slane %v5660_v39, %v6689_v51 }
 0x321   :  { %v4540_v7 = vcombine.low %v4532_v5, %v4539_v6 }
 0x323   :  { %5661 = vst.sshfl [vmem:[%s8441_s3] sm:$0x55 pattern:$0x73625140] %v4540_v7 }

// kernel: autoencoder_forward.14
= control target key start
LH: loop header
LB: loop body
LE: loop exit
PB: predicated region body
PF: predicated region fallthrough
CT: control target
= control target key end

     0   :  { %vm171_vm0 = vcmask 519168   ;;  %s1984_s10 = smov 64   ;;  %vm469_vm1 = vcmask 1043968   ;;  %s2368_s1 = inlined_call_operand.vmem [shape: bf16[9,128,64], index: 1, kind: input, shape index: {}]   ;;  %s2369_s0 = inlined_call_operand.vmem [shape: bf16[4,32,128], index: 0, kind: input, shape index: {}]   ;;  %s2370_s2 = inlined_call_operand.vmem [shape: f32[1,64], index: 2, kind: input, shape index: {}]   ;;  %s2371_s3 = inlined_call_operand.vmem [shape: bf16[32,256], index: 3, kind: output, shape index: {}]  }
   0x1   :  { %v1894_v0 = vld [vmem:[%s2368_s1] sm:$0xff]   ;;  %v1896_v2 = vld [vmem:[%s2368_s1 + $0x8] sm:$0xff]   ;;  %v1898_v4 = vld [vmem:[%s2368_s1 + $0x10] sm:$0xff]  }
   0x2   :  { %v1895_v1 = vld [vmem:[%s2368_s1 + $0x40] sm:$0xff]   ;;  %1693 = vmatprep.subr.bf16.mxu0 %v1894_v0  ;;  %v1897_v3 = vld [vmem:[%s2368_s1 + $0x48] sm:$0xff]   ;;  %v1899_v5 = vld [vmem:[%s2368_s1 + $0x50] sm:$0xff]  }
   0x3   :  { %1733 = vmatprep.subr.bf16.mxu1 %v1895_v1  ;;  %1694 = vmatpush3.bf16.msra.mxu0 %v1894_v0  ;;  %v1900_v6 = vld [vmem:[%s2368_s1 + $0x18] sm:$0xff]   ;;  %v1902_v8 = vld [vmem:[%s2368_s1 + $0x20] sm:$0xff]   ;;  %v1904_v10 = vld [vmem:[%s2368_s1 + $0x28] sm:$0xff]  }
   0x4   :  { %1734 = vmatpush3.bf16.msra.mxu1 %v1895_v1  ;;  %1695 = vmatprep.subr.bf16.mxu0 %v1896_v2  ;;  %v1901_v7 = vld [vmem:[%s2368_s1 + $0x58] sm:$0xff]   ;;  %v1903_v9 = vld [vmem:[%s2368_s1 + $0x60] sm:$0xff]   ;;  %v1905_v11 = vld [vmem:[%s2368_s1 + $0x68] sm:$0xff]  }
   0x5   :  { %1735 = vmatprep.subr.bf16.mxu1 %v1897_v3  ;;  %v1910_v12 = vld [vmem:[%s2369_s0] sm:$0xff]   ;;  %v1906_v14 = vld [vmem:[%s2368_s1 + $0x30] sm:$0xff]   ;;  %v1908_v16 = vld [vmem:[%s2368_s1 + $0x38] sm:$0xff]  }
   0x6   :  { %v1911_v13 = vld [vmem:[%s2369_s0] sm:$0xff]   ;;  %1749 = vmatprep.mubr.bf16.mxu1 %v1910_v12  ;;  %v1907_v15 = vld [vmem:[%s2368_s1 + $0x70] sm:$0xff]   ;;  %v1909_v17 = vld [vmem:[%s2368_s1 + $0x78] sm:$0xff]  }
   0x7   :  { %1696 = vmatpush3.bf16.msra.mxu0 %v1896_v2  ;;  %1709 = vmatprep.mubr.bf16.mxu0 %v1911_v13  ;;  %v1912_v18 = vld [vmem:[%s2368_s1 + $0x80] sm:$0xff]   ;;  %v1915_v20 = vld [vmem:[%s2369_s0 + $0x8] sm:$0xff]   ;;  %v1918_v24 = vld [vmem:[%s2368_s1 + $0x90] sm:$0xff]  }
   0x8   :  { %1736 = vmatpush3.bf16.msra.mxu1 %v1897_v3  ;;  %1697 = vmatprep.subr.bf16.mxu0 %v1898_v4  ;;  %v1914_v19 = vld [vmem:[%s2368_s1 + $0x180] sm:$0xff]   ;;  %v1913_v21 = vld [vmem:[%s2369_s0 + $0x8] sm:$0xff]   ;;  %v1930_v25 = vld [vmem:[%s2369_s0 + $0x10] sm:$0xff]  }
   0x9   :  { %1737 = vmatprep.subr.bf16.mxu1 %v1899_v5  ;;  %v1916_v22 = vld [vmem:[%s2368_s1 + $0x88] sm:$0xff]   ;;  %v1919_v26 = vld [vmem:[%s2368_s1 + $0x190] sm:$0xff]   ;;  %v1920_v28 = vld [vmem:[%s2368_s1 + $0x98] sm:$0xff]  }
   0xa   :  { %v1917_v23 = vld [vmem:[%s2368_s1 + $0x188] sm:$0xff]   ;;  %v1932_v27 = vld [vmem:[%s2369_s0 + $0x10] sm:$0xff]   ;;  %v1921_v29 = vld [vmem:[%s2368_s1 + $0x198] sm:$0xff]  }
   0xb   :  { %1698 = vmatpush3.bf16.msra.mxu0 %v1898_v4  ;;  %v1922_v30 = vld [vmem:[%s2368_s1 + $0xa0] sm:$0xff]   ;;  %v1924_v32 = vld [vmem:[%s2368_s1 + $0xa8] sm:$0xff]   ;;  %v1926_v34 = vld [vmem:[%s2368_s1 + $0xb0] sm:$0xff]  }
   0xc   :  { %1738 = vmatpush3.bf16.msra.mxu1 %v1899_v5  ;;  %1699 = vmatprep.subr.bf16.mxu0 %v1900_v6  ;;  %v1923_v31 = vld [vmem:[%s2368_s1 + $0x1a0] sm:$0xff]   ;;  %v1925_v33 = vld [vmem:[%s2368_s1 + $0x1a8] sm:$0xff]   ;;  %v1927_v35 = vld [vmem:[%s2368_s1 + $0x1b0] sm:$0xff]  }
   0xd   :  { %1739 = vmatprep.subr.bf16.mxu1 %v1901_v7  ;;  %v1928_v36 = vld [vmem:[%s2368_s1 + $0xb8] sm:$0xff]   ;;  %v1933_v38 = vld [vmem:[%s2368_s1 + $0x140] sm:$0xff]   ;;  %v1935_v42 = vld [vmem:[%s2368_s1 + $0x148] sm:$0xff]  }
   0xe   :  { %v1929_v37 = vld [vmem:[%s2368_s1 + $0x1b8] sm:$0xff]   ;;  %v1942_v41 = vld [vmem:[%s2369_s0] sm:$0xff]   ;;  %v1936_v43 = vld [vmem:[%s2368_s1 + $0x150] sm:$0xff]  }
   0xf   :  { %1700 = vmatpush3.bf16.msra.mxu0 %v1900_v6  ;;  %v1931_v39 = vld [vmem:[%s2369_s0 + $0x18] sm:$0xff]   ;;  %v1964_v44 = vld [vmem:[%s2368_s1 + $0x100] sm:$0xff]   ;;  %v1965_v45 = vld [vmem:[%s2368_s1 + $0x108] sm:$0xff]  }
  0x10   :  { %1740 = vmatpush3.bf16.msra.mxu1 %v1901_v7  ;;  %1701 = vmatprep.subr.bf16.mxu0 %v1902_v8  ;;  %v1934_v40 = vld [vmem:[%s2369_s0 + $0x18] sm:$0xff]   ;;  %v1966_v47 = vld [vmem:[%s2368_s1 + $0x110] sm:$0xff]   ;;  %v1938_v48 = vld [vmem:[%s2368_s1 + $0x160] sm:$0xff]  }
  0x11   :  { %1741 = vmatprep.subr.bf16.mxu1 %v1903_v9  ;;  %v1937_v46 = vld [vmem:[%s2368_s1 + $0x158] sm:$0xff]   ;;  %v1972_v50 = vld [vmem:[%s2369_s0 + $0x20] sm:$0xff]   ;;  %v1939_v51 = vld [vmem:[%s2368_s1 + $0x168] sm:$0xff]  }
  0x12   :  { %v1967_v49 = vld [vmem:[%s2368_s1 + $0x118] sm:$0xff]   ;;  %v1968_v52 = vld [vmem:[%s2368_s1 + $0x120] sm:$0xff]   ;;  %v1940_v53 = vld [vmem:[%s2368_s1 + $0x170] sm:$0xff]  }
  0x13   :  { %1702 = vmatpush3.bf16.msra.mxu0 %v1902_v8  ;;  %v1969_v54 = vld [vmem:[%s2368_s1 + $0x128] sm:$0xff]   ;;  %v1941_v55 = vld [vmem:[%s2368_s1 + $0x178] sm:$0xff]   ;;  %v1970_v56 = vld [vmem:[%s2368_s1 + $0x130] sm:$0xff]  }
  0x14   :  { %1742 = vmatpush3.bf16.msra.mxu1 %v1903_v9  ;;  %1703 = vmatprep.subr.bf16.mxu0 %v1904_v10  ;;  %v1943_v57 = vld [vmem:[%s2368_s1 + $0x1c0] sm:$0xff]   ;;  %v1971_v58 = vld [vmem:[%s2368_s1 + $0x138] sm:$0xff]   ;;  %v1944_v59 = vld [vmem:[%s2369_s0 + $0x8] sm:$0xff]  }
  0x15   :  { %1743 = vmatprep.subr.bf16.mxu1 %v1905_v11  ;;  %v1952_v60 = vld [vmem:[%s2369_s0 + $0x20] sm:$0xff]   ;;  %v1945_v61 = vld [vmem:[%s2368_s1 + $0x1c8] sm:$0xff]   ;;  %v1946_v0 = vld [vmem:[%s2368_s1 + $0x1d0] sm:$0xff]  }
  0x16   :  { %v1973_v62 = vld [vmem:[%s2368_s1 + $0xc0] sm:$0xff]   ;;  %v1974_v63 = vld [vmem:[%s2369_s0 + $0x28] sm:$0xff]   ;;  %v1947_v2 = vld [vmem:[%s2368_s1 + $0x1d8] sm:$0xff]  }
  0x17   :  { %1704 = vmatpush3.bf16.msra.mxu0 %v1904_v10  ;;  %v1975_v1 = vld [vmem:[%s2368_s1 + $0xc8] sm:$0xff]   ;;  %v1976_v3 = vld [vmem:[%s2368_s1 + $0xd0] sm:$0xff]   ;;  %v1948_v4 = vld [vmem:[%s2368_s1 + $0x1e0] sm:$0xff]  }
  0x18   :  { %1744 = vmatpush3.bf16.msra.mxu1 %v1905_v11  ;;  %1705 = vmatprep.subr.bf16.mxu0 %v1906_v14  ;;  %v1977_v5 = vld [vmem:[%s2368_s1 + $0xd8] sm:$0xff]   ;;  %v1949_v6 = vld [vmem:[%s2368_s1 + $0x1e8] sm:$0xff]   ;;  %v1978_v7 = vld [vmem:[%s2368_s1 + $0xe0] sm:$0xff]  }
  0x19   :  { %1745 = vmatprep.subr.bf16.mxu1 %v1907_v15  ;;  %v1982_v8 = vld [vmem:[%s2369_s0] sm:$0xff]   ;;  %v1950_v9 = vld [vmem:[%s2368_s1 + $0x1f0] sm:$0xff]   ;;  %v1979_v10 = vld [vmem:[%s2368_s1 + $0xe8] sm:$0xff]  }
  0x1a   :  { %v1951_v11 = vld [vmem:[%s2368_s1 + $0x1f8] sm:$0xff]   ;;  %v1980_v12 = vld [vmem:[%s2368_s1 + $0xf0] sm:$0xff]   ;;  %v1953_v13 = vld [vmem:[%s2368_s1 + $0x200] sm:$0xff]  }
  0x1b   :  { %1706 = vmatpush3.bf16.msra.mxu0 %v1906_v14  ;;  %v1981_v14 = vld [vmem:[%s2368_s1 + $0xf8] sm:$0xff]  }
  0x1c   :  { %1746 = vmatpush3.bf16.msra.mxu1 %v1907_v15  ;;  %1707 = vmatprep.subr.bf16.mxu0 %v1908_v16  ;;  %v1954_v15 = vld [vmem:[%s2369_s0 + $0x28] sm:$0xff]  }
  0x1d   :  { %1747 = vmatprep.subr.bf16.mxu1 %v1909_v17 }
  0x1f   :  { %1708 = vmatpush3.bf16.msra.mxu0 %v1908_v16  ;;  %v1962_v16 = vld [vmem:[%s2369_s0 + $0x30] sm:$0xff]  }
  0x20   :  { %1748 = vmatpush3.bf16.msra.mxu1 %v1909_v17  ;;  %1713 = vmatprep.subr.bf16.mxu0 %v1912_v18  ;;  %v1955_v17 = vld [vmem:[%s2368_s1 + $0x208] sm:$0xff]  }
  0x21   :  { %1793 = vmatprep.subr.bf16.mxu1 %v1914_v19 }
  0x22   :  { %1710 = vmatmul.mubr.bf16.vlgmr.msra.gmra.mrb[0].mxu0 %v1915_v20  ;;  %v1957_v20 = vld [vmem:[%s2368_s1 + $0x218] sm:$0xff]  }
  0x23   :  { %1750 = vmatmul.mubr.bf16.vlgmr.msra.gmra.mrb[0].mxu1 %v1913_v21  ;;  %1714 = vmatpush3.bf16.msra.mxu0 %v1912_v18  ;;  %v1983_v18 = vld [vmem:[%s2369_s0 + $0x8] sm:$0xff]   ;;  %v1958_v21 = vld [vmem:[%s2368_s1 + $0x220] sm:$0xff]  }
  0x24   :  { %1794 = vmatpush3.bf16.msra.mxu1 %v1914_v19  ;;  %1715 = vmatprep.subr.bf16.mxu0 %v1916_v22  ;;  %v1956_v19 = vld [vmem:[%s2368_s1 + $0x210] sm:$0xff]  }
  0x25   :  { %1795 = vmatprep.subr.bf16.mxu1 %v1917_v23  ;;  %1729 = vmatprep.mubr.bf16.mxu0 %v1930_v25  ;;  %v1963_v25 = vld [vmem:[%s2369_s0 + $0x38] sm:$0xff]  }
  0x26   :  { %1809 = vmatprep.mubr.bf16.mxu1 %v1932_v27  ;;  %v2278_v27 = vld [vmem:[%s2370_s2] ss:$0 sm:$0xff] }
  0x27   :  { %1716 = vmatpush3.bf16.msra.mxu0 %v1916_v22  ;;  %v1959_v22 = vld [vmem:[%s2368_s1 + $0x228] sm:$0xff]  }
  0x28   :  { %1796 = vmatpush3.bf16.msra.mxu1 %v1917_v23  ;;  %1717 = vmatprep.subr.bf16.mxu0 %v1918_v24  ;;  %v1960_v23 = vld [vmem:[%s2368_s1 + $0x230] sm:$0xff]  }
  0x29   :  { %1797 = vmatprep.subr.bf16.mxu1 %v1919_v26 }
  0x2b   :  { %1718 = vmatpush3.bf16.msra.mxu0 %v1918_v24  ;;  %v1961_v24 = vld [vmem:[%s2368_s1 + $0x238] sm:$0xff]  }
  0x2c   :  { %1798 = vmatpush3.bf16.msra.mxu1 %v1919_v26  ;;  %1719 = vmatprep.subr.bf16.mxu0 %v1920_v28 }
  0x2d   :  { %1799 = vmatprep.subr.bf16.mxu1 %v1921_v29 }
  0x2f   :  { %1720 = vmatpush3.bf16.msra.mxu0 %v1920_v28 }
  0x30   :  { %1800 = vmatpush3.bf16.msra.mxu1 %v1921_v29  ;;  %1721 = vmatprep.subr.bf16.mxu0 %v1922_v30 }
  0x31   :  { %1801 = vmatprep.subr.bf16.mxu1 %v1923_v31 }
  0x33   :  { %1722 = vmatpush3.bf16.msra.mxu0 %v1922_v30 }
  0x34   :  { %1802 = vmatpush3.bf16.msra.mxu1 %v1923_v31  ;;  %1723 = vmatprep.subr.bf16.mxu0 %v1924_v32 }
  0x35   :  { %1803 = vmatprep.subr.bf16.mxu1 %v1925_v33 }
  0x37   :  { %1724 = vmatpush3.bf16.msra.mxu0 %v1924_v32 }
  0x38   :  { %1804 = vmatpush3.bf16.msra.mxu1 %v1925_v33  ;;  %1725 = vmatprep.subr.bf16.mxu0 %v1926_v34 }
  0x39   :  { %1805 = vmatprep.subr.bf16.mxu1 %v1927_v35 }
  0x3b   :  { %1726 = vmatpush3.bf16.msra.mxu0 %v1926_v34 }
  0x3c   :  { %1806 = vmatpush3.bf16.msra.mxu1 %v1927_v35  ;;  %1727 = vmatprep.subr.bf16.mxu0 %v1928_v36 }
  0x3d   :  { %1807 = vmatprep.subr.bf16.mxu1 %v1929_v37 }
  0x3f   :  { %1728 = vmatpush3.bf16.msra.mxu0 %v1928_v36 }
  0x40   :  { %1808 = vmatpush3.bf16.msra.mxu1 %v1929_v37  ;;  %1753 = vmatprep.subr.bf16.mxu0 %v1964_v44 }
  0x41   :  { %1813 = vmatprep.subr.bf16.mxu1 %v1933_v38 }
  0x42   :  { %1730 = vmatmul.mubr.bf16.vlgmr.msra.gmra.mrb[4].mxu0 %v1931_v39 }
  0x43   :  { %1810 = vmatmul.mubr.bf16.vlgmr.msra.gmra.mrb[4].mxu1 %v1934_v40  ;;  %1754 = vmatpush3.bf16.msra.mxu0 %v1964_v44 }
  0x44   :  { %1814 = vmatpush3.bf16.msra.mxu1 %v1933_v38  ;;  %1829 = vmatprep.mubr.bf16.mxu1 %v1942_v41 }
  0x45   :  { %1815 = vmatprep.subr.bf16.mxu1 %v1935_v42  ;;  %1755 = vmatprep.subr.bf16.mxu0 %v1965_v45 }
  0x46   :  { %1769 = vmatprep.mubr.bf16.mxu0 %v1972_v50 }
  0x47   :  { %1756 = vmatpush3.bf16.msra.mxu0 %v1965_v45 }
  0x48   :  { %1816 = vmatpush3.bf16.msra.mxu1 %v1935_v42  ;;  %1757 = vmatprep.subr.bf16.mxu0 %v1966_v47 }
  0x49   :  { %1817 = vmatprep.subr.bf16.mxu1 %v1936_v43 }
  0x4b   :  { %1758 = vmatpush3.bf16.msra.mxu0 %v1966_v47 }
  0x4c   :  { %1818 = vmatpush3.bf16.msra.mxu1 %v1936_v43  ;;  %1759 = vmatprep.subr.bf16.mxu0 %v1967_v49 }
  0x4d   :  { %1819 = vmatprep.subr.bf16.mxu1 %v1937_v46 }
  0x4f   :  { %1760 = vmatpush3.bf16.msra.mxu0 %v1967_v49 }
  0x50   :  { %1820 = vmatpush3.bf16.msra.mxu1 %v1937_v46  ;;  %1761 = vmatprep.subr.bf16.mxu0 %v1968_v52 }
  0x51   :  { %1821 = vmatprep.subr.bf16.mxu1 %v1938_v48 }
  0x53   :  { %1762 = vmatpush3.bf16.msra.mxu0 %v1968_v52 }
  0x54   :  { %1822 = vmatpush3.bf16.msra.mxu1 %v1938_v48  ;;  %1763 = vmatprep.subr.bf16.mxu0 %v1969_v54 }
  0x55   :  { %1823 = vmatprep.subr.bf16.mxu1 %v1939_v51 }
  0x57   :  { %1764 = vmatpush3.bf16.msra.mxu0 %v1969_v54 }
  0x58   :  { %1824 = vmatpush3.bf16.msra.mxu1 %v1939_v51  ;;  %1765 = vmatprep.subr.bf16.mxu0 %v1970_v56 }
  0x59   :  { %1825 = vmatprep.subr.bf16.mxu1 %v1940_v53 }
  0x5b   :  { %1766 = vmatpush3.bf16.msra.mxu0 %v1970_v56 }
  0x5c   :  { %1826 = vmatpush3.bf16.msra.mxu1 %v1940_v53  ;;  %1767 = vmatprep.subr.bf16.mxu0 %v1971_v58 }
  0x5d   :  { %1827 = vmatprep.subr.bf16.mxu1 %v1941_v55 }
  0x5f   :  { %1768 = vmatpush3.bf16.msra.mxu0 %v1971_v58 }
  0x60   :  { %1828 = vmatpush3.bf16.msra.mxu1 %v1941_v55  ;;  %1773 = vmatprep.subr.bf16.mxu0 %v1973_v62 }
  0x61   :  { %1833 = vmatprep.subr.bf16.mxu1 %v1943_v57 }
  0x62   :  { %1770 = vmatmul.mubr.bf16.vlgmr.msra.gmra.mrb[8].mxu0 %v1974_v63 }
  0x63   :  { %1830 = vmatmul.mubr.bf16.vlgmr.msra.gmra.mrb[4].mxu1 %v1944_v59  ;;  %1774 = vmatpush3.bf16.msra.mxu0 %v1973_v62 }
  0x64   :  { %1834 = vmatpush3.bf16.msra.mxu1 %v1943_v57  ;;  %1849 = vmatprep.mubr.bf16.mxu1 %v1952_v60 }
  0x65   :  { %1835 = vmatprep.subr.bf16.mxu1 %v1945_v61  ;;  %1775 = vmatprep.subr.bf16.mxu0 %v1975_v1 }
  0x66   :  { %1789 = vmatprep.mubr.bf16.mxu0 %v1982_v8 }
  0x67   :  { %1776 = vmatpush3.bf16.msra.mxu0 %v1975_v1 }
  0x68   :  { %1836 = vmatpush3.bf16.msra.mxu1 %v1945_v61  ;;  %1777 = vmatprep.subr.bf16.mxu0 %v1976_v3 }
  0x69   :  { %1837 = vmatprep.subr.bf16.mxu1 %v1946_v0 }
  0x6b   :  { %1778 = vmatpush3.bf16.msra.mxu0 %v1976_v3 }
  0x6c   :  { %1838 = vmatpush3.bf16.msra.mxu1 %v1946_v0  ;;  %1779 = vmatprep.subr.bf16.mxu0 %v1977_v5 }
  0x6d   :  { %1839 = vmatprep.subr.bf16.mxu1 %v1947_v2 }
  0x6f   :  { %1780 = vmatpush3.bf16.msra.mxu0 %v1977_v5 }
  0x70   :  { %1840 = vmatpush3.bf16.msra.mxu1 %v1947_v2  ;;  %1781 = vmatprep.subr.bf16.mxu0 %v1978_v7 }
  0x71   :  { %1841 = vmatprep.subr.bf16.mxu1 %v1948_v4 }
  0x73   :  { %1782 = vmatpush3.bf16.msra.mxu0 %v1978_v7 }
  0x74   :  { %1842 = vmatpush3.bf16.msra.mxu1 %v1948_v4  ;;  %1783 = vmatprep.subr.bf16.mxu0 %v1979_v10 }
  0x75   :  { %1843 = vmatprep.subr.bf16.mxu1 %v1949_v6 }
  0x77   :  { %1784 = vmatpush3.bf16.msra.mxu0 %v1979_v10 }
  0x78   :  { %1844 = vmatpush3.bf16.msra.mxu1 %v1949_v6  ;;  %1785 = vmatprep.subr.bf16.mxu0 %v1980_v12 }
  0x79   :  { %1845 = vmatprep.subr.bf16.mxu1 %v1950_v9 }
  0x7b   :  { %1786 = vmatpush3.bf16.msra.mxu0 %v1980_v12 }
  0x7c   :  { %1846 = vmatpush3.bf16.msra.mxu1 %v1950_v9  ;;  %1787 = vmatprep.subr.bf16.mxu0 %v1981_v14 }
  0x7d   :  { %1847 = vmatprep.subr.bf16.mxu1 %v1951_v11 }
  0x7f   :  { %1788 = vmatpush3.bf16.msra.mxu0 %v1981_v14 }
  0x80   :  { %1848 = vmatpush3.bf16.msra.mxu1 %v1951_v11 }
  0x81   :  { %1853 = vmatprep.subr.bf16.mxu1 %v1953_v13 }
  0x82   :  { %1790 = vmatmul.mubr.bf16.vlgmr.msra.gmra.mrb[8].mxu0 %v1983_v18 }
  0x83   :  { %1850 = vmatmul.mubr.bf16.vlgmr.msra.gmra.mrb[4].mxu1 %v1954_v15 }
  0x84   :  { %1854 = vmatpush3.bf16.msra.mxu1 %v1953_v13  ;;  %1869 = vmatprep.mubr.bf16.mxu1 %v1962_v16 }
  0x85   :  { %1855 = vmatprep.subr.bf16.mxu1 %v1955_v17 }
  0x88   :  { %1856 = vmatpush3.bf16.msra.mxu1 %v1955_v17 }
  0x89   :  { %1857 = vmatprep.subr.bf16.mxu1 %v1956_v19 }
  0x8c   :  { %1858 = vmatpush3.bf16.msra.mxu1 %v1956_v19 }
  0x8d   :  { %1859 = vmatprep.subr.bf16.mxu1 %v1957_v20 }
  0x90   :  { %1860 = vmatpush3.bf16.msra.mxu1 %v1957_v20 }
  0x91   :  { %1861 = vmatprep.subr.bf16.mxu1 %v1958_v21 }
  0x94   :  { %1862 = vmatpush3.bf16.msra.mxu1 %v1958_v21 }
  0x95   :  { %1863 = vmatprep.subr.bf16.mxu1 %v1959_v22 }
  0x98   :  { %1864 = vmatpush3.bf16.msra.mxu1 %v1959_v22 }
  0x99   :  { %1865 = vmatprep.subr.bf16.mxu1 %v1960_v23 }
  0x9c   :  { %1866 = vmatpush3.bf16.msra.mxu1 %v1960_v23 }
  0x9d   :  { %1867 = vmatprep.subr.bf16.mxu1 %v1961_v24 }
  0xa0   :  { %1868 = vmatpush3.bf16.msra.mxu1 %v1961_v24 }
  0xa3   :  { %1870 = vmatmul.mubr.bf16.vlgmr.msra.gmra.mrb[4].mxu1 %v1963_v25 }
  0xf5   :  { %v1711_v26 = vpop.f32.mrb[0].mxu0 }
  0xf6   :  { %v1751_v28 = vpop.f32.mrb[0].mxu1  ;;  %v145_v29 = vadd.f32 %v1711_v26, %v2278_v27  ;;  %v136_v30 = vpop.f32.mrb[1].mxu0 }
  0xf7   :  { %v422_v31 = vpop.f32.mrb[1].mxu1  ;;  %v137_v32 = vadd.f32 %v2278_v27, %v136_v30  ;;  %v1712_v33 = vpop.f32.mrb[2].mxu0 }
  0xf8   :  { %v1752_v34 = vpop.f32.mrb[2].mxu1  ;;  %v153_v35 = vmax.f32 %v145_v29, 0.0  ;;  %v148_v36 = vadd.f32 %v1712_v33, %v2278_v27  ;;  %v139_v37 = vpop.f32.mrb[3].mxu0 }
  0xf9   :  { %v425_v38 = vpop.f32.mrb[3].mxu1  ;;  %v151_v39 = vmax.f32 %v137_v32, 0.0  ;;  %v140_v40 = vadd.f32 %v2278_v27, %v139_v37 }
  0xfa   :  { %v1589_v41 = vpack.c.bf16 %v153_v35, %v153_v35  ;;  %v154_v42 = vmax.f32 %v148_v36, 0.0 }
  0xfb   :  { %v1587_v43 = vpack.c.bf16 %v151_v39, %v151_v39  ;;  %v152_v44 = vmax.f32 %v140_v40, 0.0 }
  0xfc   :  { %174 = vst.msk [vmem:[%s2371_s3 + $0x10] sm:$0xf] %vm171_vm0, %v1589_v41  ;;  %v1590_v45 = vpack.c.bf16 %v154_v42, %v154_v42 }
  0xfd   :  { %172 = vst.msk [vmem:[%s2371_s3] sm:$0xf] %vm171_vm0, %v1587_v43  ;;  %v1588_v46 = vpack.c.bf16 %v152_v44, %v152_v44 }
  0xfe   :  { %175 = vst.msk [vmem:[%s2371_s3 + $0x18] sm:$0xf] %vm171_vm0, %v1590_v45 }
  0xff   :  { %173 = vst.msk [vmem:[%s2371_s3 + $0x8] sm:$0xf] %vm171_vm0, %v1588_v46 }
 0x115   :  { %v1731_v47 = vpop.f32.mrb[4].mxu0 }
 0x116   :  { %v431_v48 = vadd.f32 %v1751_v28, %v1731_v47  ;;  %v313_v49 = vpop.f32.mrb[5].mxu0 }
 0x117   :  { %v423_v50 = vadd.f32 %v422_v31, %v313_v49  ;;  %v1732_v51 = vpop.f32.mrb[6].mxu0 }
 0x118   :  { %v434_v52 = vadd.f32 %v1752_v34, %v1732_v51  ;;  %v316_v53 = vpop.f32.mrb[7].mxu0  ;;  %v439_v54 = vadd.f32 %v2278_v27, %v431_v48 }
 0x119   :  { %v426_v55 = vadd.f32 %v425_v38, %v316_v53  ;;  %v437_v56 = vadd.f32 %v2278_v27, %v423_v50 }
 0x11a   :  { %v440_v57 = vadd.f32 %v2278_v27, %v434_v52  ;;  %v443_v58 = vmax.f32 %v439_v54, 0.0 }
 0x11b   :  { %v438_v59 = vadd.f32 %v2278_v27, %v426_v55  ;;  %v441_v60 = vmax.f32 %v437_v56, 0.0 }
 0x11c   :  { %v444_v61 = vmax.f32 %v440_v57, 0.0  ;;  %v1593_v62 = vpack.c.bf16 %v443_v58, %v443_v58 }
 0x11d   :  { %v442_v63 = vmax.f32 %v438_v59, 0.0  ;;  %v1591_v0 = vpack.c.bf16 %v441_v60, %v441_v60 }
 0x11e   :  { %461 = vrot.lane.b32.xlu1 %v1593_v62, %s1984_s10  ;;  %v1594_v1 = vpack.c.bf16 %v444_v61, %v444_v61 }
 0x11f   :  { %457 = vrot.lane.b32.xlu0 %v1591_v0, %s1984_s10  ;;  %v1592_v2 = vpack.c.bf16 %v442_v63, %v442_v63 }
 0x122   :  { %463 = vrot.lane.b32.xlu1 %v1594_v1, %s1984_s10 }
 0x123   :  { %459 = vrot.lane.b32.xlu0 %v1592_v2, %s1984_s10 }
 0x155   :  { %v1791_v3 = vpop.f32.mrb[8].mxu0 }
 0x156   :  { %v737_v4 = vadd.f32 %v1791_v3, %v2278_v27  ;;  %v720_v5 = vpop.f32.mrb[9].mxu0 }
 0x157   :  { %v735_v6 = vadd.f32 %v2278_v27, %v720_v5  ;;  %v1792_v7 = vpop.f32.mrb[10].mxu0 }
 0x158   :  { %v741_v8 = vmax.f32 %v737_v4, 0.0  ;;  %v738_v9 = vadd.f32 %v1792_v7, %v2278_v27  ;;  %v723_v10 = vpop.f32.mrb[11].mxu0 }
 0x159   :  { %v739_v11 = vmax.f32 %v735_v6, 0.0  ;;  %v736_v12 = vadd.f32 %v2278_v27, %v723_v10 }
 0x15a   :  { %v1597_v13 = vpack.c.bf16 %v741_v8, %v741_v8  ;;  %v742_v14 = vmax.f32 %v738_v9, 0.0 }
 0x15b   :  { %v1595_v15 = vpack.c.bf16 %v739_v11, %v739_v11  ;;  %v740_v16 = vmax.f32 %v736_v12, 0.0 }
 0x15c   :  { %761 = vst.msk [vmem:[%s2371_s3 + $0x14] sm:$0xf] %vm171_vm0, %v1597_v13  ;;  %v1598_v17 = vpack.c.bf16 %v742_v14, %v742_v14 }
 0x15d   :  { %759 = vst.msk [vmem:[%s2371_s3 + $0x4] sm:$0xf] %vm171_vm0, %v1595_v15  ;;  %v1596_v18 = vpack.c.bf16 %v740_v16, %v740_v16 }
 0x15e   :  { %762 = vst.msk [vmem:[%s2371_s3 + $0x1c] sm:$0xf] %vm171_vm0, %v1598_v17 }
 0x15f   :  { %760 = vst.msk [vmem:[%s2371_s3 + $0xc] sm:$0xf] %vm171_vm0, %v1596_v18 }
 0x176   :  { %v1871_v19 = vpop.f32.mrb[4].mxu1 }
 0x177   :  { %v1273_v20 = vpop.f32.mrb[5].mxu1  ;;  %v1294_v21 = vadd.f32 %v1871_v19, %v2278_v27 }
 0x178   :  { %v1292_v22 = vadd.f32 %v2278_v27, %v1273_v20  ;;  %v1872_v23 = vpop.f32.mrb[6].mxu1 }
 0x179   :  { %v1276_v24 = vpop.f32.mrb[7].mxu1  ;;  %v1295_v26 = vadd.f32 %v1872_v23, %v2278_v27  ;;  %v1298_v29 = vmax.f32 %v1294_v21, 0.0 }
 0x17a   :  { %v1296_v25 = vmax.f32 %v1292_v22, 0.0  ;;  %v1293_v28 = vadd.f32 %v2278_v27, %v1276_v24 }
 0x17b   :  { %v1299_v32 = vmax.f32 %v1295_v26, 0.0  ;;  %v1601_v34 = vpack.c.bf16 %v1298_v29, %v1298_v29 }
 0x17c   :  { %v1599_v30 = vpack.c.bf16 %v1296_v25, %v1296_v25  ;;  %v1297_v31 = vmax.f32 %v1293_v28, 0.0 }
 0x17d   :  { %v1602_v35 = vpack.c.bf16 %v1299_v32, %v1299_v32 }
 0x17e   :  { %v1600_v33 = vpack.c.bf16 %v1297_v31, %v1297_v31  ;;  %1312 = vrot.lane.b32.xlu0 %v1599_v30, %s1984_s10 }
 0x180   :  { %1314 = vrot.lane.b32.xlu1 %v1600_v33, %s1984_s10 }
 0x182   :  { %1316 = vrot.lane.b32.xlu0 %v1601_v34, %s1984_s10 }
 0x184   :  { %1318 = vrot.lane.b32.xlu1 %v1602_v35, %s1984_s10 }
 0x190   :  { %v462_v36 = vpop.permute.xlu1 %461 }
 0x191   :  { %472 = vst.msk [vmem:[%s2371_s3 + $0x10] sm:$0xf] %vm469_vm1, %v462_v36  ;;  %v458_v27 = vpop.permute.xlu0 %457 }
 0x192   :  { %470 = vst.msk [vmem:[%s2371_s3] sm:$0xf] %vm469_vm1, %v458_v27 }
 0x194   :  { %v464_v37 = vpop.permute.xlu1 %463 }
 0x195   :  { %473 = vst.msk [vmem:[%s2371_s3 + $0x18] sm:$0xf] %vm469_vm1, %v464_v37  ;;  %v460_v38 = vpop.permute.xlu0 %459 }
 0x196   :  { %471 = vst.msk [vmem:[%s2371_s3 + $0x8] sm:$0xf] %vm469_vm1, %v460_v38 }
 0x1f0   :  { %v1313_v39 = vpop.permute.xlu0 %1312 }
 0x1f1   :  { %1324 = vst.msk [vmem:[%s2371_s3 + $0x4] sm:$0xf] %vm469_vm1, %v1313_v39 }
 0x1f2   :  { %v1315_v40 = vpop.permute.xlu1 %1314 }
 0x1f3   :  { %1325 = vst.msk [vmem:[%s2371_s3 + $0xc] sm:$0xf] %vm469_vm1, %v1315_v40 }
 0x1f4   :  { %v1317_v41 = vpop.permute.xlu0 %1316 }
 0x1f5   :  { %1326 = vst.msk [vmem:[%s2371_s3 + $0x14] sm:$0xf] %vm469_vm1, %v1317_v41 }
 0x1f6   :  { %v1319_v42 = vpop.permute.xlu1 %1318 }
 0x1f7   :  { %1327 = vst.msk [vmem:[%s2371_s3 + $0x1c] sm:$0xf] %vm469_vm1, %v1319_v42 }

// kernel: autoencoder_forward.12
= control target key start
LH: loop header
LB: loop body
LE: loop exit
PB: predicated region body
PF: predicated region fallthrough
CT: control target
= control target key end

     0   :  { %v81_v38 = vlaneseq  ;;  %v6588_v39 = vmov 1966171168   ;;  %s8498_s1 = inlined_call_operand.vmem [shape: bf16[9,512,256], index: 1, kind: input, shape index: {}]   ;;  %s8499_s0 = inlined_call_operand.vmem [shape: bf16[4,2,512], index: 0, kind: input, shape index: {}]   ;;  %s8500_s2 = inlined_call_operand.vmem [shape: f32[1,256], index: 2, kind: input, shape index: {}]   ;;  %s8501_s3 = inlined_call_operand.vmem [shape: bf16[2,1024], index: 3, kind: output, shape index: {}]  }
   0x1   :  { %v5724_v0 = vld [vmem:[%s8498_s1 + $0x4] ss:$8 sps:$4 sm:$0xff]   ;;  %v5728_v2 = vld [vmem:[%s8498_s1] ss:$8 sps:$4 sm:$0xff]   ;;  %v5730_v4 = vld [vmem:[%s8498_s1 + $0x14] ss:$8 sps:$4 sm:$0xff]   ;;  %v101_v40 = vunpack.c.l.s4 %v6588_v39 }
   0x2   :  { %v5726_v1 = vld [vmem:[%s8498_s1 + $0x404] ss:$8 sps:$4 sm:$0xff]   ;;  %440 = vmatprep.subr.bf16.mxu0 %v5724_v0  ;;  %v5729_v3 = vld [vmem:[%s8498_s1 + $0x400] ss:$8 sps:$4 sm:$0xff]   ;;  %v5732_v5 = vld [vmem:[%s8498_s1 + $0x414] ss:$8 sps:$4 sm:$0xff]  }
   0x3   :  { %1027 = vmatprep.subr.bf16.mxu1 %v5726_v1  ;;  %441 = vmatpush1.bf16.msra.mxu0 %v5728_v2  ;;  %v5734_v6 = vld [vmem:[%s8498_s1 + $0x10] ss:$8 sps:$4 sm:$0xff]   ;;  %v5736_v8 = vld [vmem:[%s8498_s1 + $0x24] ss:$8 sps:$4 sm:$0xff]   ;;  %v5740_v10 = vld [vmem:[%s8498_s1 + $0x20] ss:$8 sps:$4 sm:$0xff]   ;;  %v102_v46 = vunpack.c.0.s8 %v101_v40 }
   0x4   :  { %1028 = vmatpush1.bf16.msra.mxu1 %v5729_v3  ;;  %442 = vmatprep.subr.bf16.mxu0 %v5730_v4  ;;  %v5735_v7 = vld [vmem:[%s8498_s1 + $0x410] ss:$8 sps:$4 sm:$0xff]   ;;  %v5738_v9 = vld [vmem:[%s8498_s1 + $0x424] ss:$8 sps:$4 sm:$0xff]   ;;  %v5741_v11 = vld [vmem:[%s8498_s1 + $0x420] ss:$8 sps:$4 sm:$0xff]  }
   0x5   :  { %1029 = vmatprep.subr.bf16.mxu1 %v5732_v5  ;;  %v5742_v12 = vld [vmem:[%s8498_s1 + $0x34] ss:$8 sps:$4 sm:$0xff]   ;;  %v5746_v14 = vld [vmem:[%s8498_s1 + $0x30] ss:$8 sps:$4 sm:$0xff]   ;;  %v5748_v16 = vld [vmem:[%s8498_s1 + $0x44] ss:$8 sps:$4 sm:$0xff]  }
   0x6   :  { %v5744_v13 = vld [vmem:[%s8498_s1 + $0x434] ss:$8 sps:$4 sm:$0xff]   ;;  %v5747_v15 = vld [vmem:[%s8498_s1 + $0x430] ss:$8 sps:$4 sm:$0xff]   ;;  %v5750_v17 = vld [vmem:[%s8498_s1 + $0x444] ss:$8 sps:$4 sm:$0xff]  }
   0x7   :  { %443 = vmatpush1.bf16.msra.mxu0 %v5734_v6  ;;  %v5752_v18 = vld [vmem:[%s8498_s1 + $0x40] ss:$8 sps:$4 sm:$0xff]   ;;  %v5754_v20 = vld [vmem:[%s8498_s1 + $0x54] ss:$8 sps:$4 sm:$0xff]   ;;  %v5758_v22 = vld [vmem:[%s8498_s1 + $0x50] ss:$8 sps:$4 sm:$0xff]  }
   0x8   :  { %1030 = vmatpush1.bf16.msra.mxu1 %v5735_v7  ;;  %444 = vmatprep.subr.bf16.mxu0 %v5736_v8  ;;  %v5753_v19 = vld [vmem:[%s8498_s1 + $0x440] ss:$8 sps:$4 sm:$0xff]   ;;  %v5756_v21 = vld [vmem:[%s8498_s1 + $0x454] ss:$8 sps:$4 sm:$0xff]   ;;  %v5759_v23 = vld [vmem:[%s8498_s1 + $0x450] ss:$8 sps:$4 sm:$0xff]  }
   0x9   :  { %1031 = vmatprep.subr.bf16.mxu1 %v5738_v9  ;;  %v5760_v24 = vld [vmem:[%s8498_s1 + $0x64] ss:$8 sps:$4 sm:$0xff]   ;;  %v5764_v26 = vld [vmem:[%s8498_s1 + $0x60] ss:$8 sps:$4 sm:$0xff]   ;;  %v5766_v28 = vld [vmem:[%s8498_s1 + $0x74] ss:$8 sps:$4 sm:$0xff]  }
   0xa   :  { %v5762_v25 = vld [vmem:[%s8498_s1 + $0x464] ss:$8 sps:$4 sm:$0xff]   ;;  %v5765_v27 = vld [vmem:[%s8498_s1 + $0x460] ss:$8 sps:$4 sm:$0xff]   ;;  %v5768_v29 = vld [vmem:[%s8498_s1 + $0x474] ss:$8 sps:$4 sm:$0xff]  }
   0xb   :  { %445 = vmatpush1.bf16.msra.mxu0 %v5740_v10  ;;  %v5770_v30 = vld [vmem:[%s8498_s1 + $0x70] ss:$8 sps:$4 sm:$0xff]   ;;  %v5772_v32 = vld [vmem:[%s8498_s1 + $0x84] ss:$8 sps:$4 sm:$0xff]   ;;  %v5776_v34 = vld [vmem:[%s8498_s1 + $0x80] ss:$8 sps:$4 sm:$0xff]  }
   0xc   :  { %1032 = vmatpush1.bf16.msra.mxu1 %v5741_v11  ;;  %446 = vmatprep.subr.bf16.mxu0 %v5742_v12  ;;  %v5771_v31 = vld [vmem:[%s8498_s1 + $0x470] ss:$8 sps:$4 sm:$0xff]   ;;  %v5774_v33 = vld [vmem:[%s8498_s1 + $0x484] ss:$8 sps:$4 sm:$0xff]   ;;  %v5777_v35 = vld [vmem:[%s8498_s1 + $0x480] ss:$8 sps:$4 sm:$0xff]  }
   0xd   :  { %1033 = vmatprep.subr.bf16.mxu1 %v5744_v13  ;;  %v5778_v36 = vld [vmem:[%s8498_s1 + $0x94] ss:$8 sps:$4 sm:$0xff]   ;;  %v5782_v41 = vld [vmem:[%s8498_s1 + $0x90] ss:$8 sps:$4 sm:$0xff]   ;;  %v5784_v43 = vld [vmem:[%s8498_s1 + $0xa4] ss:$8 sps:$4 sm:$0xff]  }
   0xe   :  { %v5780_v37 = vld [vmem:[%s8498_s1 + $0x494] ss:$8 sps:$4 sm:$0xff]   ;;  %v5783_v42 = vld [vmem:[%s8498_s1 + $0x490] ss:$8 sps:$4 sm:$0xff]   ;;  %v5786_v44 = vld [vmem:[%s8498_s1 + $0x4a4] ss:$8 sps:$4 sm:$0xff]  }
   0xf   :  { %447 = vmatpush1.bf16.msra.mxu0 %v5746_v14  ;;  %v6735_v45 = vshrl.u32 %v81_v38, 7  ;;  %v5788_v47 = vld [vmem:[%s8498_s1 + $0xa0] ss:$8 sps:$4 sm:$0xff]   ;;  %v5790_v49 = vld [vmem:[%s8498_s1 + $0xb4] ss:$8 sps:$4 sm:$0xff]  }
  0x10   :  { %1034 = vmatpush1.bf16.msra.mxu1 %v5747_v15  ;;  %448 = vmatprep.subr.bf16.mxu0 %v5748_v16  ;;  %v5789_v48 = vld [vmem:[%s8498_s1 + $0x4a0] ss:$8 sps:$4 sm:$0xff]   ;;  %v5792_v50 = vld [vmem:[%s8498_s1 + $0x4b4] ss:$8 sps:$4 sm:$0xff]   ;;  %v5794_v51 = vld [vmem:[%s8498_s1 + $0xb0] ss:$8 sps:$4 sm:$0xff]  }
  0x11   :  { %1035 = vmatprep.subr.bf16.mxu1 %v5750_v17  ;;  %v6753_v52 = vsub.s32 %v102_v46, %v6735_v45  ;;  %v4803_v53 = vld.sshfl [vmem:[%s8499_s0 + $0x4] sm:$0x33 pattern:$0x75316420]  ;;  %v5795_v54 = vld [vmem:[%s8498_s1 + $0x4b0] ss:$8 sps:$4 sm:$0xff]  }
  0x12   :  { %v686_v55 = vcombine.high %v4803_v53, %v4803_v53  ;;  %v4607_v56 = vld.sshfl [vmem:[%s8499_s0] sm:$0x33 pattern:$0x75316420]  ;;  %v5796_v57 = vld [vmem:[%s8498_s1 + $0xc4] ss:$8 sps:$4 sm:$0xff]  }
  0x13   :  { %449 = vmatpush1.bf16.msra.mxu0 %v5752_v18  ;;  %v5798_v58 = vld [vmem:[%s8498_s1 + $0x4c4] ss:$8 sps:$4 sm:$0xff]   ;;  %v99_v59 = vcombine.high %v4607_v56, %v4607_v56  ;;  %v5800_v61 = vld [vmem:[%s8498_s1 + $0xc0] ss:$8 sps:$4 sm:$0xff]   ;;  %v5802_v0 = vld [vmem:[%s8498_s1 + $0xd4] ss:$8 sps:$4 sm:$0xff]   ;;  %v6827_v15 = vrot.slane %v4803_v53, %v6753_v52  ;;  %v6830_v16 = vrot.slane %v4607_v56, %v6753_v52 }
  0x14   :  { %1036 = vmatpush1.bf16.msra.mxu1 %v5753_v19  ;;  %450 = vmatprep.subr.bf16.mxu0 %v5754_v20  ;;  %v700_v60 = vrot.slane %v686_v55, %v6753_v52  ;;  %v5801_v63 = vld [vmem:[%s8498_s1 + $0x4c0] ss:$8 sps:$4 sm:$0xff]   ;;  %v5804_v1 = vld [vmem:[%s8498_s1 + $0x4d4] ss:$8 sps:$4 sm:$0xff]   ;;  %v5806_v2 = vld [vmem:[%s8498_s1 + $0xd0] ss:$8 sps:$4 sm:$0xff]  }
  0x15   :  { %1037 = vmatprep.subr.bf16.mxu1 %v5756_v21  ;;  %v6775_v62 = vrot.slane %v99_v59, %v6753_v52  ;;  %v5807_v3 = vld [vmem:[%s8498_s1 + $0x4d0] ss:$8 sps:$4 sm:$0xff]   ;;  %v5808_v4 = vld [vmem:[%s8498_s1 + $0xe4] ss:$8 sps:$4 sm:$0xff]   ;;  %v5812_v6 = vld [vmem:[%s8498_s1 + $0xe0] ss:$8 sps:$4 sm:$0xff]  }
  0x16   :  { %1059 = vmatprep.mubr.bf16.mxu1 %v700_v60  ;;  %v5810_v5 = vld [vmem:[%s8498_s1 + $0x4e4] ss:$8 sps:$4 sm:$0xff]   ;;  %v5813_v7 = vld [vmem:[%s8498_s1 + $0x4e0] ss:$8 sps:$4 sm:$0xff]   ;;  %v5814_v8 = vld [vmem:[%s8498_s1 + $0xf4] ss:$8 sps:$4 sm:$0xff]   ;;  %v702_v20 = vcombine.high %v700_v60, %v700_v60 }
  0x17   :  { %451 = vmatpush1.bf16.msra.mxu0 %v5758_v22  ;;  %472 = vmatprep.mubr.bf16.mxu0 %v6775_v62  ;;  %v5816_v9 = vld [vmem:[%s8498_s1 + $0x4f4] ss:$8 sps:$4 sm:$0xff]   ;;  %v5818_v10 = vld [vmem:[%s8498_s1 + $0xf0] ss:$8 sps:$4 sm:$0xff]   ;;  %v5822_v12 = vld [vmem:[%s8498_s1 + $0x104] ss:$8 sps:$4 sm:$0xff]   ;;  %v6843_v21 = vcombine.high %v6775_v62, %v6775_v62 }
  0x18   :  { %1038 = vmatpush1.bf16.msra.mxu1 %v5759_v23  ;;  %452 = vmatprep.subr.bf16.mxu0 %v5760_v24  ;;  %v5819_v11 = vld [vmem:[%s8498_s1 + $0x4f0] ss:$8 sps:$4 sm:$0xff]   ;;  %v5825_v13 = vld [vmem:[%s8498_s1 + $0x504] ss:$8 sps:$4 sm:$0xff]   ;;  %v5820_v14 = vld [vmem:[%s8498_s1 + $0x100] ss:$8 sps:$4 sm:$0xff]  }
  0x19   :  { %1039 = vmatprep.subr.bf16.mxu1 %v5762_v25  ;;  %v5823_v17 = vld [vmem:[%s8498_s1 + $0x500] ss:$8 sps:$4 sm:$0xff]   ;;  %v5828_v18 = vld [vmem:[%s8498_s1 + $0x114] ss:$8 sps:$4 sm:$0xff]   ;;  %v5826_v22 = vld [vmem:[%s8498_s1 + $0x110] ss:$8 sps:$4 sm:$0xff]  }
  0x1a   :  { %v5831_v19 = vld [vmem:[%s8498_s1 + $0x514] ss:$8 sps:$4 sm:$0xff]   ;;  %v5829_v23 = vld [vmem:[%s8498_s1 + $0x510] ss:$8 sps:$4 sm:$0xff]   ;;  %v5834_v24 = vld [vmem:[%s8498_s1 + $0x124] ss:$8 sps:$4 sm:$0xff]  }
  0x1b   :  { %453 = vmatpush1.bf16.msra.mxu0 %v5764_v26  ;;  %v5837_v25 = vld [vmem:[%s8498_s1 + $0x524] ss:$8 sps:$4 sm:$0xff]   ;;  %v5832_v26 = vld [vmem:[%s8498_s1 + $0x120] ss:$8 sps:$4 sm:$0xff]   ;;  %v5850_v38 = vld [vmem:[%s8498_s1 + $0x150] ss:$8 sps:$4 sm:$0xff]  }
  0x1c   :  { %1040 = vmatpush1.bf16.msra.mxu1 %v5765_v27  ;;  %454 = vmatprep.subr.bf16.mxu0 %v5766_v28  ;;  %v5835_v27 = vld [vmem:[%s8498_s1 + $0x520] ss:$8 sps:$4 sm:$0xff]   ;;  %v5840_v28 = vld [vmem:[%s8498_s1 + $0x134] ss:$8 sps:$4 sm:$0xff]   ;;  %v5853_v39 = vld [vmem:[%s8498_s1 + $0x550] ss:$8 sps:$4 sm:$0xff]  }
  0x1d   :  { %1041 = vmatprep.subr.bf16.mxu1 %v5768_v29  ;;  %v5843_v29 = vld [vmem:[%s8498_s1 + $0x534] ss:$8 sps:$4 sm:$0xff]   ;;  %v5858_v40 = vld [vmem:[%s8498_s1 + $0x164] ss:$8 sps:$4 sm:$0xff]   ;;  %v5871_v53 = vld [vmem:[%s8498_s1 + $0x580] ss:$8 sps:$4 sm:$0xff]  }
  0x1e   :  { %v5867_v46 = vld [vmem:[%s8498_s1 + $0x574] ss:$8 sps:$4 sm:$0xff]   ;;  %v5874_v56 = vld [vmem:[%s8498_s1 + $0x190] ss:$8 sps:$4 sm:$0xff]   ;;  %v5885_v59 = vld [vmem:[%s8498_s1 + $0x5a4] ss:$8 sps:$4 sm:$0xff]  }
  0x1f   :  { %455 = vmatpush1.bf16.msra.mxu0 %v5770_v30  ;;  %v5838_v30 = vld [vmem:[%s8498_s1 + $0x130] ss:$8 sps:$4 sm:$0xff]   ;;  %v5879_v55 = vld [vmem:[%s8498_s1 + $0x594] ss:$8 sps:$4 sm:$0xff]   ;;  %v5880_v60 = vld [vmem:[%s8498_s1 + $0x1a0] ss:$8 sps:$4 sm:$0xff]  }
  0x20   :  { %1042 = vmatpush1.bf16.msra.mxu1 %v5771_v31  ;;  %456 = vmatprep.subr.bf16.mxu0 %v5772_v32  ;;  %v5841_v31 = vld [vmem:[%s8498_s1 + $0x530] ss:$8 sps:$4 sm:$0xff]   ;;  %v5846_v32 = vld [vmem:[%s8498_s1 + $0x144] ss:$8 sps:$4 sm:$0xff]  }
  0x21   :  { %1043 = vmatprep.subr.bf16.mxu1 %v5774_v33  ;;  %v5849_v33 = vld [vmem:[%s8498_s1 + $0x544] ss:$8 sps:$4 sm:$0xff]  }
  0x23   :  { %457 = vmatpush1.bf16.msra.mxu0 %v5776_v34  ;;  %v5844_v34 = vld [vmem:[%s8498_s1 + $0x140] ss:$8 sps:$4 sm:$0xff]  }
  0x24   :  { %1044 = vmatpush1.bf16.msra.mxu1 %v5777_v35  ;;  %458 = vmatprep.subr.bf16.mxu0 %v5778_v36  ;;  %v5847_v35 = vld [vmem:[%s8498_s1 + $0x540] ss:$8 sps:$4 sm:$0xff]   ;;  %v5852_v36 = vld [vmem:[%s8498_s1 + $0x154] ss:$8 sps:$4 sm:$0xff]  }
  0x25   :  { %1045 = vmatprep.subr.bf16.mxu1 %v5780_v37  ;;  %v5855_v37 = vld [vmem:[%s8498_s1 + $0x554] ss:$8 sps:$4 sm:$0xff]  }
  0x27   :  { %459 = vmatpush1.bf16.msra.mxu0 %v5782_v41  ;;  %v5861_v41 = vld [vmem:[%s8498_s1 + $0x564] ss:$8 sps:$4 sm:$0xff]  }
  0x28   :  { %1046 = vmatpush1.bf16.msra.mxu1 %v5783_v42  ;;  %460 = vmatprep.subr.bf16.mxu0 %v5784_v43  ;;  %v5856_v42 = vld [vmem:[%s8498_s1 + $0x160] ss:$8 sps:$4 sm:$0xff]  }
  0x29   :  { %1047 = vmatprep.subr.bf16.mxu1 %v5786_v44  ;;  %v5859_v43 = vld [vmem:[%s8498_s1 + $0x560] ss:$8 sps:$4 sm:$0xff]   ;;  %v5864_v44 = vld [vmem:[%s8498_s1 + $0x174] ss:$8 sps:$4 sm:$0xff]  }
  0x2b   :  { %461 = vmatpush1.bf16.msra.mxu0 %v5788_v47  ;;  %v5862_v47 = vld [vmem:[%s8498_s1 + $0x170] ss:$8 sps:$4 sm:$0xff]  }
  0x2c   :  { %1048 = vmatpush1.bf16.msra.mxu1 %v5789_v48  ;;  %462 = vmatprep.subr.bf16.mxu0 %v5790_v49  ;;  %v5865_v48 = vld [vmem:[%s8498_s1 + $0x570] ss:$8 sps:$4 sm:$0xff]   ;;  %v5870_v49 = vld [vmem:[%s8498_s1 + $0x184] ss:$8 sps:$4 sm:$0xff]  }
  0x2d   :  { %1049 = vmatprep.subr.bf16.mxu1 %v5792_v50  ;;  %v5873_v50 = vld [vmem:[%s8498_s1 + $0x584] ss:$8 sps:$4 sm:$0xff]  }
  0x2f   :  { %463 = vmatpush1.bf16.msra.mxu0 %v5794_v51  ;;  %v5868_v51 = vld [vmem:[%s8498_s1 + $0x180] ss:$8 sps:$4 sm:$0xff]  }
  0x30   :  { %1050 = vmatpush1.bf16.msra.mxu1 %v5795_v54  ;;  %464 = vmatprep.subr.bf16.mxu0 %v5796_v57  ;;  %v5876_v54 = vld [vmem:[%s8498_s1 + $0x194] ss:$8 sps:$4 sm:$0xff]   ;;  %v5877_v57 = vld [vmem:[%s8498_s1 + $0x590] ss:$8 sps:$4 sm:$0xff]  }
  0x31   :  { %1051 = vmatprep.subr.bf16.mxu1 %v5798_v58  ;;  %v5882_v58 = vld [vmem:[%s8498_s1 + $0x1a4] ss:$8 sps:$4 sm:$0xff]  }
  0x33   :  { %465 = vmatpush1.bf16.msra.mxu0 %v5800_v61  ;;  %v5883_v61 = vld [vmem:[%s8498_s1 + $0x5a0] ss:$8 sps:$4 sm:$0xff]  }
  0x34   :  { %1052 = vmatpush1.bf16.msra.mxu1 %v5801_v63  ;;  %466 = vmatprep.subr.bf16.mxu0 %v5802_v0  ;;  %v5888_v63 = vld [vmem:[%s8498_s1 + $0x1b4] ss:$8 sps:$4 sm:$0xff]  }
  0x35   :  { %1053 = vmatprep.subr.bf16.mxu1 %v5804_v1  ;;  %v5891_v0 = vld [vmem:[%s8498_s1 + $0x5b4] ss:$8 sps:$4 sm:$0xff]   ;;  %v5886_v1 = vld [vmem:[%s8498_s1 + $0x1b0] ss:$8 sps:$4 sm:$0xff]  }
  0x37   :  { %467 = vmatpush1.bf16.msra.mxu0 %v5806_v2  ;;  %v5889_v2 = vld [vmem:[%s8498_s1 + $0x5b0] ss:$8 sps:$4 sm:$0xff]  }
  0x38   :  { %1054 = vmatpush1.bf16.msra.mxu1 %v5807_v3  ;;  %468 = vmatprep.subr.bf16.mxu0 %v5808_v4  ;;  %v5894_v3 = vld [vmem:[%s8498_s1 + $0x1c4] ss:$8 sps:$4 sm:$0xff]  }
  0x39   :  { %1055 = vmatprep.subr.bf16.mxu1 %v5810_v5  ;;  %v5897_v4 = vld [vmem:[%s8498_s1 + $0x5c4] ss:$8 sps:$4 sm:$0xff]   ;;  %v5892_v5 = vld [vmem:[%s8498_s1 + $0x1c0] ss:$8 sps:$4 sm:$0xff]  }
  0x3b   :  { %469 = vmatpush1.bf16.msra.mxu0 %v5812_v6  ;;  %v5895_v6 = vld [vmem:[%s8498_s1 + $0x5c0] ss:$8 sps:$4 sm:$0xff]  }
  0x3c   :  { %1056 = vmatpush1.bf16.msra.mxu1 %v5813_v7  ;;  %470 = vmatprep.subr.bf16.mxu0 %v5814_v8  ;;  %v5900_v7 = vld [vmem:[%s8498_s1 + $0x1d4] ss:$8 sps:$4 sm:$0xff]  }
  0x3d   :  { %1057 = vmatprep.subr.bf16.mxu1 %v5816_v9  ;;  %v5903_v8 = vld [vmem:[%s8498_s1 + $0x5d4] ss:$8 sps:$4 sm:$0xff]   ;;  %v5898_v9 = vld [vmem:[%s8498_s1 + $0x1d0] ss:$8 sps:$4 sm:$0xff]  }
  0x3f   :  { %471 = vmatpush1.bf16.msra.mxu0 %v5818_v10  ;;  %v5901_v10 = vld [vmem:[%s8498_s1 + $0x5d0] ss:$8 sps:$4 sm:$0xff]  }
  0x40   :  { %1058 = vmatpush1.bf16.msra.mxu1 %v5819_v11  ;;  %481 = vmatprep.subr.bf16.mxu0 %v5822_v12  ;;  %v5906_v11 = vld [vmem:[%s8498_s1 + $0x1e4] ss:$8 sps:$4 sm:$0xff]  }
  0x41   :  { %1068 = vmatprep.subr.bf16.mxu1 %v5825_v13  ;;  %v5909_v12 = vld [vmem:[%s8498_s1 + $0x5e4] ss:$8 sps:$4 sm:$0xff]   ;;  %v5904_v13 = vld [vmem:[%s8498_s1 + $0x1e0] ss:$8 sps:$4 sm:$0xff]  }
  0x42   :  { %473 = vmatmul.mubr.bf16.vlgmr.msra.gmra.mrb[0].mxu0 %v6830_v16 }
  0x43   :  { %1060 = vmatmul.mubr.bf16.vlgmr.msra.gmra.mrb[0].mxu1 %v6827_v15  ;;  %482 = vmatpush1.bf16.msra.mxu0 %v5820_v14  ;;  %v5907_v14 = vld [vmem:[%s8498_s1 + $0x5e0] ss:$8 sps:$4 sm:$0xff]  }
  0x44   :  { %1069 = vmatpush1.bf16.msra.mxu1 %v5823_v17  ;;  %483 = vmatprep.subr.bf16.mxu0 %v5828_v18  ;;  %v5912_v17 = vld [vmem:[%s8498_s1 + $0x1f4] ss:$8 sps:$4 sm:$0xff]  }
  0x45   :  { %1070 = vmatprep.subr.bf16.mxu1 %v5831_v19  ;;  %513 = vmatprep.mubr.bf16.mxu0 %v6843_v21  ;;  %v5915_v18 = vld [vmem:[%s8498_s1 + $0x5f4] ss:$8 sps:$4 sm:$0xff]   ;;  %v5910_v19 = vld [vmem:[%s8498_s1 + $0x1f0] ss:$8 sps:$4 sm:$0xff]  }
  0x46   :  { %1100 = vmatprep.mubr.bf16.mxu1 %v702_v20  ;;  %v5913_v20 = vld [vmem:[%s8498_s1 + $0x5f0] ss:$8 sps:$4 sm:$0xff]  }
  0x47   :  { %484 = vmatpush1.bf16.msra.mxu0 %v5826_v22  ;;  %v5918_v22 = vld [vmem:[%s8498_s1 + $0x204] ss:$8 sps:$4 sm:$0xff]  }
  0x48   :  { %1071 = vmatpush1.bf16.msra.mxu1 %v5829_v23  ;;  %485 = vmatprep.subr.bf16.mxu0 %v5834_v24  ;;  %v5921_v23 = vld [vmem:[%s8498_s1 + $0x304] ss:$8 sps:$4 sm:$0xff]   ;;  %v701_v24 = vcombine.high %v6827_v15, %v6827_v15  ;;  %v5927_v15 = vld [vmem:[%s8498_s1 + $0x314] ss:$8 sps:$4 sm:$0xff]  }
  0x49   :  { %1072 = vmatprep.subr.bf16.mxu1 %v5837_v25  ;;  %v7032_v25 = vcombine.high %v6830_v16, %v6830_v16 }
  0x4b   :  { %486 = vmatpush1.bf16.msra.mxu0 %v5832_v26  ;;  %v5916_v26 = vld [vmem:[%s8498_s1 + $0x200] ss:$8 sps:$4 sm:$0xff]  }
  0x4c   :  { %1073 = vmatpush1.bf16.msra.mxu1 %v5835_v27  ;;  %487 = vmatprep.subr.bf16.mxu0 %v5840_v28  ;;  %v5919_v27 = vld [vmem:[%s8498_s1 + $0x300] ss:$8 sps:$4 sm:$0xff]   ;;  %v5924_v28 = vld [vmem:[%s8498_s1 + $0x214] ss:$8 sps:$4 sm:$0xff]  }
  0x4d   :  { %1074 = vmatprep.subr.bf16.mxu1 %v5843_v29  ;;  %v5922_v29 = vld [vmem:[%s8498_s1 + $0x210] ss:$8 sps:$4 sm:$0xff]  }
  0x4f   :  { %488 = vmatpush1.bf16.msra.mxu0 %v5838_v30  ;;  %v5925_v30 = vld [vmem:[%s8498_s1 + $0x310] ss:$8 sps:$4 sm:$0xff]  }
  0x50   :  { %1075 = vmatpush1.bf16.msra.mxu1 %v5841_v31  ;;  %489 = vmatprep.subr.bf16.mxu0 %v5846_v32  ;;  %v5930_v31 = vld [vmem:[%s8498_s1 + $0x224] ss:$8 sps:$4 sm:$0xff]  }
  0x51   :  { %1076 = vmatprep.subr.bf16.mxu1 %v5849_v33  ;;  %v5933_v32 = vld [vmem:[%s8498_s1 + $0x324] ss:$8 sps:$4 sm:$0xff]   ;;  %v5928_v33 = vld [vmem:[%s8498_s1 + $0x220] ss:$8 sps:$4 sm:$0xff]  }
  0x53   :  { %490 = vmatpush1.bf16.msra.mxu0 %v5844_v34  ;;  %v5931_v34 = vld [vmem:[%s8498_s1 + $0x320] ss:$8 sps:$4 sm:$0xff]  }
  0x54   :  { %1077 = vmatpush1.bf16.msra.mxu1 %v5847_v35  ;;  %491 = vmatprep.subr.bf16.mxu0 %v5852_v36  ;;  %v5936_v35 = vld [vmem:[%s8498_s1 + $0x234] ss:$8 sps:$4 sm:$0xff]   ;;  %v5937_v36 = vld [vmem:[%s8498_s1 + $0x330] ss:$8 sps:$4 sm:$0xff]  }
  0x55   :  { %1078 = vmatprep.subr.bf16.mxu1 %v5855_v37  ;;  %v5942_v37 = vld [vmem:[%s8498_s1 + $0x244] ss:$8 sps:$4 sm:$0xff]  }
  0x57   :  { %492 = vmatpush1.bf16.msra.mxu0 %v5850_v38  ;;  %v5945_v38 = vld [vmem:[%s8498_s1 + $0x344] ss:$8 sps:$4 sm:$0xff]  }
  0x58   :  { %1079 = vmatpush1.bf16.msra.mxu1 %v5853_v39  ;;  %493 = vmatprep.subr.bf16.mxu0 %v5858_v40  ;;  %v5940_v39 = vld [vmem:[%s8498_s1 + $0x240] ss:$8 sps:$4 sm:$0xff]  }
  0x59   :  { %1080 = vmatprep.subr.bf16.mxu1 %v5861_v41  ;;  %v5943_v40 = vld [vmem:[%s8498_s1 + $0x340] ss:$8 sps:$4 sm:$0xff]   ;;  %v5948_v41 = vld [vmem:[%s8498_s1 + $0x254] ss:$8 sps:$4 sm:$0xff]  }
  0x5b   :  { %494 = vmatpush1.bf16.msra.mxu0 %v5856_v42  ;;  %v5951_v42 = vld [vmem:[%s8498_s1 + $0x354] ss:$8 sps:$4 sm:$0xff]  }
  0x5c   :  { %1081 = vmatpush1.bf16.msra.mxu1 %v5859_v43  ;;  %495 = vmatprep.subr.bf16.mxu0 %v5864_v44  ;;  %v5946_v43 = vld [vmem:[%s8498_s1 + $0x250] ss:$8 sps:$4 sm:$0xff]  }
  0x5d   :  { %1082 = vmatprep.subr.bf16.mxu1 %v5867_v46  ;;  %v5949_v44 = vld [vmem:[%s8498_s1 + $0x350] ss:$8 sps:$4 sm:$0xff]   ;;  %v5954_v46 = vld [vmem:[%s8498_s1 + $0x264] ss:$8 sps:$4 sm:$0xff]  }
  0x5f   :  { %496 = vmatpush1.bf16.msra.mxu0 %v5862_v47  ;;  %v5957_v47 = vld [vmem:[%s8498_s1 + $0x364] ss:$8 sps:$4 sm:$0xff]  }
  0x60   :  { %1083 = vmatpush1.bf16.msra.mxu1 %v5865_v48  ;;  %497 = vmatprep.subr.bf16.mxu0 %v5870_v49  ;;  %v5952_v48 = vld [vmem:[%s8498_s1 + $0x260] ss:$8 sps:$4 sm:$0xff]  }
  0x61   :  { %1084 = vmatprep.subr.bf16.mxu1 %v5873_v50  ;;  %v5955_v49 = vld [vmem:[%s8498_s1 + $0x360] ss:$8 sps:$4 sm:$0xff]   ;;  %v5960_v50 = vld [vmem:[%s8498_s1 + $0x274] ss:$8 sps:$4 sm:$0xff]  }
  0x63   :  { %498 = vmatpush1.bf16.msra.mxu0 %v5868_v51  ;;  %v5963_v51 = vld [vmem:[%s8498_s1 + $0x374] ss:$8 sps:$4 sm:$0xff]  }
  0x64   :  { %1085 = vmatpush1.bf16.msra.mxu1 %v5871_v53  ;;  %499 = vmatprep.subr.bf16.mxu0 %v5876_v54  ;;  %v5958_v53 = vld [vmem:[%s8498_s1 + $0x270] ss:$8 sps:$4 sm:$0xff]  }
  0x65   :  { %1086 = vmatprep.subr.bf16.mxu1 %v5879_v55  ;;  %v5961_v54 = vld [vmem:[%s8498_s1 + $0x370] ss:$8 sps:$4 sm:$0xff]   ;;  %v5966_v55 = vld [vmem:[%s8498_s1 + $0x284] ss:$8 sps:$4 sm:$0xff]  }
  0x67   :  { %500 = vmatpush1.bf16.msra.mxu0 %v5874_v56  ;;  %v5969_v56 = vld [vmem:[%s8498_s1 + $0x384] ss:$8 sps:$4 sm:$0xff]  }
  0x68   :  { %1087 = vmatpush1.bf16.msra.mxu1 %v5877_v57  ;;  %501 = vmatprep.subr.bf16.mxu0 %v5882_v58  ;;  %v5964_v57 = vld [vmem:[%s8498_s1 + $0x280] ss:$8 sps:$4 sm:$0xff]  }
  0x69   :  { %1088 = vmatprep.subr.bf16.mxu1 %v5885_v59  ;;  %v5967_v58 = vld [vmem:[%s8498_s1 + $0x380] ss:$8 sps:$4 sm:$0xff]   ;;  %v5972_v59 = vld [vmem:[%s8498_s1 + $0x294] ss:$8 sps:$4 sm:$0xff]  }
  0x6b   :  { %502 = vmatpush1.bf16.msra.mxu0 %v5880_v60  ;;  %v5975_v60 = vld [vmem:[%s8498_s1 + $0x394] ss:$8 sps:$4 sm:$0xff]  }
  0x6c   :  { %1089 = vmatpush1.bf16.msra.mxu1 %v5883_v61  ;;  %503 = vmatprep.subr.bf16.mxu0 %v5888_v63  ;;  %v5970_v61 = vld [vmem:[%s8498_s1 + $0x290] ss:$8 sps:$4 sm:$0xff]  }
  0x6d   :  { %1090 = vmatprep.subr.bf16.mxu1 %v5891_v0  ;;  %v5973_v63 = vld [vmem:[%s8498_s1 + $0x390] ss:$8 sps:$4 sm:$0xff]   ;;  %v5978_v0 = vld [vmem:[%s8498_s1 + $0x2a4] ss:$8 sps:$4 sm:$0xff]  }
  0x6f   :  { %504 = vmatpush1.bf16.msra.mxu0 %v5886_v1  ;;  %v5981_v1 = vld [vmem:[%s8498_s1 + $0x3a4] ss:$8 sps:$4 sm:$0xff]  }
  0x70   :  { %1091 = vmatpush1.bf16.msra.mxu1 %v5889_v2  ;;  %505 = vmatprep.subr.bf16.mxu0 %v5894_v3  ;;  %v5976_v2 = vld [vmem:[%s8498_s1 + $0x2a0] ss:$8 sps:$4 sm:$0xff]  }
  0x71   :  { %1092 = vmatprep.subr.bf16.mxu1 %v5897_v4  ;;  %v5979_v3 = vld [vmem:[%s8498_s1 + $0x3a0] ss:$8 sps:$4 sm:$0xff]   ;;  %v5984_v4 = vld [vmem:[%s8498_s1 + $0x2b4] ss:$8 sps:$4 sm:$0xff]  }
  0x73   :  { %506 = vmatpush1.bf16.msra.mxu0 %v5892_v5  ;;  %v5987_v5 = vld [vmem:[%s8498_s1 + $0x3b4] ss:$8 sps:$4 sm:$0xff]  }
  0x74   :  { %1093 = vmatpush1.bf16.msra.mxu1 %v5895_v6  ;;  %507 = vmatprep.subr.bf16.mxu0 %v5900_v7  ;;  %v5982_v6 = vld [vmem:[%s8498_s1 + $0x2b0] ss:$8 sps:$4 sm:$0xff]  }
  0x75   :  { %1094 = vmatprep.subr.bf16.mxu1 %v5903_v8  ;;  %v5985_v7 = vld [vmem:[%s8498_s1 + $0x3b0] ss:$8 sps:$4 sm:$0xff]   ;;  %v5990_v8 = vld [vmem:[%s8498_s1 + $0x2c4] ss:$8 sps:$4 sm:$0xff]  }
  0x77   :  { %508 = vmatpush1.bf16.msra.mxu0 %v5898_v9  ;;  %v5993_v9 = vld [vmem:[%s8498_s1 + $0x3c4] ss:$8 sps:$4 sm:$0xff]  }
  0x78   :  { %1095 = vmatpush1.bf16.msra.mxu1 %v5901_v10  ;;  %509 = vmatprep.subr.bf16.mxu0 %v5906_v11  ;;  %v5988_v10 = vld [vmem:[%s8498_s1 + $0x2c0] ss:$8 sps:$4 sm:$0xff]  }
  0x79   :  { %1096 = vmatprep.subr.bf16.mxu1 %v5909_v12  ;;  %v5991_v11 = vld [vmem:[%s8498_s1 + $0x3c0] ss:$8 sps:$4 sm:$0xff]   ;;  %v5996_v12 = vld [vmem:[%s8498_s1 + $0x2d4] ss:$8 sps:$4 sm:$0xff]  }
  0x7b   :  { %510 = vmatpush1.bf16.msra.mxu0 %v5904_v13  ;;  %v5999_v13 = vld [vmem:[%s8498_s1 + $0x3d4] ss:$8 sps:$4 sm:$0xff]  }
  0x7c   :  { %1097 = vmatpush1.bf16.msra.mxu1 %v5907_v14  ;;  %511 = vmatprep.subr.bf16.mxu0 %v5912_v17  ;;  %v5994_v14 = vld [vmem:[%s8498_s1 + $0x2d0] ss:$8 sps:$4 sm:$0xff]  }
  0x7d   :  { %1098 = vmatprep.subr.bf16.mxu1 %v5915_v18  ;;  %v5997_v17 = vld [vmem:[%s8498_s1 + $0x3d0] ss:$8 sps:$4 sm:$0xff]   ;;  %v6002_v18 = vld [vmem:[%s8498_s1 + $0x2e4] ss:$8 sps:$4 sm:$0xff]  }
  0x7f   :  { %512 = vmatpush1.bf16.msra.mxu0 %v5910_v19  ;;  %v6005_v19 = vld [vmem:[%s8498_s1 + $0x3e4] ss:$8 sps:$4 sm:$0xff]  }
  0x80   :  { %1099 = vmatpush1.bf16.msra.mxu1 %v5913_v20  ;;  %1458 = vmatprep.subr.bf16.mxu0 %v5918_v22  ;;  %v6000_v20 = vld [vmem:[%s8498_s1 + $0x2e0] ss:$8 sps:$4 sm:$0xff]  }
  0x81   :  { %1499 = vmatprep.subr.bf16.mxu1 %v5921_v23  ;;  %v6003_v22 = vld [vmem:[%s8498_s1 + $0x3e0] ss:$8 sps:$4 sm:$0xff]  }
  0x82   :  { %514 = vmatmul.mubr.bf16.vlgmr.msra.gmra.mrb[0].mxu0 %v7032_v25  ;;  %v7214_v23 = vld.sshfl [vmem:[%s8499_s0 + $0x8] sm:$0x33 pattern:$0x75316420] }
  0x83   :  { %1101 = vmatmul.mubr.bf16.vlgmr.msra.gmra.mrb[4].mxu1 %v701_v24  ;;  %1459 = vmatpush1.bf16.msra.mxu0 %v5916_v26  ;;  %v6008_v24 = vld [vmem:[%s8498_s1 + $0x2f4] ss:$8 sps:$4 sm:$0xff]  }
  0x84   :  { %1500 = vmatpush1.bf16.msra.mxu1 %v5919_v27  ;;  %1460 = vmatprep.subr.bf16.mxu0 %v5924_v28  ;;  %v6011_v26 = vld [vmem:[%s8498_s1 + $0x3f4] ss:$8 sps:$4 sm:$0xff]   ;;  %v1706_v27 = vcombine.high %v7214_v23, %v7214_v23  ;;  %v6006_v28 = vld [vmem:[%s8498_s1 + $0x2f0] ss:$8 sps:$4 sm:$0xff]  }
  0x85   :  { %1501 = vmatprep.subr.bf16.mxu1 %v5927_v15  ;;  %1490 = vmatprep.mubr.bf16.mxu0 %v6775_v62  ;;  %v5939_v62 = vld [vmem:[%s8498_s1 + $0x334] ss:$8 sps:$4 sm:$0xff]   ;;  %v6009_v15 = vld [vmem:[%s8498_s1 + $0x3f0] ss:$8 sps:$4 sm:$0xff]  }
  0x86   :  { %1531 = vmatprep.mubr.bf16.mxu1 %v6843_v21  ;;  %v5934_v21 = vld [vmem:[%s8498_s1 + $0x230] ss:$8 sps:$4 sm:$0xff]  }
  0x87   :  { %1461 = vmatpush1.bf16.msra.mxu0 %v5922_v29  ;;  %v6014_v29 = vld [vmem:[%s8498_s1 + $0x804] ss:$8 sps:$4 sm:$0xff]  }
  0x88   :  { %1502 = vmatpush1.bf16.msra.mxu1 %v5925_v30  ;;  %1462 = vmatprep.subr.bf16.mxu0 %v5930_v31  ;;  %v6017_v30 = vld [vmem:[%s8498_s1 + $0x904] ss:$8 sps:$4 sm:$0xff]   ;;  %v1720_v31 = vrot.slane %v1706_v27, %v6753_v52 }
  0x89   :  { %1503 = vmatprep.subr.bf16.mxu1 %v5933_v32  ;;  %v6012_v32 = vld [vmem:[%s8498_s1 + $0x800] ss:$8 sps:$4 sm:$0xff]   ;;  %v6098_v27 = vld [vmem:[%s8498_s1 + $0x8e4] ss:$8 sps:$4 sm:$0xff]  }
  0x8b   :  { %1463 = vmatpush1.bf16.msra.mxu0 %v5928_v33  ;;  %v6015_v33 = vld [vmem:[%s8498_s1 + $0x900] ss:$8 sps:$4 sm:$0xff]  }
  0x8c   :  { %1504 = vmatpush1.bf16.msra.mxu1 %v5931_v34  ;;  %1464 = vmatprep.subr.bf16.mxu0 %v5936_v35  ;;  %v6020_v34 = vld [vmem:[%s8498_s1 + $0x814] ss:$8 sps:$4 sm:$0xff]  }
  0x8d   :  { %1505 = vmatprep.subr.bf16.mxu1 %v5939_v62  ;;  %v6023_v35 = vld [vmem:[%s8498_s1 + $0x914] ss:$8 sps:$4 sm:$0xff]   ;;  %v1722_v62 = vcombine.high %v1720_v31, %v1720_v31 }
  0x8f   :  { %1465 = vmatpush1.bf16.msra.mxu0 %v5934_v21  ;;  %v6018_v21 = vld [vmem:[%s8498_s1 + $0x810] ss:$8 sps:$4 sm:$0xff]  }
  0x90   :  { %1506 = vmatpush1.bf16.msra.mxu1 %v5937_v36  ;;  %1466 = vmatprep.subr.bf16.mxu0 %v5942_v37  ;;  %v6021_v36 = vld [vmem:[%s8498_s1 + $0x910] ss:$8 sps:$4 sm:$0xff]   ;;  %v6026_v37 = vld [vmem:[%s8498_s1 + $0x824] ss:$8 sps:$4 sm:$0xff]  }
  0x91   :  { %1507 = vmatprep.subr.bf16.mxu1 %v5945_v38  ;;  %v6027_v38 = vld [vmem:[%s8498_s1 + $0x920] ss:$8 sps:$4 sm:$0xff]  }
  0x93   :  { %1467 = vmatpush1.bf16.msra.mxu0 %v5940_v39  ;;  %v6032_v39 = vld [vmem:[%s8498_s1 + $0x834] ss:$8 sps:$4 sm:$0xff]  }
  0x94   :  { %1508 = vmatpush1.bf16.msra.mxu1 %v5943_v40  ;;  %1468 = vmatprep.subr.bf16.mxu0 %v5948_v41  ;;  %v6035_v40 = vld [vmem:[%s8498_s1 + $0x934] ss:$8 sps:$4 sm:$0xff]   ;;  %v6030_v41 = vld [vmem:[%s8498_s1 + $0x830] ss:$8 sps:$4 sm:$0xff]  }
  0x95   :  { %1509 = vmatprep.subr.bf16.mxu1 %v5951_v42  ;;  %v6033_v42 = vld [vmem:[%s8498_s1 + $0x930] ss:$8 sps:$4 sm:$0xff]  }
  0x97   :  { %1469 = vmatpush1.bf16.msra.mxu0 %v5946_v43  ;;  %v6038_v43 = vld [vmem:[%s8498_s1 + $0x844] ss:$8 sps:$4 sm:$0xff]  }
  0x98   :  { %1510 = vmatpush1.bf16.msra.mxu1 %v5949_v44  ;;  %1470 = vmatprep.subr.bf16.mxu0 %v5954_v46  ;;  %v6041_v44 = vld [vmem:[%s8498_s1 + $0x944] ss:$8 sps:$4 sm:$0xff]   ;;  %v6036_v46 = vld [vmem:[%s8498_s1 + $0x840] ss:$8 sps:$4 sm:$0xff]  }
  0x99   :  { %1511 = vmatprep.subr.bf16.mxu1 %v5957_v47  ;;  %v6039_v47 = vld [vmem:[%s8498_s1 + $0x940] ss:$8 sps:$4 sm:$0xff]  }
  0x9b   :  { %1471 = vmatpush1.bf16.msra.mxu0 %v5952_v48  ;;  %v6044_v48 = vld [vmem:[%s8498_s1 + $0x854] ss:$8 sps:$4 sm:$0xff]  }
  0x9c   :  { %1512 = vmatpush1.bf16.msra.mxu1 %v5955_v49  ;;  %1472 = vmatprep.subr.bf16.mxu0 %v5960_v50  ;;  %v6047_v49 = vld [vmem:[%s8498_s1 + $0x954] ss:$8 sps:$4 sm:$0xff]   ;;  %v6042_v50 = vld [vmem:[%s8498_s1 + $0x850] ss:$8 sps:$4 sm:$0xff]  }
  0x9d   :  { %1513 = vmatprep.subr.bf16.mxu1 %v5963_v51  ;;  %v6045_v51 = vld [vmem:[%s8498_s1 + $0x950] ss:$8 sps:$4 sm:$0xff]  }
  0x9f   :  { %1473 = vmatpush1.bf16.msra.mxu0 %v5958_v53  ;;  %v6050_v53 = vld [vmem:[%s8498_s1 + $0x864] ss:$8 sps:$4 sm:$0xff]  }
  0xa0   :  { %1514 = vmatpush1.bf16.msra.mxu1 %v5961_v54  ;;  %1474 = vmatprep.subr.bf16.mxu0 %v5966_v55  ;;  %v6053_v54 = vld [vmem:[%s8498_s1 + $0x964] ss:$8 sps:$4 sm:$0xff]   ;;  %v6048_v55 = vld [vmem:[%s8498_s1 + $0x860] ss:$8 sps:$4 sm:$0xff]  }
  0xa1   :  { %1515 = vmatprep.subr.bf16.mxu1 %v5969_v56  ;;  %v6051_v56 = vld [vmem:[%s8498_s1 + $0x960] ss:$8 sps:$4 sm:$0xff]  }
  0xa3   :  { %1475 = vmatpush1.bf16.msra.mxu0 %v5964_v57  ;;  %v6056_v57 = vld [vmem:[%s8498_s1 + $0x874] ss:$8 sps:$4 sm:$0xff]  }
  0xa4   :  { %1516 = vmatpush1.bf16.msra.mxu1 %v5967_v58  ;;  %1476 = vmatprep.subr.bf16.mxu0 %v5972_v59  ;;  %v6059_v58 = vld [vmem:[%s8498_s1 + $0x974] ss:$8 sps:$4 sm:$0xff]   ;;  %v6054_v59 = vld [vmem:[%s8498_s1 + $0x870] ss:$8 sps:$4 sm:$0xff]  }
  0xa5   :  { %1517 = vmatprep.subr.bf16.mxu1 %v5975_v60  ;;  %v6057_v60 = vld [vmem:[%s8498_s1 + $0x970] ss:$8 sps:$4 sm:$0xff]  }
  0xa7   :  { %1477 = vmatpush1.bf16.msra.mxu0 %v5970_v61  ;;  %v6062_v61 = vld [vmem:[%s8498_s1 + $0x884] ss:$8 sps:$4 sm:$0xff]  }
  0xa8   :  { %1518 = vmatpush1.bf16.msra.mxu1 %v5973_v63  ;;  %1478 = vmatprep.subr.bf16.mxu0 %v5978_v0  ;;  %v6065_v63 = vld [vmem:[%s8498_s1 + $0x984] ss:$8 sps:$4 sm:$0xff]   ;;  %v6060_v0 = vld [vmem:[%s8498_s1 + $0x880] ss:$8 sps:$4 sm:$0xff]  }
  0xa9   :  { %1519 = vmatprep.subr.bf16.mxu1 %v5981_v1  ;;  %v6063_v1 = vld [vmem:[%s8498_s1 + $0x980] ss:$8 sps:$4 sm:$0xff]  }
  0xab   :  { %1479 = vmatpush1.bf16.msra.mxu0 %v5976_v2  ;;  %v6068_v2 = vld [vmem:[%s8498_s1 + $0x894] ss:$8 sps:$4 sm:$0xff]  }
  0xac   :  { %1520 = vmatpush1.bf16.msra.mxu1 %v5979_v3  ;;  %1480 = vmatprep.subr.bf16.mxu0 %v5984_v4  ;;  %v6071_v3 = vld [vmem:[%s8498_s1 + $0x994] ss:$8 sps:$4 sm:$0xff]   ;;  %v6066_v4 = vld [vmem:[%s8498_s1 + $0x890] ss:$8 sps:$4 sm:$0xff]  }
  0xad   :  { %1521 = vmatprep.subr.bf16.mxu1 %v5987_v5  ;;  %v6069_v5 = vld [vmem:[%s8498_s1 + $0x990] ss:$8 sps:$4 sm:$0xff]  }
  0xaf   :  { %1481 = vmatpush1.bf16.msra.mxu0 %v5982_v6  ;;  %v6074_v6 = vld [vmem:[%s8498_s1 + $0x8a4] ss:$8 sps:$4 sm:$0xff]  }
  0xb0   :  { %1522 = vmatpush1.bf16.msra.mxu1 %v5985_v7  ;;  %1482 = vmatprep.subr.bf16.mxu0 %v5990_v8  ;;  %v6077_v7 = vld [vmem:[%s8498_s1 + $0x9a4] ss:$8 sps:$4 sm:$0xff]   ;;  %v6072_v8 = vld [vmem:[%s8498_s1 + $0x8a0] ss:$8 sps:$4 sm:$0xff]  }
  0xb1   :  { %1523 = vmatprep.subr.bf16.mxu1 %v5993_v9  ;;  %v6075_v9 = vld [vmem:[%s8498_s1 + $0x9a0] ss:$8 sps:$4 sm:$0xff]  }
  0xb3   :  { %1483 = vmatpush1.bf16.msra.mxu0 %v5988_v10  ;;  %v6080_v10 = vld [vmem:[%s8498_s1 + $0x8b4] ss:$8 sps:$4 sm:$0xff]  }
  0xb4   :  { %1524 = vmatpush1.bf16.msra.mxu1 %v5991_v11  ;;  %1484 = vmatprep.subr.bf16.mxu0 %v5996_v12  ;;  %v6083_v11 = vld [vmem:[%s8498_s1 + $0x9b4] ss:$8 sps:$4 sm:$0xff]   ;;  %v6078_v12 = vld [vmem:[%s8498_s1 + $0x8b0] ss:$8 sps:$4 sm:$0xff]  }
  0xb5   :  { %1525 = vmatprep.subr.bf16.mxu1 %v5999_v13  ;;  %v6081_v13 = vld [vmem:[%s8498_s1 + $0x9b0] ss:$8 sps:$4 sm:$0xff]  }
  0xb7   :  { %1485 = vmatpush1.bf16.msra.mxu0 %v5994_v14  ;;  %v6086_v14 = vld [vmem:[%s8498_s1 + $0x8c4] ss:$8 sps:$4 sm:$0xff]  }
  0xb8   :  { %1526 = vmatpush1.bf16.msra.mxu1 %v5997_v17  ;;  %1486 = vmatprep.subr.bf16.mxu0 %v6002_v18  ;;  %v6089_v17 = vld [vmem:[%s8498_s1 + $0x9c4] ss:$8 sps:$4 sm:$0xff]   ;;  %v6084_v18 = vld [vmem:[%s8498_s1 + $0x8c0] ss:$8 sps:$4 sm:$0xff]  }
  0xb9   :  { %1527 = vmatprep.subr.bf16.mxu1 %v6005_v19  ;;  %v6087_v19 = vld [vmem:[%s8498_s1 + $0x9c0] ss:$8 sps:$4 sm:$0xff]  }
  0xbb   :  { %1487 = vmatpush1.bf16.msra.mxu0 %v6000_v20  ;;  %v6092_v20 = vld [vmem:[%s8498_s1 + $0x8d4] ss:$8 sps:$4 sm:$0xff]  }
  0xbc   :  { %1528 = vmatpush1.bf16.msra.mxu1 %v6003_v22  ;;  %1488 = vmatprep.subr.bf16.mxu0 %v6008_v24  ;;  %v6095_v22 = vld [vmem:[%s8498_s1 + $0x9d4] ss:$8 sps:$4 sm:$0xff]   ;;  %v6090_v24 = vld [vmem:[%s8498_s1 + $0x8d0] ss:$8 sps:$4 sm:$0xff]  }
  0xbd   :  { %1529 = vmatprep.subr.bf16.mxu1 %v6011_v26  ;;  %v6093_v26 = vld [vmem:[%s8498_s1 + $0x9d0] ss:$8 sps:$4 sm:$0xff]  }
  0xbf   :  { %1489 = vmatpush1.bf16.msra.mxu0 %v6006_v28  ;;  %v6101_v28 = vld [vmem:[%s8498_s1 + $0x9e4] ss:$8 sps:$4 sm:$0xff]  }
  0xc0   :  { %1530 = vmatpush1.bf16.msra.mxu1 %v6009_v15  ;;  %2047 = vmatprep.subr.bf16.mxu0 %v6014_v29  ;;  %v7410_v15 = vld.sshfl [vmem:[%s8499_s0] sm:$0x33 pattern:$0x75316420] }
  0xc1   :  { %2088 = vmatprep.subr.bf16.mxu1 %v6017_v30  ;;  %v6096_v29 = vld [vmem:[%s8498_s1 + $0x8e0] ss:$8 sps:$4 sm:$0xff]  }
  0xc2   :  { %1491 = vmatmul.mubr.bf16.vlgmr.msra.gmra.mrb[4].mxu0 %v6830_v16  ;;  %v6029_v16 = vld [vmem:[%s8498_s1 + $0x924] ss:$8 sps:$4 sm:$0xff]   ;;  %v6099_v30 = vld [vmem:[%s8498_s1 + $0x9e0] ss:$8 sps:$4 sm:$0xff]  }
  0xc3   :  { %1532 = vmatmul.mubr.bf16.vlgmr.msra.gmra.mrb[8].mxu1 %v7032_v25  ;;  %2048 = vmatpush1.bf16.msra.mxu0 %v6012_v32  ;;  %v6024_v25 = vld [vmem:[%s8498_s1 + $0x820] ss:$8 sps:$4 sm:$0xff]   ;;  %v6107_v32 = vld [vmem:[%s8498_s1 + $0x9f4] ss:$8 sps:$4 sm:$0xff]  }
  0xc4   :  { %2089 = vmatpush1.bf16.msra.mxu1 %v6015_v33  ;;  %2049 = vmatprep.subr.bf16.mxu0 %v6020_v34  ;;  %v2137_v33 = vcombine.high %v7410_v15, %v7410_v15  ;;  %v1713_v34 = vrot.slane %v7214_v23, %v6753_v52  ;;  %v6113_v23 = vld [vmem:[%s8498_s1 + $0x704] ss:$8 sps:$4 sm:$0xff]  }
  0xc5   :  { %2090 = vmatprep.subr.bf16.mxu1 %v6023_v35  ;;  %2079 = vmatprep.mubr.bf16.mxu0 %v1720_v31  ;;  %v6104_v31 = vld [vmem:[%s8498_s1 + $0x8f4] ss:$8 sps:$4 sm:$0xff]   ;;  %v6102_v35 = vld [vmem:[%s8498_s1 + $0x8f0] ss:$8 sps:$4 sm:$0xff]  }
  0xc6   :  { %2120 = vmatprep.mubr.bf16.mxu1 %v1722_v62  ;;  %v6105_v62 = vld [vmem:[%s8498_s1 + $0x9f0] ss:$8 sps:$4 sm:$0xff]  }
  0xc7   :  { %2050 = vmatpush1.bf16.msra.mxu0 %v6018_v21  ;;  %v6110_v21 = vld [vmem:[%s8498_s1 + $0x604] ss:$8 sps:$4 sm:$0xff]  }
  0xc8   :  { %2091 = vmatpush1.bf16.msra.mxu1 %v6021_v36  ;;  %2051 = vmatprep.subr.bf16.mxu0 %v6026_v37  ;;  %v7441_v36 = vrot.slane %v2137_v33, %v6753_v52  ;;  %v1721_v37 = vcombine.high %v1713_v34, %v1713_v34  ;;  %v6180_v33 = vld [vmem:[%s8498_s1 + $0x6c0] ss:$8 sps:$4 sm:$0xff]  }
  0xc9   :  { %2092 = vmatprep.subr.bf16.mxu1 %v6029_v16  ;;  %v6108_v16 = vld [vmem:[%s8498_s1 + $0x600] ss:$8 sps:$4 sm:$0xff]  }
  0xcb   :  { %2052 = vmatpush1.bf16.msra.mxu0 %v6024_v25  ;;  %v6111_v25 = vld [vmem:[%s8498_s1 + $0x700] ss:$8 sps:$4 sm:$0xff]  }
  0xcc   :  { %2093 = vmatpush1.bf16.msra.mxu1 %v6027_v38  ;;  %2053 = vmatprep.subr.bf16.mxu0 %v6032_v39  ;;  %v6116_v38 = vld [vmem:[%s8498_s1 + $0x614] ss:$8 sps:$4 sm:$0xff]  }
  0xcd   :  { %2094 = vmatprep.subr.bf16.mxu1 %v6035_v40  ;;  %v6119_v39 = vld [vmem:[%s8498_s1 + $0x714] ss:$8 sps:$4 sm:$0xff]   ;;  %v7457_v40 = vcombine.high %v7441_v36, %v7441_v36 }
  0xcf   :  { %2054 = vmatpush1.bf16.msra.mxu0 %v6030_v41  ;;  %v6114_v41 = vld [vmem:[%s8498_s1 + $0x610] ss:$8 sps:$4 sm:$0xff]  }
  0xd0   :  { %2095 = vmatpush1.bf16.msra.mxu1 %v6033_v42  ;;  %2055 = vmatprep.subr.bf16.mxu0 %v6038_v43  ;;  %v6117_v42 = vld [vmem:[%s8498_s1 + $0x710] ss:$8 sps:$4 sm:$0xff]   ;;  %v6122_v43 = vld [vmem:[%s8498_s1 + $0x624] ss:$8 sps:$4 sm:$0xff]  }
  0xd1   :  { %2096 = vmatprep.subr.bf16.mxu1 %v6041_v44  ;;  %v6125_v44 = vld [vmem:[%s8498_s1 + $0x724] ss:$8 sps:$4 sm:$0xff]  }
  0xd3   :  { %2056 = vmatpush1.bf16.msra.mxu0 %v6036_v46  ;;  %v6120_v46 = vld [vmem:[%s8498_s1 + $0x620] ss:$8 sps:$4 sm:$0xff]  }
  0xd4   :  { %2097 = vmatpush1.bf16.msra.mxu1 %v6039_v47  ;;  %2057 = vmatprep.subr.bf16.mxu0 %v6044_v48  ;;  %v6123_v47 = vld [vmem:[%s8498_s1 + $0x720] ss:$8 sps:$4 sm:$0xff]   ;;  %v6128_v48 = vld [vmem:[%s8498_s1 + $0x634] ss:$8 sps:$4 sm:$0xff]  }
  0xd5   :  { %2098 = vmatprep.subr.bf16.mxu1 %v6047_v49  ;;  %v6131_v49 = vld [vmem:[%s8498_s1 + $0x734] ss:$8 sps:$4 sm:$0xff]  }
  0xd7   :  { %2058 = vmatpush1.bf16.msra.mxu0 %v6042_v50  ;;  %v6126_v50 = vld [vmem:[%s8498_s1 + $0x630] ss:$8 sps:$4 sm:$0xff]  }
  0xd8   :  { %2099 = vmatpush1.bf16.msra.mxu1 %v6045_v51  ;;  %2059 = vmatprep.subr.bf16.mxu0 %v6050_v53  ;;  %v6129_v51 = vld [vmem:[%s8498_s1 + $0x730] ss:$8 sps:$4 sm:$0xff]   ;;  %v6134_v53 = vld [vmem:[%s8498_s1 + $0x644] ss:$8 sps:$4 sm:$0xff]  }
  0xd9   :  { %2100 = vmatprep.subr.bf16.mxu1 %v6053_v54  ;;  %v6137_v54 = vld [vmem:[%s8498_s1 + $0x744] ss:$8 sps:$4 sm:$0xff]  }
  0xdb   :  { %2060 = vmatpush1.bf16.msra.mxu0 %v6048_v55  ;;  %v6132_v55 = vld [vmem:[%s8498_s1 + $0x640] ss:$8 sps:$4 sm:$0xff]  }
  0xdc   :  { %2101 = vmatpush1.bf16.msra.mxu1 %v6051_v56  ;;  %2061 = vmatprep.subr.bf16.mxu0 %v6056_v57  ;;  %v6135_v56 = vld [vmem:[%s8498_s1 + $0x740] ss:$8 sps:$4 sm:$0xff]   ;;  %v6140_v57 = vld [vmem:[%s8498_s1 + $0x654] ss:$8 sps:$4 sm:$0xff]  }
  0xdd   :  { %2102 = vmatprep.subr.bf16.mxu1 %v6059_v58  ;;  %v6143_v58 = vld [vmem:[%s8498_s1 + $0x754] ss:$8 sps:$4 sm:$0xff]  }
  0xdf   :  { %2062 = vmatpush1.bf16.msra.mxu0 %v6054_v59  ;;  %v6138_v59 = vld [vmem:[%s8498_s1 + $0x650] ss:$8 sps:$4 sm:$0xff]  }
  0xe0   :  { %2103 = vmatpush1.bf16.msra.mxu1 %v6057_v60  ;;  %2063 = vmatprep.subr.bf16.mxu0 %v6062_v61  ;;  %v6141_v60 = vld [vmem:[%s8498_s1 + $0x750] ss:$8 sps:$4 sm:$0xff]   ;;  %v6146_v61 = vld [vmem:[%s8498_s1 + $0x664] ss:$8 sps:$4 sm:$0xff]  }
  0xe1   :  { %2104 = vmatprep.subr.bf16.mxu1 %v6065_v63  ;;  %v6149_v63 = vld [vmem:[%s8498_s1 + $0x764] ss:$8 sps:$4 sm:$0xff]  }
  0xe3   :  { %2064 = vmatpush1.bf16.msra.mxu0 %v6060_v0 }
  0xe4   :  { %2105 = vmatpush1.bf16.msra.mxu1 %v6063_v1  ;;  %2065 = vmatprep.subr.bf16.mxu0 %v6068_v2  ;;  %v6144_v1 = vld [vmem:[%s8498_s1 + $0x660] ss:$8 sps:$4 sm:$0xff]  }
  0xe5   :  { %2106 = vmatprep.subr.bf16.mxu1 %v6071_v3  ;;  %v6147_v2 = vld [vmem:[%s8498_s1 + $0x760] ss:$8 sps:$4 sm:$0xff]  }
  0xe7   :  { %2066 = vmatpush1.bf16.msra.mxu0 %v6066_v4 }
  0xe8   :  { %2107 = vmatpush1.bf16.msra.mxu1 %v6069_v5  ;;  %2067 = vmatprep.subr.bf16.mxu0 %v6074_v6  ;;  %v6152_v6 = vld [vmem:[%s8498_s1 + $0x674] ss:$8 sps:$4 sm:$0xff]  }
  0xe9   :  { %2108 = vmatprep.subr.bf16.mxu1 %v6077_v7  ;;  %v6155_v7 = vld [vmem:[%s8498_s1 + $0x774] ss:$8 sps:$4 sm:$0xff]  }
  0xeb   :  { %2068 = vmatpush1.bf16.msra.mxu0 %v6072_v8  ;;  %v6150_v8 = vld [vmem:[%s8498_s1 + $0x670] ss:$8 sps:$4 sm:$0xff]  }
  0xec   :  { %2109 = vmatpush1.bf16.msra.mxu1 %v6075_v9  ;;  %2069 = vmatprep.subr.bf16.mxu0 %v6080_v10  ;;  %v6153_v9 = vld [vmem:[%s8498_s1 + $0x770] ss:$8 sps:$4 sm:$0xff]   ;;  %v6158_v10 = vld [vmem:[%s8498_s1 + $0x684] ss:$8 sps:$4 sm:$0xff]  }
  0xed   :  { %2110 = vmatprep.subr.bf16.mxu1 %v6083_v11  ;;  %v6161_v11 = vld [vmem:[%s8498_s1 + $0x784] ss:$8 sps:$4 sm:$0xff]  }
  0xef   :  { %2070 = vmatpush1.bf16.msra.mxu0 %v6078_v12  ;;  %v6156_v12 = vld [vmem:[%s8498_s1 + $0x680] ss:$8 sps:$4 sm:$0xff]  }
  0xf0   :  { %2111 = vmatpush1.bf16.msra.mxu1 %v6081_v13  ;;  %2071 = vmatprep.subr.bf16.mxu0 %v6086_v14  ;;  %v6159_v13 = vld [vmem:[%s8498_s1 + $0x780] ss:$8 sps:$4 sm:$0xff]   ;;  %v6164_v14 = vld [vmem:[%s8498_s1 + $0x694] ss:$8 sps:$4 sm:$0xff]  }
  0xf1   :  { %2112 = vmatprep.subr.bf16.mxu1 %v6089_v17  ;;  %v6167_v17 = vld [vmem:[%s8498_s1 + $0x794] ss:$8 sps:$4 sm:$0xff]  }
  0xf3   :  { %2072 = vmatpush1.bf16.msra.mxu0 %v6084_v18  ;;  %v6162_v18 = vld [vmem:[%s8498_s1 + $0x690] ss:$8 sps:$4 sm:$0xff]  }
  0xf4   :  { %2113 = vmatpush1.bf16.msra.mxu1 %v6087_v19  ;;  %2073 = vmatprep.subr.bf16.mxu0 %v6092_v20  ;;  %v6165_v19 = vld [vmem:[%s8498_s1 + $0x790] ss:$8 sps:$4 sm:$0xff]   ;;  %v6170_v20 = vld [vmem:[%s8498_s1 + $0x6a4] ss:$8 sps:$4 sm:$0xff]  }
  0xf5   :  { %2114 = vmatprep.subr.bf16.mxu1 %v6095_v22  ;;  %v6173_v22 = vld [vmem:[%s8498_s1 + $0x7a4] ss:$8 sps:$4 sm:$0xff]  }
  0xf7   :  { %2074 = vmatpush1.bf16.msra.mxu0 %v6090_v24  ;;  %v6168_v24 = vld [vmem:[%s8498_s1 + $0x6a0] ss:$8 sps:$4 sm:$0xff]  }
  0xf8   :  { %2115 = vmatpush1.bf16.msra.mxu1 %v6093_v26  ;;  %2075 = vmatprep.subr.bf16.mxu0 %v6098_v27  ;;  %v6171_v26 = vld [vmem:[%s8498_s1 + $0x7a0] ss:$8 sps:$4 sm:$0xff]   ;;  %v6176_v27 = vld [vmem:[%s8498_s1 + $0x6b4] ss:$8 sps:$4 sm:$0xff]  }
  0xf9   :  { %2116 = vmatprep.subr.bf16.mxu1 %v6101_v28  ;;  %v6179_v28 = vld [vmem:[%s8498_s1 + $0x7b4] ss:$8 sps:$4 sm:$0xff]  }
  0xfb   :  { %2076 = vmatpush1.bf16.msra.mxu0 %v6096_v29  ;;  %v6174_v29 = vld [vmem:[%s8498_s1 + $0x6b0] ss:$8 sps:$4 sm:$0xff]  }
  0xfc   :  { %2117 = vmatpush1.bf16.msra.mxu1 %v6099_v30  ;;  %2077 = vmatprep.subr.bf16.mxu0 %v6104_v31  ;;  %v6177_v30 = vld [vmem:[%s8498_s1 + $0x7b0] ss:$8 sps:$4 sm:$0xff]   ;;  %v6182_v31 = vld [vmem:[%s8498_s1 + $0x6c4] ss:$8 sps:$4 sm:$0xff]  }
  0xfd   :  { %2118 = vmatprep.subr.bf16.mxu1 %v6107_v32  ;;  %v6185_v32 = vld [vmem:[%s8498_s1 + $0x7c4] ss:$8 sps:$4 sm:$0xff]  }
  0xff   :  { %2078 = vmatpush1.bf16.msra.mxu0 %v6102_v35  ;;  %v6188_v35 = vld [vmem:[%s8498_s1 + $0x6d4] ss:$8 sps:$4 sm:$0xff]  }
 0x100   :  { %2119 = vmatpush1.bf16.msra.mxu1 %v6105_v62  ;;  %2478 = vmatprep.subr.bf16.mxu0 %v6110_v21  ;;  %v6191_v62 = vld [vmem:[%s8498_s1 + $0x7d4] ss:$8 sps:$4 sm:$0xff]   ;;  %v6186_v21 = vld [vmem:[%s8498_s1 + $0x6d0] ss:$8 sps:$4 sm:$0xff]  }
 0x101   :  { %2519 = vmatprep.subr.bf16.mxu1 %v6113_v23  ;;  %v6189_v23 = vld [vmem:[%s8498_s1 + $0x7d0] ss:$8 sps:$4 sm:$0xff]  }
 0x102   :  { %2080 = vmatmul.mubr.bf16.vlgmr.msra.gmra.mrb[8].mxu0 %v1713_v34  ;;  %v6183_v34 = vld [vmem:[%s8498_s1 + $0x7c0] ss:$8 sps:$4 sm:$0xff]  }
 0x103   :  { %2121 = vmatmul.mubr.bf16.vlgmr.msra.gmra.mrb[12].mxu1 %v1721_v37  ;;  %2479 = vmatpush1.bf16.msra.mxu0 %v6108_v16  ;;  %v6194_v37 = vld [vmem:[%s8498_s1 + $0x6e4] ss:$8 sps:$4 sm:$0xff]  }
 0x104   :  { %2520 = vmatpush1.bf16.msra.mxu1 %v6111_v25  ;;  %2480 = vmatprep.subr.bf16.mxu0 %v6116_v38  ;;  %v6197_v16 = vld [vmem:[%s8498_s1 + $0x7e4] ss:$8 sps:$4 sm:$0xff]   ;;  %v6192_v38 = vld [vmem:[%s8498_s1 + $0x6e0] ss:$8 sps:$4 sm:$0xff]  }
 0x105   :  { %2521 = vmatprep.subr.bf16.mxu1 %v6119_v39  ;;  %2510 = vmatprep.mubr.bf16.mxu0 %v7441_v36  ;;  %v7624_v25 = vld.sshfl [vmem:[%s8499_s0 + $0x4] sm:$0x33 pattern:$0x75316420]  ;;  %v6195_v39 = vld [vmem:[%s8498_s1 + $0x7e0] ss:$8 sps:$4 sm:$0xff]  }
 0x106   :  { %2551 = vmatprep.mubr.bf16.mxu1 %v7457_v40 }
 0x107   :  { %2481 = vmatpush1.bf16.msra.mxu0 %v6114_v41  ;;  %v6200_v41 = vld [vmem:[%s8498_s1 + $0x6f4] ss:$8 sps:$4 sm:$0xff]  }
 0x108   :  { %2522 = vmatpush1.bf16.msra.mxu1 %v6117_v42  ;;  %2482 = vmatprep.subr.bf16.mxu0 %v6122_v43  ;;  %v6203_v42 = vld [vmem:[%s8498_s1 + $0x7f4] ss:$8 sps:$4 sm:$0xff]   ;;  %v2725_v43 = vcombine.high %v7624_v25, %v7624_v25 }
 0x109   :  { %2523 = vmatprep.subr.bf16.mxu1 %v6125_v44  ;;  %v7642_v44 = vrot.slane %v7410_v15, %v6753_v52  ;;  %v6209_v15 = vld [vmem:[%s8498_s1 + $0xd04] ss:$8 sps:$4 sm:$0xff]  }
 0x10b   :  { %2483 = vmatpush1.bf16.msra.mxu0 %v6120_v46  ;;  %v6198_v46 = vld [vmem:[%s8498_s1 + $0x6f0] ss:$8 sps:$4 sm:$0xff]  }
 0x10c   :  { %2524 = vmatpush1.bf16.msra.mxu1 %v6123_v47  ;;  %2484 = vmatprep.subr.bf16.mxu0 %v6128_v48  ;;  %v6201_v47 = vld [vmem:[%s8498_s1 + $0x7f0] ss:$8 sps:$4 sm:$0xff]   ;;  %v6206_v48 = vld [vmem:[%s8498_s1 + $0xc04] ss:$8 sps:$4 sm:$0xff]  }
 0x10d   :  { %2525 = vmatprep.subr.bf16.mxu1 %v6131_v49  ;;  %v6204_v49 = vld [vmem:[%s8498_s1 + $0xc00] ss:$8 sps:$4 sm:$0xff]  }
 0x10f   :  { %2485 = vmatpush1.bf16.msra.mxu0 %v6126_v50  ;;  %v6207_v50 = vld [vmem:[%s8498_s1 + $0xd00] ss:$8 sps:$4 sm:$0xff]  }
 0x110   :  { %2526 = vmatpush1.bf16.msra.mxu1 %v6129_v51  ;;  %2486 = vmatprep.subr.bf16.mxu0 %v6134_v53  ;;  %v2739_v51 = vrot.slane %v2725_v43, %v6753_v52  ;;  %v7665_v53 = vcombine.high %v7642_v44, %v7642_v44  ;;  %v6257_v43 = vld [vmem:[%s8498_s1 + $0xd84] ss:$8 sps:$4 sm:$0xff]  }
 0x111   :  { %2527 = vmatprep.subr.bf16.mxu1 %v6137_v54  ;;  %v6212_v54 = vld [vmem:[%s8498_s1 + $0xc14] ss:$8 sps:$4 sm:$0xff]  }
 0x113   :  { %2487 = vmatpush1.bf16.msra.mxu0 %v6132_v55  ;;  %v6215_v55 = vld [vmem:[%s8498_s1 + $0xd14] ss:$8 sps:$4 sm:$0xff]  }
 0x114   :  { %2528 = vmatpush1.bf16.msra.mxu1 %v6135_v56  ;;  %2488 = vmatprep.subr.bf16.mxu0 %v6140_v57  ;;  %v2741_v56 = vcombine.high %v2739_v51, %v2739_v51  ;;  %v6210_v57 = vld [vmem:[%s8498_s1 + $0xc10] ss:$8 sps:$4 sm:$0xff]  }
 0x115   :  { %2529 = vmatprep.subr.bf16.mxu1 %v6143_v58  ;;  %v6213_v58 = vld [vmem:[%s8498_s1 + $0xd10] ss:$8 sps:$4 sm:$0xff]  }
 0x116   :  { %v7521_v0 = vpop.f32.mrb[0].mxu1 }
 0x117   :  { %v7529_v3 = vpop.f32.mrb[1].mxu1  ;;  %2489 = vmatpush1.bf16.msra.mxu0 %v6138_v59  ;;  %v6218_v59 = vld [vmem:[%s8498_s1 + $0xc24] ss:$8 sps:$4 sm:$0xff]  }
 0x118   :  { %v1065_v4 = vpop.f32.mrb[2].mxu1  ;;  %2530 = vmatpush1.bf16.msra.mxu1 %v6141_v60  ;;  %2490 = vmatprep.subr.bf16.mxu0 %v6146_v61  ;;  %v6221_v60 = vld [vmem:[%s8498_s1 + $0xd24] ss:$8 sps:$4 sm:$0xff]   ;;  %v6216_v61 = vld [vmem:[%s8498_s1 + $0xc20] ss:$8 sps:$4 sm:$0xff]  }
 0x119   :  { %v1066_v5 = vpop.f32.mrb[3].mxu1  ;;  %2531 = vmatprep.subr.bf16.mxu1 %v6149_v63  ;;  %v6219_v63 = vld [vmem:[%s8498_s1 + $0xd20] ss:$8 sps:$4 sm:$0xff]   ;;  %v6222_v4 = vld [vmem:[%s8498_s1 + $0xc30] ss:$8 sps:$4 sm:$0xff]  }
 0x11a   :  { %v6225_v5 = vld [vmem:[%s8498_s1 + $0xd30] ss:$8 sps:$4 sm:$0xff]  }
 0x11b   :  { %2491 = vmatpush1.bf16.msra.mxu0 %v6144_v1  ;;  %v6224_v1 = vld [vmem:[%s8498_s1 + $0xc34] ss:$8 sps:$4 sm:$0xff]  }
 0x11c   :  { %2532 = vmatpush1.bf16.msra.mxu1 %v6147_v2  ;;  %2492 = vmatprep.subr.bf16.mxu0 %v6152_v6  ;;  %v6227_v2 = vld [vmem:[%s8498_s1 + $0xd34] ss:$8 sps:$4 sm:$0xff]   ;;  %v6230_v6 = vld [vmem:[%s8498_s1 + $0xc44] ss:$8 sps:$4 sm:$0xff]  }
 0x11d   :  { %2533 = vmatprep.subr.bf16.mxu1 %v6155_v7  ;;  %v6233_v7 = vld [vmem:[%s8498_s1 + $0xd44] ss:$8 sps:$4 sm:$0xff]  }
 0x11f   :  { %2493 = vmatpush1.bf16.msra.mxu0 %v6150_v8  ;;  %v6228_v8 = vld [vmem:[%s8498_s1 + $0xc40] ss:$8 sps:$4 sm:$0xff]  }
 0x120   :  { %2534 = vmatpush1.bf16.msra.mxu1 %v6153_v9  ;;  %2494 = vmatprep.subr.bf16.mxu0 %v6158_v10  ;;  %v83_v9 = vsub.s32 0, %v6735_v45  ;;  %v6231_v10 = vld [vmem:[%s8498_s1 + $0xd40] ss:$8 sps:$4 sm:$0xff]  }
 0x121   :  { %2535 = vmatprep.subr.bf16.mxu1 %v6161_v11  ;;  %v14_v11 = vld [vmem:[%s8500_s2] sm:$0x3] }
 0x123   :  { %2495 = vmatpush1.bf16.msra.mxu0 %v6156_v12  ;;  %v87_v12 = vsub.s32 1, %v6735_v45 }
 0x124   :  { %2536 = vmatpush1.bf16.msra.mxu1 %v6159_v13  ;;  %2496 = vmatprep.subr.bf16.mxu0 %v6164_v14  ;;  %v6236_v13 = vld [vmem:[%s8498_s1 + $0xc54] ss:$8 sps:$4 sm:$0xff]  }
 0x125   :  { %2537 = vmatprep.subr.bf16.mxu1 %v6167_v17  ;;  %v6239_v14 = vld [vmem:[%s8498_s1 + $0xd54] ss:$8 sps:$4 sm:$0xff]   ;;  %v6234_v17 = vld [vmem:[%s8498_s1 + $0xc50] ss:$8 sps:$4 sm:$0xff]   ;;  %v7736_v45 = vrot.slane %v14_v11, %v87_v12  ;;  %v6291_v12 = vld [vmem:[%s8498_s1 + $0xde0] ss:$8 sps:$4 sm:$0xff]  }
 0x127   :  { %2497 = vmatpush1.bf16.msra.mxu0 %v6162_v18  ;;  %v6237_v18 = vld [vmem:[%s8498_s1 + $0xd50] ss:$8 sps:$4 sm:$0xff]  }
 0x128   :  { %2538 = vmatpush1.bf16.msra.mxu1 %v6165_v19  ;;  %2498 = vmatprep.subr.bf16.mxu0 %v6170_v20  ;;  %v7734_v19 = vrot.slane %v14_v11, %v83_v9  ;;  %v6242_v20 = vld [vmem:[%s8498_s1 + $0xc64] ss:$8 sps:$4 sm:$0xff]   ;;  %v6288_v11 = vld [vmem:[%s8498_s1 + $0xce0] ss:$8 sps:$4 sm:$0xff]  }
 0x129   :  { %2539 = vmatprep.subr.bf16.mxu1 %v6173_v22  ;;  %v6245_v22 = vld [vmem:[%s8498_s1 + $0xd64] ss:$8 sps:$4 sm:$0xff]  }
 0x12a   :  { %v6290_v9 = vld [vmem:[%s8498_s1 + $0xce4] ss:$8 sps:$4 sm:$0xff]  }
 0x12b   :  { %2499 = vmatpush1.bf16.msra.mxu0 %v6168_v24 }
 0x12c   :  { %2540 = vmatpush1.bf16.msra.mxu1 %v6171_v26  ;;  %2500 = vmatprep.subr.bf16.mxu0 %v6176_v27  ;;  %v6240_v27 = vld [vmem:[%s8498_s1 + $0xc60] ss:$8 sps:$4 sm:$0xff]  }
 0x12d   :  { %2541 = vmatprep.subr.bf16.mxu1 %v6179_v28  ;;  %v6243_v28 = vld [vmem:[%s8498_s1 + $0xd60] ss:$8 sps:$4 sm:$0xff]  }
 0x12f   :  { %2501 = vmatpush1.bf16.msra.mxu0 %v6174_v29 }
 0x130   :  { %2542 = vmatpush1.bf16.msra.mxu1 %v6177_v30  ;;  %2502 = vmatprep.subr.bf16.mxu0 %v6182_v31 }
 0x131   :  { %2543 = vmatprep.subr.bf16.mxu1 %v6185_v32 }
 0x133   :  { %2503 = vmatpush1.bf16.msra.mxu0 %v6180_v33  ;;  %v6248_v33 = vld [vmem:[%s8498_s1 + $0xc74] ss:$8 sps:$4 sm:$0xff]  }
 0x134   :  { %2544 = vmatpush1.bf16.msra.mxu1 %v6183_v34  ;;  %2504 = vmatprep.subr.bf16.mxu0 %v6188_v35 }
 0x135   :  { %2545 = vmatprep.subr.bf16.mxu1 %v6191_v62 }
 0x137   :  { %2505 = vmatpush1.bf16.msra.mxu0 %v6186_v21 }
 0x138   :  { %2546 = vmatpush1.bf16.msra.mxu1 %v6189_v23  ;;  %2506 = vmatprep.subr.bf16.mxu0 %v6194_v37 }
 0x139   :  { %2547 = vmatprep.subr.bf16.mxu1 %v6197_v16 }
 0x13b   :  { %2507 = vmatpush1.bf16.msra.mxu0 %v6192_v38 }
 0x13c   :  { %2548 = vmatpush1.bf16.msra.mxu1 %v6195_v39  ;;  %2508 = vmatprep.subr.bf16.mxu0 %v6200_v41  ;;  %v6249_v41 = vld [vmem:[%s8498_s1 + $0xd70] ss:$8 sps:$4 sm:$0xff]  }
 0x13d   :  { %2549 = vmatprep.subr.bf16.mxu1 %v6203_v42  ;;  %v6254_v42 = vld [vmem:[%s8498_s1 + $0xc84] ss:$8 sps:$4 sm:$0xff]  }
 0x13f   :  { %2509 = vmatpush1.bf16.msra.mxu0 %v6198_v46 }
 0x140   :  { %2550 = vmatpush1.bf16.msra.mxu1 %v6201_v47  ;;  %3066 = vmatprep.subr.bf16.mxu0 %v6206_v48  ;;  %v6252_v47 = vld [vmem:[%s8498_s1 + $0xc80] ss:$8 sps:$4 sm:$0xff]  }
 0x141   :  { %3107 = vmatprep.subr.bf16.mxu1 %v6209_v15  ;;  %v6255_v48 = vld [vmem:[%s8498_s1 + $0xd80] ss:$8 sps:$4 sm:$0xff]   ;;  %v6260_v15 = vld [vmem:[%s8498_s1 + $0xc94] ss:$8 sps:$4 sm:$0xff]  }
 0x142   :  { %2511 = vmatmul.mubr.bf16.vlgmr.msra.gmra.mrb[12].mxu0 %v7642_v44 }
 0x143   :  { %2552 = vmatmul.mubr.bf16.vlgmr.msra.gmra.mrb[16].mxu1 %v7665_v53  ;;  %3067 = vmatpush1.bf16.msra.mxu0 %v6204_v49  ;;  %v6263_v49 = vld [vmem:[%s8498_s1 + $0xd94] ss:$8 sps:$4 sm:$0xff]  }
 0x144   :  { %3108 = vmatpush1.bf16.msra.mxu1 %v6207_v50  ;;  %3068 = vmatprep.subr.bf16.mxu0 %v6212_v54  ;;  %v6258_v50 = vld [vmem:[%s8498_s1 + $0xc90] ss:$8 sps:$4 sm:$0xff]   ;;  %v6266_v54 = vld [vmem:[%s8498_s1 + $0xca4] ss:$8 sps:$4 sm:$0xff]  }
 0x145   :  { %3109 = vmatprep.subr.bf16.mxu1 %v6215_v55  ;;  %3098 = vmatprep.mubr.bf16.mxu0 %v2739_v51  ;;  %v6261_v51 = vld [vmem:[%s8498_s1 + $0xd90] ss:$8 sps:$4 sm:$0xff]   ;;  %v6269_v55 = vld [vmem:[%s8498_s1 + $0xda4] ss:$8 sps:$4 sm:$0xff]  }
 0x146   :  { %3139 = vmatprep.mubr.bf16.mxu1 %v2741_v56  ;;  %v6264_v56 = vld [vmem:[%s8498_s1 + $0xca0] ss:$8 sps:$4 sm:$0xff]  }
 0x147   :  { %3069 = vmatpush1.bf16.msra.mxu0 %v6210_v57  ;;  %v6267_v57 = vld [vmem:[%s8498_s1 + $0xda0] ss:$8 sps:$4 sm:$0xff]  }
 0x148   :  { %3110 = vmatpush1.bf16.msra.mxu1 %v6213_v58  ;;  %3070 = vmatprep.subr.bf16.mxu0 %v6218_v59  ;;  %v6272_v58 = vld [vmem:[%s8498_s1 + $0xcb4] ss:$8 sps:$4 sm:$0xff]  }
 0x149   :  { %3111 = vmatprep.subr.bf16.mxu1 %v6221_v60  ;;  %v6275_v59 = vld [vmem:[%s8498_s1 + $0xdb4] ss:$8 sps:$4 sm:$0xff]   ;;  %v6270_v60 = vld [vmem:[%s8498_s1 + $0xcb0] ss:$8 sps:$4 sm:$0xff]  }
 0x14b   :  { %3071 = vmatpush1.bf16.msra.mxu0 %v6216_v61  ;;  %v6273_v61 = vld [vmem:[%s8498_s1 + $0xdb0] ss:$8 sps:$4 sm:$0xff]  }
 0x14c   :  { %3112 = vmatpush1.bf16.msra.mxu1 %v6219_v63  ;;  %3072 = vmatprep.subr.bf16.mxu0 %v6224_v1  ;;  %v6278_v63 = vld [vmem:[%s8498_s1 + $0xcc4] ss:$8 sps:$4 sm:$0xff]  }
 0x14d   :  { %3113 = vmatprep.subr.bf16.mxu1 %v6227_v2  ;;  %v6281_v1 = vld [vmem:[%s8498_s1 + $0xdc4] ss:$8 sps:$4 sm:$0xff]   ;;  %v6276_v2 = vld [vmem:[%s8498_s1 + $0xcc0] ss:$8 sps:$4 sm:$0xff]  }
 0x14f   :  { %3073 = vmatpush1.bf16.msra.mxu0 %v6222_v4  ;;  %v6279_v4 = vld [vmem:[%s8498_s1 + $0xdc0] ss:$8 sps:$4 sm:$0xff]  }
 0x150   :  { %3114 = vmatpush1.bf16.msra.mxu1 %v6225_v5  ;;  %3074 = vmatprep.subr.bf16.mxu0 %v6230_v6  ;;  %v6284_v5 = vld [vmem:[%s8498_s1 + $0xcd4] ss:$8 sps:$4 sm:$0xff]  }
 0x151   :  { %3115 = vmatprep.subr.bf16.mxu1 %v6233_v7  ;;  %v6287_v6 = vld [vmem:[%s8498_s1 + $0xdd4] ss:$8 sps:$4 sm:$0xff]   ;;  %v6282_v7 = vld [vmem:[%s8498_s1 + $0xcd0] ss:$8 sps:$4 sm:$0xff]  }
 0x153   :  { %3075 = vmatpush1.bf16.msra.mxu0 %v6228_v8  ;;  %v6285_v8 = vld [vmem:[%s8498_s1 + $0xdd0] ss:$8 sps:$4 sm:$0xff]  }
 0x154   :  { %3116 = vmatpush1.bf16.msra.mxu1 %v6231_v10  ;;  %3076 = vmatprep.subr.bf16.mxu0 %v6236_v13  ;;  %v6293_v10 = vld [vmem:[%s8498_s1 + $0xde4] ss:$8 sps:$4 sm:$0xff]   ;;  %v6296_v13 = vld [vmem:[%s8498_s1 + $0xcf4] ss:$8 sps:$4 sm:$0xff]  }
 0x155   :  { %3117 = vmatprep.subr.bf16.mxu1 %v6239_v14  ;;  %v515_v24 = vpop.f32.mrb[0].mxu0  ;;  %v6299_v14 = vld [vmem:[%s8498_s1 + $0xdf4] ss:$8 sps:$4 sm:$0xff]  }
 0x156   :  { %v1102_v26 = vpop.f32.mrb[4].mxu1  ;;  %v5717_v29 = vadd.f32 %v515_v24, %v7734_v19  ;;  %v517_v31 = vpop.f32.mrb[1].mxu0 }
 0x157   :  { %v7752_v30 = vadd.f32 %v1102_v26, %v7521_v0  ;;  %v1104_v32 = vpop.f32.mrb[5].mxu1  ;;  %v5718_v34 = vadd.f32 %v517_v31, %v7736_v45  ;;  %v519_v62 = vpop.f32.mrb[2].mxu0  ;;  %3077 = vmatpush1.bf16.msra.mxu0 %v6234_v17  ;;  %v6251_v0 = vld [vmem:[%s8498_s1 + $0xd74] ss:$8 sps:$4 sm:$0xff]   ;;  %v2732_v17 = vrot.slane %v7624_v25, %v6753_v52  ;;  %v6305_v25 = vld [vmem:[%s8498_s1 + $0xb04] ss:$8 sps:$4 sm:$0xff]  }
 0x158   :  { %v7759_v35 = vadd.f32 %v1104_v32, %v7529_v3  ;;  %v1106_v21 = vpop.f32.mrb[6].mxu1  ;;  %3118 = vmatpush1.bf16.msra.mxu1 %v6237_v18  ;;  %v522_v23 = vmax.f32 %v5717_v29, 0.0  ;;  %v520_v37 = vpop.f32.mrb[3].mxu0  ;;  %3078 = vmatprep.subr.bf16.mxu0 %v6242_v20  ;;  %v6246_v3 = vld [vmem:[%s8498_s1 + $0xc70] ss:$8 sps:$4 sm:$0xff]  }
 0x159   :  { %v1107_v16 = vpop.f32.mrb[7].mxu1  ;;  %3119 = vmatprep.subr.bf16.mxu1 %v6245_v22  ;;  %v523_v38 = vmax.f32 %v5718_v34, 0.0  ;;  %v6294_v18 = vld [vmem:[%s8498_s1 + $0xcf0] ss:$8 sps:$4 sm:$0xff]   ;;  %v6302_v22 = vld [vmem:[%s8498_s1 + $0xa04] ss:$8 sps:$4 sm:$0xff]   ;;  %v2740_v24 = vcombine.high %v2732_v17, %v2732_v17 }
 0x15a   :  { %v6297_v20 = vld [vmem:[%s8498_s1 + $0xdf0] ss:$8 sps:$4 sm:$0xff]   ;;  %v6300_v26 = vld [vmem:[%s8498_s1 + $0xa00] ss:$8 sps:$4 sm:$0xff]   ;;  %v6311_v29 = vld [vmem:[%s8498_s1 + $0xb14] ss:$8 sps:$4 sm:$0xff]  }
 0x15b   :  { %v4672_v39 = vpack.c.bf16 %v523_v38, %v522_v23  ;;  %3079 = vmatpush1.bf16.msra.mxu0 %v6240_v27  ;;  %v6303_v27 = vld [vmem:[%s8498_s1 + $0xb00] ss:$8 sps:$4 sm:$0xff]   ;;  %v6306_v31 = vld [vmem:[%s8498_s1 + $0xa10] ss:$8 sps:$4 sm:$0xff]   ;;  %v6317_v34 = vld [vmem:[%s8498_s1 + $0xb24] ss:$8 sps:$4 sm:$0xff]  }
 0x15c   :  { %3120 = vmatpush1.bf16.msra.mxu1 %v6243_v28  ;;  %3080 = vmatprep.subr.bf16.mxu0 %v6248_v33  ;;  %v6308_v28 = vld [vmem:[%s8498_s1 + $0xa14] ss:$8 sps:$4 sm:$0xff]   ;;  %v6309_v32 = vld [vmem:[%s8498_s1 + $0xb10] ss:$8 sps:$4 sm:$0xff]   ;;  %v6314_v33 = vld [vmem:[%s8498_s1 + $0xa24] ss:$8 sps:$4 sm:$0xff]  }
 0x15d   :  { %3121 = vmatprep.subr.bf16.mxu1 %v6251_v0  ;;  %v535_v46 = vrot.slane %v4672_v39, %v6753_v52  ;;  %v6312_v62 = vld [vmem:[%s8498_s1 + $0xa20] ss:$8 sps:$4 sm:$0xff]   ;;  %v6320_v23 = vld [vmem:[%s8498_s1 + $0xa34] ss:$8 sps:$4 sm:$0xff]   ;;  %v6321_v37 = vld [vmem:[%s8498_s1 + $0xb30] ss:$8 sps:$4 sm:$0xff]  }
 0x15e   :  { %v6315_v21 = vld [vmem:[%s8498_s1 + $0xb20] ss:$8 sps:$4 sm:$0xff]   ;;  %v6326_v16 = vld [vmem:[%s8498_s1 + $0xa44] ss:$8 sps:$4 sm:$0xff]  }
 0x15f   :  { %4673 = vst.sshfl [vmem:[%s8501_s3] sm:$0x5 pattern:$0x73625140] %v535_v46  ;;  %3081 = vmatpush1.bf16.msra.mxu0 %v6246_v3  ;;  %v6329_v0 = vld [vmem:[%s8498_s1 + $0xb44] ss:$8 sps:$4 sm:$0xff]  }
 0x160   :  { %3122 = vmatpush1.bf16.msra.mxu1 %v6249_v41  ;;  %3082 = vmatprep.subr.bf16.mxu0 %v6254_v42  ;;  %v6324_v38 = vld [vmem:[%s8498_s1 + $0xa40] ss:$8 sps:$4 sm:$0xff]   ;;  %v6332_v3 = vld [vmem:[%s8498_s1 + $0xa54] ss:$8 sps:$4 sm:$0xff]   ;;  %v6330_v42 = vld [vmem:[%s8498_s1 + $0xa50] ss:$8 sps:$4 sm:$0xff]  }
 0x161   :  { %3123 = vmatprep.subr.bf16.mxu1 %v6257_v43  ;;  %v6327_v39 = vld [vmem:[%s8498_s1 + $0xb40] ss:$8 sps:$4 sm:$0xff]   ;;  %v6335_v41 = vld [vmem:[%s8498_s1 + $0xb54] ss:$8 sps:$4 sm:$0xff]   ;;  %v6333_v43 = vld [vmem:[%s8498_s1 + $0xb50] ss:$8 sps:$4 sm:$0xff]  }
 0x162   :  { %v6338_v46 = vld [vmem:[%s8498_s1 + $0xa64] ss:$8 sps:$4 sm:$0xff]  }
 0x163   :  { %3083 = vmatpush1.bf16.msra.mxu0 %v6252_v47  ;;  %v6341_v47 = vld [vmem:[%s8498_s1 + $0xb64] ss:$8 sps:$4 sm:$0xff]  }
 0x164   :  { %3124 = vmatpush1.bf16.msra.mxu1 %v6255_v48  ;;  %3084 = vmatprep.subr.bf16.mxu0 %v6260_v15 }
 0x165   :  { %3125 = vmatprep.subr.bf16.mxu1 %v6263_v49 }
 0x167   :  { %3085 = vmatpush1.bf16.msra.mxu0 %v6258_v50 }
 0x168   :  { %3126 = vmatpush1.bf16.msra.mxu1 %v6261_v51  ;;  %3086 = vmatprep.subr.bf16.mxu0 %v6266_v54 }
 0x169   :  { %3127 = vmatprep.subr.bf16.mxu1 %v6269_v55 }
 0x16b   :  { %3087 = vmatpush1.bf16.msra.mxu0 %v6264_v56 }
 0x16c   :  { %3128 = vmatpush1.bf16.msra.mxu1 %v6267_v57  ;;  %3088 = vmatprep.subr.bf16.mxu0 %v6272_v58  ;;  %v6336_v57 = vld [vmem:[%s8498_s1 + $0xa60] ss:$8 sps:$4 sm:$0xff]  }
 0x16d   :  { %3129 = vmatprep.subr.bf16.mxu1 %v6275_v59  ;;  %v6339_v58 = vld [vmem:[%s8498_s1 + $0xb60] ss:$8 sps:$4 sm:$0xff]  }
 0x16f   :  { %3089 = vmatpush1.bf16.msra.mxu0 %v6270_v60 }
 0x170   :  { %3130 = vmatpush1.bf16.msra.mxu1 %v6273_v61  ;;  %3090 = vmatprep.subr.bf16.mxu0 %v6278_v63 }
 0x171   :  { %3131 = vmatprep.subr.bf16.mxu1 %v6281_v1 }
 0x173   :  { %3091 = vmatpush1.bf16.msra.mxu0 %v6276_v2 }
 0x174   :  { %3132 = vmatpush1.bf16.msra.mxu1 %v6279_v4  ;;  %3092 = vmatprep.subr.bf16.mxu0 %v6284_v5  ;;  %v6342_v4 = vld [vmem:[%s8498_s1 + $0xa70] ss:$8 sps:$4 sm:$0xff]  }
 0x175   :  { %3133 = vmatprep.subr.bf16.mxu1 %v6287_v6  ;;  %v6345_v5 = vld [vmem:[%s8498_s1 + $0xb70] ss:$8 sps:$4 sm:$0xff]  }
 0x177   :  { %3093 = vmatpush1.bf16.msra.mxu0 %v6282_v7  ;;  %v6350_v7 = vld [vmem:[%s8498_s1 + $0xa84] ss:$8 sps:$4 sm:$0xff]  }
 0x178   :  { %3134 = vmatpush1.bf16.msra.mxu1 %v6285_v8  ;;  %3094 = vmatprep.subr.bf16.mxu0 %v6290_v9  ;;  %v6353_v8 = vld [vmem:[%s8498_s1 + $0xb84] ss:$8 sps:$4 sm:$0xff]  }
 0x179   :  { %3135 = vmatprep.subr.bf16.mxu1 %v6293_v10 }
 0x17b   :  { %3095 = vmatpush1.bf16.msra.mxu0 %v6288_v11  ;;  %v6348_v11 = vld [vmem:[%s8498_s1 + $0xa80] ss:$8 sps:$4 sm:$0xff]  }
 0x17c   :  { %3136 = vmatpush1.bf16.msra.mxu1 %v6291_v12  ;;  %3096 = vmatprep.subr.bf16.mxu0 %v6296_v13  ;;  %v6351_v12 = vld [vmem:[%s8498_s1 + $0xb80] ss:$8 sps:$4 sm:$0xff]   ;;  %v6356_v13 = vld [vmem:[%s8498_s1 + $0xa94] ss:$8 sps:$4 sm:$0xff]  }
 0x17d   :  { %3137 = vmatprep.subr.bf16.mxu1 %v6299_v14  ;;  %v6359_v14 = vld [vmem:[%s8498_s1 + $0xb94] ss:$8 sps:$4 sm:$0xff]  }
 0x17f   :  { %3097 = vmatpush1.bf16.msra.mxu0 %v6294_v18  ;;  %v6354_v18 = vld [vmem:[%s8498_s1 + $0xa90] ss:$8 sps:$4 sm:$0xff]  }
 0x180   :  { %3138 = vmatpush1.bf16.msra.mxu1 %v6297_v20  ;;  %3497 = vmatprep.subr.bf16.mxu0 %v6302_v22  ;;  %v6357_v20 = vld [vmem:[%s8498_s1 + $0xb90] ss:$8 sps:$4 sm:$0xff]   ;;  %v6362_v22 = vld [vmem:[%s8498_s1 + $0xaa4] ss:$8 sps:$4 sm:$0xff]  }
 0x181   :  { %3538 = vmatprep.subr.bf16.mxu1 %v6305_v25  ;;  %v6365_v25 = vld [vmem:[%s8498_s1 + $0xba4] ss:$8 sps:$4 sm:$0xff]  }
 0x182   :  { %3099 = vmatmul.mubr.bf16.vlgmr.msra.gmra.mrb[16].mxu0 %v2732_v17 }
 0x183   :  { %3140 = vmatmul.mubr.bf16.vlgmr.msra.gmra.mrb[20].mxu1 %v2740_v24  ;;  %3498 = vmatpush1.bf16.msra.mxu0 %v6300_v26  ;;  %v6360_v24 = vld [vmem:[%s8498_s1 + $0xaa0] ss:$8 sps:$4 sm:$0xff]  }
 0x184   :  { %3539 = vmatpush1.bf16.msra.mxu1 %v6303_v27  ;;  %3499 = vmatprep.subr.bf16.mxu0 %v6308_v28  ;;  %v6363_v26 = vld [vmem:[%s8498_s1 + $0xba0] ss:$8 sps:$4 sm:$0xff]   ;;  %v6368_v27 = vld [vmem:[%s8498_s1 + $0xab4] ss:$8 sps:$4 sm:$0xff]  }
 0x185   :  { %3540 = vmatprep.subr.bf16.mxu1 %v6311_v29  ;;  %3529 = vmatprep.mubr.bf16.mxu0 %v7441_v36  ;;  %v6323_v36 = vld [vmem:[%s8498_s1 + $0xb34] ss:$8 sps:$4 sm:$0xff]   ;;  %v6366_v29 = vld [vmem:[%s8498_s1 + $0xab0] ss:$8 sps:$4 sm:$0xff]  }
 0x186   :  { %3570 = vmatprep.mubr.bf16.mxu1 %v7457_v40  ;;  %v6318_v40 = vld [vmem:[%s8498_s1 + $0xa30] ss:$8 sps:$4 sm:$0xff]   ;;  %v6371_v28 = vld [vmem:[%s8498_s1 + $0xbb4] ss:$8 sps:$4 sm:$0xff]  }
 0x187   :  { %3500 = vmatpush1.bf16.msra.mxu0 %v6306_v31  ;;  %v6369_v31 = vld [vmem:[%s8498_s1 + $0xbb0] ss:$8 sps:$4 sm:$0xff]  }
 0x188   :  { %3541 = vmatpush1.bf16.msra.mxu1 %v6309_v32  ;;  %3501 = vmatprep.subr.bf16.mxu0 %v6314_v33  ;;  %v6374_v32 = vld [vmem:[%s8498_s1 + $0xac4] ss:$8 sps:$4 sm:$0xff]  }
 0x189   :  { %3542 = vmatprep.subr.bf16.mxu1 %v6317_v34  ;;  %v6377_v33 = vld [vmem:[%s8498_s1 + $0xbc4] ss:$8 sps:$4 sm:$0xff]   ;;  %v6372_v34 = vld [vmem:[%s8498_s1 + $0xac0] ss:$8 sps:$4 sm:$0xff]  }
 0x18b   :  { %3502 = vmatpush1.bf16.msra.mxu0 %v6312_v62  ;;  %v6375_v62 = vld [vmem:[%s8498_s1 + $0xbc0] ss:$8 sps:$4 sm:$0xff]  }
 0x18c   :  { %3543 = vmatpush1.bf16.msra.mxu1 %v6315_v21  ;;  %3503 = vmatprep.subr.bf16.mxu0 %v6320_v23  ;;  %v6380_v21 = vld [vmem:[%s8498_s1 + $0xad4] ss:$8 sps:$4 sm:$0xff]  }
 0x18d   :  { %3544 = vmatprep.subr.bf16.mxu1 %v6323_v36  ;;  %v6383_v23 = vld [vmem:[%s8498_s1 + $0xbd4] ss:$8 sps:$4 sm:$0xff]   ;;  %v6378_v36 = vld [vmem:[%s8498_s1 + $0xad0] ss:$8 sps:$4 sm:$0xff]  }
 0x18f   :  { %3504 = vmatpush1.bf16.msra.mxu0 %v6318_v40  ;;  %v6381_v40 = vld [vmem:[%s8498_s1 + $0xbd0] ss:$8 sps:$4 sm:$0xff]  }
 0x190   :  { %3545 = vmatpush1.bf16.msra.mxu1 %v6321_v37  ;;  %3505 = vmatprep.subr.bf16.mxu0 %v6326_v16  ;;  %v6386_v37 = vld [vmem:[%s8498_s1 + $0xae4] ss:$8 sps:$4 sm:$0xff]  }
 0x191   :  { %3546 = vmatprep.subr.bf16.mxu1 %v6329_v0  ;;  %v6389_v16 = vld [vmem:[%s8498_s1 + $0xbe4] ss:$8 sps:$4 sm:$0xff]   ;;  %v8059_v0 = vld.sshfl [vmem:[%s8499_s0 + $0x8] sm:$0x33 pattern:$0x75316420] }
 0x193   :  { %3506 = vmatpush1.bf16.msra.mxu0 %v6324_v38  ;;  %v6384_v38 = vld [vmem:[%s8498_s1 + $0xae0] ss:$8 sps:$4 sm:$0xff]  }
 0x194   :  { %3547 = vmatpush1.bf16.msra.mxu1 %v6327_v39  ;;  %3507 = vmatprep.subr.bf16.mxu0 %v6332_v3  ;;  %v6387_v39 = vld [vmem:[%s8498_s1 + $0xbe0] ss:$8 sps:$4 sm:$0xff]   ;;  %v6392_v3 = vld [vmem:[%s8498_s1 + $0xaf4] ss:$8 sps:$4 sm:$0xff]  }
 0x195   :  { %3548 = vmatprep.subr.bf16.mxu1 %v6335_v41  ;;  %v1492_v48 = vpop.f32.mrb[4].mxu0  ;;  %v6395_v41 = vld [vmem:[%s8498_s1 + $0xbf4] ss:$8 sps:$4 sm:$0xff]  }
 0x196   :  { %v1533_v15 = vpop.f32.mrb[8].mxu1  ;;  %v1493_v49 = vadd.f32 %v1492_v48, %v7752_v30  ;;  %v1494_v50 = vpop.f32.mrb[5].mxu0  ;;  %v6344_v30 = vld [vmem:[%s8498_s1 + $0xa74] ss:$8 sps:$4 sm:$0xff]   ;;  %v6401_v48 = vld [vmem:[%s8498_s1 + $0xf04] ss:$8 sps:$4 sm:$0xff]  }
 0x197   :  { %v1535_v51 = vpop.f32.mrb[9].mxu1  ;;  %v1495_v54 = vadd.f32 %v1494_v50, %v7759_v35  ;;  %v1496_v55 = vpop.f32.mrb[6].mxu0  ;;  %3508 = vmatpush1.bf16.msra.mxu0 %v6330_v42  ;;  %v6347_v35 = vld [vmem:[%s8498_s1 + $0xb74] ss:$8 sps:$4 sm:$0xff]   ;;  %v3653_v42 = vcombine.high %v8059_v0, %v8059_v0  ;;  %v6399_v50 = vld [vmem:[%s8498_s1 + $0xf00] ss:$8 sps:$4 sm:$0xff]  }
 0x198   :  { %v1537_v56 = vpop.f32.mrb[10].mxu1  ;;  %3549 = vmatpush1.bf16.msra.mxu1 %v6333_v43  ;;  %v1534_v59 = vadd.f32 %v1533_v15, %v1493_v49  ;;  %v1497_v60 = vpop.f32.mrb[7].mxu0  ;;  %3509 = vmatprep.subr.bf16.mxu0 %v6338_v46  ;;  %v6390_v43 = vld [vmem:[%s8498_s1 + $0xaf0] ss:$8 sps:$4 sm:$0xff]   ;;  %v6396_v49 = vld [vmem:[%s8498_s1 + $0xe00] ss:$8 sps:$4 sm:$0xff]  }
 0x199   :  { %v1538_v61 = vpop.f32.mrb[11].mxu1  ;;  %3550 = vmatprep.subr.bf16.mxu1 %v6341_v47  ;;  %v1536_v63 = vadd.f32 %v1535_v51, %v1495_v54  ;;  %v6393_v46 = vld [vmem:[%s8498_s1 + $0xbf0] ss:$8 sps:$4 sm:$0xff]   ;;  %v6398_v47 = vld [vmem:[%s8498_s1 + $0xe04] ss:$8 sps:$4 sm:$0xff]   ;;  %v3667_v15 = vrot.slane %v3653_v42, %v6753_v52 }
 0x19a   :  { %v1540_v1 = vadd.f32 %v1534_v59, %v7734_v19  ;;  %v6404_v51 = vld [vmem:[%s8498_s1 + $0xe14] ss:$8 sps:$4 sm:$0xff]   ;;  %v6402_v56 = vld [vmem:[%s8498_s1 + $0xe10] ss:$8 sps:$4 sm:$0xff]   ;;  %v6411_v59 = vld [vmem:[%s8498_s1 + $0xf20] ss:$8 sps:$4 sm:$0xff]  }
 0x19b   :  { %v1541_v2 = vadd.f32 %v1536_v63, %v7736_v45  ;;  %3510 = vmatpush1.bf16.msra.mxu0 %v6336_v57  ;;  %v6407_v54 = vld [vmem:[%s8498_s1 + $0xf14] ss:$8 sps:$4 sm:$0xff]   ;;  %v3669_v55 = vcombine.high %v3667_v15, %v3667_v15  ;;  %v6405_v57 = vld [vmem:[%s8498_s1 + $0xf10] ss:$8 sps:$4 sm:$0xff]   ;;  %v6422_v63 = vld [vmem:[%s8498_s1 + $0xe44] ss:$8 sps:$4 sm:$0xff]  }
 0x19c   :  { %3551 = vmatpush1.bf16.msra.mxu1 %v6339_v58  ;;  %v1542_v6 = vmax.f32 %v1540_v1, 0.0  ;;  %3511 = vmatprep.subr.bf16.mxu0 %v6344_v30  ;;  %v6410_v58 = vld [vmem:[%s8498_s1 + $0xe24] ss:$8 sps:$4 sm:$0xff]   ;;  %v6416_v60 = vld [vmem:[%s8498_s1 + $0xe34] ss:$8 sps:$4 sm:$0xff]  }
 0x19d   :  { %3552 = vmatprep.subr.bf16.mxu1 %v6347_v35  ;;  %v1543_v9 = vmax.f32 %v1541_v2, 0.0  ;;  %v6419_v61 = vld [vmem:[%s8498_s1 + $0xf34] ss:$8 sps:$4 sm:$0xff]   ;;  %v6414_v30 = vld [vmem:[%s8498_s1 + $0xe30] ss:$8 sps:$4 sm:$0xff]  }
 0x19e   :  { %v6417_v35 = vld [vmem:[%s8498_s1 + $0xf30] ss:$8 sps:$4 sm:$0xff]   ;;  %v6425_v1 = vld [vmem:[%s8498_s1 + $0xf44] ss:$8 sps:$4 sm:$0xff]   ;;  %v6420_v2 = vld [vmem:[%s8498_s1 + $0xe40] ss:$8 sps:$4 sm:$0xff]  }
 0x19f   :  { %v4933_v10 = vpack.c.bf16 %v1543_v9, %v1542_v6  ;;  %3512 = vmatpush1.bf16.msra.mxu0 %v6342_v4  ;;  %v6423_v4 = vld [vmem:[%s8498_s1 + $0xf40] ss:$8 sps:$4 sm:$0xff]   ;;  %v6431_v6 = vld [vmem:[%s8498_s1 + $0xf54] ss:$8 sps:$4 sm:$0xff]   ;;  %v6434_v9 = vld [vmem:[%s8498_s1 + $0xe64] ss:$8 sps:$4 sm:$0xff]  }
 0x1a0   :  { %3553 = vmatpush1.bf16.msra.mxu1 %v6345_v5  ;;  %3513 = vmatprep.subr.bf16.mxu0 %v6350_v7  ;;  %v6428_v5 = vld [vmem:[%s8498_s1 + $0xe54] ss:$8 sps:$4 sm:$0xff]   ;;  %v6426_v7 = vld [vmem:[%s8498_s1 + $0xe50] ss:$8 sps:$4 sm:$0xff]  }
 0x1a1   :  { %3554 = vmatprep.subr.bf16.mxu1 %v6353_v8  ;;  %v1555_v17 = vrot.slane %v4933_v10, %v6753_v52  ;;  %v6429_v8 = vld [vmem:[%s8498_s1 + $0xf50] ss:$8 sps:$4 sm:$0xff]   ;;  %v6437_v10 = vld [vmem:[%s8498_s1 + $0xf64] ss:$8 sps:$4 sm:$0xff]   ;;  %v6467_v42 = vld [vmem:[%s8498_s1 + $0xfb4] ss:$8 sps:$4 sm:$0xff]  }
 0x1a3   :  { %4934 = vst.sshfl [vmem:[%s8501_s3 + $0x2] sm:$0x5 pattern:$0x73625140] %v1555_v17  ;;  %3514 = vmatpush1.bf16.msra.mxu0 %v6348_v11 }
 0x1a4   :  { %3555 = vmatpush1.bf16.msra.mxu1 %v6351_v12  ;;  %3515 = vmatprep.subr.bf16.mxu0 %v6356_v13 }
 0x1a5   :  { %3556 = vmatprep.subr.bf16.mxu1 %v6359_v14 }
 0x1a7   :  { %3516 = vmatpush1.bf16.msra.mxu0 %v6354_v18 }
 0x1a8   :  { %3557 = vmatpush1.bf16.msra.mxu1 %v6357_v20  ;;  %3517 = vmatprep.subr.bf16.mxu0 %v6362_v22 }
 0x1a9   :  { %3558 = vmatprep.subr.bf16.mxu1 %v6365_v25  ;;  %v6432_v25 = vld [vmem:[%s8498_s1 + $0xe60] ss:$8 sps:$4 sm:$0xff]  }
 0x1ab   :  { %3518 = vmatpush1.bf16.msra.mxu0 %v6360_v24  ;;  %v6435_v24 = vld [vmem:[%s8498_s1 + $0xf60] ss:$8 sps:$4 sm:$0xff]  }
 0x1ac   :  { %3559 = vmatpush1.bf16.msra.mxu1 %v6363_v26  ;;  %3519 = vmatprep.subr.bf16.mxu0 %v6368_v27 }
 0x1ad   :  { %3560 = vmatprep.subr.bf16.mxu1 %v6371_v28  ;;  %v6440_v28 = vld [vmem:[%s8498_s1 + $0xe74] ss:$8 sps:$4 sm:$0xff]  }
 0x1af   :  { %3520 = vmatpush1.bf16.msra.mxu0 %v6366_v29  ;;  %v6443_v29 = vld [vmem:[%s8498_s1 + $0xf74] ss:$8 sps:$4 sm:$0xff]  }
 0x1b0   :  { %3561 = vmatpush1.bf16.msra.mxu1 %v6369_v31  ;;  %3521 = vmatprep.subr.bf16.mxu0 %v6374_v32  ;;  %v6438_v31 = vld [vmem:[%s8498_s1 + $0xe70] ss:$8 sps:$4 sm:$0xff]  }
 0x1b1   :  { %3562 = vmatprep.subr.bf16.mxu1 %v6377_v33  ;;  %v6441_v32 = vld [vmem:[%s8498_s1 + $0xf70] ss:$8 sps:$4 sm:$0xff]   ;;  %v6446_v33 = vld [vmem:[%s8498_s1 + $0xe84] ss:$8 sps:$4 sm:$0xff]  }
 0x1b3   :  { %3522 = vmatpush1.bf16.msra.mxu0 %v6372_v34  ;;  %v6449_v34 = vld [vmem:[%s8498_s1 + $0xf84] ss:$8 sps:$4 sm:$0xff]  }
 0x1b4   :  { %3563 = vmatpush1.bf16.msra.mxu1 %v6375_v62  ;;  %3523 = vmatprep.subr.bf16.mxu0 %v6380_v21  ;;  %v6444_v62 = vld [vmem:[%s8498_s1 + $0xe80] ss:$8 sps:$4 sm:$0xff]  }
 0x1b5   :  { %3564 = vmatprep.subr.bf16.mxu1 %v6383_v23  ;;  %v6447_v21 = vld [vmem:[%s8498_s1 + $0xf80] ss:$8 sps:$4 sm:$0xff]   ;;  %v6452_v23 = vld [vmem:[%s8498_s1 + $0xe94] ss:$8 sps:$4 sm:$0xff]  }
 0x1b7   :  { %3524 = vmatpush1.bf16.msra.mxu0 %v6378_v36  ;;  %v6455_v36 = vld [vmem:[%s8498_s1 + $0xf94] ss:$8 sps:$4 sm:$0xff]  }
 0x1b8   :  { %3565 = vmatpush1.bf16.msra.mxu1 %v6381_v40  ;;  %3525 = vmatprep.subr.bf16.mxu0 %v6386_v37  ;;  %v6450_v40 = vld [vmem:[%s8498_s1 + $0xe90] ss:$8 sps:$4 sm:$0xff]  }
 0x1b9   :  { %3566 = vmatprep.subr.bf16.mxu1 %v6389_v16  ;;  %v6453_v37 = vld [vmem:[%s8498_s1 + $0xf90] ss:$8 sps:$4 sm:$0xff]   ;;  %v6458_v16 = vld [vmem:[%s8498_s1 + $0xea4] ss:$8 sps:$4 sm:$0xff]  }
 0x1bb   :  { %3526 = vmatpush1.bf16.msra.mxu0 %v6384_v38  ;;  %v6461_v38 = vld [vmem:[%s8498_s1 + $0xfa4] ss:$8 sps:$4 sm:$0xff]  }
 0x1bc   :  { %3567 = vmatpush1.bf16.msra.mxu1 %v6387_v39  ;;  %3527 = vmatprep.subr.bf16.mxu0 %v6392_v3  ;;  %v6456_v39 = vld [vmem:[%s8498_s1 + $0xea0] ss:$8 sps:$4 sm:$0xff]  }
 0x1bd   :  { %3568 = vmatprep.subr.bf16.mxu1 %v6395_v41  ;;  %v6459_v3 = vld [vmem:[%s8498_s1 + $0xfa0] ss:$8 sps:$4 sm:$0xff]   ;;  %v6464_v41 = vld [vmem:[%s8498_s1 + $0xeb4] ss:$8 sps:$4 sm:$0xff]  }
 0x1bf   :  { %3528 = vmatpush1.bf16.msra.mxu0 %v6390_v43  ;;  %v6462_v43 = vld [vmem:[%s8498_s1 + $0xeb0] ss:$8 sps:$4 sm:$0xff]  }
 0x1c0   :  { %3569 = vmatpush1.bf16.msra.mxu1 %v6393_v46  ;;  %3994 = vmatprep.subr.bf16.mxu0 %v6398_v47  ;;  %v6465_v46 = vld [vmem:[%s8498_s1 + $0xfb0] ss:$8 sps:$4 sm:$0xff]   ;;  %v6470_v47 = vld [vmem:[%s8498_s1 + $0xec4] ss:$8 sps:$4 sm:$0xff]  }
 0x1c1   :  { %4035 = vmatprep.subr.bf16.mxu1 %v6401_v48  ;;  %v6473_v48 = vld [vmem:[%s8498_s1 + $0xfc4] ss:$8 sps:$4 sm:$0xff]  }
 0x1c2   :  { %3530 = vmatmul.mubr.bf16.vlgmr.msra.gmra.mrb[20].mxu0 %v7642_v44  ;;  %v6413_v44 = vld [vmem:[%s8498_s1 + $0xf24] ss:$8 sps:$4 sm:$0xff]  }
 0x1c3   :  { %3571 = vmatmul.mubr.bf16.vlgmr.msra.gmra.mrb[24].mxu1 %v7665_v53  ;;  %3995 = vmatpush1.bf16.msra.mxu0 %v6396_v49  ;;  %v6408_v53 = vld [vmem:[%s8498_s1 + $0xe20] ss:$8 sps:$4 sm:$0xff]  }
 0x1c4   :  { %4036 = vmatpush1.bf16.msra.mxu1 %v6399_v50  ;;  %3996 = vmatprep.subr.bf16.mxu0 %v6404_v51  ;;  %v6471_v49 = vld [vmem:[%s8498_s1 + $0xfc0] ss:$8 sps:$4 sm:$0xff]   ;;  %v6476_v50 = vld [vmem:[%s8498_s1 + $0xed4] ss:$8 sps:$4 sm:$0xff]  }
 0x1c5   :  { %4037 = vmatprep.subr.bf16.mxu1 %v6407_v54  ;;  %4026 = vmatprep.mubr.bf16.mxu0 %v3667_v15  ;;  %v6468_v15 = vld [vmem:[%s8498_s1 + $0xec0] ss:$8 sps:$4 sm:$0xff]   ;;  %v6479_v51 = vld [vmem:[%s8498_s1 + $0xfd4] ss:$8 sps:$4 sm:$0xff]   ;;  %v6474_v54 = vld [vmem:[%s8498_s1 + $0xed0] ss:$8 sps:$4 sm:$0xff]  }
 0x1c6   :  { %4067 = vmatprep.mubr.bf16.mxu1 %v3669_v55  ;;  %v6477_v55 = vld [vmem:[%s8498_s1 + $0xfd0] ss:$8 sps:$4 sm:$0xff]  }
 0x1c7   :  { %3997 = vmatpush1.bf16.msra.mxu0 %v6402_v56  ;;  %v6482_v56 = vld [vmem:[%s8498_s1 + $0xee4] ss:$8 sps:$4 sm:$0xff]  }
 0x1c8   :  { %4038 = vmatpush1.bf16.msra.mxu1 %v6405_v57  ;;  %3998 = vmatprep.subr.bf16.mxu0 %v6410_v58  ;;  %v6485_v57 = vld [vmem:[%s8498_s1 + $0xfe4] ss:$8 sps:$4 sm:$0xff]  }
 0x1c9   :  { %4039 = vmatprep.subr.bf16.mxu1 %v6413_v44  ;;  %v8265_v58 = vld.sshfl [vmem:[%s8499_s0 + $0xc] sm:$0x33 pattern:$0x75316420]  ;;  %v6480_v44 = vld [vmem:[%s8498_s1 + $0xee0] ss:$8 sps:$4 sm:$0xff]  }
 0x1cb   :  { %3999 = vmatpush1.bf16.msra.mxu0 %v6408_v53  ;;  %v6483_v53 = vld [vmem:[%s8498_s1 + $0xfe0] ss:$8 sps:$4 sm:$0xff]  }
 0x1cc   :  { %4040 = vmatpush1.bf16.msra.mxu1 %v6411_v59  ;;  %4000 = vmatprep.subr.bf16.mxu0 %v6416_v60  ;;  %v6488_v59 = vld [vmem:[%s8498_s1 + $0xef4] ss:$8 sps:$4 sm:$0xff]  }
 0x1cd   :  { %4041 = vmatprep.subr.bf16.mxu1 %v6419_v61  ;;  %v6491_v60 = vld [vmem:[%s8498_s1 + $0xff4] ss:$8 sps:$4 sm:$0xff]   ;;  %v4153_v61 = vcombine.high %v8265_v58, %v8265_v58 }
 0x1cf   :  { %4001 = vmatpush1.bf16.msra.mxu0 %v6414_v30  ;;  %v3660_v30 = vrot.slane %v8059_v0, %v6753_v52  ;;  %v6497_v0 = vld [vmem:[%s8498_s1 + $0x1104] ss:$8 sps:$4 sm:$0xff]  }
 0x1d0   :  { %4042 = vmatpush1.bf16.msra.mxu1 %v6417_v35  ;;  %4002 = vmatprep.subr.bf16.mxu0 %v6422_v63  ;;  %v6486_v35 = vld [vmem:[%s8498_s1 + $0xef0] ss:$8 sps:$4 sm:$0xff]  }
 0x1d1   :  { %4043 = vmatprep.subr.bf16.mxu1 %v6425_v1  ;;  %v6489_v63 = vld [vmem:[%s8498_s1 + $0xff0] ss:$8 sps:$4 sm:$0xff]   ;;  %v6494_v1 = vld [vmem:[%s8498_s1 + $0x1004] ss:$8 sps:$4 sm:$0xff]  }
 0x1d3   :  { %4003 = vmatpush1.bf16.msra.mxu0 %v6420_v2  ;;  %v4167_v2 = vrot.slane %v4153_v61, %v6753_v52  ;;  %v6548_v61 = vld [vmem:[%s8498_s1 + $0x1094] ss:$8 sps:$4 sm:$0xff]  }
 0x1d4   :  { %4044 = vmatpush1.bf16.msra.mxu1 %v6423_v4  ;;  %4004 = vmatprep.subr.bf16.mxu0 %v6428_v5  ;;  %v3668_v4 = vcombine.high %v3660_v30, %v3660_v30  ;;  %v6492_v5 = vld [vmem:[%s8498_s1 + $0x1000] ss:$8 sps:$4 sm:$0xff]  }
 0x1d5   :  { %4045 = vmatprep.subr.bf16.mxu1 %v6431_v6  ;;  %v2081_v11 = vpop.f32.mrb[8].mxu0  ;;  %v6495_v6 = vld [vmem:[%s8498_s1 + $0x1100] ss:$8 sps:$4 sm:$0xff]  }
 0x1d6   :  { %v2122_v12 = vpop.f32.mrb[12].mxu1  ;;  %v2083_v14 = vpop.f32.mrb[9].mxu0 }
 0x1d7   :  { %v8162_v13 = vadd.f32 %v2122_v12, %v2081_v11  ;;  %v2124_v17 = vpop.f32.mrb[13].mxu1  ;;  %v2085_v20 = vpop.f32.mrb[10].mxu0  ;;  %4005 = vmatpush1.bf16.msra.mxu0 %v6426_v7  ;;  %v6500_v7 = vld [vmem:[%s8498_s1 + $0x1014] ss:$8 sps:$4 sm:$0xff]   ;;  %v6501_v11 = vld [vmem:[%s8498_s1 + $0x1110] ss:$8 sps:$4 sm:$0xff]  }
 0x1d8   :  { %v8164_v18 = vadd.f32 %v2124_v17, %v2083_v14  ;;  %v2126_v22 = vpop.f32.mrb[14].mxu1  ;;  %4046 = vmatpush1.bf16.msra.mxu1 %v6429_v8  ;;  %v2086_v26 = vpop.f32.mrb[11].mxu0  ;;  %4006 = vmatprep.subr.bf16.mxu0 %v6434_v9  ;;  %v6503_v8 = vld [vmem:[%s8498_s1 + $0x1114] ss:$8 sps:$4 sm:$0xff]   ;;  %v4169_v9 = vcombine.high %v4167_v2, %v4167_v2  ;;  %v6506_v12 = vld [vmem:[%s8498_s1 + $0x1024] ss:$8 sps:$4 sm:$0xff]  }
 0x1d9   :  { %v2127_v27 = vpop.f32.mrb[15].mxu1  ;;  %4047 = vmatprep.subr.bf16.mxu1 %v6437_v10  ;;  %v6498_v10 = vld [vmem:[%s8498_s1 + $0x1010] ss:$8 sps:$4 sm:$0xff]   ;;  %v6509_v14 = vld [vmem:[%s8498_s1 + $0x1124] ss:$8 sps:$4 sm:$0xff]  }
 0x1da   :  { %v6504_v17 = vld [vmem:[%s8498_s1 + $0x1020] ss:$8 sps:$4 sm:$0xff]   ;;  %v6512_v22 = vld [vmem:[%s8498_s1 + $0x1034] ss:$8 sps:$4 sm:$0xff]   ;;  %v6513_v26 = vld [vmem:[%s8498_s1 + $0x1130] ss:$8 sps:$4 sm:$0xff]  }
 0x1db   :  { %4007 = vmatpush1.bf16.msra.mxu0 %v6432_v25  ;;  %v6507_v20 = vld [vmem:[%s8498_s1 + $0x1120] ss:$8 sps:$4 sm:$0xff]   ;;  %v6515_v25 = vld [vmem:[%s8498_s1 + $0x1134] ss:$8 sps:$4 sm:$0xff]   ;;  %v6518_v27 = vld [vmem:[%s8498_s1 + $0x1044] ss:$8 sps:$4 sm:$0xff]  }
 0x1dc   :  { %4048 = vmatpush1.bf16.msra.mxu1 %v6435_v24  ;;  %4008 = vmatprep.subr.bf16.mxu0 %v6440_v28  ;;  %v6510_v24 = vld [vmem:[%s8498_s1 + $0x1030] ss:$8 sps:$4 sm:$0xff]   ;;  %v6521_v28 = vld [vmem:[%s8498_s1 + $0x1144] ss:$8 sps:$4 sm:$0xff]  }
 0x1dd   :  { %4049 = vmatprep.subr.bf16.mxu1 %v6443_v29  ;;  %v6516_v29 = vld [vmem:[%s8498_s1 + $0x1040] ss:$8 sps:$4 sm:$0xff]  }
 0x1df   :  { %4009 = vmatpush1.bf16.msra.mxu0 %v6438_v31  ;;  %v6519_v31 = vld [vmem:[%s8498_s1 + $0x1140] ss:$8 sps:$4 sm:$0xff]  }
 0x1e0   :  { %4050 = vmatpush1.bf16.msra.mxu1 %v6441_v32  ;;  %4010 = vmatprep.subr.bf16.mxu0 %v6446_v33  ;;  %v6524_v32 = vld [vmem:[%s8498_s1 + $0x1054] ss:$8 sps:$4 sm:$0xff]  }
 0x1e1   :  { %4051 = vmatprep.subr.bf16.mxu1 %v6449_v34  ;;  %v6527_v33 = vld [vmem:[%s8498_s1 + $0x1154] ss:$8 sps:$4 sm:$0xff]   ;;  %v6522_v34 = vld [vmem:[%s8498_s1 + $0x1050] ss:$8 sps:$4 sm:$0xff]  }
 0x1e3   :  { %4011 = vmatpush1.bf16.msra.mxu0 %v6444_v62  ;;  %v6525_v62 = vld [vmem:[%s8498_s1 + $0x1150] ss:$8 sps:$4 sm:$0xff]  }
 0x1e4   :  { %4052 = vmatpush1.bf16.msra.mxu1 %v6447_v21  ;;  %4012 = vmatprep.subr.bf16.mxu0 %v6452_v23  ;;  %v6530_v21 = vld [vmem:[%s8498_s1 + $0x1064] ss:$8 sps:$4 sm:$0xff]  }
 0x1e5   :  { %4053 = vmatprep.subr.bf16.mxu1 %v6455_v36  ;;  %v6533_v23 = vld [vmem:[%s8498_s1 + $0x1164] ss:$8 sps:$4 sm:$0xff]  }
 0x1e7   :  { %4013 = vmatpush1.bf16.msra.mxu0 %v6450_v40 }
 0x1e8   :  { %4054 = vmatpush1.bf16.msra.mxu1 %v6453_v37  ;;  %4014 = vmatprep.subr.bf16.mxu0 %v6458_v16 }
 0x1e9   :  { %4055 = vmatprep.subr.bf16.mxu1 %v6461_v38 }
 0x1eb   :  { %4015 = vmatpush1.bf16.msra.mxu0 %v6456_v39 }
 0x1ec   :  { %4056 = vmatpush1.bf16.msra.mxu1 %v6459_v3  ;;  %4016 = vmatprep.subr.bf16.mxu0 %v6464_v41 }
 0x1ed   :  { %4057 = vmatprep.subr.bf16.mxu1 %v6467_v42  ;;  %v6528_v42 = vld [vmem:[%s8498_s1 + $0x1060] ss:$8 sps:$4 sm:$0xff]  }
 0x1ef   :  { %4017 = vmatpush1.bf16.msra.mxu0 %v6462_v43  ;;  %v6531_v43 = vld [vmem:[%s8498_s1 + $0x1160] ss:$8 sps:$4 sm:$0xff]  }
 0x1f0   :  { %4058 = vmatpush1.bf16.msra.mxu1 %v6465_v46  ;;  %4018 = vmatprep.subr.bf16.mxu0 %v6470_v47 }
 0x1f1   :  { %4059 = vmatprep.subr.bf16.mxu1 %v6473_v48 }
 0x1f3   :  { %4019 = vmatpush1.bf16.msra.mxu0 %v6468_v15 }
 0x1f4   :  { %4060 = vmatpush1.bf16.msra.mxu1 %v6471_v49  ;;  %4020 = vmatprep.subr.bf16.mxu0 %v6476_v50 }
 0x1f5   :  { %4061 = vmatprep.subr.bf16.mxu1 %v6479_v51  ;;  %v6534_v51 = vld [vmem:[%s8498_s1 + $0x1070] ss:$8 sps:$4 sm:$0xff]  }
 0x1f7   :  { %4021 = vmatpush1.bf16.msra.mxu0 %v6474_v54  ;;  %v6537_v54 = vld [vmem:[%s8498_s1 + $0x1170] ss:$8 sps:$4 sm:$0xff]  }
 0x1f8   :  { %4062 = vmatpush1.bf16.msra.mxu1 %v6477_v55  ;;  %4022 = vmatprep.subr.bf16.mxu0 %v6482_v56  ;;  %v6542_v56 = vld [vmem:[%s8498_s1 + $0x1084] ss:$8 sps:$4 sm:$0xff]  }
 0x1f9   :  { %4063 = vmatprep.subr.bf16.mxu1 %v6485_v57  ;;  %v6545_v57 = vld [vmem:[%s8498_s1 + $0x1184] ss:$8 sps:$4 sm:$0xff]  }
 0x1fb   :  { %4023 = vmatpush1.bf16.msra.mxu0 %v6480_v44 }
 0x1fc   :  { %4064 = vmatpush1.bf16.msra.mxu1 %v6483_v53  ;;  %4024 = vmatprep.subr.bf16.mxu0 %v6488_v59  ;;  %v6540_v59 = vld [vmem:[%s8498_s1 + $0x1080] ss:$8 sps:$4 sm:$0xff]  }
 0x1fd   :  { %4065 = vmatprep.subr.bf16.mxu1 %v6491_v60  ;;  %v6543_v60 = vld [vmem:[%s8498_s1 + $0x1180] ss:$8 sps:$4 sm:$0xff]  }
 0x1ff   :  { %4025 = vmatpush1.bf16.msra.mxu0 %v6486_v35 }
 0x200   :  { %4066 = vmatpush1.bf16.msra.mxu1 %v6489_v63  ;;  %4494 = vmatprep.subr.bf16.mxu0 %v6494_v1  ;;  %v6546_v63 = vld [vmem:[%s8498_s1 + $0x1090] ss:$8 sps:$4 sm:$0xff]  }
 0x201   :  { %4535 = vmatprep.subr.bf16.mxu1 %v6497_v0  ;;  %v6549_v1 = vld [vmem:[%s8498_s1 + $0x1190] ss:$8 sps:$4 sm:$0xff]   ;;  %v6554_v0 = vld [vmem:[%s8498_s1 + $0x10a4] ss:$8 sps:$4 sm:$0xff]  }
 0x202   :  { %4027 = vmatmul.mubr.bf16.vlgmr.msra.gmra.mrb[24].mxu0 %v3660_v30  ;;  %v6551_v30 = vld [vmem:[%s8498_s1 + $0x1194] ss:$8 sps:$4 sm:$0xff]  }
 0x203   :  { %4068 = vmatmul.mubr.bf16.vlgmr.msra.gmra.mrb[28].mxu1 %v3668_v4  ;;  %4495 = vmatpush1.bf16.msra.mxu0 %v6492_v5  ;;  %v6552_v4 = vld [vmem:[%s8498_s1 + $0x10a0] ss:$8 sps:$4 sm:$0xff]  }
 0x204   :  { %4536 = vmatpush1.bf16.msra.mxu1 %v6495_v6  ;;  %4496 = vmatprep.subr.bf16.mxu0 %v6500_v7  ;;  %v6555_v5 = vld [vmem:[%s8498_s1 + $0x11a0] ss:$8 sps:$4 sm:$0xff]   ;;  %v6560_v6 = vld [vmem:[%s8498_s1 + $0x10b4] ss:$8 sps:$4 sm:$0xff]  }
 0x205   :  { %4537 = vmatprep.subr.bf16.mxu1 %v6503_v8  ;;  %4526 = vmatprep.mubr.bf16.mxu0 %v4167_v2  ;;  %v6557_v2 = vld [vmem:[%s8498_s1 + $0x11a4] ss:$8 sps:$4 sm:$0xff]   ;;  %v6563_v7 = vld [vmem:[%s8498_s1 + $0x11b4] ss:$8 sps:$4 sm:$0xff]   ;;  %v6558_v8 = vld [vmem:[%s8498_s1 + $0x10b0] ss:$8 sps:$4 sm:$0xff]  }
 0x206   :  { %4567 = vmatprep.mubr.bf16.mxu1 %v4169_v9  ;;  %v6561_v9 = vld [vmem:[%s8498_s1 + $0x11b0] ss:$8 sps:$4 sm:$0xff]  }
 0x207   :  { %4497 = vmatpush1.bf16.msra.mxu0 %v6498_v10  ;;  %v6566_v10 = vld [vmem:[%s8498_s1 + $0x10c4] ss:$8 sps:$4 sm:$0xff]  }
 0x208   :  { %4538 = vmatpush1.bf16.msra.mxu1 %v6501_v11  ;;  %4498 = vmatprep.subr.bf16.mxu0 %v6506_v12  ;;  %v6569_v11 = vld [vmem:[%s8498_s1 + $0x11c4] ss:$8 sps:$4 sm:$0xff]   ;;  %v6564_v12 = vld [vmem:[%s8498_s1 + $0x10c0] ss:$8 sps:$4 sm:$0xff]  }
 0x209   :  { %4539 = vmatprep.subr.bf16.mxu1 %v6509_v14  ;;  %v6567_v14 = vld [vmem:[%s8498_s1 + $0x11c0] ss:$8 sps:$4 sm:$0xff]  }
 0x20b   :  { %4499 = vmatpush1.bf16.msra.mxu0 %v6504_v17  ;;  %v6572_v17 = vld [vmem:[%s8498_s1 + $0x10d4] ss:$8 sps:$4 sm:$0xff]  }
 0x20c   :  { %4540 = vmatpush1.bf16.msra.mxu1 %v6507_v20  ;;  %4500 = vmatprep.subr.bf16.mxu0 %v6512_v22  ;;  %v6575_v20 = vld [vmem:[%s8498_s1 + $0x11d4] ss:$8 sps:$4 sm:$0xff]   ;;  %v6570_v22 = vld [vmem:[%s8498_s1 + $0x10d0] ss:$8 sps:$4 sm:$0xff]  }
 0x20d   :  { %4541 = vmatprep.subr.bf16.mxu1 %v6515_v25  ;;  %v6573_v25 = vld [vmem:[%s8498_s1 + $0x11d0] ss:$8 sps:$4 sm:$0xff]  }
 0x20f   :  { %4501 = vmatpush1.bf16.msra.mxu0 %v6510_v24  ;;  %v6578_v24 = vld [vmem:[%s8498_s1 + $0x10e4] ss:$8 sps:$4 sm:$0xff]  }
 0x210   :  { %4542 = vmatpush1.bf16.msra.mxu1 %v6513_v26  ;;  %4502 = vmatprep.subr.bf16.mxu0 %v6518_v27  ;;  %v6581_v26 = vld [vmem:[%s8498_s1 + $0x11e4] ss:$8 sps:$4 sm:$0xff]   ;;  %v6576_v27 = vld [vmem:[%s8498_s1 + $0x10e0] ss:$8 sps:$4 sm:$0xff]  }
 0x211   :  { %4543 = vmatprep.subr.bf16.mxu1 %v6521_v28  ;;  %v6579_v28 = vld [vmem:[%s8498_s1 + $0x11e0] ss:$8 sps:$4 sm:$0xff]  }
 0x213   :  { %4503 = vmatpush1.bf16.msra.mxu0 %v6516_v29  ;;  %v6584_v29 = vld [vmem:[%s8498_s1 + $0x10f4] ss:$8 sps:$4 sm:$0xff]  }
 0x214   :  { %4544 = vmatpush1.bf16.msra.mxu1 %v6519_v31  ;;  %4504 = vmatprep.subr.bf16.mxu0 %v6524_v32  ;;  %v6587_v31 = vld [vmem:[%s8498_s1 + $0x11f4] ss:$8 sps:$4 sm:$0xff]   ;;  %v4160_v32 = vrot.slane %v8265_v58, %v6753_v52 }
 0x215   :  { %4545 = vmatprep.subr.bf16.mxu1 %v6527_v33  ;;  %v2512_v36 = vpop.f32.mrb[12].mxu0  ;;  %v6582_v33 = vld [vmem:[%s8498_s1 + $0x10f0] ss:$8 sps:$4 sm:$0xff]  }
 0x216   :  { %v2553_v40 = vpop.f32.mrb[16].mxu1  ;;  %v2513_v37 = vadd.f32 %v2512_v36, %v8162_v13  ;;  %v2514_v16 = vpop.f32.mrb[13].mxu0  ;;  %v6536_v13 = vld [vmem:[%s8498_s1 + $0x1074] ss:$8 sps:$4 sm:$0xff]  }
 0x217   :  { %v2555_v38 = vpop.f32.mrb[17].mxu1  ;;  %v2515_v39 = vadd.f32 %v2514_v16, %v8164_v18  ;;  %v2516_v3 = vpop.f32.mrb[14].mxu0  ;;  %4505 = vmatpush1.bf16.msra.mxu0 %v6522_v34  ;;  %v6539_v18 = vld [vmem:[%s8498_s1 + $0x1174] ss:$8 sps:$4 sm:$0xff]   ;;  %v6585_v34 = vld [vmem:[%s8498_s1 + $0x11f0] ss:$8 sps:$4 sm:$0xff]  }
 0x218   :  { %v2557_v41 = vpop.f32.mrb[18].mxu1  ;;  %4546 = vmatpush1.bf16.msra.mxu1 %v6525_v62  ;;  %v2554_v46 = vadd.f32 %v2553_v40, %v2513_v37  ;;  %v2517_v47 = vpop.f32.mrb[15].mxu0  ;;  %4506 = vmatprep.subr.bf16.mxu0 %v6530_v21  ;;  %v4168_v62 = vcombine.high %v4160_v32, %v4160_v32 }
 0x219   :  { %v2558_v48 = vpop.f32.mrb[19].mxu1  ;;  %4547 = vmatprep.subr.bf16.mxu1 %v6533_v23  ;;  %v2556_v15 = vadd.f32 %v2555_v38, %v2515_v39 }
 0x21a   :  { %v2560_v49 = vadd.f32 %v2554_v46, %v7734_v19 }
 0x21b   :  { %v2561_v50 = vadd.f32 %v2556_v15, %v7736_v45  ;;  %4507 = vmatpush1.bf16.msra.mxu0 %v6528_v42 }
 0x21c   :  { %4548 = vmatpush1.bf16.msra.mxu1 %v6531_v43  ;;  %v2562_v55 = vmax.f32 %v2560_v49, 0.0  ;;  %4508 = vmatprep.subr.bf16.mxu0 %v6536_v13 }
 0x21d   :  { %4549 = vmatprep.subr.bf16.mxu1 %v6539_v18  ;;  %v2563_v44 = vmax.f32 %v2561_v50, 0.0 }
 0x21f   :  { %v5194_v53 = vpack.c.bf16 %v2563_v44, %v2562_v55  ;;  %4509 = vmatpush1.bf16.msra.mxu0 %v6534_v51 }
 0x220   :  { %4550 = vmatpush1.bf16.msra.mxu1 %v6537_v54  ;;  %4510 = vmatprep.subr.bf16.mxu0 %v6542_v56 }
 0x221   :  { %4551 = vmatprep.subr.bf16.mxu1 %v6545_v57  ;;  %v2575_v35 = vrot.slane %v5194_v53, %v6753_v52 }
 0x223   :  { %5195 = vst.sshfl [vmem:[%s8501_s3 + $0x4] sm:$0x5 pattern:$0x73625140] %v2575_v35  ;;  %4511 = vmatpush1.bf16.msra.mxu0 %v6540_v59 }
 0x224   :  { %4552 = vmatpush1.bf16.msra.mxu1 %v6543_v60  ;;  %4512 = vmatprep.subr.bf16.mxu0 %v6548_v61 }
 0x225   :  { %4553 = vmatprep.subr.bf16.mxu1 %v6551_v30 }
 0x227   :  { %4513 = vmatpush1.bf16.msra.mxu0 %v6546_v63 }
 0x228   :  { %4554 = vmatpush1.bf16.msra.mxu1 %v6549_v1  ;;  %4514 = vmatprep.subr.bf16.mxu0 %v6554_v0 }
 0x229   :  { %4555 = vmatprep.subr.bf16.mxu1 %v6557_v2 }
 0x22b   :  { %4515 = vmatpush1.bf16.msra.mxu0 %v6552_v4 }
 0x22c   :  { %4556 = vmatpush1.bf16.msra.mxu1 %v6555_v5  ;;  %4516 = vmatprep.subr.bf16.mxu0 %v6560_v6 }
 0x22d   :  { %4557 = vmatprep.subr.bf16.mxu1 %v6563_v7 }
 0x22f   :  { %4517 = vmatpush1.bf16.msra.mxu0 %v6558_v8 }
 0x230   :  { %4558 = vmatpush1.bf16.msra.mxu1 %v6561_v9  ;;  %4518 = vmatprep.subr.bf16.mxu0 %v6566_v10 }
 0x231   :  { %4559 = vmatprep.subr.bf16.mxu1 %v6569_v11 }
 0x233   :  { %4519 = vmatpush1.bf16.msra.mxu0 %v6564_v12 }
 0x234   :  { %4560 = vmatpush1.bf16.msra.mxu1 %v6567_v14  ;;  %4520 = vmatprep.subr.bf16.mxu0 %v6572_v17 }
 0x235   :  { %4561 = vmatprep.subr.bf16.mxu1 %v6575_v20 }
 0x237   :  { %4521 = vmatpush1.bf16.msra.mxu0 %v6570_v22 }
 0x238   :  { %4562 = vmatpush1.bf16.msra.mxu1 %v6573_v25  ;;  %4522 = vmatprep.subr.bf16.mxu0 %v6578_v24 }
 0x239   :  { %4563 = vmatprep.subr.bf16.mxu1 %v6581_v26 }
 0x23b   :  { %4523 = vmatpush1.bf16.msra.mxu0 %v6576_v27 }
 0x23c   :  { %4564 = vmatpush1.bf16.msra.mxu1 %v6579_v28  ;;  %4524 = vmatprep.subr.bf16.mxu0 %v6584_v29 }
 0x23d   :  { %4565 = vmatprep.subr.bf16.mxu1 %v6587_v31 }
 0x23f   :  { %4525 = vmatpush1.bf16.msra.mxu0 %v6582_v33 }
 0x240   :  { %4566 = vmatpush1.bf16.msra.mxu1 %v6585_v34 }
 0x242   :  { %4527 = vmatmul.mubr.bf16.vlgmr.msra.gmra.mrb[28].mxu0 %v4160_v32 }
 0x243   :  { %4568 = vmatmul.mubr.bf16.vlgmr.msra.gmra.mrb[32].mxu1 %v4168_v62 }
 0x255   :  { %v3100_v21 = vpop.f32.mrb[16].mxu0 }
 0x256   :  { %v3141_v23 = vpop.f32.mrb[20].mxu1  ;;  %v3102_v36 = vpop.f32.mrb[17].mxu0 }
 0x257   :  { %v3142_v58 = vadd.f32 %v3141_v23, %v3100_v21  ;;  %v3143_v40 = vpop.f32.mrb[21].mxu1  ;;  %v3104_v16 = vpop.f32.mrb[18].mxu0 }
 0x258   :  { %v3144_v37 = vadd.f32 %v3143_v40, %v3102_v36  ;;  %v3145_v38 = vpop.f32.mrb[22].mxu1  ;;  %v3105_v39 = vpop.f32.mrb[19].mxu0 }
 0x259   :  { %v3146_v3 = vpop.f32.mrb[23].mxu1 }
 0x295   :  { %v3531_v41 = vpop.f32.mrb[20].mxu0 }
 0x296   :  { %v3572_v42 = vpop.f32.mrb[24].mxu1  ;;  %v3532_v43 = vadd.f32 %v3531_v41, %v3142_v58  ;;  %v3533_v46 = vpop.f32.mrb[21].mxu0 }
 0x297   :  { %v3574_v47 = vpop.f32.mrb[25].mxu1  ;;  %v3534_v48 = vadd.f32 %v3533_v46, %v3144_v37  ;;  %v3535_v13 = vpop.f32.mrb[22].mxu0 }
 0x298   :  { %v3576_v18 = vpop.f32.mrb[26].mxu1  ;;  %v3573_v15 = vadd.f32 %v3572_v42, %v3532_v43  ;;  %v3536_v49 = vpop.f32.mrb[23].mxu0 }
 0x299   :  { %v3577_v50 = vpop.f32.mrb[27].mxu1  ;;  %v3575_v51 = vadd.f32 %v3574_v47, %v3534_v48 }
 0x2d5   :  { %v4028_v54 = vpop.f32.mrb[24].mxu0 }
 0x2d6   :  { %v4069_v55 = vpop.f32.mrb[28].mxu1  ;;  %v4030_v57 = vpop.f32.mrb[25].mxu0 }
 0x2d7   :  { %v4070_v56 = vadd.f32 %v4069_v55, %v4028_v54  ;;  %v4071_v44 = vpop.f32.mrb[29].mxu1  ;;  %v4032_v59 = vpop.f32.mrb[26].mxu0 }
 0x2d8   :  { %v4072_v53 = vadd.f32 %v4071_v44, %v4030_v57  ;;  %v4073_v60 = vpop.f32.mrb[30].mxu1  ;;  %v4033_v30 = vpop.f32.mrb[27].mxu0 }
 0x2d9   :  { %v4076_v61 = vadd.f32 %v4070_v56, %v3573_v15  ;;  %v4074_v35 = vpop.f32.mrb[31].mxu1 }
 0x2da   :  { %v4077_v63 = vadd.f32 %v4072_v53, %v3575_v51 }
 0x315   :  { %v4528_v1 = vpop.f32.mrb[28].mxu0 }
 0x316   :  { %v4569_v0 = vpop.f32.mrb[32].mxu1  ;;  %v4530_v4 = vpop.f32.mrb[29].mxu0 }
 0x317   :  { %v4570_v2 = vadd.f32 %v4569_v0, %v4528_v1  ;;  %v4571_v5 = vpop.f32.mrb[33].mxu1  ;;  %v4532_v7 = vpop.f32.mrb[30].mxu0 }
 0x318   :  { %v4572_v6 = vadd.f32 %v4571_v5, %v4530_v4  ;;  %v4573_v8 = vpop.f32.mrb[34].mxu1  ;;  %v4533_v10 = vpop.f32.mrb[31].mxu0 }
 0x319   :  { %v4576_v9 = vadd.f32 %v4570_v2, %v4076_v61  ;;  %v4574_v11 = vpop.f32.mrb[35].mxu1 }
 0x31a   :  { %v4577_v12 = vadd.f32 %v4572_v6, %v4077_v63 }
 0x31b   :  { %v4578_v14 = vadd.f32 %v4576_v9, %v7734_v19 }
 0x31c   :  { %v4579_v17 = vadd.f32 %v4577_v12, %v7736_v45 }
 0x31d   :  { %v4580_v20 = vmax.f32 %v4578_v14, 0.0 }
 0x31e   :  { %v4581_v22 = vmax.f32 %v4579_v17, 0.0 }
 0x320   :  { %v5715_v25 = vpack.c.bf16 %v4581_v22, %v4580_v20 }
 0x322   :  { %v4593_v24 = vrot.slane %v5715_v25, %v6753_v52 }
 0x324   :  { %5716 = vst.sshfl [vmem:[%s8501_s3 + $0x6] sm:$0x5 pattern:$0x73625140] %v4593_v24 }

// kernel: autoencoder_forward.15
= control target key start
LH: loop header
LB: loop body
LE: loop exit
PB: predicated region body
PF: predicated region fallthrough
CT: control target
= control target key end

     0   :  { %vm110_vm0 = vcmask 523264   ;;  %s4361_s1 = inlined_call_operand.vmem [shape: bf16[9,64,128], index: 1, kind: input, shape index: {}]   ;;  %s4362_s0 = inlined_call_operand.vmem [shape: bf16[4,128,64], index: 0, kind: input, shape index: {}]   ;;  %s4363_s2 = inlined_call_operand.vmem [shape: f32[1,128], index: 2, kind: input, shape index: {}]   ;;  %s4364_s3 = inlined_call_operand.vmem [shape: f32[128,512], index: 3, kind: output, shape index: {}]  }
   0x1   :  { %v3248_v0 = vld [vmem:[%s4361_s1] sm:$0xff]   ;;  %v3250_v2 = vld [vmem:[%s4361_s1 + $0x8] sm:$0xff]   ;;  %v3252_v4 = vld [vmem:[%s4361_s1 + $0x10] sm:$0xff]  }
   0x2   :  { %v3639_v1 = vld [vmem:[%s4361_s1 + $0x20] sm:$0xff]   ;;  %2944 = vmatprep.subr.bf16.mxu0 %v3248_v0  ;;  %v3648_v3 = vld [vmem:[%s4361_s1 + $0x28] sm:$0xff]   ;;  %v3658_v5 = vld [vmem:[%s4361_s1 + $0x30] sm:$0xff]  }
   0x3   :  { %3160 = vmatprep.subr.bf16.mxu1 %v3639_v1  ;;  %2945 = vmatpush3.bf16.msra.mxu0 %v3248_v0  ;;  %v3254_v6 = vld [vmem:[%s4361_s1 + $0x18] sm:$0xff]   ;;  %v3256_v8 = vld [vmem:[%s4362_s0] sm:$0xff]   ;;  %v3258_v10 = vld [vmem:[%s4362_s0 + $0x8] sm:$0xff]  }
   0x4   :  { %3164 = vmatpush3.bf16.msra.mxu1 %v3639_v1  ;;  %2946 = vmatprep.subr.bf16.mxu0 %v3250_v2  ;;  %v3666_v7 = vld [vmem:[%s4361_s1 + $0x38] sm:$0xff]   ;;  %v3257_v9 = vld [vmem:[%s4362_s0 + $0x20] sm:$0xff]   ;;  %v3260_v13 = vld [vmem:[%s4362_s0 + $0x28] sm:$0xff]  }
   0x5   :  { %3161 = vmatprep.subr.bf16.mxu1 %v3648_v3  ;;  %2952 = vmatprep.mubr.msk.bf16.mxu0 %vm110_vm0, %v3256_v8  ;;  %v3259_v11 = vld [vmem:[%s4361_s1 + $0x40] sm:$0xff]   ;;  %v3262_v14 = vld [vmem:[%s4361_s1 + $0xc8] sm:$0xff]   ;;  %v3263_v15 = vld [vmem:[%s4362_s0 + $0x10] sm:$0xff]  }
   0x6   :  { %3008 = vmatprep.mubr.msk.bf16.mxu1 %vm110_vm0, %v3257_v9  ;;  %v3261_v12 = vld [vmem:[%s4361_s1 + $0xc0] sm:$0xff]   ;;  %v3264_v16 = vld [vmem:[%s4362_s0 + $0x30] sm:$0xff]   ;;  %v3266_v17 = vld [vmem:[%s4361_s1 + $0x48] sm:$0xff]  }
   0x7   :  { %2947 = vmatpush3.bf16.msra.mxu0 %v3250_v2  ;;  %v3265_v18 = vld [vmem:[%s4362_s0 + $0x18] sm:$0xff]   ;;  %v3268_v19 = vld [vmem:[%s4361_s1 + $0xd0] sm:$0xff]   ;;  %v3270_v22 = vld [vmem:[%s4362_s0 + $0x20] sm:$0xff]  }
   0x8   :  { %3165 = vmatpush3.bf16.msra.mxu1 %v3648_v3  ;;  %2948 = vmatprep.subr.bf16.mxu0 %v3252_v4  ;;  %v3267_v20 = vld [vmem:[%s4362_s0 + $0x38] sm:$0xff]   ;;  %v3271_v23 = vld [vmem:[%s4362_s0 + $0x40] sm:$0xff]   ;;  %v3273_v24 = vld [vmem:[%s4361_s1 + $0x50] sm:$0xff]  }
   0x9   :  { %3162 = vmatprep.subr.bf16.mxu1 %v3658_v5  ;;  %v3269_v21 = vld [vmem:[%s4361_s1 + $0xd8] sm:$0xff]   ;;  %v3272_v25 = vld [vmem:[%s4362_s0 + $0x28] sm:$0xff]   ;;  %v3275_v27 = vld [vmem:[%s4361_s1 + $0xa0] sm:$0xff]  }
   0xa   :  { %v3274_v26 = vld [vmem:[%s4362_s0 + $0x48] sm:$0xff]   ;;  %v3276_v28 = vld [vmem:[%s4362_s0 + $0x30] sm:$0xff]   ;;  %v3279_v29 = vld [vmem:[%s4361_s1 + $0x58] sm:$0xff]  }
   0xb   :  { %2949 = vmatpush3.bf16.msra.mxu0 %v3252_v4  ;;  %v3277_v30 = vld [vmem:[%s4362_s0 + $0x50] sm:$0xff]   ;;  %v3281_v31 = vld [vmem:[%s4361_s1 + $0xa8] sm:$0xff]   ;;  %v3278_v32 = vld [vmem:[%s4362_s0 + $0x38] sm:$0xff]  }
   0xc   :  { %3166 = vmatpush3.bf16.msra.mxu1 %v3658_v5  ;;  %2950 = vmatprep.subr.bf16.mxu0 %v3254_v6  ;;  %v3280_v33 = vld [vmem:[%s4362_s0 + $0x58] sm:$0xff]   ;;  %v3286_v34 = vld [vmem:[%s4361_s1 + $0xb0] sm:$0xff]   ;;  %v3282_v35 = vld [vmem:[%s4362_s0 + $0x40] sm:$0xff]  }
   0xd   :  { %3163 = vmatprep.subr.bf16.mxu1 %v3666_v7  ;;  %v3283_v36 = vld [vmem:[%s4362_s0 + $0x60] sm:$0xff]   ;;  %v3291_v37 = vld [vmem:[%s4361_s1 + $0xb8] sm:$0xff]   ;;  %v3284_v38 = vld [vmem:[%s4362_s0 + $0x48] sm:$0xff]  }
   0xe   :  { %v3285_v39 = vld [vmem:[%s4362_s0 + $0x68] sm:$0xff]   ;;  %v3287_v40 = vld [vmem:[%s4362_s0 + $0x50] sm:$0xff]   ;;  %v3296_v42 = vld [vmem:[%s4361_s1 + $0xe0] sm:$0xff]  }
   0xf   :  { %2951 = vmatpush3.bf16.msra.mxu0 %v3254_v6  ;;  %v3288_v41 = vld [vmem:[%s4362_s0 + $0x70] sm:$0xff]   ;;  %v3289_v43 = vld [vmem:[%s4362_s0 + $0x58] sm:$0xff]   ;;  %v3292_v45 = vld [vmem:[%s4362_s0 + $0x60] sm:$0xff]  }
  0x10   :  { %3167 = vmatpush3.bf16.msra.mxu1 %v3666_v7  ;;  %2968 = vmatprep.subr.bf16.mxu0 %v3259_v11  ;;  %v3290_v44 = vld [vmem:[%s4362_s0 + $0x78] sm:$0xff]   ;;  %v3293_v46 = vld [vmem:[%s4362_s0] sm:$0xff]   ;;  %v3294_v47 = vld [vmem:[%s4362_s0 + $0x68] sm:$0xff]  }
  0x11   :  { %3064 = vmatprep.subr.bf16.mxu1 %v3261_v12  ;;  %v3305_v48 = vld [vmem:[%s4361_s1 + $0x80] sm:$0xff]   ;;  %v3295_v49 = vld [vmem:[%s4362_s0 + $0x8] sm:$0xff]   ;;  %v3297_v50 = vld [vmem:[%s4362_s0 + $0x70] sm:$0xff]  }
  0x12   :  { %2953 = vmatmul.mubr.msk.bf16.vlgmr.msra.gmra.mrb[0].mxu0 %vm110_vm0, %v3258_v10  ;;  %v3298_v51 = vld [vmem:[%s4362_s0 + $0x10] sm:$0xff]   ;;  %v3301_v52 = vld [vmem:[%s4361_s1 + $0xe8] sm:$0xff]   ;;  %v3299_v53 = vld [vmem:[%s4362_s0 + $0x78] sm:$0xff]  }
  0x13   :  { %3009 = vmatmul.mubr.msk.bf16.vlgmr.msra.gmra.mrb[0].mxu1 %vm110_vm0, %v3260_v13  ;;  %2969 = vmatpush3.bf16.msra.mxu0 %v3259_v11  ;;  %v3307_v54 = vld [vmem:[%s4361_s1 + $0xf0] sm:$0xff]   ;;  %v3300_v55 = vld [vmem:[%s4362_s0 + $0x18] sm:$0xff]   ;;  %v3302_v56 = vld [vmem:[%s4362_s0] sm:$0xff]  }
  0x14   :  { %3065 = vmatpush3.bf16.msra.mxu1 %v3261_v12  ;;  %2956 = vmatprep.mubr.msk.bf16.mxu0 %vm110_vm0, %v3263_v15  ;;  %v3303_v57 = vld [vmem:[%s4362_s0 + $0x20] sm:$0xff]   ;;  %v3314_v58 = vld [vmem:[%s4361_s1 + $0xf8] sm:$0xff]   ;;  %v3304_v59 = vld [vmem:[%s4362_s0 + $0x8] sm:$0xff]  }
  0x15   :  { %3066 = vmatprep.subr.bf16.mxu1 %v3262_v14  ;;  %3012 = vmatprep.mubr.msk.bf16.mxu1 %vm110_vm0, %v3264_v16  ;;  %v3321_v60 = vld [vmem:[%s4361_s1 + $0x100] sm:$0xff]   ;;  %v3306_v61 = vld [vmem:[%s4362_s0 + $0x28] sm:$0xff]   ;;  %v3309_v63 = vld [vmem:[%s4362_s0 + $0x10] sm:$0xff]  }
  0x16   :  { %2970 = vmatprep.subr.bf16.mxu0 %v3266_v17  ;;  %v3308_v62 = vld [vmem:[%s4361_s1 + $0x88] sm:$0xff]   ;;  %v3310_v0 = vld [vmem:[%s4362_s0 + $0x30] sm:$0xff]   ;;  %v3311_v2 = vld [vmem:[%s4362_s0 + $0x18] sm:$0xff]  }
  0x17   :  { %2971 = vmatpush3.bf16.msra.mxu0 %v3266_v17  ;;  %v3315_v4 = vld [vmem:[%s4361_s1 + $0x98] sm:$0xff]   ;;  %v3317_v6 = vld [vmem:[%s4362_s0 + $0x80] sm:$0xff]   ;;  %v3318_v8 = vld [vmem:[%s4362_s0 + $0x88] sm:$0xff]  }
  0x18   :  { %3067 = vmatpush3.bf16.msra.mxu1 %v3262_v14  ;;  %2972 = vmatprep.subr.bf16.mxu0 %v3273_v24  ;;  %v3320_v9 = vld [vmem:[%s4362_s0 + $0x88] sm:$0xff]   ;;  %v3322_v10 = vld [vmem:[%s4362_s0 + $0x90] sm:$0xff]   ;;  %v3324_v14 = vld [vmem:[%s4362_s0 + $0x98] sm:$0xff]  }
  0x19   :  { %3068 = vmatprep.subr.bf16.mxu1 %v3268_v19  ;;  %v3323_v11 = vld [vmem:[%s4362_s0 + $0x90] sm:$0xff]   ;;  %v3325_v12 = vld [vmem:[%s4361_s1 + $0x68] sm:$0xff]   ;;  %v3326_v17 = vld [vmem:[%s4362_s0 + $0x98] sm:$0xff]  }
  0x1a   :  { %2957 = vmatmul.mubr.msk.bf16.gmra.mrb[4].mxu0 %vm110_vm0, %v3265_v18  ;;  %v3327_v13 = vld [vmem:[%s4361_s1 + $0x108] sm:$0xff]   ;;  %v3331_v15 = vld [vmem:[%s4361_s1 + $0x70] sm:$0xff]   ;;  %v3328_v18 = vld [vmem:[%s4362_s0 + $0xa0] sm:$0xff]  }
  0x1b   :  { %3013 = vmatmul.mubr.msk.bf16.gmra.mrb[4].mxu1 %vm110_vm0, %v3267_v20  ;;  %2960 = vmatprep.mubr.msk.bf16.mxu0 %vm110_vm0, %v3270_v22  ;;  %v3333_v16 = vld [vmem:[%s4361_s1 + $0x110] sm:$0xff]   ;;  %v3337_v20 = vld [vmem:[%s4361_s1 + $0x78] sm:$0xff]   ;;  %v3330_v22 = vld [vmem:[%s4362_s0 + $0xa8] sm:$0xff]  }
  0x1c   :  { %3069 = vmatpush3.bf16.msra.mxu1 %v3268_v19  ;;  %3072 = vmatprep.mubr.msk.bf16.mxu1 %vm110_vm0, %v3271_v23  ;;  %v3329_v19 = vld [vmem:[%s4362_s0 + $0xa0] sm:$0xff]   ;;  %v3332_v23 = vld [vmem:[%s4362_s0 + $0xa8] sm:$0xff]  }
  0x1d   :  { %3070 = vmatprep.subr.bf16.mxu1 %v3269_v21  ;;  %2973 = vmatpush3.bf16.msra.mxu0 %v3273_v24  ;;  %v3334_v24 = vld [vmem:[%s4362_s0 + $0xb0] sm:$0xff]  }
  0x1e   :  { %2974 = vmatprep.subr.bf16.mxu0 %v3279_v29 }
  0x20   :  { %3071 = vmatpush3.bf16.msra.mxu1 %v3269_v21  ;;  %v3339_v21 = vld [vmem:[%s4361_s1 + $0x118] sm:$0xff]  }
  0x21   :  { %3088 = vmatprep.subr.bf16.mxu1 %v3275_v27  ;;  %2975 = vmatpush3.bf16.msra.mxu0 %v3279_v29  ;;  %v3341_v29 = vld [vmem:[%s4362_s0 + $0xc0] sm:$0xff]  }
  0x22   :  { %2961 = vmatmul.mubr.msk.bf16.gmra.mrb[8].mxu0 %vm110_vm0, %v3272_v25  ;;  %2992 = vmatprep.subr.bf16.mxu0 %v3639_v1  ;;  %v3335_v25 = vld [vmem:[%s4362_s0 + $0xb0] sm:$0xff]  }
  0x23   :  { %3073 = vmatmul.mubr.msk.bf16.vlgmr.msra.gmra.mrb[8].mxu1 %vm110_vm0, %v3274_v26  ;;  %2964 = vmatprep.mubr.msk.bf16.mxu0 %vm110_vm0, %v3276_v28  ;;  %v3336_v26 = vld [vmem:[%s4362_s0 + $0xb8] sm:$0xff]   ;;  %v3340_v28 = vld [vmem:[%s4362_s0] sm:$0xff]  }
  0x24   :  { %3089 = vmatpush3.bf16.msra.mxu1 %v3275_v27  ;;  %3076 = vmatprep.mubr.msk.bf16.mxu1 %vm110_vm0, %v3277_v30  ;;  %v3338_v27 = vld [vmem:[%s4362_s0 + $0xb8] sm:$0xff]   ;;  %v3342_v30 = vld [vmem:[%s4362_s0 + $0x8] sm:$0xff]  }
  0x25   :  { %3090 = vmatprep.subr.bf16.mxu1 %v3281_v31 }
  0x28   :  { %3091 = vmatpush3.bf16.msra.mxu1 %v3281_v31  ;;  %v3343_v31 = vld [vmem:[%s4362_s0 + $0xc8] sm:$0xff]  }
  0x29   :  { %3092 = vmatprep.subr.bf16.mxu1 %v3286_v34 }
  0x2a   :  { %2965 = vmatmul.mubr.msk.bf16.gmra.mrb[12].mxu0 %vm110_vm0, %v3278_v32  ;;  %v3344_v32 = vld [vmem:[%s4362_s0 + $0x10] sm:$0xff]  }
  0x2b   :  { %3077 = vmatmul.mubr.msk.bf16.gmra.mrb[12].mxu1 %vm110_vm0, %v3280_v33  ;;  %2976 = vmatprep.mubr.msk.bf16.mxu0 %vm110_vm0, %v3282_v35  ;;  %v3345_v33 = vld [vmem:[%s4362_s0 + $0xd0] sm:$0xff]   ;;  %v3347_v35 = vld [vmem:[%s4362_s0 + $0xd8] sm:$0xff]  }
  0x2c   :  { %3080 = vmatprep.mubr.msk.bf16.mxu1 %vm110_vm0, %v3283_v36  ;;  %3093 = vmatpush3.bf16.msra.mxu1 %v3286_v34  ;;  %v3346_v34 = vld [vmem:[%s4362_s0 + $0x18] sm:$0xff]   ;;  %v3348_v36 = vld [vmem:[%s4362_s0 + $0x20] sm:$0xff]  }
  0x2d   :  { %3094 = vmatprep.subr.bf16.mxu1 %v3291_v37 }
  0x30   :  { %3095 = vmatpush3.bf16.msra.mxu1 %v3291_v37  ;;  %v3349_v37 = vld [vmem:[%s4362_s0 + $0xe0] sm:$0xff]  }
  0x31   :  { %3112 = vmatprep.subr.bf16.mxu1 %v3296_v42 }
  0x32   :  { %2977 = vmatmul.mubr.msk.bf16.vlgmr.msra.gmra.mrb[16].mxu0 %vm110_vm0, %v3284_v38  ;;  %v3350_v38 = vld [vmem:[%s4362_s0 + $0x28] sm:$0xff]  }
  0x33   :  { %3081 = vmatmul.mubr.msk.bf16.gmra.mrb[16].mxu1 %vm110_vm0, %v3285_v39  ;;  %2993 = vmatpush3.bf16.msra.mxu0 %v3639_v1  ;;  %v3312_v1 = vld [vmem:[%s4361_s1 + $0x90] sm:$0xff]   ;;  %v3351_v39 = vld [vmem:[%s4362_s0 + $0xe8] sm:$0xff]  }
  0x34   :  { %2980 = vmatprep.mubr.msk.bf16.mxu0 %vm110_vm0, %v3287_v40  ;;  %3084 = vmatprep.mubr.msk.bf16.mxu1 %vm110_vm0, %v3288_v41  ;;  %v3352_v40 = vld [vmem:[%s4362_s0 + $0x30] sm:$0xff]  }
  0x35   :  { %2994 = vmatprep.subr.bf16.mxu0 %v3648_v3  ;;  %v3353_v41 = vld [vmem:[%s4362_s0 + $0xf0] sm:$0xff]  }
  0x37   :  { %2995 = vmatpush3.bf16.msra.mxu0 %v3648_v3  ;;  %v3313_v3 = vld [vmem:[%s4362_s0 + $0x38] sm:$0xff]  }
  0x38   :  { %2996 = vmatprep.subr.bf16.mxu0 %v3658_v5 }
  0x3a   :  { %2981 = vmatmul.mubr.msk.bf16.gmra.mrb[20].mxu0 %vm110_vm0, %v3289_v43  ;;  %v3355_v43 = vld [vmem:[%s4362_s0 + $0xf8] sm:$0xff]  }
  0x3b   :  { %3085 = vmatmul.mubr.msk.bf16.gmra.mrb[20].mxu1 %vm110_vm0, %v3290_v44  ;;  %2984 = vmatprep.mubr.msk.bf16.mxu0 %vm110_vm0, %v3292_v45  ;;  %v4056_v44 = vld [vmem:[%s4363_s2] ss:$0 sm:$0xff] }
  0x3c   :  { %3096 = vmatprep.mubr.msk.bf16.mxu1 %vm110_vm0, %v3293_v46  ;;  %2997 = vmatpush3.bf16.msra.mxu0 %v3658_v5  ;;  %v3316_v5 = vld [vmem:[%s4362_s0 + $0x80] sm:$0xff]  }
  0x3d   :  { %2998 = vmatprep.subr.bf16.mxu0 %v3666_v7 }
  0x40   :  { %2999 = vmatpush3.bf16.msra.mxu0 %v3666_v7  ;;  %v3319_v7 = vld [vmem:[%s4361_s1 + $0x60] sm:$0xff]  }
  0x41   :  { %3016 = vmatprep.subr.bf16.mxu0 %v3305_v48 }
  0x42   :  { %2985 = vmatmul.mubr.msk.bf16.gmra.mrb[24].mxu0 %vm110_vm0, %v3294_v47 }
  0x43   :  { %3097 = vmatmul.mubr.msk.bf16.vlgmr.msra.gmra.mrb[8].mxu1 %vm110_vm0, %v3295_v49  ;;  %2988 = vmatprep.mubr.msk.bf16.mxu0 %vm110_vm0, %v3297_v50 }
  0x44   :  { %3113 = vmatpush3.bf16.msra.mxu1 %v3296_v42  ;;  %3100 = vmatprep.mubr.msk.bf16.mxu1 %vm110_vm0, %v3298_v51  ;;  %v3354_v42 = vld [vmem:[%s4362_s0 + $0x38] sm:$0xff]  }
  0x45   :  { %3114 = vmatprep.subr.bf16.mxu1 %v3301_v52 }
  0x48   :  { %3115 = vmatpush3.bf16.msra.mxu1 %v3301_v52 }
  0x49   :  { %3116 = vmatprep.subr.bf16.mxu1 %v3307_v54 }
  0x4a   :  { %2989 = vmatmul.mubr.msk.bf16.gmra.mrb[28].mxu0 %vm110_vm0, %v3299_v53 }
  0x4b   :  { %3101 = vmatmul.mubr.msk.bf16.gmra.mrb[12].mxu1 %vm110_vm0, %v3300_v55  ;;  %3000 = vmatprep.mubr.msk.bf16.mxu0 %vm110_vm0, %v3302_v56 }
  0x4c   :  { %3104 = vmatprep.mubr.msk.bf16.mxu1 %vm110_vm0, %v3303_v57  ;;  %3117 = vmatpush3.bf16.msra.mxu1 %v3307_v54 }
  0x4d   :  { %3118 = vmatprep.subr.bf16.mxu1 %v3314_v58 }
  0x50   :  { %3119 = vmatpush3.bf16.msra.mxu1 %v3314_v58 }
  0x51   :  { %3136 = vmatprep.subr.bf16.mxu1 %v3321_v60 }
  0x52   :  { %3001 = vmatmul.mubr.msk.bf16.vlgmr.msra.gmra.mrb[16].mxu0 %vm110_vm0, %v3304_v59 }
  0x53   :  { %3105 = vmatmul.mubr.msk.bf16.gmra.mrb[16].mxu1 %vm110_vm0, %v3306_v61  ;;  %3017 = vmatpush3.bf16.msra.mxu0 %v3305_v48 }
  0x54   :  { %3018 = vmatprep.subr.bf16.mxu0 %v3308_v62  ;;  %3004 = vmatprep.mubr.msk.bf16.mxu0 %vm110_vm0, %v3309_v63 }
  0x55   :  { %3108 = vmatprep.mubr.msk.bf16.mxu1 %vm110_vm0, %v3310_v0 }
  0x57   :  { %3019 = vmatpush3.bf16.msra.mxu0 %v3308_v62 }
  0x58   :  { %3020 = vmatprep.subr.bf16.mxu0 %v3312_v1 }
  0x5a   :  { %3005 = vmatmul.mubr.msk.bf16.gmra.mrb[20].mxu0 %vm110_vm0, %v3311_v2 }
  0x5b   :  { %3109 = vmatmul.mubr.msk.bf16.gmra.mrb[20].mxu1 %vm110_vm0, %v3313_v3  ;;  %3021 = vmatpush3.bf16.msra.mxu0 %v3312_v1 }
  0x5c   :  { %3022 = vmatprep.subr.bf16.mxu0 %v3315_v4  ;;  %3024 = vmatprep.mubr.msk.bf16.mxu0 %vm110_vm0, %v3316_v5 }
  0x5d   :  { %3120 = vmatprep.mubr.msk.bf16.mxu1 %vm110_vm0, %v3317_v6 }
  0x5f   :  { %3023 = vmatpush3.bf16.msra.mxu0 %v3315_v4 }
  0x60   :  { %3040 = vmatprep.subr.bf16.mxu0 %v3319_v7 }
  0x62   :  { %3025 = vmatmul.mubr.msk.bf16.vlgmr.msra.gmra.mrb[32].mxu0 %vm110_vm0, %v3318_v8 }
  0x63   :  { %3121 = vmatmul.mubr.msk.bf16.vlgmr.msra.gmra.mrb[8].mxu1 %vm110_vm0, %v3320_v9  ;;  %3041 = vmatpush3.bf16.msra.mxu0 %v3319_v7 }
  0x64   :  { %3137 = vmatpush3.bf16.msra.mxu1 %v3321_v60  ;;  %3028 = vmatprep.mubr.msk.bf16.mxu0 %vm110_vm0, %v3322_v10 }
  0x65   :  { %3124 = vmatprep.mubr.msk.bf16.mxu1 %vm110_vm0, %v3323_v11  ;;  %3042 = vmatprep.subr.bf16.mxu0 %v3325_v12 }
  0x66   :  { %3138 = vmatprep.subr.bf16.mxu1 %v3327_v13 }
  0x67   :  { %3043 = vmatpush3.bf16.msra.mxu0 %v3325_v12 }
  0x68   :  { %3139 = vmatpush3.bf16.msra.mxu1 %v3327_v13  ;;  %3044 = vmatprep.subr.bf16.mxu0 %v3331_v15 }
  0x69   :  { %3140 = vmatprep.subr.bf16.mxu1 %v3333_v16 }
  0x6a   :  { %3029 = vmatmul.mubr.msk.bf16.gmra.mrb[36].mxu0 %vm110_vm0, %v3324_v14 }
  0x6b   :  { %3125 = vmatmul.mubr.msk.bf16.gmra.mrb[12].mxu1 %vm110_vm0, %v3326_v17  ;;  %3032 = vmatprep.mubr.msk.bf16.mxu0 %vm110_vm0, %v3328_v18 }
  0x6c   :  { %3128 = vmatprep.mubr.msk.bf16.mxu1 %vm110_vm0, %v3329_v19  ;;  %3045 = vmatpush3.bf16.msra.mxu0 %v3331_v15 }
  0x6d   :  { %3141 = vmatpush3.bf16.msra.mxu1 %v3333_v16  ;;  %3046 = vmatprep.subr.bf16.mxu0 %v3337_v20 }
  0x6e   :  { %3142 = vmatprep.subr.bf16.mxu1 %v3339_v21 }
  0x70   :  { %3047 = vmatpush3.bf16.msra.mxu0 %v3337_v20 }
  0x71   :  { %3143 = vmatpush3.bf16.msra.mxu1 %v3339_v21 }
  0x72   :  { %3033 = vmatmul.mubr.msk.bf16.gmra.mrb[40].mxu0 %vm110_vm0, %v3330_v22 }
  0x73   :  { %3129 = vmatmul.mubr.msk.bf16.gmra.mrb[16].mxu1 %vm110_vm0, %v3332_v23  ;;  %3036 = vmatprep.mubr.msk.bf16.mxu0 %vm110_vm0, %v3334_v24 }
  0x74   :  { %3132 = vmatprep.mubr.msk.bf16.mxu1 %vm110_vm0, %v3335_v25 }
  0x7a   :  { %3037 = vmatmul.mubr.msk.bf16.gmra.mrb[44].mxu0 %vm110_vm0, %v3336_v26 }
  0x7b   :  { %3133 = vmatmul.mubr.msk.bf16.gmra.mrb[20].mxu1 %vm110_vm0, %v3338_v27  ;;  %3048 = vmatprep.mubr.msk.bf16.mxu0 %vm110_vm0, %v3340_v28 }
  0x7c   :  { %3144 = vmatprep.mubr.msk.bf16.mxu1 %vm110_vm0, %v3341_v29 }
  0x82   :  { %3049 = vmatmul.mubr.msk.bf16.vlgmr.msra.gmra.mrb[32].mxu0 %vm110_vm0, %v3342_v30 }
  0x83   :  { %3145 = vmatmul.mubr.msk.bf16.vlgmr.msra.gmra.mrb[8].mxu1 %vm110_vm0, %v3343_v31  ;;  %3052 = vmatprep.mubr.msk.bf16.mxu0 %vm110_vm0, %v3344_v32 }
  0x84   :  { %3148 = vmatprep.mubr.msk.bf16.mxu1 %vm110_vm0, %v3345_v33 }
  0x8a   :  { %3053 = vmatmul.mubr.msk.bf16.gmra.mrb[36].mxu0 %vm110_vm0, %v3346_v34 }
  0x8b   :  { %3149 = vmatmul.mubr.msk.bf16.gmra.mrb[12].mxu1 %vm110_vm0, %v3347_v35  ;;  %3056 = vmatprep.mubr.msk.bf16.mxu0 %vm110_vm0, %v3348_v36 }
  0x8c   :  { %3152 = vmatprep.mubr.msk.bf16.mxu1 %vm110_vm0, %v3349_v37 }
  0x92   :  { %3057 = vmatmul.mubr.msk.bf16.gmra.mrb[40].mxu0 %vm110_vm0, %v3350_v38 }
  0x93   :  { %3153 = vmatmul.mubr.msk.bf16.gmra.mrb[16].mxu1 %vm110_vm0, %v3351_v39  ;;  %3060 = vmatprep.mubr.msk.bf16.mxu0 %vm110_vm0, %v3352_v40 }
  0x94   :  { %3156 = vmatprep.mubr.msk.bf16.mxu1 %vm110_vm0, %v3353_v41 }
  0x9a   :  { %3061 = vmatmul.mubr.msk.bf16.gmra.mrb[44].mxu0 %vm110_vm0, %v3354_v42 }
  0x9b   :  { %3157 = vmatmul.mubr.msk.bf16.gmra.mrb[20].mxu1 %vm110_vm0, %v3355_v43 }
  0xe5   :  { %v2954_v45 = vpop.f32.mrb[0].mxu0 }
  0xe6   :  { %v178_v46 = vadd.f32 %v2954_v45, %v4056_v44  ;;  %v4059_v47 = vpop.f32.mrb[0].mxu1  ;;  %v169_v48 = vpop.f32.mrb[1].mxu0 }
  0xe7   :  { %v170_v49 = vadd.f32 %v4056_v44, %v169_v48  ;;  %v4062_v50 = vpop.f32.mrb[1].mxu1  ;;  %v2955_v51 = vpop.f32.mrb[2].mxu0 }
  0xe8   :  { %v2470_v52 = vmul.f32 -1.442695, %v178_v46  ;;  %v181_v53 = vadd.f32 %v2955_v51, %v4056_v44  ;;  %v4065_v54 = vpop.f32.mrb[2].mxu1  ;;  %v172_v55 = vpop.f32.mrb[3].mxu0 }
  0xe9   :  { %v2468_v56 = vmul.f32 -1.442695, %v170_v49  ;;  %v173_v57 = vadd.f32 %v4056_v44, %v172_v55  ;;  %v4068_v58 = vpop.f32.mrb[3].mxu1 }
  0xea   :  { %3356 = vpow2.f32 %v2470_v52  ;;  %v2471_v59 = vmul.f32 -1.442695, %v181_v53 }
  0xeb   :  { %3358 = vpow2.f32 %v2468_v56  ;;  %v2469_v60 = vmul.f32 -1.442695, %v173_v57 }
  0xec   :  { %3360 = vpow2.f32 %v2471_v59 }
  0xed   :  { %3362 = vpow2.f32 %v2469_v60  ;;  %v2958_v61 = vpop.f32.mrb[4].mxu0 }
  0xee   :  { %v194_v62 = vadd.f32 %v2958_v61, %v4056_v44  ;;  %v4071_v63 = vpop.f32.mrb[4].mxu1  ;;  %v185_v0 = vpop.f32.mrb[5].mxu0 }
  0xef   :  { %v186_v1 = vadd.f32 %v4056_v44, %v185_v0  ;;  %v4074_v2 = vpop.f32.mrb[5].mxu1  ;;  %v2959_v3 = vpop.f32.mrb[6].mxu0 }
  0xf0   :  { %v2474_v4 = vmul.f32 -1.442695, %v194_v62  ;;  %v197_v5 = vadd.f32 %v2959_v3, %v4056_v44  ;;  %v4077_v6 = vpop.f32.mrb[6].mxu1  ;;  %v188_v7 = vpop.f32.mrb[7].mxu0 }
  0xf1   :  { %v2472_v8 = vmul.f32 -1.442695, %v186_v1  ;;  %v189_v9 = vadd.f32 %v4056_v44, %v188_v7  ;;  %v4080_v10 = vpop.f32.mrb[7].mxu1 }
  0xf2   :  { %3364 = vpow2.f32 %v2474_v4  ;;  %v2475_v11 = vmul.f32 -1.442695, %v197_v5 }
  0xf3   :  { %3366 = vpow2.f32 %v2472_v8  ;;  %v2473_v12 = vmul.f32 -1.442695, %v189_v9 }
  0xf4   :  { %v3357_v13 = vpop.eup %3356  ;;  %3368 = vpow2.f32 %v2475_v11 }
  0xf5   :  { %v3359_v14 = vpop.eup %3358  ;;  %v282_v15 = vadd.f32 1.0, %v3357_v13  ;;  %3370 = vpow2.f32 %v2473_v12  ;;  %v2962_v16 = vpop.f32.mrb[8].mxu0 }
  0xf6   :  { %v3361_v17 = vpop.eup %3360  ;;  %v280_v18 = vadd.f32 1.0, %v3359_v14  ;;  %v210_v19 = vadd.f32 %v2962_v16, %v4056_v44  ;;  %v201_v20 = vpop.f32.mrb[9].mxu0 }
  0xf7   :  { %v3363_v21 = vpop.eup %3362  ;;  %3372 = vrcp.f32 %v282_v15  ;;  %v283_v22 = vadd.f32 1.0, %v3361_v17  ;;  %v202_v23 = vadd.f32 %v4056_v44, %v201_v20  ;;  %v2963_v24 = vpop.f32.mrb[10].mxu0 }
  0xf8   :  { %3374 = vrcp.f32 %v280_v18  ;;  %v281_v25 = vadd.f32 1.0, %v3363_v21  ;;  %v2478_v26 = vmul.f32 -1.442695, %v210_v19  ;;  %v213_v27 = vadd.f32 %v2963_v24, %v4056_v44  ;;  %v204_v28 = vpop.f32.mrb[11].mxu0 }
  0xf9   :  { %3376 = vrcp.f32 %v283_v22  ;;  %v2476_v29 = vmul.f32 -1.442695, %v202_v23  ;;  %v205_v30 = vadd.f32 %v4056_v44, %v204_v28 }
  0xfa   :  { %3378 = vrcp.f32 %v281_v25  ;;  %v2479_v31 = vmul.f32 -1.442695, %v213_v27 }
  0xfb   :  { %3380 = vpow2.f32 %v2478_v26  ;;  %v2477_v32 = vmul.f32 -1.442695, %v205_v30 }
  0xfc   :  { %v3365_v33 = vpop.eup %3364  ;;  %3382 = vpow2.f32 %v2476_v29 }
  0xfd   :  { %v3367_v34 = vpop.eup %3366  ;;  %v286_v35 = vadd.f32 1.0, %v3365_v33  ;;  %3384 = vpow2.f32 %v2479_v31  ;;  %v2966_v36 = vpop.f32.mrb[12].mxu0 }
  0xfe   :  { %v3369_v37 = vpop.eup %3368  ;;  %v284_v38 = vadd.f32 1.0, %v3367_v34  ;;  %3386 = vpow2.f32 %v2477_v32  ;;  %v226_v39 = vadd.f32 %v2966_v36, %v4056_v44  ;;  %v217_v40 = vpop.f32.mrb[13].mxu0 }
  0xff   :  { %v3371_v41 = vpop.eup %3370  ;;  %3388 = vrcp.f32 %v286_v35  ;;  %v287_v42 = vadd.f32 1.0, %v3369_v37  ;;  %v218_v43 = vadd.f32 %v4056_v44, %v217_v40  ;;  %v2967_v45 = vpop.f32.mrb[14].mxu0 }
 0x100   :  { %3390 = vrcp.f32 %v284_v38  ;;  %v285_v46 = vadd.f32 1.0, %v3371_v41  ;;  %v2482_v48 = vmul.f32 -1.442695, %v226_v39  ;;  %v229_v49 = vadd.f32 %v2967_v45, %v4056_v44  ;;  %v220_v51 = vpop.f32.mrb[15].mxu0 }
 0x101   :  { %v3373_v52 = vpop.eup %3372  ;;  %3392 = vrcp.f32 %v287_v42  ;;  %v2480_v53 = vmul.f32 -1.442695, %v218_v43  ;;  %v221_v55 = vadd.f32 %v4056_v44, %v220_v51 }
 0x102   :  { %v3375_v56 = vpop.eup %3374  ;;  %330 = vst [vmem:[%s4364_s3 + $0x40] sm:$0xff] %v3373_v52  ;;  %3394 = vrcp.f32 %v285_v46  ;;  %v2483_v57 = vmul.f32 -1.442695, %v229_v49 }
 0x103   :  { %v3377_v59 = vpop.eup %3376  ;;  %328 = vst [vmem:[%s4364_s3] sm:$0xff] %v3375_v56  ;;  %3396 = vpow2.f32 %v2482_v48  ;;  %v2481_v60 = vmul.f32 -1.442695, %v221_v55 }
 0x104   :  { %v3379_v61 = vpop.eup %3378  ;;  %331 = vst [vmem:[%s4364_s3 + $0x60] sm:$0xff] %v3377_v59  ;;  %3398 = vpow2.f32 %v2480_v53 }
 0x105   :  { %v3381_v62 = vpop.eup %3380  ;;  %329 = vst [vmem:[%s4364_s3 + $0x20] sm:$0xff] %v3379_v61  ;;  %3400 = vpow2.f32 %v2483_v57 }
 0x106   :  { %v3383_v0 = vpop.eup %3382  ;;  %v290_v1 = vadd.f32 1.0, %v3381_v62  ;;  %3402 = vpow2.f32 %v2481_v60 }
 0x107   :  { %v3385_v3 = vpop.eup %3384  ;;  %v288_v4 = vadd.f32 1.0, %v3383_v0 }
 0x108   :  { %v3387_v5 = vpop.eup %3386  ;;  %3404 = vrcp.f32 %v290_v1  ;;  %v291_v7 = vadd.f32 1.0, %v3385_v3 }
 0x109   :  { %v3389_v8 = vpop.eup %3388  ;;  %3406 = vrcp.f32 %v288_v4  ;;  %v289_v9 = vadd.f32 1.0, %v3387_v5 }
 0x10a   :  { %v3391_v11 = vpop.eup %3390  ;;  %334 = vst [vmem:[%s4364_s3 + $0xc0] sm:$0xff] %v3389_v8  ;;  %3408 = vrcp.f32 %v291_v7 }
 0x10b   :  { %v3393_v12 = vpop.eup %3392  ;;  %332 = vst [vmem:[%s4364_s3 + $0x80] sm:$0xff] %v3391_v11  ;;  %3410 = vrcp.f32 %v289_v9 }
 0x10c   :  { %v3395_v13 = vpop.eup %3394  ;;  %335 = vst [vmem:[%s4364_s3 + $0xe0] sm:$0xff] %v3393_v12 }
 0x10d   :  { %v3397_v14 = vpop.eup %3396  ;;  %333 = vst [vmem:[%s4364_s3 + $0xa0] sm:$0xff] %v3395_v13 }
 0x10e   :  { %v3399_v15 = vpop.eup %3398  ;;  %v294_v16 = vadd.f32 1.0, %v3397_v14 }
 0x10f   :  { %v3401_v17 = vpop.eup %3400  ;;  %v292_v18 = vadd.f32 1.0, %v3399_v15 }
 0x110   :  { %v3403_v19 = vpop.eup %3402  ;;  %3412 = vrcp.f32 %v294_v16  ;;  %v295_v20 = vadd.f32 1.0, %v3401_v17 }
 0x111   :  { %3414 = vrcp.f32 %v292_v18  ;;  %v293_v21 = vadd.f32 1.0, %v3403_v19 }
 0x112   :  { %v3405_v22 = vpop.eup %3404  ;;  %3416 = vrcp.f32 %v295_v20 }
 0x113   :  { %v3407_v23 = vpop.eup %3406  ;;  %338 = vst [vmem:[%s4364_s3 + $0x140] sm:$0xff] %v3405_v22  ;;  %3418 = vrcp.f32 %v293_v21 }
 0x114   :  { %v3409_v24 = vpop.eup %3408  ;;  %336 = vst [vmem:[%s4364_s3 + $0x100] sm:$0xff] %v3407_v23 }
 0x115   :  { %v3411_v25 = vpop.eup %3410  ;;  %339 = vst [vmem:[%s4364_s3 + $0x160] sm:$0xff] %v3409_v24  ;;  %v2986_v26 = vpop.f32.mrb[24].mxu0 }
 0x116   :  { %337 = vst [vmem:[%s4364_s3 + $0x120] sm:$0xff] %v3411_v25  ;;  %v743_v27 = vadd.f32 %v4059_v47, %v2986_v26  ;;  %v549_v28 = vpop.f32.mrb[25].mxu0 }
 0x117   :  { %v735_v29 = vadd.f32 %v4062_v50, %v549_v28  ;;  %v2987_v30 = vpop.f32.mrb[26].mxu0 }
 0x118   :  { %v775_v31 = vadd.f32 %v4056_v44, %v743_v27  ;;  %v746_v32 = vadd.f32 %v4065_v54, %v2987_v30  ;;  %v552_v33 = vpop.f32.mrb[27].mxu0 }
 0x119   :  { %v773_v34 = vadd.f32 %v4056_v44, %v735_v29  ;;  %v738_v35 = vadd.f32 %v4068_v58, %v552_v33 }
 0x11a   :  { %v3413_v36 = vpop.eup %3412  ;;  %v2566_v37 = vmul.f32 -1.442695, %v775_v31  ;;  %v776_v38 = vadd.f32 %v4056_v44, %v746_v32 }
 0x11b   :  { %v3415_v39 = vpop.eup %3414  ;;  %342 = vst [vmem:[%s4364_s3 + $0x1c0] sm:$0xff] %v3413_v36  ;;  %v2564_v47 = vmul.f32 -1.442695, %v773_v34  ;;  %v774_v50 = vadd.f32 %v4056_v44, %v738_v35 }
 0x11c   :  { %v3417_v40 = vpop.eup %3416  ;;  %340 = vst [vmem:[%s4364_s3 + $0x180] sm:$0xff] %v3415_v39  ;;  %3420 = vpow2.f32 %v2566_v37  ;;  %v2567_v54 = vmul.f32 -1.442695, %v776_v38 }
 0x11d   :  { %v3419_v58 = vpop.eup %3418  ;;  %343 = vst [vmem:[%s4364_s3 + $0x1e0] sm:$0xff] %v3417_v40  ;;  %3422 = vpow2.f32 %v2564_v47  ;;  %v2565_v41 = vmul.f32 -1.442695, %v774_v50  ;;  %v2990_v42 = vpop.f32.mrb[28].mxu0 }
 0x11e   :  { %341 = vst [vmem:[%s4364_s3 + $0x1a0] sm:$0xff] %v3419_v58  ;;  %3424 = vpow2.f32 %v2567_v54  ;;  %v759_v43 = vadd.f32 %v4071_v63, %v2990_v42  ;;  %v565_v45 = vpop.f32.mrb[29].mxu0 }
 0x11f   :  { %3426 = vpow2.f32 %v2565_v41  ;;  %v751_v46 = vadd.f32 %v4074_v2, %v565_v45  ;;  %v2991_v48 = vpop.f32.mrb[30].mxu0 }
 0x120   :  { %v779_v49 = vadd.f32 %v4056_v44, %v759_v43  ;;  %v762_v51 = vadd.f32 %v4077_v6, %v2991_v48  ;;  %v568_v52 = vpop.f32.mrb[31].mxu0 }
 0x121   :  { %v777_v53 = vadd.f32 %v4056_v44, %v751_v46  ;;  %v754_v55 = vadd.f32 %v4080_v10, %v568_v52 }
 0x122   :  { %v2570_v56 = vmul.f32 -1.442695, %v779_v49  ;;  %v780_v57 = vadd.f32 %v4056_v44, %v762_v51 }
 0x123   :  { %v2568_v59 = vmul.f32 -1.442695, %v777_v53  ;;  %v778_v63 = vadd.f32 %v4056_v44, %v754_v55 }
 0x124   :  { %3428 = vpow2.f32 %v2570_v56  ;;  %v2571_v60 = vmul.f32 -1.442695, %v780_v57 }
 0x125   :  { %3430 = vpow2.f32 %v2568_v59  ;;  %v2569_v2 = vmul.f32 -1.442695, %v778_v63  ;;  %v3002_v61 = vpop.f32.mrb[16].mxu0 }
 0x126   :  { %v3421_v62 = vpop.eup %3420  ;;  %3432 = vpow2.f32 %v2571_v60  ;;  %v767_v6 = vadd.f32 %v3002_v61, %v4056_v44  ;;  %v702_v0 = vpop.f32.mrb[17].mxu0 }
 0x127   :  { %v3423_v1 = vpop.eup %3422  ;;  %v839_v3 = vadd.f32 1.0, %v3421_v62  ;;  %3434 = vpow2.f32 %v2569_v2  ;;  %v765_v10 = vadd.f32 %v4056_v44, %v702_v0  ;;  %v3003_v4 = vpop.f32.mrb[18].mxu0 }
 0x128   :  { %v3425_v5 = vpop.eup %3424  ;;  %v837_v7 = vadd.f32 1.0, %v3423_v1  ;;  %v768_v8 = vadd.f32 %v3003_v4, %v4056_v44  ;;  %v705_v9 = vpop.f32.mrb[19].mxu0  ;;  %v2558_v13 = vmul.f32 -1.442695, %v767_v6 }
 0x129   :  { %v3427_v11 = vpop.eup %3426  ;;  %3436 = vrcp.f32 %v839_v3  ;;  %v840_v12 = vadd.f32 1.0, %v3425_v5  ;;  %v766_v14 = vadd.f32 %v4056_v44, %v705_v9  ;;  %v2556_v16 = vmul.f32 -1.442695, %v765_v10 }
 0x12a   :  { %3438 = vrcp.f32 %v837_v7  ;;  %v838_v15 = vadd.f32 1.0, %v3427_v11  ;;  %v2559_v17 = vmul.f32 -1.442695, %v768_v8 }
 0x12b   :  { %3440 = vrcp.f32 %v840_v12  ;;  %v2557_v18 = vmul.f32 -1.442695, %v766_v14 }
 0x12c   :  { %3442 = vrcp.f32 %v838_v15 }
 0x12d   :  { %3444 = vpow2.f32 %v2558_v13  ;;  %v3006_v19 = vpop.f32.mrb[20].mxu0 }
 0x12e   :  { %v3429_v20 = vpop.eup %3428  ;;  %3446 = vpow2.f32 %v2556_v16  ;;  %v771_v21 = vadd.f32 %v3006_v19, %v4056_v44  ;;  %v718_v22 = vpop.f32.mrb[21].mxu0 }
 0x12f   :  { %v3431_v23 = vpop.eup %3430  ;;  %v843_v24 = vadd.f32 1.0, %v3429_v20  ;;  %3448 = vpow2.f32 %v2559_v17  ;;  %v769_v25 = vadd.f32 %v4056_v44, %v718_v22  ;;  %v3007_v26 = vpop.f32.mrb[22].mxu0 }
 0x130   :  { %v3433_v27 = vpop.eup %3432  ;;  %v841_v28 = vadd.f32 1.0, %v3431_v23  ;;  %3450 = vpow2.f32 %v2557_v18  ;;  %v772_v29 = vadd.f32 %v3007_v26, %v4056_v44  ;;  %v721_v30 = vpop.f32.mrb[23].mxu0  ;;  %v2562_v33 = vmul.f32 -1.442695, %v771_v21 }
 0x131   :  { %v3435_v31 = vpop.eup %3434  ;;  %3452 = vrcp.f32 %v843_v24  ;;  %v844_v32 = vadd.f32 1.0, %v3433_v27  ;;  %v770_v34 = vadd.f32 %v4056_v44, %v721_v30  ;;  %v2560_v36 = vmul.f32 -1.442695, %v769_v25 }
 0x132   :  { %3454 = vrcp.f32 %v841_v28  ;;  %v842_v35 = vadd.f32 1.0, %v3435_v31  ;;  %v2563_v38 = vmul.f32 -1.442695, %v772_v29 }
 0x133   :  { %v3437_v37 = vpop.eup %3436  ;;  %3456 = vrcp.f32 %v844_v32  ;;  %v2561_v47 = vmul.f32 -1.442695, %v770_v34 }
 0x134   :  { %v3439_v39 = vpop.eup %3438  ;;  %887 = vst [vmem:[%s4364_s3 + $0x148] sm:$0xff] %v3437_v37  ;;  %3458 = vrcp.f32 %v842_v35 }
 0x135   :  { %v3441_v50 = vpop.eup %3440  ;;  %885 = vst [vmem:[%s4364_s3 + $0x108] sm:$0xff] %v3439_v39  ;;  %3460 = vpow2.f32 %v2562_v33 }
 0x136   :  { %v3443_v40 = vpop.eup %3442  ;;  %888 = vst [vmem:[%s4364_s3 + $0x168] sm:$0xff] %v3441_v50  ;;  %3462 = vpow2.f32 %v2560_v36 }
 0x137   :  { %v3445_v54 = vpop.eup %3444  ;;  %886 = vst [vmem:[%s4364_s3 + $0x128] sm:$0xff] %v3443_v40  ;;  %3464 = vpow2.f32 %v2563_v38 }
 0x138   :  { %v3447_v58 = vpop.eup %3446  ;;  %v831_v41 = vadd.f32 1.0, %v3445_v54  ;;  %3466 = vpow2.f32 %v2561_v47 }
 0x139   :  { %v3449_v42 = vpop.eup %3448  ;;  %v829_v43 = vadd.f32 1.0, %v3447_v58 }
 0x13a   :  { %v3451_v45 = vpop.eup %3450  ;;  %3468 = vrcp.f32 %v831_v41  ;;  %v832_v46 = vadd.f32 1.0, %v3449_v42 }
 0x13b   :  { %v3453_v48 = vpop.eup %3452  ;;  %3470 = vrcp.f32 %v829_v43  ;;  %v830_v49 = vadd.f32 1.0, %v3451_v45 }
 0x13c   :  { %v3455_v51 = vpop.eup %3454  ;;  %891 = vst [vmem:[%s4364_s3 + $0x1c8] sm:$0xff] %v3453_v48  ;;  %3472 = vrcp.f32 %v832_v46 }
 0x13d   :  { %v3457_v52 = vpop.eup %3456  ;;  %889 = vst [vmem:[%s4364_s3 + $0x188] sm:$0xff] %v3455_v51  ;;  %3474 = vrcp.f32 %v830_v49 }
 0x13e   :  { %v3459_v53 = vpop.eup %3458  ;;  %892 = vst [vmem:[%s4364_s3 + $0x1e8] sm:$0xff] %v3457_v52 }
 0x13f   :  { %v3461_v55 = vpop.eup %3460  ;;  %890 = vst [vmem:[%s4364_s3 + $0x1a8] sm:$0xff] %v3459_v53 }
 0x140   :  { %v3463_v56 = vpop.eup %3462  ;;  %v835_v57 = vadd.f32 1.0, %v3461_v55 }
 0x141   :  { %v3465_v59 = vpop.eup %3464  ;;  %v833_v63 = vadd.f32 1.0, %v3463_v56 }
 0x142   :  { %v3467_v60 = vpop.eup %3466  ;;  %3476 = vrcp.f32 %v835_v57  ;;  %v836_v2 = vadd.f32 1.0, %v3465_v59 }
 0x143   :  { %3478 = vrcp.f32 %v833_v63  ;;  %v834_v61 = vadd.f32 1.0, %v3467_v60 }
 0x144   :  { %v3469_v62 = vpop.eup %3468  ;;  %3480 = vrcp.f32 %v836_v2 }
 0x145   :  { %v3471_v6 = vpop.eup %3470  ;;  %879 = vst [vmem:[%s4364_s3 + $0x48] sm:$0xff] %v3469_v62  ;;  %3482 = vrcp.f32 %v834_v61 }
 0x146   :  { %v3473_v0 = vpop.eup %3472  ;;  %877 = vst [vmem:[%s4364_s3 + $0x8] sm:$0xff] %v3471_v6 }
 0x147   :  { %v3475_v1 = vpop.eup %3474  ;;  %880 = vst [vmem:[%s4364_s3 + $0x68] sm:$0xff] %v3473_v0 }
 0x148   :  { %878 = vst [vmem:[%s4364_s3 + $0x28] sm:$0xff] %v3475_v1 }
 0x14c   :  { %v3477_v3 = vpop.eup %3476 }
 0x14d   :  { %v3479_v10 = vpop.eup %3478  ;;  %883 = vst [vmem:[%s4364_s3 + $0xc8] sm:$0xff] %v3477_v3 }
 0x14e   :  { %v3481_v4 = vpop.eup %3480  ;;  %881 = vst [vmem:[%s4364_s3 + $0x88] sm:$0xff] %v3479_v10 }
 0x14f   :  { %v3483_v5 = vpop.eup %3482  ;;  %884 = vst [vmem:[%s4364_s3 + $0xe8] sm:$0xff] %v3481_v4 }
 0x150   :  { %882 = vst [vmem:[%s4364_s3 + $0xa8] sm:$0xff] %v3483_v5 }
 0x155   :  { %v3050_v7 = vpop.f32.mrb[32].mxu0 }
 0x156   :  { %v1316_v8 = vadd.f32 %v3050_v7, %v4056_v44  ;;  %v3146_v9 = vpop.f32.mrb[8].mxu1  ;;  %v1251_v11 = vpop.f32.mrb[33].mxu0 }
 0x157   :  { %v2317_v12 = vadd.f32 %v3146_v9, %v4056_v44  ;;  %v1314_v13 = vadd.f32 %v4056_v44, %v1251_v11  ;;  %v2236_v14 = vpop.f32.mrb[9].mxu1  ;;  %v3051_v15 = vpop.f32.mrb[34].mxu0 }
 0x158   :  { %v2646_v16 = vmul.f32 -1.442695, %v1316_v8  ;;  %v2315_v17 = vadd.f32 %v4056_v44, %v2236_v14  ;;  %v1317_v18 = vadd.f32 %v3051_v15, %v4056_v44  ;;  %v3147_v19 = vpop.f32.mrb[10].mxu1  ;;  %v1254_v20 = vpop.f32.mrb[35].mxu0 }
 0x159   :  { %v2822_v21 = vmul.f32 -1.442695, %v2317_v12  ;;  %v2644_v22 = vmul.f32 -1.442695, %v1314_v13  ;;  %v2318_v23 = vadd.f32 %v3147_v19, %v4056_v44  ;;  %v1315_v24 = vadd.f32 %v4056_v44, %v1254_v20  ;;  %v2239_v25 = vpop.f32.mrb[11].mxu1 }
 0x15a   :  { %3484 = vpow2.f32 %v2646_v16  ;;  %v2820_v26 = vmul.f32 -1.442695, %v2315_v17  ;;  %v2647_v27 = vmul.f32 -1.442695, %v1317_v18  ;;  %v2316_v28 = vadd.f32 %v4056_v44, %v2239_v25 }
 0x15b   :  { %3486 = vpow2.f32 %v2822_v21  ;;  %v2823_v29 = vmul.f32 -1.442695, %v2318_v23  ;;  %v2645_v30 = vmul.f32 -1.442695, %v1315_v24 }
 0x15c   :  { %3488 = vpow2.f32 %v2644_v22  ;;  %v2821_v31 = vmul.f32 -1.442695, %v2316_v28 }
 0x15d   :  { %3490 = vpow2.f32 %v2820_v26  ;;  %v3054_v32 = vpop.f32.mrb[36].mxu0 }
 0x15e   :  { %3492 = vpow2.f32 %v2647_v27  ;;  %v1320_v33 = vadd.f32 %v3054_v32, %v4056_v44  ;;  %v3150_v34 = vpop.f32.mrb[12].mxu1  ;;  %v1267_v35 = vpop.f32.mrb[37].mxu0 }
 0x15f   :  { %3494 = vpow2.f32 %v2823_v29  ;;  %v2321_v36 = vadd.f32 %v3150_v34, %v4056_v44  ;;  %v1318_v37 = vadd.f32 %v4056_v44, %v1267_v35  ;;  %v2252_v38 = vpop.f32.mrb[13].mxu1  ;;  %v3055_v39 = vpop.f32.mrb[38].mxu0 }
 0x160   :  { %3496 = vpow2.f32 %v2645_v30  ;;  %v2650_v47 = vmul.f32 -1.442695, %v1320_v33  ;;  %v2319_v50 = vadd.f32 %v4056_v44, %v2252_v38  ;;  %v1321_v40 = vadd.f32 %v3055_v39, %v4056_v44  ;;  %v3151_v54 = vpop.f32.mrb[14].mxu1  ;;  %v1270_v58 = vpop.f32.mrb[39].mxu0 }
 0x161   :  { %3498 = vpow2.f32 %v2821_v31  ;;  %v2826_v41 = vmul.f32 -1.442695, %v2321_v36  ;;  %v2648_v42 = vmul.f32 -1.442695, %v1318_v37  ;;  %v2255_v43 = vpop.f32.mrb[15].mxu1  ;;  %v2322_v12 = vadd.f32 %v3151_v54, %v4056_v44 }
 0x162   :  { %3500 = vpow2.f32 %v2650_v47  ;;  %v2824_v45 = vmul.f32 -1.442695, %v2319_v50  ;;  %v2651_v46 = vmul.f32 -1.442695, %v1321_v40  ;;  %v1319_v15 = vadd.f32 %v4056_v44, %v1270_v58 }
 0x163   :  { %3502 = vpow2.f32 %v2826_v41  ;;  %v2320_v19 = vadd.f32 %v4056_v44, %v2255_v43  ;;  %v2827_v29 = vmul.f32 -1.442695, %v2322_v12 }
 0x164   :  { %v3485_v48 = vpop.eup %3484  ;;  %3504 = vpow2.f32 %v2648_v42  ;;  %v2649_v35 = vmul.f32 -1.442695, %v1319_v15 }
 0x165   :  { %v3487_v49 = vpop.eup %3486  ;;  %v1380_v51 = vadd.f32 1.0, %v3485_v48  ;;  %3506 = vpow2.f32 %v2824_v45  ;;  %v3058_v52 = vpop.f32.mrb[40].mxu0  ;;  %v2825_v39 = vmul.f32 -1.442695, %v2320_v19 }
 0x166   :  { %v3489_v53 = vpop.eup %3488  ;;  %v2381_v55 = vadd.f32 1.0, %v3487_v49  ;;  %3508 = vpow2.f32 %v2651_v46  ;;  %v3154_v56 = vpop.f32.mrb[16].mxu1  ;;  %v1324_v24 = vadd.f32 %v3058_v52, %v4056_v44 }
 0x167   :  { %v1283_v57 = vpop.f32.mrb[41].mxu0  ;;  %v3491_v59 = vpop.eup %3490  ;;  %3510 = vrcp.f32 %v1380_v51  ;;  %v1378_v63 = vadd.f32 1.0, %v3489_v53  ;;  %v2325_v30 = vadd.f32 %v3154_v56, %v4056_v44 }
 0x168   :  { %v2268_v60 = vpop.f32.mrb[17].mxu1  ;;  %v3059_v2 = vpop.f32.mrb[42].mxu0  ;;  %3512 = vrcp.f32 %v2381_v55  ;;  %v2379_v62 = vadd.f32 1.0, %v3491_v59  ;;  %v1322_v36 = vadd.f32 %v4056_v44, %v1283_v57  ;;  %v2654_v40 = vmul.f32 -1.442695, %v1324_v24 }
 0x169   :  { %v3493_v61 = vpop.eup %3492  ;;  %v3155_v6 = vpop.f32.mrb[18].mxu1  ;;  %3514 = vrcp.f32 %v1378_v63  ;;  %v2323_v47 = vadd.f32 %v4056_v44, %v2268_v60  ;;  %v1325_v54 = vadd.f32 %v3059_v2, %v4056_v44  ;;  %v2830_v41 = vmul.f32 -1.442695, %v2325_v30 }
 0x16a   :  { %v4223_v0 = vpop.f32.mrb[43].mxu0  ;;  %v3495_v1 = vpop.eup %3494  ;;  %v1381_v3 = vadd.f32 1.0, %v3493_v61  ;;  %3516 = vrcp.f32 %v2379_v62  ;;  %v2326_v42 = vadd.f32 %v3155_v6, %v4056_v44  ;;  %v2652_v45 = vmul.f32 -1.442695, %v1322_v36 }
 0x16b   :  { %v4225_v10 = vpop.f32.mrb[19].mxu1  ;;  %v3497_v4 = vpop.eup %3496  ;;  %v2382_v5 = vadd.f32 1.0, %v3495_v1  ;;  %v1323_v46 = vadd.f32 %v4056_v44, %v4223_v0  ;;  %v2828_v49 = vmul.f32 -1.442695, %v2323_v47  ;;  %v2655_v53 = vmul.f32 -1.442695, %v1325_v54 }
 0x16c   :  { %v3499_v7 = vpop.eup %3498  ;;  %3518 = vrcp.f32 %v1381_v3  ;;  %v1379_v8 = vadd.f32 1.0, %v3497_v4  ;;  %v2324_v51 = vadd.f32 %v4056_v44, %v4225_v10  ;;  %v2831_v57 = vmul.f32 -1.442695, %v2326_v42 }
 0x16d   :  { %v3501_v9 = vpop.eup %3500  ;;  %3520 = vrcp.f32 %v2382_v5  ;;  %v2380_v11 = vadd.f32 1.0, %v3499_v7  ;;  %v3062_v16 = vpop.f32.mrb[44].mxu0  ;;  %v2653_v60 = vmul.f32 -1.442695, %v1323_v46 }
 0x16e   :  { %v3503_v13 = vpop.eup %3502  ;;  %3522 = vrcp.f32 %v1379_v8  ;;  %v1384_v14 = vadd.f32 1.0, %v3501_v9  ;;  %v3158_v20 = vpop.f32.mrb[20].mxu1  ;;  %v1328_v55 = vadd.f32 %v3062_v16, %v4056_v44  ;;  %v2829_v61 = vmul.f32 -1.442695, %v2324_v51 }
 0x16f   :  { %v3505_v17 = vpop.eup %3504  ;;  %3524 = vrcp.f32 %v2380_v11  ;;  %v2385_v18 = vadd.f32 1.0, %v3503_v13  ;;  %v4230_v21 = vpop.f32.mrb[45].mxu0  ;;  %v2329_v59 = vadd.f32 %v3158_v20, %v4056_v44 }
 0x170   :  { %v3507_v22 = vpop.eup %3506  ;;  %3526 = vrcp.f32 %v1384_v14  ;;  %v1382_v23 = vadd.f32 1.0, %v3505_v17  ;;  %v4233_v25 = vpop.f32.mrb[21].mxu1  ;;  %v2658_v6 = vmul.f32 -1.442695, %v1328_v55 }
 0x171   :  { %v4235_v26 = vpop.f32.mrb[46].mxu0  ;;  %v3509_v27 = vpop.eup %3508  ;;  %3528 = vrcp.f32 %v2385_v18  ;;  %v2383_v28 = vadd.f32 1.0, %v3507_v22  ;;  %v2834_v1 = vmul.f32 -1.442695, %v2329_v59 }
 0x172   :  { %v4238_v31 = vpop.f32.mrb[22].mxu1  ;;  %v4240_v32 = vpop.f32.mrb[47].mxu0  ;;  %3530 = vrcp.f32 %v1382_v23  ;;  %v1385_v34 = vadd.f32 1.0, %v3509_v27  ;;  %v1326_v23 = vadd.f32 %v4056_v44, %v4230_v21 }
 0x173   :  { %v3511_v33 = vpop.eup %3510  ;;  %v4243_v37 = vpop.f32.mrb[23].mxu1  ;;  %3532 = vrcp.f32 %v2383_v28  ;;  %v2327_v28 = vadd.f32 %v4056_v44, %v4233_v25 }
 0x174   :  { %v3513_v38 = vpop.eup %3512  ;;  %1428 = vst [vmem:[%s4364_s3 + $0x50] sm:$0xff] %v3511_v33  ;;  %3534 = vrcp.f32 %v1385_v34  ;;  %v3612_v33 = vld [vmem:[%s4363_s2] ss:$0 sm:$0xff]  ;;  %v2656_v47 = vmul.f32 -1.442695, %v1326_v23 }
 0x175   :  { %v3515_v50 = vpop.eup %3514  ;;  %2429 = vst [vmem:[%s4364_s3 + $0x58] sm:$0xff] %v3513_v38  ;;  %3536 = vpow2.f32 %v2827_v29  ;;  %v1329_v34 = vadd.f32 %v3612_v33, %v4235_v26  ;;  %v2330_v21 = vadd.f32 %v3612_v33, %v4238_v31  ;;  %v1327_v44 = vadd.f32 %v3612_v33, %v4240_v32 }
 0x176   :  { %v3517_v58 = vpop.eup %3516  ;;  %1426 = vst [vmem:[%s4364_s3 + $0x10] sm:$0xff] %v3515_v50  ;;  %3538 = vpow2.f32 %v2649_v35  ;;  %v2328_v54 = vadd.f32 %v3612_v33, %v4243_v37 }
 0x177   :  { %v3519_v43 = vpop.eup %3518  ;;  %2427 = vst [vmem:[%s4364_s3 + $0x18] sm:$0xff] %v3517_v58  ;;  %3540 = vpow2.f32 %v2825_v39  ;;  %v2659_v26 = vmul.f32 -1.442695, %v1329_v34  ;;  %v2835_v32 = vmul.f32 -1.442695, %v2330_v21 }
 0x178   :  { %v3521_v48 = vpop.eup %3520  ;;  %1429 = vst [vmem:[%s4364_s3 + $0x70] sm:$0xff] %v3519_v43  ;;  %3542 = vpow2.f32 %v2654_v40  ;;  %v2832_v40 = vmul.f32 -1.442695, %v2327_v28  ;;  %v2657_v37 = vmul.f32 -1.442695, %v1327_v44 }
 0x179   :  { %v3523_v52 = vpop.eup %3522  ;;  %2430 = vst [vmem:[%s4364_s3 + $0x78] sm:$0xff] %v3521_v48  ;;  %3544 = vpow2.f32 %v2830_v41  ;;  %v2833_v43 = vmul.f32 -1.442695, %v2328_v54 }
 0x17a   :  { %v3525_v56 = vpop.eup %3524  ;;  %1427 = vst [vmem:[%s4364_s3 + $0x30] sm:$0xff] %v3523_v52  ;;  %3546 = vpow2.f32 %v2652_v45 }
 0x17b   :  { %v3527_v63 = vpop.eup %3526  ;;  %2428 = vst [vmem:[%s4364_s3 + $0x38] sm:$0xff] %v3525_v56  ;;  %3548 = vpow2.f32 %v2828_v49 }
 0x17c   :  { %v3529_v2 = vpop.eup %3528  ;;  %1432 = vst [vmem:[%s4364_s3 + $0xd0] sm:$0xff] %v3527_v63  ;;  %3550 = vpow2.f32 %v2655_v53 }
 0x17d   :  { %v3531_v62 = vpop.eup %3530  ;;  %2433 = vst [vmem:[%s4364_s3 + $0xd8] sm:$0xff] %v3529_v2  ;;  %3552 = vpow2.f32 %v2831_v57 }
 0x17e   :  { %v3533_v0 = vpop.eup %3532  ;;  %1430 = vst [vmem:[%s4364_s3 + $0x90] sm:$0xff] %v3531_v62  ;;  %3554 = vpow2.f32 %v2653_v60 }
 0x17f   :  { %v3535_v3 = vpop.eup %3534  ;;  %2431 = vst [vmem:[%s4364_s3 + $0x98] sm:$0xff] %v3533_v0  ;;  %3556 = vpow2.f32 %v2829_v61 }
 0x180   :  { %v3537_v10 = vpop.eup %3536  ;;  %1433 = vst [vmem:[%s4364_s3 + $0xf0] sm:$0xff] %v3535_v3  ;;  %3558 = vpow2.f32 %v2658_v6 }
 0x181   :  { %v3539_v4 = vpop.eup %3538  ;;  %v2386_v5 = vadd.f32 1.0, %v3537_v10  ;;  %3560 = vpow2.f32 %v2834_v1 }
 0x182   :  { %v3541_v7 = vpop.eup %3540  ;;  %v1383_v8 = vadd.f32 1.0, %v3539_v4 }
 0x183   :  { %v3543_v9 = vpop.eup %3542  ;;  %3562 = vrcp.f32 %v2386_v5  ;;  %v2384_v11 = vadd.f32 1.0, %v3541_v7 }
 0x184   :  { %v3545_v12 = vpop.eup %3544  ;;  %3564 = vrcp.f32 %v1383_v8  ;;  %v1388_v13 = vadd.f32 1.0, %v3543_v9 }
 0x185   :  { %v3547_v14 = vpop.eup %3546  ;;  %3566 = vrcp.f32 %v2384_v11  ;;  %v2389_v15 = vadd.f32 1.0, %v3545_v12 }
 0x186   :  { %v3549_v16 = vpop.eup %3548  ;;  %3568 = vrcp.f32 %v1388_v13  ;;  %v1386_v17 = vadd.f32 1.0, %v3547_v14 }
 0x187   :  { %v3551_v18 = vpop.eup %3550  ;;  %3570 = vrcp.f32 %v2389_v15  ;;  %v2387_v19 = vadd.f32 1.0, %v3549_v16 }
 0x188   :  { %v3553_v20 = vpop.eup %3552  ;;  %3572 = vrcp.f32 %v1386_v17  ;;  %v1389_v22 = vadd.f32 1.0, %v3551_v18 }
 0x189   :  { %v3555_v24 = vpop.eup %3554  ;;  %3574 = vrcp.f32 %v2387_v19  ;;  %v2390_v27 = vadd.f32 1.0, %v3553_v20 }
 0x18a   :  { %v3557_v29 = vpop.eup %3556  ;;  %3576 = vrcp.f32 %v1389_v22  ;;  %v1387_v30 = vadd.f32 1.0, %v3555_v24 }
 0x18b   :  { %v3559_v35 = vpop.eup %3558  ;;  %3578 = vrcp.f32 %v2390_v27  ;;  %v2388_v36 = vadd.f32 1.0, %v3557_v29 }
 0x18c   :  { %v3561_v38 = vpop.eup %3560  ;;  %3580 = vrcp.f32 %v1387_v30  ;;  %v1392_v39 = vadd.f32 1.0, %v3559_v35 }
 0x18d   :  { %v3563_v25 = vpop.eup %3562  ;;  %3582 = vrcp.f32 %v2388_v36  ;;  %v2393_v50 = vadd.f32 1.0, %v3561_v38 }
 0x18e   :  { %v3565_v58 = vpop.eup %3564  ;;  %2434 = vst [vmem:[%s4364_s3 + $0xf8] sm:$0xff] %v3563_v25  ;;  %3584 = vrcp.f32 %v1392_v39 }
 0x18f   :  { %v3567_v31 = vpop.eup %3566  ;;  %1431 = vst [vmem:[%s4364_s3 + $0xb0] sm:$0xff] %v3565_v58  ;;  %3586 = vrcp.f32 %v2393_v50 }
 0x190   :  { %v3569_v41 = vpop.eup %3568  ;;  %2432 = vst [vmem:[%s4364_s3 + $0xb8] sm:$0xff] %v3567_v31  ;;  %3588 = vpow2.f32 %v2656_v47 }
 0x191   :  { %v3571_v42 = vpop.eup %3570  ;;  %1436 = vst [vmem:[%s4364_s3 + $0x150] sm:$0xff] %v3569_v41  ;;  %3590 = vpow2.f32 %v2832_v40 }
 0x192   :  { %v3573_v45 = vpop.eup %3572  ;;  %2437 = vst [vmem:[%s4364_s3 + $0x158] sm:$0xff] %v3571_v42  ;;  %3592 = vpow2.f32 %v2659_v26 }
 0x193   :  { %v3575_v46 = vpop.eup %3574  ;;  %1434 = vst [vmem:[%s4364_s3 + $0x110] sm:$0xff] %v3573_v45  ;;  %3594 = vpow2.f32 %v2835_v32 }
 0x194   :  { %v3577_v48 = vpop.eup %3576  ;;  %2435 = vst [vmem:[%s4364_s3 + $0x118] sm:$0xff] %v3575_v46  ;;  %3596 = vpow2.f32 %v2657_v37 }
 0x195   :  { %v3579_v49 = vpop.eup %3578  ;;  %1437 = vst [vmem:[%s4364_s3 + $0x170] sm:$0xff] %v3577_v48  ;;  %3598 = vpow2.f32 %v2833_v43 }
 0x196   :  { %v3581_v51 = vpop.eup %3580  ;;  %2438 = vst [vmem:[%s4364_s3 + $0x178] sm:$0xff] %v3579_v49 }
 0x197   :  { %v3583_v52 = vpop.eup %3582  ;;  %1435 = vst [vmem:[%s4364_s3 + $0x130] sm:$0xff] %v3581_v51 }
 0x198   :  { %v3585_v53 = vpop.eup %3584  ;;  %2436 = vst [vmem:[%s4364_s3 + $0x138] sm:$0xff] %v3583_v52 }
 0x199   :  { %v3587_v55 = vpop.eup %3586  ;;  %1440 = vst [vmem:[%s4364_s3 + $0x1d0] sm:$0xff] %v3585_v53 }
 0x19a   :  { %v3589_v56 = vpop.eup %3588  ;;  %2441 = vst [vmem:[%s4364_s3 + $0x1d8] sm:$0xff] %v3587_v55 }
 0x19b   :  { %v3591_v57 = vpop.eup %3590  ;;  %v1390_v59 = vadd.f32 1.0, %v3589_v56 }
 0x19c   :  { %v3593_v63 = vpop.eup %3592  ;;  %v2391_v60 = vadd.f32 1.0, %v3591_v57 }
 0x19d   :  { %v3595_v2 = vpop.eup %3594  ;;  %3600 = vrcp.f32 %v1390_v59  ;;  %v1393_v61 = vadd.f32 1.0, %v3593_v63 }
 0x19e   :  { %v3597_v62 = vpop.eup %3596  ;;  %3602 = vrcp.f32 %v2391_v60  ;;  %v2394_v6 = vadd.f32 1.0, %v3595_v2 }
 0x19f   :  { %v3599_v0 = vpop.eup %3598  ;;  %3604 = vrcp.f32 %v1393_v61  ;;  %v1391_v1 = vadd.f32 1.0, %v3597_v62 }
 0x1a0   :  { %3606 = vrcp.f32 %v2394_v6  ;;  %v2392_v3 = vadd.f32 1.0, %v3599_v0 }
 0x1a1   :  { %3608 = vrcp.f32 %v1391_v1 }
 0x1a2   :  { %3610 = vrcp.f32 %v2392_v3 }
 0x1a7   :  { %v3601_v10 = vpop.eup %3600 }
 0x1a8   :  { %v3603_v4 = vpop.eup %3602  ;;  %1438 = vst [vmem:[%s4364_s3 + $0x190] sm:$0xff] %v3601_v10 }
 0x1a9   :  { %v3605_v5 = vpop.eup %3604  ;;  %2439 = vst [vmem:[%s4364_s3 + $0x198] sm:$0xff] %v3603_v4 }
 0x1aa   :  { %v3607_v7 = vpop.eup %3606  ;;  %1441 = vst [vmem:[%s4364_s3 + $0x1f0] sm:$0xff] %v3605_v5 }
 0x1ab   :  { %v3609_v8 = vpop.eup %3608  ;;  %2442 = vst [vmem:[%s4364_s3 + $0x1f8] sm:$0xff] %v3607_v7 }
 0x1ac   :  { %v3611_v9 = vpop.eup %3610  ;;  %1439 = vst [vmem:[%s4364_s3 + $0x1b0] sm:$0xff] %v3609_v8 }
 0x1ad   :  { %2440 = vst [vmem:[%s4364_s3 + $0x1b8] sm:$0xff] %v3611_v9 }

</bundles_post_ra>
